<compile_context>
chip_gen: v7x
topology: tpu7x:2x2x1
jax: 0.10.0
libtpu: 0.0.40
codegen_flags: <defaults>
</compile_context>

<pallas_src>
import jax
import jax.numpy as jnp
import numpy as np
from jax.experimental import pallas as pl
from jax.experimental.pallas import tpu as pltpu


LAYER_DIMS = [(8288, 1024), (1024, 512), (512, 256), (256, 32), (32, 2)]
TN1 = 128  # layer-1 output (N) tile width


# ----------------------------------------------------------------------------
# Layer 1: y = relu(x @ W1 + b1). Grid over N tiles, full-K contraction per tile.
# ----------------------------------------------------------------------------
def _layer1_kernel(x_ref, w_ref, b_ref, o_ref):
    # x_ref: (B, K) resident; w_ref: (K, tn) contiguous weight panel; b_ref: (1, tn)
    y = jnp.dot(x_ref[...], w_ref[...], preferred_element_type=jnp.float32)
    o_ref[...] = jnp.maximum(y + b_ref[...], 0.0).astype(o_ref.dtype)


def layer1_pallas(x, w_panels, b2d):
    """x: (B, K) f32; w_panels: (n_tiles, K, tn) f32 (repacked once at init);
    b2d: (1, N) f32.  Returns relu(x @ W1 + b1) of shape (B, N)."""
    B, K = x.shape
    n_tiles, Kw, tn = w_panels.shape
    assert Kw == K
    N = n_tiles * tn

    cost = pl.CostEstimate(
        flops=2 * B * K * N,
        transcendentals=0,
        bytes_accessed=4 * (B * K + K * N + N + B * N),
    )

    return pl.pallas_call(
        _layer1_kernel,
        out_shape=jax.ShapeDtypeStruct((B, N), x.dtype),
        grid_spec=pltpu.PrefetchScalarGridSpec(
            num_scalar_prefetch=0,
            grid=(n_tiles,),
            in_specs=[
                # Activations: single resident VMEM block (index map constant).
                pl.BlockSpec((B, K), lambda j: (0, 0)),
                # Weight: one contiguous (K, tn) panel per grid step.
                pl.BlockSpec((None, K, tn), lambda j: (j, 0, 0)),
                # Bias tile.
                pl.BlockSpec((1, tn), lambda j: (0, j)),
            ],
            out_specs=pl.BlockSpec((B, tn), lambda j: (0, j)),
        ),
        compiler_params=pltpu.CompilerParams(
            dimension_semantics=("parallel",),  # megacore-shardable on v7x
        ),
        cost_estimate=cost,
    )(x, w_panels, b2d)


# ----------------------------------------------------------------------------
# Layers 2..5 fused into a single call; all weights/activations VMEM-resident.
# ----------------------------------------------------------------------------
def _tail_kernel(x_ref, *refs):
    o_ref = refs[-1]
    wb = refs[:-1]
    n_layers = len(wb) // 2
    h = x_ref[...]
    for i in range(n_layers):
        w_ref = wb[2 * i]
        b_ref = wb[2 * i + 1]
        h = jnp.dot(h, w_ref[...], preferred_element_type=jnp.float32) + b_ref[...]
        if i < n_layers - 1:  # ReLU after every layer except the last
            h = jnp.maximum(h, 0.0)
    o_ref[...] = h.astype(o_ref.dtype)


def tail_pallas(h, tail_params):
    """h: (B, 1024) activations after layer 1.  tail_params: [(w, b2d), ...]."""
    B = h.shape[0]
    n_out = tail_params[-1][0].shape[1]
    flat = []
    for w, b in tail_params:
        flat.append(w)
        flat.append(b)
    # No grid: every operand is a whole-array VMEM block (total ~2.7 MB).
    return pl.pallas_call(
        _tail_kernel,
        out_shape=jax.ShapeDtypeStruct((B, n_out), h.dtype),
    )(h, *flat)


# ----------------------------------------------------------------------------
# Parameter init / one-time repacking (outside the hot path).
# ----------------------------------------------------------------------------
def init_params(key):
    """Deterministic init mimicking nn.Linear's default U(-1/sqrt(fan_in), ...)."""
    params = []
    for fan_in, fan_out in LAYER_DIMS:
        key, kw, kb = jax.random.split(key, 3)
        bound = 1.0 / float(np.sqrt(fan_in))
        w = jax.random.uniform(kw, (fan_in, fan_out), jnp.float32, -bound, bound)
        b = jax.random.uniform(kb, (fan_out,), jnp.float32, -bound, bound)
        params.append((w, b))
    return params


def prepare_params(params):
    """One-time weight repacking: layer-1 weight -> contiguous (n_tiles, K, TN1)
    N-panels (so per-step DMAs are contiguous and no runtime pad is needed);
    all biases -> (1, N) row vectors."""
    (w1, b1), *rest = params
    K, N = w1.shape
    assert N % TN1 == 0
    n_tiles = N // TN1
    w1_panels = jnp.transpose(w1.reshape(K, n_tiles, TN1), (1, 0, 2))
    b1_2d = b1.reshape(1, N)
    tail = [(w, b.reshape(1, -1)) for (w, b) in rest]
    return (w1_panels, b1_2d), tail


def mlp_forward(x, prepared):
    (w1_panels, b1_2d), tail = prepared
    h = layer1_pallas(x, w1_panels, b1_2d)   # Linear(8288->1024) + ReLU
    return tail_pallas(h, tail)              # remaining 4 layers fused


def mlp_reference(x, params):
    n = len(params)
    for i, (w, b) in enumerate(params):
        x = jnp.dot(x, w, precision=jax.lax.Precision.HIGHEST) + b
        if i < n - 1:
            x = jnp.maximum(x, 0.0)
    return x


if __name__ == "__main__":
    key = jax.random.PRNGKey(0)
    kx, kp = jax.random.split(key)

    batch = 8
    x = jax.random.normal(kx, (batch, LAYER_DIMS[0][0]), jnp.float32)

    params = init_params(kp)
    prepared = prepare_params(params)  # one-time repack, off the hot path

    fwd = jax.jit(mlp_forward)
    out = fwd(x, prepared)
    out = jax.block_until_ready(out)

    ref = mlp_reference(x, params)
    assert out.shape == (batch, LAYER_DIMS[-1][1])
    np.testing.assert_allclose(np.asarray(out), np.asarray(ref), rtol=2e-3, atol=2e-3)

    print("KERNEL_OK")
</pallas_src>

<mosaic_0001>
module attributes {stable_mosaic.version = 11 : i64} {
  func.func @_tail_kernel(%arg0: memref<8x1024xf32, #tpu.memory_space<vmem>>, %arg1: memref<1024x512xf32, #tpu.memory_space<vmem>>, %arg2: memref<1x512xf32, #tpu.memory_space<vmem>>, %arg3: memref<512x256xf32, #tpu.memory_space<vmem>>, %arg4: memref<1x256xf32, #tpu.memory_space<vmem>>, %arg5: memref<256x32xf32, #tpu.memory_space<vmem>>, %arg6: memref<1x32xf32, #tpu.memory_space<vmem>>, %arg7: memref<32x2xf32, #tpu.memory_space<vmem>>, %arg8: memref<1x2xf32, #tpu.memory_space<vmem>>, %arg9: memref<8x2xf32, #tpu.memory_space<vmem>>) attributes {dimension_semantics = [], scalar_prefetch = 0 : i64, scratch_operands = 0 : i64, tpu.core_type = #tpu.core_type<tc>} {
    %c0 = arith.constant 0 : index
    %c0_0 = arith.constant 0 : index
    %0 = vector.load %arg0[%c0, %c0_0] : memref<8x1024xf32, #tpu.memory_space<vmem>>, vector<8x1024xf32>
    %c0_1 = arith.constant 0 : index
    %c0_2 = arith.constant 0 : index
    %1 = vector.load %arg1[%c0_1, %c0_2] : memref<1024x512xf32, #tpu.memory_space<vmem>>, vector<1024x512xf32>
    %cst = arith.constant dense<0.000000e+00> : vector<8x512xf32>
    %2 = tpu.matmul %0, %1, %cst {dimension_numbers = #tpu.dot_dimension_numbers<[1], [0], [0], [1], [0, 0, 1, 1], [], []>} : vector<8x1024xf32>, vector<1024x512xf32>, vector<8x512xf32> -> vector<8x512xf32>
    %c0_3 = arith.constant 0 : index
    %c0_4 = arith.constant 0 : index
    %3 = vector.load %arg2[%c0_3, %c0_4] : memref<1x512xf32, #tpu.memory_space<vmem>>, vector<1x512xf32>
    %4 = vector.broadcast %3 : vector<1x512xf32> to vector<8x512xf32>
    %5 = arith.addf %2, %4 : vector<8x512xf32>
    %cst_5 = arith.constant 0.000000e+00 : f32
    %6 = vector.broadcast %cst_5 : f32 to vector<8x512xf32>
    %7 = arith.maximumf %5, %6 : vector<8x512xf32>
    %c0_6 = arith.constant 0 : index
    %c0_7 = arith.constant 0 : index
    %8 = vector.load %arg3[%c0_6, %c0_7] : memref<512x256xf32, #tpu.memory_space<vmem>>, vector<512x256xf32>
    %cst_8 = arith.constant dense<0.000000e+00> : vector<8x256xf32>
    %9 = tpu.matmul %7, %8, %cst_8 {dimension_numbers = #tpu.dot_dimension_numbers<[1], [0], [0], [1], [0, 0, 1, 1], [], []>} : vector<8x512xf32>, vector<512x256xf32>, vector<8x256xf32> -> vector<8x256xf32>
    %c0_9 = arith.constant 0 : index
    %c0_10 = arith.constant 0 : index
    %10 = vector.load %arg4[%c0_9, %c0_10] : memref<1x256xf32, #tpu.memory_space<vmem>>, vector<1x256xf32>
    %11 = vector.broadcast %10 : vector<1x256xf32> to vector<8x256xf32>
    %12 = arith.addf %9, %11 : vector<8x256xf32>
    %cst_11 = arith.constant 0.000000e+00 : f32
    %13 = vector.broadcast %cst_11 : f32 to vector<8x256xf32>
    %14 = arith.maximumf %12, %13 : vector<8x256xf32>
    %c0_12 = arith.constant 0 : index
    %c0_13 = arith.constant 0 : index
    %15 = vector.load %arg5[%c0_12, %c0_13] : memref<256x32xf32, #tpu.memory_space<vmem>>, vector<256x32xf32>
    %cst_14 = arith.constant dense<0.000000e+00> : vector<8x32xf32>
    %16 = tpu.matmul %14, %15, %cst_14 {dimension_numbers = #tpu.dot_dimension_numbers<[1], [0], [0], [1], [0, 0, 1, 1], [], []>} : vector<8x256xf32>, vector<256x32xf32>, vector<8x32xf32> -> vector<8x32xf32>
    %c0_15 = arith.constant 0 : index
    %c0_16 = arith.constant 0 : index
    %17 = vector.load %arg6[%c0_15, %c0_16] : memref<1x32xf32, #tpu.memory_space<vmem>>, vector<1x32xf32>
    %18 = vector.broadcast %17 : vector<1x32xf32> to vector<8x32xf32>
    %19 = arith.addf %16, %18 : vector<8x32xf32>
    %cst_17 = arith.constant 0.000000e+00 : f32
    %20 = vector.broadcast %cst_17 : f32 to vector<8x32xf32>
    %21 = arith.maximumf %19, %20 : vector<8x32xf32>
    %c0_18 = arith.constant 0 : index
    %c0_19 = arith.constant 0 : index
    %22 = vector.load %arg7[%c0_18, %c0_19] : memref<32x2xf32, #tpu.memory_space<vmem>>, vector<32x2xf32>
    %cst_20 = arith.constant dense<0.000000e+00> : vector<8x2xf32>
    %23 = tpu.matmul %21, %22, %cst_20 {dimension_numbers = #tpu.dot_dimension_numbers<[1], [0], [0], [1], [0, 0, 1, 1], [], []>} : vector<8x32xf32>, vector<32x2xf32>, vector<8x2xf32> -> vector<8x2xf32>
    %c0_21 = arith.constant 0 : index
    %c0_22 = arith.constant 0 : index
    %24 = vector.load %arg8[%c0_21, %c0_22] : memref<1x2xf32, #tpu.memory_space<vmem>>, vector<1x2xf32>
    %25 = vector.broadcast %24 : vector<1x2xf32> to vector<8x2xf32>
    %26 = arith.addf %23, %25 : vector<8x2xf32>
    %c0_23 = arith.constant 0 : index
    %c0_24 = arith.constant 0 : index
    %27 = vector.load %arg9[%c0_23, %c0_24] : memref<8x2xf32, #tpu.memory_space<vmem>>, vector<8x2xf32>
    tpu.vector_store %arg9[%c0_23, %c0_24], %26 {strides = array<i32>} : memref<8x2xf32, #tpu.memory_space<vmem>>, vector<8x2xf32>,
    return
  }
}

module attributes {stable_mosaic.version = 11 : i64} {
  func.func @_layer1_kernel(%arg0: i32, %arg1: memref<8x8288xf32, #tpu.memory_space<vmem>>, %arg2: memref<1x8288x128xf32, #tpu.memory_space<vmem>>, %arg3: memref<1x128xf32, #tpu.memory_space<vmem>>, %arg4: memref<8x128xf32, #tpu.memory_space<vmem>>) attributes {dimension_semantics = [#tpu.dimension_semantics<parallel>], iteration_bounds = array<i64: 8>, scalar_prefetch = 0 : i64, scratch_operands = 0 : i64, tpu.core_type = #tpu.core_type<tc>, window_params = [{pipeline_mode = #tpu.pipeline_mode<synchronous>, transform_indices = @transform_0, window_bounds = array<i64: 8, 8288>}, {transform_indices = @transform_1, window_bounds = array<i64: 1, 8288, 128>}, {transform_indices = @transform_2, window_bounds = array<i64: 1, 128>}, {transform_indices = @transform_3, window_bounds = array<i64: 8, 128>}]} {
    %c0 = arith.constant 0 : index
    %c0_0 = arith.constant 0 : index
    %0 = vector.load %arg1[%c0, %c0_0] : memref<8x8288xf32, #tpu.memory_space<vmem>>, vector<8x8288xf32>
    %c0_1 = arith.constant 0 : index
    %c0_2 = arith.constant 0 : index
    %c0_3 = arith.constant 0 : index
    %1 = vector.load %arg2[%c0_1, %c0_2, %c0_3] : memref<1x8288x128xf32, #tpu.memory_space<vmem>>, vector<1x8288x128xf32>
    %2 = vector.shape_cast %1 : vector<1x8288x128xf32> to vector<8288x128xf32>
    %cst = arith.constant dense<0.000000e+00> : vector<8x128xf32>
    %3 = tpu.matmul %0, %2, %cst {dimension_numbers = #tpu.dot_dimension_numbers<[1], [0], [0], [1], [0, 0, 1, 1], [], []>} : vector<8x8288xf32>, vector<8288x128xf32>, vector<8x128xf32> -> vector<8x128xf32>
    %c0_4 = arith.constant 0 : index
    %c0_5 = arith.constant 0 : index
    %4 = vector.load %arg3[%c0_4, %c0_5] : memref<1x128xf32, #tpu.memory_space<vmem>>, vector<1x128xf32>
    %5 = vector.broadcast %4 : vector<1x128xf32> to vector<8x128xf32>
    %6 = arith.addf %3, %5 : vector<8x128xf32>
    %cst_6 = arith.constant 0.000000e+00 : f32
    %7 = vector.broadcast %cst_6 : f32 to vector<8x128xf32>
    %8 = arith.maximumf %6, %7 : vector<8x128xf32>
    %c0_7 = arith.constant 0 : index
    %c0_8 = arith.constant 0 : index
    %9 = vector.load %arg4[%c0_7, %c0_8] : memref<8x128xf32, #tpu.memory_space<vmem>>, vector<8x128xf32>
    tpu.vector_store %arg4[%c0_7, %c0_8], %8 {strides = array<i32>} : memref<8x128xf32, #tpu.memory_space<vmem>>, vector<8x128xf32>,
    return
  }
  func.func @transform_0(%arg0: i32) -> (i32, i32) {
    %c0_i32 = arith.constant 0 : i32
    %c0_i32_0 = arith.constant 0 : i32
    %c0_i32_1 = arith.constant 0 : i32
    return %c0_i32, %c0_i32_0 : i32, i32
  }
  func.func @transform_1(%arg0: i32) -> (i32, i32, i32) {
    %c0_i32 = arith.constant 0 : i32
    %c0_i32_0 = arith.constant 0 : i32
    %c0_i32_1 = arith.constant 0 : i32
    return %arg0, %c0_i32, %c0_i32_0 : i32, i32, i32
  }
  func.func @transform_2(%arg0: i32) -> (i32, i32) {
    %c0_i32 = arith.constant 0 : i32
    %c0_i32_0 = arith.constant 0 : i32
    return %c0_i32, %arg0 : i32, i32
  }
  func.func @transform_3(%arg0: i32) -> (i32, i32) {
    %c0_i32 = arith.constant 0 : i32
    %c0_i32_0 = arith.constant 0 : i32
    return %c0_i32, %arg0 : i32, i32
  }
}

</mosaic_0001>

<bundles_post_ra>
// kernel: mlp_forward.3
= control target key start
LH: loop header
LB: loop body
LE: loop exit
PB: predicated region body
PF: predicated region fallthrough
CT: control target
= control target key end

     0   :  { %vm2389_vm0 = vmmov 0   ;;  %vm1551_vm1 = vcmask 261120   ;;  %vm1625_vm2 = vcmask 15360   ;;  %s4564_s1 = inlined_call_operand.vmem [shape: f32[1024,512], index: 1, kind: input, shape index: {}]   ;;  %s4565_s0 = inlined_call_operand.vmem [shape: f32[8,1024], index: 0, kind: input, shape index: {}]   ;;  %s4566_s3 = inlined_call_operand.vmem [shape: f32[512,256], index: 3, kind: input, shape index: {}]   ;;  %s4567_s2 = inlined_call_operand.vmem [shape: f32[1,512], index: 2, kind: input, shape index: {}]   ;;  %s4568_s5 = inlined_call_operand.vmem [shape: f32[256,32], index: 5, kind: input, shape index: {}]   ;;  %s4569_s4 = inlined_call_operand.vmem [shape: f32[1,256], index: 4, kind: input, shape index: {}]   ;;  %s4570_s7 = inlined_call_operand.vmem [shape: f32[32,2], index: 7, kind: input, shape index: {}]   ;;  %s4571_s6 = inlined_call_operand.vmem [shape: f32[1,32], index: 6, kind: input, shape index: {}]   ;;  %s4572_s8 = inlined_call_operand.vmem [shape: f32[1,2], index: 8, kind: input, shape index: {}]   ;;  %s4573_s9 = inlined_call_operand.vmem [shape: f32[8,2], index: 9, kind: output, shape index: {}]  }
   0x1   :  { %v41_v0 = vld [vmem:[%s4564_s1 + $0x8] sm:$0xff]  ;;  %v40_v5 = vld [vmem:[%s4564_s1] sm:$0xff] }
   0x2   :  { %v45_v1 = vld [vmem:[%s4564_s1 + $0x28] sm:$0xff]  ;;  %v44_v6 = vld [vmem:[%s4564_s1 + $0x20] sm:$0xff] }
   0x3   :  { %v169_v2 = vld [vmem:[%s4564_s1 + $0x408] sm:$0xff]  ;;  %v1685_v3 = vpack.c.bf16 %v45_v1, %v41_v0  ;;  %v1687_v8 = vpack.c.bf16 %v44_v6, %v40_v5  ;;  %v168_v9 = vld [vmem:[%s4564_s1 + $0x400] sm:$0xff] }
   0x4   :  { %v173_v4 = vld [vmem:[%s4564_s1 + $0x428] sm:$0xff]  ;;  %v172_v10 = vld [vmem:[%s4564_s1 + $0x420] sm:$0xff] }
   0x5   :  { %v1749_v7 = vpack.c.bf16 %v173_v4, %v169_v2  ;;  %v49_v11 = vld [vmem:[%s4564_s1 + $0x48] sm:$0xff]  ;;  %1686 = vmatprep.subr.bf16.mxu1 %v1685_v3  ;;  %v1751_v12 = vpack.c.bf16 %v172_v10, %v168_v9  ;;  %v48_v18 = vld [vmem:[%s4564_s1 + $0x40] sm:$0xff] }
   0x6   :  { %v53_v13 = vld [vmem:[%s4564_s1 + $0x68] sm:$0xff]  ;;  %1688 = vmatpush1.bf16.msra.mxu1 %v1687_v8  ;;  %v52_v19 = vld [vmem:[%s4564_s1 + $0x60] sm:$0xff] }
   0x7   :  { %v177_v14 = vld [vmem:[%s4564_s1 + $0x448] sm:$0xff]  ;;  %1750 = vmatprep.subr.bf16.mxu0 %v1749_v7  ;;  %v1689_v16 = vpack.c.bf16 %v53_v13, %v49_v11  ;;  %v176_v20 = vld [vmem:[%s4564_s1 + $0x440] sm:$0xff]  ;;  %v1691_v21 = vpack.c.bf16 %v52_v19, %v48_v18 }
   0x8   :  { %v181_v15 = vld [vmem:[%s4564_s1 + $0x468] sm:$0xff]  ;;  %1752 = vmatpush1.bf16.msra.mxu0 %v1751_v12  ;;  %v180_v22 = vld [vmem:[%s4564_s1 + $0x460] sm:$0xff] }
   0x9   :  { %v1753_v17 = vpack.c.bf16 %v181_v15, %v177_v14  ;;  %v57_v23 = vld [vmem:[%s4564_s1 + $0x88] sm:$0xff]  ;;  %1690 = vmatprep.subr.bf16.mxu1 %v1689_v16  ;;  %v1755_v25 = vpack.c.bf16 %v180_v22, %v176_v20  ;;  %v56_v29 = vld [vmem:[%s4564_s1 + $0x80] sm:$0xff] }
   0xa   :  { %v61_v24 = vld [vmem:[%s4564_s1 + $0xa8] sm:$0xff]  ;;  %v60_v31 = vld [vmem:[%s4564_s1 + $0xa0] sm:$0xff]  ;;  %1692 = vmatpush1.bf16.msra.mxu1 %v1691_v21 }
   0xb   :  { %1754 = vmatprep.subr.bf16.mxu0 %v1753_v17  ;;  %v1693_v26 = vpack.c.bf16 %v61_v24, %v57_v23  ;;  %v185_v27 = vld [vmem:[%s4564_s1 + $0x488] sm:$0xff]  ;;  %v184_v32 = vld [vmem:[%s4564_s1 + $0x480] sm:$0xff]  ;;  %v1695_v34 = vpack.c.bf16 %v60_v31, %v56_v29 }
   0xc   :  { %v189_v28 = vld [vmem:[%s4564_s1 + $0x4a8] sm:$0xff]  ;;  %v188_v33 = vld [vmem:[%s4564_s1 + $0x4a0] sm:$0xff]  ;;  %1756 = vmatpush1.bf16.msra.mxu0 %v1755_v25 }
   0xd   :  { %v1757_v30 = vpack.c.bf16 %v189_v28, %v185_v27  ;;  %v65_v35 = vld [vmem:[%s4564_s1 + $0xc8] sm:$0xff]  ;;  %1694 = vmatprep.subr.bf16.mxu1 %v1693_v26  ;;  %v1759_v38 = vpack.c.bf16 %v188_v33, %v184_v32  ;;  %v64_v41 = vld [vmem:[%s4564_s1 + $0xc0] sm:$0xff] }
   0xe   :  { %v69_v36 = vld [vmem:[%s4564_s1 + $0xe8] sm:$0xff]  ;;  %v68_v42 = vld [vmem:[%s4564_s1 + $0xe0] sm:$0xff]  ;;  %1696 = vmatpush1.bf16.msra.mxu1 %v1695_v34 }
   0xf   :  { %v193_v37 = vld [vmem:[%s4564_s1 + $0x4c8] sm:$0xff]  ;;  %v1697_v39 = vpack.c.bf16 %v69_v36, %v65_v35  ;;  %1758 = vmatprep.subr.bf16.mxu0 %v1757_v30  ;;  %v192_v44 = vld [vmem:[%s4564_s1 + $0x4c0] sm:$0xff]  ;;  %v1699_v50 = vpack.c.bf16 %v68_v42, %v64_v41 }
  0x10   :  { %v197_v40 = vld [vmem:[%s4564_s1 + $0x4e8] sm:$0xff]  ;;  %v196_v45 = vld [vmem:[%s4564_s1 + $0x4e0] sm:$0xff]  ;;  %1760 = vmatpush1.bf16.msra.mxu0 %v1759_v38 }
  0x11   :  { %v1761_v43 = vpack.c.bf16 %v197_v40, %v193_v37  ;;  %v73_v46 = vld [vmem:[%s4564_s1 + $0x108] sm:$0xff]  ;;  %1698 = vmatprep.subr.bf16.mxu1 %v1697_v39  ;;  %v1763_v51 = vpack.c.bf16 %v196_v45, %v192_v44  ;;  %v72_v53 = vld [vmem:[%s4564_s1 + $0x100] sm:$0xff] }
  0x12   :  { %v77_v47 = vld [vmem:[%s4564_s1 + $0x128] sm:$0xff]  ;;  %v76_v54 = vld [vmem:[%s4564_s1 + $0x120] sm:$0xff]  ;;  %1700 = vmatpush1.bf16.msra.mxu1 %v1699_v50 }
  0x13   :  { %v201_v48 = vld [vmem:[%s4564_s1 + $0x508] sm:$0xff]  ;;  %v1701_v52 = vpack.c.bf16 %v77_v47, %v73_v46  ;;  %v200_v55 = vld [vmem:[%s4564_s1 + $0x500] sm:$0xff]  ;;  %1762 = vmatprep.subr.bf16.mxu0 %v1761_v43  ;;  %v1703_v62 = vpack.c.bf16 %v76_v54, %v72_v53 }
  0x14   :  { %v205_v49 = vld [vmem:[%s4564_s1 + $0x528] sm:$0xff]  ;;  %v204_v57 = vld [vmem:[%s4564_s1 + $0x520] sm:$0xff]  ;;  %1764 = vmatpush1.bf16.msra.mxu0 %v1763_v51 }
  0x15   :  { %v1765_v56 = vpack.c.bf16 %v205_v49, %v201_v48  ;;  %v81_v58 = vld [vmem:[%s4564_s1 + $0x148] sm:$0xff]  ;;  %1702 = vmatprep.subr.bf16.mxu1 %v1701_v52  ;;  %v1767_v63 = vpack.c.bf16 %v204_v57, %v200_v55  ;;  %v80_v1 = vld [vmem:[%s4564_s1 + $0x140] sm:$0xff] }
  0x16   :  { %v85_v59 = vld [vmem:[%s4564_s1 + $0x168] sm:$0xff]  ;;  %v84_v2 = vld [vmem:[%s4564_s1 + $0x160] sm:$0xff]  ;;  %1704 = vmatpush1.bf16.msra.mxu1 %v1703_v62 }
  0x17   :  { %v209_v60 = vld [vmem:[%s4564_s1 + $0x548] sm:$0xff]  ;;  %v1705_v0 = vpack.c.bf16 %v85_v59, %v81_v58  ;;  %v208_v3 = vld [vmem:[%s4564_s1 + $0x540] sm:$0xff]  ;;  %1766 = vmatprep.subr.bf16.mxu0 %v1765_v56  ;;  %v1707_v10 = vpack.c.bf16 %v84_v2, %v80_v1 }
  0x18   :  { %v213_v61 = vld [vmem:[%s4564_s1 + $0x568] sm:$0xff]  ;;  %v212_v5 = vld [vmem:[%s4564_s1 + $0x560] sm:$0xff]  ;;  %1768 = vmatpush1.bf16.msra.mxu0 %v1767_v63 }
  0x19   :  { %v1769_v4 = vpack.c.bf16 %v213_v61, %v209_v60  ;;  %v89_v6 = vld [vmem:[%s4564_s1 + $0x188] sm:$0xff]  ;;  %1706 = vmatprep.subr.bf16.mxu1 %v1705_v0  ;;  %v1771_v11 = vpack.c.bf16 %v212_v5, %v208_v3  ;;  %v88_v13 = vld [vmem:[%s4564_s1 + $0x180] sm:$0xff] }
  0x1a   :  { %v93_v7 = vld [vmem:[%s4564_s1 + $0x1a8] sm:$0xff]  ;;  %v92_v14 = vld [vmem:[%s4564_s1 + $0x1a0] sm:$0xff]  ;;  %1708 = vmatpush1.bf16.msra.mxu1 %v1707_v10 }
  0x1b   :  { %v217_v8 = vld [vmem:[%s4564_s1 + $0x588] sm:$0xff]  ;;  %v1709_v12 = vpack.c.bf16 %v93_v7, %v89_v6  ;;  %v216_v15 = vld [vmem:[%s4564_s1 + $0x580] sm:$0xff]  ;;  %1770 = vmatprep.subr.bf16.mxu0 %v1769_v4  ;;  %v1711_v22 = vpack.c.bf16 %v92_v14, %v88_v13 }
  0x1c   :  { %v221_v9 = vld [vmem:[%s4564_s1 + $0x5a8] sm:$0xff]  ;;  %v220_v17 = vld [vmem:[%s4564_s1 + $0x5a0] sm:$0xff]  ;;  %1772 = vmatpush1.bf16.msra.mxu0 %v1771_v11 }
  0x1d   :  { %v1773_v16 = vpack.c.bf16 %v221_v9, %v217_v8  ;;  %v97_v18 = vld [vmem:[%s4564_s1 + $0x1c8] sm:$0xff]  ;;  %1710 = vmatprep.subr.bf16.mxu1 %v1709_v12  ;;  %v1775_v23 = vpack.c.bf16 %v220_v17, %v216_v15  ;;  %v96_v25 = vld [vmem:[%s4564_s1 + $0x1c0] sm:$0xff] }
  0x1e   :  { %v101_v19 = vld [vmem:[%s4564_s1 + $0x1e8] sm:$0xff]  ;;  %v100_v26 = vld [vmem:[%s4564_s1 + $0x1e0] sm:$0xff]  ;;  %1712 = vmatpush1.bf16.msra.mxu1 %v1711_v22 }
  0x1f   :  { %v225_v20 = vld [vmem:[%s4564_s1 + $0x5c8] sm:$0xff]  ;;  %v1713_v24 = vpack.c.bf16 %v101_v19, %v97_v18  ;;  %v224_v27 = vld [vmem:[%s4564_s1 + $0x5c0] sm:$0xff]  ;;  %1774 = vmatprep.subr.bf16.mxu0 %v1773_v16  ;;  %v1715_v34 = vpack.c.bf16 %v100_v26, %v96_v25  ;;  %v2750_v19 = vld [vmem:[%s4565_s0 + $0x18] sm:$0xff] }
  0x20   :  { %v229_v21 = vld [vmem:[%s4564_s1 + $0x5e8] sm:$0xff]  ;;  %v228_v29 = vld [vmem:[%s4564_s1 + $0x5e0] sm:$0xff]  ;;  %1776 = vmatpush1.bf16.msra.mxu0 %v1775_v23  ;;  %709 = vmatprep.mubr.f32.mxu0 %v2750_v19 }
  0x21   :  { %v1777_v28 = vpack.c.bf16 %v229_v21, %v225_v20  ;;  %v105_v30 = vld [vmem:[%s4564_s1 + $0x208] sm:$0xff]  ;;  %1714 = vmatprep.subr.bf16.mxu1 %v1713_v24  ;;  %v1779_v35 = vpack.c.bf16 %v228_v29, %v224_v27  ;;  %v104_v37 = vld [vmem:[%s4564_s1 + $0x200] sm:$0xff] }
  0x22   :  { %v109_v31 = vld [vmem:[%s4564_s1 + $0x228] sm:$0xff]  ;;  %v108_v38 = vld [vmem:[%s4564_s1 + $0x220] sm:$0xff]  ;;  %1716 = vmatpush1.bf16.msra.mxu1 %v1715_v34 }
  0x23   :  { %v233_v32 = vld [vmem:[%s4564_s1 + $0x608] sm:$0xff]  ;;  %v1717_v36 = vpack.c.bf16 %v109_v31, %v105_v30  ;;  %v232_v39 = vld [vmem:[%s4564_s1 + $0x600] sm:$0xff]  ;;  %1778 = vmatprep.subr.bf16.mxu0 %v1777_v28  ;;  %v1719_v46 = vpack.c.bf16 %v108_v38, %v104_v37 }
  0x24   :  { %v237_v33 = vld [vmem:[%s4564_s1 + $0x628] sm:$0xff]  ;;  %v236_v41 = vld [vmem:[%s4564_s1 + $0x620] sm:$0xff]  ;;  %1780 = vmatpush1.bf16.msra.mxu0 %v1779_v35 }
  0x25   :  { %v1781_v40 = vpack.c.bf16 %v237_v33, %v233_v32  ;;  %v113_v42 = vld [vmem:[%s4564_s1 + $0x248] sm:$0xff]  ;;  %1718 = vmatprep.subr.bf16.mxu1 %v1717_v36  ;;  %v1783_v47 = vpack.c.bf16 %v236_v41, %v232_v39  ;;  %v112_v49 = vld [vmem:[%s4564_s1 + $0x240] sm:$0xff] }
  0x26   :  { %v117_v43 = vld [vmem:[%s4564_s1 + $0x268] sm:$0xff]  ;;  %v116_v50 = vld [vmem:[%s4564_s1 + $0x260] sm:$0xff]  ;;  %1720 = vmatpush1.bf16.msra.mxu1 %v1719_v46 }
  0x27   :  { %v241_v44 = vld [vmem:[%s4564_s1 + $0x648] sm:$0xff]  ;;  %v1721_v48 = vpack.c.bf16 %v117_v43, %v113_v42  ;;  %v240_v51 = vld [vmem:[%s4564_s1 + $0x640] sm:$0xff]  ;;  %1782 = vmatprep.subr.bf16.mxu0 %v1781_v40  ;;  %v1723_v58 = vpack.c.bf16 %v116_v50, %v112_v49 }
  0x28   :  { %v245_v45 = vld [vmem:[%s4564_s1 + $0x668] sm:$0xff]  ;;  %v244_v53 = vld [vmem:[%s4564_s1 + $0x660] sm:$0xff]  ;;  %1784 = vmatpush1.bf16.msra.mxu0 %v1783_v47 }
  0x29   :  { %v1785_v52 = vpack.c.bf16 %v245_v45, %v241_v44  ;;  %v121_v54 = vld [vmem:[%s4564_s1 + $0x288] sm:$0xff]  ;;  %1722 = vmatprep.subr.bf16.mxu1 %v1721_v48  ;;  %v1787_v59 = vpack.c.bf16 %v244_v53, %v240_v51  ;;  %v120_v61 = vld [vmem:[%s4564_s1 + $0x280] sm:$0xff] }
  0x2a   :  { %v125_v55 = vld [vmem:[%s4564_s1 + $0x2a8] sm:$0xff]  ;;  %v124_v62 = vld [vmem:[%s4564_s1 + $0x2a0] sm:$0xff]  ;;  %1724 = vmatpush1.bf16.msra.mxu1 %v1723_v58 }
  0x2b   :  { %v249_v56 = vld [vmem:[%s4564_s1 + $0x688] sm:$0xff]  ;;  %v1725_v60 = vpack.c.bf16 %v125_v55, %v121_v54  ;;  %v248_v63 = vld [vmem:[%s4564_s1 + $0x680] sm:$0xff]  ;;  %1786 = vmatprep.subr.bf16.mxu0 %v1785_v52  ;;  %v1727_v6 = vpack.c.bf16 %v124_v62, %v120_v61 }
  0x2c   :  { %v253_v57 = vld [vmem:[%s4564_s1 + $0x6a8] sm:$0xff]  ;;  %v252_v1 = vld [vmem:[%s4564_s1 + $0x6a0] sm:$0xff]  ;;  %1788 = vmatpush1.bf16.msra.mxu0 %v1787_v59 }
  0x2d   :  { %v1789_v0 = vpack.c.bf16 %v253_v57, %v249_v56  ;;  %v129_v2 = vld [vmem:[%s4564_s1 + $0x2c8] sm:$0xff]  ;;  %v128_v7 = vld [vmem:[%s4564_s1 + $0x2c0] sm:$0xff]  ;;  %1726 = vmatprep.subr.bf16.mxu1 %v1725_v60  ;;  %v1791_v8 = vpack.c.bf16 %v252_v1, %v248_v63  ;;  %v47_v1 = vld [vmem:[%s4564_s1 + $0x38] sm:$0xff] }
  0x2e   :  { %v133_v3 = vld [vmem:[%s4564_s1 + $0x2e8] sm:$0xff]  ;;  %v132_v10 = vld [vmem:[%s4564_s1 + $0x2e0] sm:$0xff]  ;;  %1728 = vmatpush1.bf16.msra.mxu1 %v1727_v6 }
  0x2f   :  { %v257_v4 = vld [vmem:[%s4564_s1 + $0x6c8] sm:$0xff]  ;;  %v1729_v9 = vpack.c.bf16 %v133_v3, %v129_v2  ;;  %v256_v11 = vld [vmem:[%s4564_s1 + $0x6c0] sm:$0xff]  ;;  %1790 = vmatprep.subr.bf16.mxu0 %v1789_v0  ;;  %v1731_v20 = vpack.c.bf16 %v132_v10, %v128_v7  ;;  %v43_v0 = vld [vmem:[%s4564_s1 + $0x18] sm:$0xff] }
  0x30   :  { %v261_v5 = vld [vmem:[%s4564_s1 + $0x6e8] sm:$0xff]  ;;  %v260_v12 = vld [vmem:[%s4564_s1 + $0x6e0] sm:$0xff]  ;;  %1792 = vmatpush1.bf16.msra.mxu0 %v1791_v8  ;;  %v1941_v6 = vpack.c.bf16 %v47_v1, %v43_v0  ;;  %v42_v8 = vld [vmem:[%s4564_s1 + $0x10] sm:$0xff] }
  0x31   :  { %v1793_v13 = vpack.c.bf16 %v261_v5, %v257_v4  ;;  %v137_v14 = vld [vmem:[%s4564_s1 + $0x308] sm:$0xff]  ;;  %1730 = vmatprep.subr.bf16.mxu1 %v1729_v9  ;;  %v1795_v21 = vpack.c.bf16 %v260_v12, %v256_v11  ;;  %v136_v23 = vld [vmem:[%s4564_s1 + $0x300] sm:$0xff]  ;;  %v46_v9 = vld [vmem:[%s4564_s1 + $0x30] sm:$0xff] }
  0x32   :  { %v141_v15 = vld [vmem:[%s4564_s1 + $0x328] sm:$0xff]  ;;  %v140_v24 = vld [vmem:[%s4564_s1 + $0x320] sm:$0xff]  ;;  %1732 = vmatpush1.bf16.msra.mxu1 %v1731_v20  ;;  %v51_v12 = vld [vmem:[%s4564_s1 + $0x58] sm:$0xff]  ;;  %v1943_v20 = vpack.c.bf16 %v46_v9, %v42_v8 }
  0x33   :  { %v2738_v16 = vld [vmem:[%s4565_s0 + $0x8] sm:$0xff]  ;;  %v1733_v22 = vpack.c.bf16 %v141_v15, %v137_v14  ;;  %v264_v25 = vld [vmem:[%s4564_s1 + $0x700] sm:$0xff]  ;;  %1794 = vmatprep.subr.bf16.mxu0 %v1793_v13  ;;  %v1735_v32 = vpack.c.bf16 %v140_v24, %v136_v23  ;;  %v55_v13 = vld [vmem:[%s4564_s1 + $0x78] sm:$0xff] }
  0x34   :  { %v265_v17 = vld [vmem:[%s4564_s1 + $0x708] sm:$0xff]  ;;  %638 = vmatprep.mubr.f32.mxu1 %v2738_v16  ;;  %v268_v27 = vld [vmem:[%s4564_s1 + $0x720] sm:$0xff]  ;;  %1796 = vmatpush1.bf16.msra.mxu0 %v1795_v21  ;;  %v50_v24 = vld [vmem:[%s4564_s1 + $0x50] sm:$0xff] }
  0x35   :  { %v269_v18 = vld [vmem:[%s4564_s1 + $0x728] sm:$0xff]  ;;  %1734 = vmatprep.subr.bf16.mxu1 %v1733_v22  ;;  %v1799_v33 = vpack.c.bf16 %v268_v27, %v264_v25  ;;  %v144_v35 = vld [vmem:[%s4564_s1 + $0x340] sm:$0xff]  ;;  %v1945_v22 = vpack.c.bf16 %v55_v13, %v51_v12  ;;  %v54_v25 = vld [vmem:[%s4564_s1 + $0x70] sm:$0xff] }
  0x36   :  { %v1797_v26 = vpack.c.bf16 %v269_v18, %v265_v17  ;;  %v145_v28 = vld [vmem:[%s4564_s1 + $0x348] sm:$0xff]  ;;  %v148_v36 = vld [vmem:[%s4564_s1 + $0x360] sm:$0xff]  ;;  %1736 = vmatpush1.bf16.msra.mxu1 %v1735_v32  ;;  %v34_v18 = vld [vmem:[%s4565_s0 + $0x10] sm:$0xff]  ;;  %v1947_v32 = vpack.c.bf16 %v54_v25, %v50_v24 }
  0x37   :  { %v149_v29 = vld [vmem:[%s4564_s1 + $0x368] sm:$0xff]  ;;  %v272_v37 = vld [vmem:[%s4564_s1 + $0x740] sm:$0xff]  ;;  %v1739_v44 = vpack.c.bf16 %v148_v36, %v144_v35  ;;  %v58_v36 = vld [vmem:[%s4564_s1 + $0x90] sm:$0xff] }
  0x38   :  { %v273_v30 = vld [vmem:[%s4564_s1 + $0x748] sm:$0xff]  ;;  %v1737_v34 = vpack.c.bf16 %v149_v29, %v145_v28  ;;  %1798 = vmatprep.subr.bf16.mxu0 %v1797_v26  ;;  %v276_v39 = vld [vmem:[%s4564_s1 + $0x760] sm:$0xff]  ;;  %v59_v28 = vld [vmem:[%s4564_s1 + $0x98] sm:$0xff] }
  0x39   :  { %v277_v31 = vld [vmem:[%s4564_s1 + $0x768] sm:$0xff]  ;;  %1800 = vmatpush1.bf16.msra.mxu0 %v1799_v33  ;;  %v1803_v45 = vpack.c.bf16 %v276_v39, %v272_v37  ;;  %v152_v47 = vld [vmem:[%s4564_s1 + $0x380] sm:$0xff]  ;;  %v63_v29 = vld [vmem:[%s4564_s1 + $0xb8] sm:$0xff] }
  0x3a   :  { %v1801_v38 = vpack.c.bf16 %v277_v31, %v273_v30  ;;  %v153_v40 = vld [vmem:[%s4564_s1 + $0x388] sm:$0xff]  ;;  %1738 = vmatprep.subr.bf16.mxu1 %v1737_v34  ;;  %v156_v48 = vld [vmem:[%s4564_s1 + $0x3a0] sm:$0xff]  ;;  %v1949_v34 = vpack.c.bf16 %v63_v29, %v59_v28  ;;  %v62_v37 = vld [vmem:[%s4564_s1 + $0xb0] sm:$0xff] }
  0x3b   :  { %v157_v41 = vld [vmem:[%s4564_s1 + $0x3a8] sm:$0xff]  ;;  %v280_v49 = vld [vmem:[%s4564_s1 + $0x780] sm:$0xff]  ;;  %1740 = vmatpush1.bf16.msra.mxu1 %v1739_v44  ;;  %v1743_v56 = vpack.c.bf16 %v156_v48, %v152_v47  ;;  %v1951_v44 = vpack.c.bf16 %v62_v37, %v58_v36  ;;  %v70_v48 = vld [vmem:[%s4564_s1 + $0xf0] sm:$0xff] }
  0x3c   :  { %v281_v42 = vld [vmem:[%s4564_s1 + $0x788] sm:$0xff]  ;;  %v1741_v46 = vpack.c.bf16 %v157_v41, %v153_v40  ;;  %1802 = vmatprep.subr.bf16.mxu0 %v1801_v38  ;;  %v284_v51 = vld [vmem:[%s4564_s1 + $0x7a0] sm:$0xff]  ;;  %v67_v40 = vld [vmem:[%s4564_s1 + $0xd8] sm:$0xff] }
  0x3d   :  { %v285_v43 = vld [vmem:[%s4564_s1 + $0x7a8] sm:$0xff]  ;;  %1804 = vmatpush1.bf16.msra.mxu0 %v1803_v45  ;;  %v1807_v57 = vpack.c.bf16 %v284_v51, %v280_v49  ;;  %v160_v59 = vld [vmem:[%s4564_s1 + $0x3c0] sm:$0xff]  ;;  %v71_v41 = vld [vmem:[%s4564_s1 + $0xf8] sm:$0xff] }
  0x3e   :  { %v1805_v50 = vpack.c.bf16 %v285_v43, %v281_v42  ;;  %v161_v52 = vld [vmem:[%s4564_s1 + $0x3c8] sm:$0xff]  ;;  %1742 = vmatprep.subr.bf16.mxu1 %v1741_v46  ;;  %v164_v60 = vld [vmem:[%s4564_s1 + $0x3e0] sm:$0xff]  ;;  %v1953_v46 = vpack.c.bf16 %v71_v41, %v67_v40  ;;  %v75_v51 = vld [vmem:[%s4564_s1 + $0x118] sm:$0xff] }
  0x3f   :  { %v165_v53 = vld [vmem:[%s4564_s1 + $0x3e8] sm:$0xff]  ;;  %v288_v61 = vld [vmem:[%s4564_s1 + $0x7c0] sm:$0xff]  ;;  %1744 = vmatpush1.bf16.msra.mxu1 %v1743_v56  ;;  %v1747_v4 = vpack.c.bf16 %v164_v60, %v160_v59  ;;  %v74_v59 = vld [vmem:[%s4564_s1 + $0x110] sm:$0xff] }
  0x40   :  { %v289_v54 = vld [vmem:[%s4564_s1 + $0x7c8] sm:$0xff]  ;;  %v1745_v58 = vpack.c.bf16 %v165_v53, %v161_v52  ;;  %1806 = vmatprep.subr.bf16.mxu0 %v1805_v50  ;;  %v292_v63 = vld [vmem:[%s4564_s1 + $0x7e0] sm:$0xff]  ;;  %v79_v52 = vld [vmem:[%s4564_s1 + $0x138] sm:$0xff] }
  0x41   :  { %v293_v55 = vld [vmem:[%s4564_s1 + $0x7e8] sm:$0xff]  ;;  %1808 = vmatpush1.bf16.msra.mxu0 %v1807_v57  ;;  %v1811_v5 = vpack.c.bf16 %v292_v63, %v288_v61  ;;  %v296_v7 = vld [vmem:[%s4564_s1 + $0x800] sm:$0xff]  ;;  %v1957_v57 = vpack.c.bf16 %v79_v52, %v75_v51  ;;  %v78_v60 = vld [vmem:[%s4564_s1 + $0x130] sm:$0xff] }
  0x42   :  { %v1809_v62 = vpack.c.bf16 %v293_v55, %v289_v54  ;;  %v297_v2 = vld [vmem:[%s4564_s1 + $0x808] sm:$0xff]  ;;  %1746 = vmatprep.subr.bf16.mxu1 %v1745_v58  ;;  %v300_v11 = vld [vmem:[%s4564_s1 + $0x820] sm:$0xff]  ;;  %v83_v63 = vld [vmem:[%s4564_s1 + $0x158] sm:$0xff] }
  0x43   :  { %v301_v3 = vld [vmem:[%s4564_s1 + $0x828] sm:$0xff]  ;;  %1748 = vmatpush1.bf16.msra.mxu1 %v1747_v4  ;;  %v2876_v17 = vld [vmem:[%s4565_s0] sm:$0xff]  ;;  %v1815_v21 = vpack.c.bf16 %v300_v11, %v296_v7  ;;  %v87_v0 = vld [vmem:[%s4564_s1 + $0x178] sm:$0xff] }
  0x44   :  { %1810 = vmatprep.subr.bf16.mxu0 %v1809_v62  ;;  %v1813_v10 = vpack.c.bf16 %v301_v3, %v297_v2  ;;  %v305_v14 = vld [vmem:[%s4564_s1 + $0x848] sm:$0xff]  ;;  %1942 = vmatprep.subr.bf16.mxu1 %v1941_v6  ;;  %v304_v23 = vld [vmem:[%s4564_s1 + $0x840] sm:$0xff]  ;;  %v1959_v3 = vpack.c.bf16 %v78_v60, %v74_v59  ;;  %v82_v7 = vld [vmem:[%s4564_s1 + $0x150] sm:$0xff] }
  0x45   :  { %v309_v15 = vld [vmem:[%s4564_s1 + $0x868] sm:$0xff]  ;;  %1812 = vmatpush1.bf16.msra.mxu0 %v1811_v5  ;;  %v308_v27 = vld [vmem:[%s4564_s1 + $0x860] sm:$0xff]  ;;  %v1961_v5 = vpack.c.bf16 %v87_v0, %v83_v63  ;;  %v86_v8 = vld [vmem:[%s4564_s1 + $0x170] sm:$0xff] }
  0x46   :  { %1814 = vmatprep.subr.bf16.mxu0 %v1813_v10  ;;  %v1817_v26 = vpack.c.bf16 %v309_v15, %v305_v14  ;;  %639 = vmatmul.mubr.f32.vlgmr.msra.gmra.mrb[0].mxu1 %v2876_v17  ;;  %v313_v30 = vld [vmem:[%s4564_s1 + $0x888] sm:$0xff]  ;;  %v1819_v33 = vpack.c.bf16 %v308_v27, %v304_v23  ;;  %v312_v35 = vld [vmem:[%s4564_s1 + $0x880] sm:$0xff]  ;;  %v91_v11 = vld [vmem:[%s4564_s1 + $0x198] sm:$0xff]  ;;  %v1963_v15 = vpack.c.bf16 %v86_v8, %v82_v7 }
  0x47   :  { %v317_v31 = vld [vmem:[%s4564_s1 + $0x8a8] sm:$0xff]  ;;  %1944 = vmatpush1.bf16.msra.mxu1 %v1943_v20  ;;  %v316_v39 = vld [vmem:[%s4564_s1 + $0x8a0] sm:$0xff]  ;;  %922 = vmatprep.mubr.f32.mxu1 %v2738_v16  ;;  %v66_v16 = vld [vmem:[%s4564_s1 + $0xd0] sm:$0xff] }
  0x48   :  { %710 = vmatmul.mubr.f32.vlgmr.msra.gmra.mrb[0].mxu0 %v34_v18  ;;  %1946 = vmatprep.subr.bf16.mxu1 %v1945_v22  ;;  %v1821_v38 = vpack.c.bf16 %v317_v31, %v313_v30  ;;  %v321_v42 = vld [vmem:[%s4564_s1 + $0x8c8] sm:$0xff]  ;;  %v1823_v45 = vpack.c.bf16 %v316_v39, %v312_v35  ;;  %v320_v47 = vld [vmem:[%s4564_s1 + $0x8c0] sm:$0xff]  ;;  %v1955_v55 = vpack.c.bf16 %v70_v48, %v66_v16  ;;  %v95_v12 = vld [vmem:[%s4564_s1 + $0x1b8] sm:$0xff] }
  0x49   :  { %1816 = vmatpush1.bf16.msra.mxu0 %v1815_v21  ;;  %v325_v43 = vld [vmem:[%s4564_s1 + $0x8e8] sm:$0xff]  ;;  %v324_v50 = vld [vmem:[%s4564_s1 + $0x8e0] sm:$0xff]  ;;  %v1965_v21 = vpack.c.bf16 %v95_v12, %v91_v11  ;;  %v90_v23 = vld [vmem:[%s4564_s1 + $0x190] sm:$0xff] }
  0x4a   :  { %1818 = vmatprep.subr.bf16.mxu0 %v1817_v26  ;;  %v1825_v49 = vpack.c.bf16 %v325_v43, %v321_v42  ;;  %v329_v53 = vld [vmem:[%s4564_s1 + $0x908] sm:$0xff]  ;;  %v1827_v56 = vpack.c.bf16 %v324_v50, %v320_v47  ;;  %v328_v58 = vld [vmem:[%s4564_s1 + $0x900] sm:$0xff]  ;;  %v94_v24 = vld [vmem:[%s4564_s1 + $0x1b0] sm:$0xff] }
  0x4b   :  { %1948 = vmatpush1.bf16.msra.mxu1 %v1947_v32  ;;  %v333_v54 = vld [vmem:[%s4564_s1 + $0x928] sm:$0xff]  ;;  %v332_v62 = vld [vmem:[%s4564_s1 + $0x920] sm:$0xff]  ;;  %v99_v26 = vld [vmem:[%s4564_s1 + $0x1d8] sm:$0xff]  ;;  %v1967_v31 = vpack.c.bf16 %v94_v24, %v90_v23 }
  0x4c   :  { %1950 = vmatprep.subr.bf16.mxu1 %v1949_v34  ;;  %v1829_v61 = vpack.c.bf16 %v333_v54, %v329_v53  ;;  %v337_v1 = vld [vmem:[%s4564_s1 + $0x948] sm:$0xff]  ;;  %v1831_v4 = vpack.c.bf16 %v332_v62, %v328_v58  ;;  %v336_v6 = vld [vmem:[%s4564_s1 + $0x940] sm:$0xff]  ;;  %v103_v27 = vld [vmem:[%s4564_s1 + $0x1f8] sm:$0xff] }
  0x4d   :  { %1820 = vmatpush1.bf16.msra.mxu0 %v1819_v33  ;;  %v341_v2 = vld [vmem:[%s4564_s1 + $0x968] sm:$0xff]  ;;  %v340_v10 = vld [vmem:[%s4564_s1 + $0x960] sm:$0xff]  ;;  %v1969_v33 = vpack.c.bf16 %v103_v27, %v99_v26  ;;  %v98_v35 = vld [vmem:[%s4564_s1 + $0x1d0] sm:$0xff] }
  0x4e   :  { %1822 = vmatprep.subr.bf16.mxu0 %v1821_v38  ;;  %v1833_v9 = vpack.c.bf16 %v341_v2, %v337_v1  ;;  %v345_v13 = vld [vmem:[%s4564_s1 + $0x988] sm:$0xff]  ;;  %v344_v18 = vld [vmem:[%s4564_s1 + $0x980] sm:$0xff]  ;;  %v1835_v20 = vpack.c.bf16 %v340_v10, %v336_v6  ;;  %v102_v36 = vld [vmem:[%s4564_s1 + $0x1f0] sm:$0xff] }
  0x4f   :  { %1952 = vmatpush1.bf16.msra.mxu1 %v1951_v44  ;;  %v349_v14 = vld [vmem:[%s4564_s1 + $0x9a8] sm:$0xff]  ;;  %v348_v22 = vld [vmem:[%s4564_s1 + $0x9a0] sm:$0xff]  ;;  %v107_v39 = vld [vmem:[%s4564_s1 + $0x218] sm:$0xff]  ;;  %v1971_v43 = vpack.c.bf16 %v102_v36, %v98_v35 }
  0x50   :  { %1954 = vmatprep.subr.bf16.mxu1 %v1953_v46  ;;  %v1837_v25 = vpack.c.bf16 %v349_v14, %v345_v13  ;;  %v3024_v28 = vld [vmem:[%s4565_s0 + $0x28] sm:$0xff]  ;;  %v1839_v32 = vpack.c.bf16 %v348_v22, %v344_v18  ;;  %v352_v34 = vld [vmem:[%s4564_s1 + $0x9c0] sm:$0xff]  ;;  %v111_v40 = vld [vmem:[%s4564_s1 + $0x238] sm:$0xff] }
  0x51   :  { %1824 = vmatpush1.bf16.msra.mxu0 %v1823_v45  ;;  %v353_v29 = vld [vmem:[%s4564_s1 + $0x9c8] sm:$0xff]  ;;  %780 = vmatprep.mubr.f32.mxu0 %v3024_v28  ;;  %v356_v38 = vld [vmem:[%s4564_s1 + $0x9e0] sm:$0xff]  ;;  %v1973_v45 = vpack.c.bf16 %v111_v40, %v107_v39  ;;  %v106_v47 = vld [vmem:[%s4564_s1 + $0x210] sm:$0xff] }
  0x52   :  { %1826 = vmatprep.subr.bf16.mxu0 %v1825_v49  ;;  %v357_v30 = vld [vmem:[%s4564_s1 + $0x9e8] sm:$0xff]  ;;  %v1843_v44 = vpack.c.bf16 %v356_v38, %v352_v34  ;;  %v360_v46 = vld [vmem:[%s4564_s1 + $0xa00] sm:$0xff]  ;;  %v110_v16 = vld [vmem:[%s4564_s1 + $0x230] sm:$0xff] }
  0x53   :  { %1956 = vmatpush1.bf16.msra.mxu1 %v1955_v55  ;;  %v1841_v37 = vpack.c.bf16 %v357_v30, %v353_v29  ;;  %v361_v41 = vld [vmem:[%s4564_s1 + $0xa08] sm:$0xff]  ;;  %v364_v49 = vld [vmem:[%s4564_s1 + $0xa20] sm:$0xff]  ;;  %v115_v50 = vld [vmem:[%s4564_s1 + $0x258] sm:$0xff]  ;;  %v1975_v54 = vpack.c.bf16 %v110_v16, %v106_v47 }
  0x54   :  { %1958 = vmatprep.subr.bf16.mxu1 %v1957_v57  ;;  %v365_v42 = vld [vmem:[%s4564_s1 + $0xa28] sm:$0xff]  ;;  %v119_v51 = vld [vmem:[%s4564_s1 + $0x278] sm:$0xff]  ;;  %v1847_v55 = vpack.c.bf16 %v364_v49, %v360_v46  ;;  %v368_v57 = vld [vmem:[%s4564_s1 + $0xa40] sm:$0xff] }
  0x55   :  { %1828 = vmatpush1.bf16.msra.mxu0 %v1827_v56  ;;  %v1845_v48 = vpack.c.bf16 %v365_v42, %v361_v41  ;;  %v369_v52 = vld [vmem:[%s4564_s1 + $0xa48] sm:$0xff]  ;;  %v1977_v56 = vpack.c.bf16 %v119_v51, %v115_v50  ;;  %v114_v58 = vld [vmem:[%s4564_s1 + $0x250] sm:$0xff]  ;;  %v123_v62 = vld [vmem:[%s4564_s1 + $0x298] sm:$0xff] }
  0x56   :  { %1830 = vmatprep.subr.bf16.mxu0 %v1829_v61  ;;  %v373_v53 = vld [vmem:[%s4564_s1 + $0xa68] sm:$0xff]  ;;  %v118_v59 = vld [vmem:[%s4564_s1 + $0x270] sm:$0xff]  ;;  %v372_v61 = vld [vmem:[%s4564_s1 + $0xa60] sm:$0xff] }
  0x57   :  { %1960 = vmatpush1.bf16.msra.mxu1 %v1959_v3  ;;  %v1849_v60 = vpack.c.bf16 %v373_v53, %v369_v52  ;;  %v127_v63 = vld [vmem:[%s4564_s1 + $0x2b8] sm:$0xff]  ;;  %v377_v0 = vld [vmem:[%s4564_s1 + $0xa88] sm:$0xff]  ;;  %v1979_v2 = vpack.c.bf16 %v118_v59, %v114_v58  ;;  %v1851_v3 = vpack.c.bf16 %v372_v61, %v368_v57  ;;  %v122_v6 = vld [vmem:[%s4564_s1 + $0x290] sm:$0xff] }
  0x58   :  { %1962 = vmatprep.subr.bf16.mxu1 %v1961_v5  ;;  %v381_v1 = vld [vmem:[%s4564_s1 + $0xaa8] sm:$0xff]  ;;  %v376_v5 = vld [vmem:[%s4564_s1 + $0xa80] sm:$0xff]  ;;  %v126_v7 = vld [vmem:[%s4564_s1 + $0x2b0] sm:$0xff] }
  0x59   :  { %1832 = vmatpush1.bf16.msra.mxu0 %v1831_v4  ;;  %v1981_v4 = vpack.c.bf16 %v127_v63, %v123_v62  ;;  %v1853_v8 = vpack.c.bf16 %v381_v1, %v377_v0  ;;  %v131_v10 = vld [vmem:[%s4564_s1 + $0x2d8] sm:$0xff]  ;;  %v385_v12 = vld [vmem:[%s4564_s1 + $0xac8] sm:$0xff]  ;;  %v1983_v14 = vpack.c.bf16 %v126_v7, %v122_v6  ;;  %v134_v22 = vld [vmem:[%s4564_s1 + $0x2f0] sm:$0xff] }
  0x5a   :  { %1834 = vmatprep.subr.bf16.mxu0 %v1833_v9  ;;  %v380_v9 = vld [vmem:[%s4564_s1 + $0xaa0] sm:$0xff]  ;;  %v135_v11 = vld [vmem:[%s4564_s1 + $0x2f8] sm:$0xff]  ;;  %v389_v13 = vld [vmem:[%s4564_s1 + $0xae8] sm:$0xff] }
  0x5b   :  { %1964 = vmatpush1.bf16.msra.mxu1 %v1963_v15  ;;  %v1855_v15 = vpack.c.bf16 %v380_v9, %v376_v5  ;;  %v1985_v18 = vpack.c.bf16 %v135_v11, %v131_v10  ;;  %v1857_v23 = vpack.c.bf16 %v389_v13, %v385_v12  ;;  %v388_v24 = vld [vmem:[%s4564_s1 + $0xae0] sm:$0xff]  ;;  %v143_v26 = vld [vmem:[%s4564_s1 + $0x338] sm:$0xff]  ;;  %v393_v27 = vld [vmem:[%s4564_s1 + $0xb08] sm:$0xff] }
  0x5c   :  { %1966 = vmatprep.subr.bf16.mxu1 %v1965_v21  ;;  %v130_v21 = vld [vmem:[%s4564_s1 + $0x2d0] sm:$0xff]  ;;  %v397_v29 = vld [vmem:[%s4564_s1 + $0xb28] sm:$0xff]  ;;  %v147_v38 = vld [vmem:[%s4564_s1 + $0x358] sm:$0xff] }
  0x5d   :  { %1836 = vmatpush1.bf16.msra.mxu0 %v1835_v20  ;;  %v384_v20 = vld [vmem:[%s4564_s1 + $0xac0] sm:$0xff]  ;;  %v1987_v30 = vpack.c.bf16 %v134_v22, %v130_v21  ;;  %v138_v34 = vld [vmem:[%s4564_s1 + $0x310] sm:$0xff]  ;;  %v1861_v36 = vpack.c.bf16 %v397_v29, %v393_v27  ;;  %v151_v39 = vld [vmem:[%s4564_s1 + $0x378] sm:$0xff] }
  0x5e   :  { %1838 = vmatprep.subr.bf16.mxu0 %v1837_v25  ;;  %v139_v25 = vld [vmem:[%s4564_s1 + $0x318] sm:$0xff]  ;;  %v142_v35 = vld [vmem:[%s4564_s1 + $0x330] sm:$0xff]  ;;  %v401_v40 = vld [vmem:[%s4564_s1 + $0xb48] sm:$0xff] }
  0x5f   :  { %1968 = vmatpush1.bf16.msra.mxu1 %v1967_v31  ;;  %v1859_v31 = vpack.c.bf16 %v388_v24, %v384_v20  ;;  %v405_v41 = vld [vmem:[%s4564_s1 + $0xb68] sm:$0xff]  ;;  %v1991_v42 = vpack.c.bf16 %v142_v35, %v138_v34  ;;  %v146_v46 = vld [vmem:[%s4564_s1 + $0x350] sm:$0xff]  ;;  %v155_v49 = vld [vmem:[%s4564_s1 + $0x398] sm:$0xff] }
  0x60   :  { %1970 = vmatprep.subr.bf16.mxu1 %v1969_v33  ;;  %v392_v33 = vld [vmem:[%s4564_s1 + $0xb00] sm:$0xff]  ;;  %v150_v47 = vld [vmem:[%s4564_s1 + $0x370] sm:$0xff]  ;;  %v1865_v16 = vpack.c.bf16 %v405_v41, %v401_v40  ;;  %v159_v50 = vld [vmem:[%s4564_s1 + $0x3b8] sm:$0xff] }
  0x61   :  { %1840 = vmatpush1.bf16.msra.mxu0 %v1839_v32  ;;  %v1989_v32 = vpack.c.bf16 %v143_v26, %v139_v25  ;;  %v409_v51 = vld [vmem:[%s4564_s1 + $0xb88] sm:$0xff]  ;;  %v1995_v53 = vpack.c.bf16 %v150_v47, %v146_v46  ;;  %v154_v57 = vld [vmem:[%s4564_s1 + $0x390] sm:$0xff]  ;;  %v163_v61 = vld [vmem:[%s4564_s1 + $0x3d8] sm:$0xff] }
  0x62   :  { %1842 = vmatprep.subr.bf16.mxu0 %v1841_v37  ;;  %v396_v37 = vld [vmem:[%s4564_s1 + $0xb20] sm:$0xff]  ;;  %v413_v52 = vld [vmem:[%s4564_s1 + $0xba8] sm:$0xff]  ;;  %v158_v58 = vld [vmem:[%s4564_s1 + $0x3b0] sm:$0xff] }
  0x63   :  { %1972 = vmatpush1.bf16.msra.mxu1 %v1971_v43  ;;  %v1863_v43 = vpack.c.bf16 %v396_v37, %v392_v33  ;;  %v1869_v59 = vpack.c.bf16 %v413_v52, %v409_v51  ;;  %v167_v62 = vld [vmem:[%s4564_s1 + $0x3f8] sm:$0xff]  ;;  %v417_v63 = vld [vmem:[%s4564_s1 + $0xbc8] sm:$0xff]  ;;  %v1999_v1 = vpack.c.bf16 %v158_v58, %v154_v57  ;;  %v162_v5 = vld [vmem:[%s4564_s1 + $0x3d0] sm:$0xff] }
  0x64   :  { %1974 = vmatprep.subr.bf16.mxu1 %v1973_v45  ;;  %v400_v45 = vld [vmem:[%s4564_s1 + $0xb40] sm:$0xff]  ;;  %v421_v0 = vld [vmem:[%s4564_s1 + $0xbe8] sm:$0xff]  ;;  %v166_v6 = vld [vmem:[%s4564_s1 + $0x3f0] sm:$0xff] }
  0x65   :  { %1844 = vmatpush1.bf16.msra.mxu0 %v1843_v44  ;;  %v1993_v44 = vpack.c.bf16 %v151_v39, %v147_v38  ;;  %v1873_v7 = vpack.c.bf16 %v421_v0, %v417_v63  ;;  %v171_v9 = vld [vmem:[%s4564_s1 + $0x418] sm:$0xff]  ;;  %v425_v11 = vld [vmem:[%s4564_s1 + $0xc08] sm:$0xff]  ;;  %v2003_v13 = vpack.c.bf16 %v166_v6, %v162_v5  ;;  %v170_v20 = vld [vmem:[%s4564_s1 + $0x410] sm:$0xff] }
  0x66   :  { %1846 = vmatprep.subr.bf16.mxu0 %v1845_v48  ;;  %v404_v48 = vld [vmem:[%s4564_s1 + $0xb60] sm:$0xff]  ;;  %v175_v10 = vld [vmem:[%s4564_s1 + $0x438] sm:$0xff]  ;;  %v429_v12 = vld [vmem:[%s4564_s1 + $0xc28] sm:$0xff] }
  0x67   :  { %1976 = vmatpush1.bf16.msra.mxu1 %v1975_v54  ;;  %v1867_v54 = vpack.c.bf16 %v404_v48, %v400_v45  ;;  %v174_v21 = vld [vmem:[%s4564_s1 + $0x430] sm:$0xff]  ;;  %v1877_v22 = vpack.c.bf16 %v429_v12, %v425_v11  ;;  %v179_v24 = vld [vmem:[%s4564_s1 + $0x458] sm:$0xff]  ;;  %v433_v26 = vld [vmem:[%s4564_s1 + $0xc48] sm:$0xff] }
  0x68   :  { %1978 = vmatprep.subr.bf16.mxu1 %v1977_v56  ;;  %v408_v56 = vld [vmem:[%s4564_s1 + $0xb80] sm:$0xff]  ;;  %v183_v25 = vld [vmem:[%s4564_s1 + $0x478] sm:$0xff]  ;;  %v437_v27 = vld [vmem:[%s4564_s1 + $0xc68] sm:$0xff] }
  0x69   :  { %1848 = vmatpush1.bf16.msra.mxu0 %v1847_v55  ;;  %v1997_v55 = vpack.c.bf16 %v159_v50, %v155_v49  ;;  %v36_v29 = vld [vmem:[%s4565_s0 + $0x20] sm:$0xff]  ;;  %v178_v34 = vld [vmem:[%s4564_s1 + $0x450] sm:$0xff]  ;;  %v187_v38 = vld [vmem:[%s4564_s1 + $0x498] sm:$0xff] }
  0x6a   :  { %1850 = vmatprep.subr.bf16.mxu0 %v1849_v60  ;;  %v412_v60 = vld [vmem:[%s4564_s1 + $0xba0] sm:$0xff]  ;;  %v182_v35 = vld [vmem:[%s4564_s1 + $0x470] sm:$0xff]  ;;  %v191_v39 = vld [vmem:[%s4564_s1 + $0x4b8] sm:$0xff] }
  0x6b   :  { %1980 = vmatpush1.bf16.msra.mxu1 %v1979_v2  ;;  %v1871_v2 = vpack.c.bf16 %v412_v60, %v408_v56  ;;  %v432_v33 = vld [vmem:[%s4564_s1 + $0xc40] sm:$0xff]  ;;  %v441_v40 = vld [vmem:[%s4564_s1 + $0xc88] sm:$0xff]  ;;  %v186_v46 = vld [vmem:[%s4564_s1 + $0x490] sm:$0xff] }
  0x6c   :  { %1982 = vmatprep.subr.bf16.mxu1 %v1981_v4  ;;  %v416_v4 = vld [vmem:[%s4564_s1 + $0xbc0] sm:$0xff]  ;;  %v445_v41 = vld [vmem:[%s4564_s1 + $0xca8] sm:$0xff]  ;;  %v190_v47 = vld [vmem:[%s4564_s1 + $0x4b0] sm:$0xff] }
  0x6d   :  { %1852 = vmatpush1.bf16.msra.mxu0 %v1851_v3  ;;  %v2001_v3 = vpack.c.bf16 %v167_v62, %v163_v61  ;;  %v436_v37 = vld [vmem:[%s4564_s1 + $0xc60] sm:$0xff]  ;;  %v195_v49 = vld [vmem:[%s4564_s1 + $0x4d8] sm:$0xff]  ;;  %v449_v51 = vld [vmem:[%s4564_s1 + $0xcc8] sm:$0xff] }
  0x6e   :  { %1854 = vmatprep.subr.bf16.mxu0 %v1853_v8  ;;  %v420_v8 = vld [vmem:[%s4564_s1 + $0xbe0] sm:$0xff]  ;;  %v199_v50 = vld [vmem:[%s4564_s1 + $0x4f8] sm:$0xff]  ;;  %v453_v52 = vld [vmem:[%s4564_s1 + $0xce8] sm:$0xff] }
  0x6f   :  { %1984 = vmatpush1.bf16.msra.mxu1 %v1983_v14  ;;  %v1875_v14 = vpack.c.bf16 %v420_v8, %v416_v4  ;;  %v440_v45 = vld [vmem:[%s4564_s1 + $0xc80] sm:$0xff]  ;;  %v194_v57 = vld [vmem:[%s4564_s1 + $0x4d0] sm:$0xff]  ;;  %v203_v60 = vld [vmem:[%s4564_s1 + $0x518] sm:$0xff] }
  0x70   :  { %1986 = vmatprep.subr.bf16.mxu1 %v1985_v18  ;;  %v424_v18 = vld [vmem:[%s4564_s1 + $0xc00] sm:$0xff]  ;;  %v198_v58 = vld [vmem:[%s4564_s1 + $0x4f0] sm:$0xff]  ;;  %v207_v61 = vld [vmem:[%s4564_s1 + $0x538] sm:$0xff] }
  0x71   :  { %1856 = vmatpush1.bf16.msra.mxu0 %v1855_v15  ;;  %v2005_v15 = vpack.c.bf16 %v175_v10, %v171_v9  ;;  %v444_v48 = vld [vmem:[%s4564_s1 + $0xca0] sm:$0xff]  ;;  %v457_v62 = vld [vmem:[%s4564_s1 + $0xd08] sm:$0xff]  ;;  %v2019_v0 = vpack.c.bf16 %v198_v58, %v194_v57  ;;  %v202_v4 = vld [vmem:[%s4564_s1 + $0x510] sm:$0xff] }
  0x72   :  { %1858 = vmatprep.subr.bf16.mxu0 %v1857_v23  ;;  %v428_v23 = vld [vmem:[%s4564_s1 + $0xc20] sm:$0xff]  ;;  %v461_v63 = vld [vmem:[%s4564_s1 + $0xd28] sm:$0xff]  ;;  %v206_v5 = vld [vmem:[%s4564_s1 + $0x530] sm:$0xff] }
  0x73   :  { %1988 = vmatpush1.bf16.msra.mxu1 %v1987_v30  ;;  %v2007_v30 = vpack.c.bf16 %v174_v21, %v170_v20  ;;  %v448_v56 = vld [vmem:[%s4564_s1 + $0xcc0] sm:$0xff]  ;;  %v1893_v6 = vpack.c.bf16 %v461_v63, %v457_v62  ;;  %v211_v8 = vld [vmem:[%s4564_s1 + $0x558] sm:$0xff]  ;;  %v465_v10 = vld [vmem:[%s4564_s1 + $0xd48] sm:$0xff]  ;;  %v2023_v12 = vpack.c.bf16 %v206_v5, %v202_v4 }
  0x74   :  { %1990 = vmatprep.subr.bf16.mxu1 %v1989_v32  ;;  %v2009_v32 = vpack.c.bf16 %v183_v25, %v179_v24  ;;  %v215_v9 = vld [vmem:[%s4564_s1 + $0x578] sm:$0xff]  ;;  %v469_v11 = vld [vmem:[%s4564_s1 + $0xd68] sm:$0xff]  ;;  %v214_v20 = vld [vmem:[%s4564_s1 + $0x570] sm:$0xff] }
  0x75   :  { %1860 = vmatpush1.bf16.msra.mxu0 %v1859_v31  ;;  %v1879_v31 = vpack.c.bf16 %v428_v23, %v424_v18  ;;  %v210_v18 = vld [vmem:[%s4564_s1 + $0x550] sm:$0xff]  ;;  %v1897_v21 = vpack.c.bf16 %v469_v11, %v465_v10  ;;  %v219_v23 = vld [vmem:[%s4564_s1 + $0x598] sm:$0xff]  ;;  %v473_v25 = vld [vmem:[%s4564_s1 + $0xd88] sm:$0xff] }
  0x76   :  { %1862 = vmatprep.subr.bf16.mxu0 %v1861_v36  ;;  %v1881_v36 = vpack.c.bf16 %v437_v27, %v433_v26  ;;  %v223_v24 = vld [vmem:[%s4564_s1 + $0x5b8] sm:$0xff]  ;;  %v477_v26 = vld [vmem:[%s4564_s1 + $0xda8] sm:$0xff]  ;;  %v2027_v27 = vpack.c.bf16 %v214_v20, %v210_v18  ;;  %v492_v58 = vld [vmem:[%s4564_s1 + $0xe20] sm:$0xff] }
  0x77   :  { %1992 = vmatpush1.bf16.msra.mxu1 %v1991_v42  ;;  %v3304_v42 = vld [vmem:[%s4565_s0 + $0x38] sm:$0xff]  ;;  %v500_v5 = vld [vmem:[%s4564_s1 + $0xe60] sm:$0xff] }
  0x78   :  { %1994 = vmatprep.subr.bf16.mxu1 %v1993_v44  ;;  %v1883_v44 = vpack.c.bf16 %v436_v37, %v432_v33  ;;  %v222_v33 = vld [vmem:[%s4564_s1 + $0x5b0] sm:$0xff]  ;;  %v231_v37 = vld [vmem:[%s4564_s1 + $0x5f8] sm:$0xff]  ;;  %v508_v20 = vld [vmem:[%s4564_s1 + $0xea0] sm:$0xff] }
  0x79   :  { %1864 = vmatpush1.bf16.msra.mxu0 %v1863_v43  ;;  %v2011_v43 = vpack.c.bf16 %v182_v35, %v178_v34  ;;  %v1901_v34 = vpack.c.bf16 %v477_v26, %v473_v25  ;;  %v476_v35 = vld [vmem:[%s4564_s1 + $0xda0] sm:$0xff] }
  0x7a   :  { %1866 = vmatprep.subr.bf16.mxu0 %v1865_v16  ;;  %v1885_v16 = vpack.c.bf16 %v445_v41, %v441_v40 }
  0x7b   :  { %1996 = vmatpush1.bf16.msra.mxu1 %v1995_v53  ;;  %v2015_v53 = vpack.c.bf16 %v190_v47, %v186_v46  ;;  %v484_v47 = vld [vmem:[%s4564_s1 + $0xde0] sm:$0xff] }
  0x7c   :  { %1998 = vmatprep.subr.bf16.mxu1 %v1997_v55  ;;  %v2017_v55 = vpack.c.bf16 %v199_v50, %v195_v49  ;;  %v489_v49 = vld [vmem:[%s4564_s1 + $0xe08] sm:$0xff] }
  0x7d   :  { %1868 = vmatpush1.bf16.msra.mxu0 %v1867_v54  ;;  %v1887_v54 = vpack.c.bf16 %v444_v48, %v440_v45  ;;  %v230_v45 = vld [vmem:[%s4564_s1 + $0x5f0] sm:$0xff]  ;;  %v239_v48 = vld [vmem:[%s4564_s1 + $0x638] sm:$0xff]  ;;  %v493_v50 = vld [vmem:[%s4564_s1 + $0xe28] sm:$0xff] }
  0x7e   :  { %1870 = vmatprep.subr.bf16.mxu0 %v1869_v59  ;;  %v452_v59 = vld [vmem:[%s4564_s1 + $0xce0] sm:$0xff]  ;;  %v1909_v57 = vpack.c.bf16 %v493_v50, %v489_v49 }
  0x7f   :  { %2000 = vmatpush1.bf16.msra.mxu1 %v1999_v1  ;;  %v1891_v1 = vpack.c.bf16 %v452_v59, %v448_v56  ;;  %v238_v56 = vld [vmem:[%s4564_s1 + $0x630] sm:$0xff]  ;;  %v247_v59 = vld [vmem:[%s4564_s1 + $0x678] sm:$0xff] }
  0x80   :  { %2002 = vmatprep.subr.bf16.mxu1 %v2001_v3  ;;  %v456_v3 = vld [vmem:[%s4564_s1 + $0xd00] sm:$0xff] }
  0x81   :  { %1872 = vmatpush1.bf16.msra.mxu0 %v1871_v2  ;;  %v2021_v2 = vpack.c.bf16 %v207_v61, %v203_v60  ;;  %v497_v60 = vld [vmem:[%s4564_s1 + $0xe48] sm:$0xff] }
  0x82   :  { %1874 = vmatprep.subr.bf16.mxu0 %v1873_v7  ;;  %v460_v7 = vld [vmem:[%s4564_s1 + $0xd20] sm:$0xff]  ;;  %v501_v61 = vld [vmem:[%s4564_s1 + $0xe68] sm:$0xff] }
  0x83   :  { %2004 = vmatpush1.bf16.msra.mxu1 %v2003_v13  ;;  %v1895_v13 = vpack.c.bf16 %v460_v7, %v456_v3  ;;  %v246_v3 = vld [vmem:[%s4564_s1 + $0x670] sm:$0xff]  ;;  %v1913_v4 = vpack.c.bf16 %v501_v61, %v497_v60  ;;  %v255_v7 = vld [vmem:[%s4564_s1 + $0x6b8] sm:$0xff] }
  0x84   :  { %2006 = vmatprep.subr.bf16.mxu1 %v2005_v15  ;;  %v464_v15 = vld [vmem:[%s4564_s1 + $0xd40] sm:$0xff] }
  0x85   :  { %1876 = vmatpush1.bf16.msra.mxu0 %v1875_v14  ;;  %v2025_v14 = vpack.c.bf16 %v215_v9, %v211_v8  ;;  %v505_v8 = vld [vmem:[%s4564_s1 + $0xe88] sm:$0xff] }
  0x86   :  { %1878 = vmatprep.subr.bf16.mxu0 %v1877_v22  ;;  %923 = vmatmul.mubr.f32.vlgmr.msra.gmra.mrb[2].mxu1 %v2876_v17  ;;  %v2013_v17 = vpack.c.bf16 %v191_v39, %v187_v38  ;;  %v468_v22 = vld [vmem:[%s4564_s1 + $0xd60] sm:$0xff]  ;;  %v481_v38 = vld [vmem:[%s4564_s1 + $0xdc8] sm:$0xff] }
  0x87   :  { %2008 = vmatpush1.bf16.msra.mxu1 %v2007_v30  ;;  %993 = vmatprep.mubr.f32.mxu1 %v2750_v19  ;;  %v1889_v19 = vpack.c.bf16 %v453_v52, %v449_v51  ;;  %v2029_v30 = vpack.c.bf16 %v223_v24, %v219_v23  ;;  %v485_v39 = vld [vmem:[%s4564_s1 + $0xde8] sm:$0xff] }
  0x88   :  { %781 = vmatmul.mubr.f32.vlgmr.msra.gmra.mrb[0].mxu0 %v36_v29  ;;  %2010 = vmatprep.subr.bf16.mxu1 %v2009_v32  ;;  %v1899_v29 = vpack.c.bf16 %v468_v22, %v464_v15  ;;  %v218_v32 = vld [vmem:[%s4564_s1 + $0x590] sm:$0xff]  ;;  %v1905_v46 = vpack.c.bf16 %v485_v39, %v481_v38  ;;  %v509_v9 = vld [vmem:[%s4564_s1 + $0xea8] sm:$0xff]  ;;  %v263_v22 = vld [vmem:[%s4564_s1 + $0x6f8] sm:$0xff] }
  0x89   :  { %1880 = vmatpush1.bf16.msra.mxu0 %v1879_v31  ;;  %851 = vmatprep.mubr.f32.mxu0 %v3304_v42  ;;  %v472_v31 = vld [vmem:[%s4564_s1 + $0xd80] sm:$0xff]  ;;  %v2031_v40 = vpack.c.bf16 %v222_v33, %v218_v32  ;;  %v254_v15 = vld [vmem:[%s4564_s1 + $0x6b0] sm:$0xff]  ;;  %v1917_v18 = vpack.c.bf16 %v509_v9, %v505_v8  ;;  %v513_v23 = vld [vmem:[%s4564_s1 + $0xec8] sm:$0xff] }
  0x8a   :  { %1882 = vmatprep.subr.bf16.mxu0 %v1881_v36  ;;  %v227_v36 = vld [vmem:[%s4564_s1 + $0x5d8] sm:$0xff]  ;;  %v1903_v41 = vpack.c.bf16 %v476_v35, %v472_v31  ;;  %v517_v24 = vld [vmem:[%s4564_s1 + $0xee8] sm:$0xff]  ;;  %v262_v31 = vld [vmem:[%s4564_s1 + $0x6f0] sm:$0xff] }
  0x8b   :  { %2012 = vmatpush1.bf16.msra.mxu1 %v2011_v43  ;;  %v2033_v43 = vpack.c.bf16 %v231_v37, %v227_v36  ;;  %v1921_v32 = vpack.c.bf16 %v517_v24, %v513_v23  ;;  %v516_v33 = vld [vmem:[%s4564_s1 + $0xee0] sm:$0xff]  ;;  %v271_v35 = vld [vmem:[%s4564_s1 + $0x738] sm:$0xff]  ;;  %v521_v36 = vld [vmem:[%s4564_s1 + $0xf08] sm:$0xff] }
  0x8c   :  { %2014 = vmatprep.subr.bf16.mxu1 %v2013_v17  ;;  %v226_v17 = vld [vmem:[%s4564_s1 + $0x5d0] sm:$0xff]  ;;  %v525_v37 = vld [vmem:[%s4564_s1 + $0xf28] sm:$0xff] }
  0x8d   :  { %1884 = vmatpush1.bf16.msra.mxu0 %v1883_v44  ;;  %v480_v44 = vld [vmem:[%s4564_s1 + $0xdc0] sm:$0xff]  ;;  %v2035_v51 = vpack.c.bf16 %v230_v45, %v226_v17  ;;  %v1925_v17 = vpack.c.bf16 %v525_v37, %v521_v36  ;;  %v298_v24 = vld [vmem:[%s4564_s1 + $0x810] sm:$0xff] }
  0x8e   :  { %1886 = vmatprep.subr.bf16.mxu0 %v1885_v16  ;;  %v235_v16 = vld [vmem:[%s4564_s1 + $0x618] sm:$0xff]  ;;  %v1907_v52 = vpack.c.bf16 %v484_v47, %v480_v44  ;;  %v270_v44 = vld [vmem:[%s4564_s1 + $0x730] sm:$0xff]  ;;  %v524_v45 = vld [vmem:[%s4564_s1 + $0xf20] sm:$0xff] }
  0x8f   :  { %2016 = vmatpush1.bf16.msra.mxu1 %v2015_v53  ;;  %v2037_v53 = vpack.c.bf16 %v239_v48, %v235_v16  ;;  %v279_v47 = vld [vmem:[%s4564_s1 + $0x778] sm:$0xff]  ;;  %v529_v16 = vld [vmem:[%s4564_s1 + $0xf48] sm:$0xff]  ;;  %v2386_v36 = vld [vmem:[%s4565_s0 + $0x10] sm:$0xff] }
  0x90   :  { %2018 = vmatprep.subr.bf16.mxu1 %v2017_v55  ;;  %v234_v55 = vld [vmem:[%s4564_s1 + $0x610] sm:$0xff]  ;;  %v533_v48 = vld [vmem:[%s4564_s1 + $0xf68] sm:$0xff] }
  0x91   :  { %1888 = vmatpush1.bf16.msra.mxu0 %v1887_v54  ;;  %v488_v54 = vld [vmem:[%s4564_s1 + $0xe00] sm:$0xff]  ;;  %v2039_v62 = vpack.c.bf16 %v238_v56, %v234_v55  ;;  %v1929_v55 = vpack.c.bf16 %v533_v48, %v529_v16  ;;  %v314_v37 = vld [vmem:[%s4564_s1 + $0x890] sm:$0xff]  ;;  %v1151_v16 = vld [vmem:[%s4566_s3 + $0x28] sm:$0xff] }
  0x92   :  { %1890 = vmatprep.subr.bf16.mxu0 %v1889_v19  ;;  %v243_v19 = vld [vmem:[%s4564_s1 + $0x658] sm:$0xff]  ;;  %v1911_v63 = vpack.c.bf16 %v492_v58, %v488_v54  ;;  %v278_v54 = vld [vmem:[%s4564_s1 + $0x770] sm:$0xff]  ;;  %v532_v56 = vld [vmem:[%s4564_s1 + $0xf60] sm:$0xff] }
  0x93   :  { %2020 = vmatpush1.bf16.msra.mxu1 %v2019_v0  ;;  %v2041_v0 = vpack.c.bf16 %v247_v59, %v243_v19  ;;  %v287_v58 = vld [vmem:[%s4564_s1 + $0x7b8] sm:$0xff]  ;;  %v537_v19 = vld [vmem:[%s4564_s1 + $0xf88] sm:$0xff] }
  0x94   :  { %2022 = vmatprep.subr.bf16.mxu1 %v2021_v2  ;;  %v242_v2 = vld [vmem:[%s4564_s1 + $0x650] sm:$0xff]  ;;  %v541_v59 = vld [vmem:[%s4564_s1 + $0xfa8] sm:$0xff]  ;;  %v1153_v48 = vld [vmem:[%s4566_s3 + $0x38] sm:$0xff] }
  0x95   :  { %1892 = vmatpush1.bf16.msra.mxu0 %v1891_v1  ;;  %v496_v1 = vld [vmem:[%s4564_s1 + $0xe40] sm:$0xff]  ;;  %v2043_v10 = vpack.c.bf16 %v246_v3, %v242_v2  ;;  %v1933_v2 = vpack.c.bf16 %v541_v59, %v537_v19  ;;  %v331_v19 = vld [vmem:[%s4564_s1 + $0x918] sm:$0xff] }
  0x96   :  { %1894 = vmatprep.subr.bf16.mxu0 %v1893_v6  ;;  %v251_v6 = vld [vmem:[%s4564_s1 + $0x698] sm:$0xff]  ;;  %v1915_v11 = vpack.c.bf16 %v500_v5, %v496_v1  ;;  %v286_v1 = vld [vmem:[%s4564_s1 + $0x7b0] sm:$0xff]  ;;  %v540_v3 = vld [vmem:[%s4564_s1 + $0xfa0] sm:$0xff] }
  0x97   :  { %2024 = vmatpush1.bf16.msra.mxu1 %v2023_v12  ;;  %v2045_v12 = vpack.c.bf16 %v255_v7, %v251_v6  ;;  %v295_v5 = vld [vmem:[%s4564_s1 + $0x7f8] sm:$0xff]  ;;  %v545_v6 = vld [vmem:[%s4564_s1 + $0xfc8] sm:$0xff] }
  0x98   :  { %2026 = vmatprep.subr.bf16.mxu1 %v2025_v14  ;;  %v250_v14 = vld [vmem:[%s4564_s1 + $0x690] sm:$0xff]  ;;  %v549_v7 = vld [vmem:[%s4564_s1 + $0xfe8] sm:$0xff] }
  0x99   :  { %1896 = vmatpush1.bf16.msra.mxu0 %v1895_v13  ;;  %v504_v13 = vld [vmem:[%s4564_s1 + $0xe80] sm:$0xff]  ;;  %v2047_v25 = vpack.c.bf16 %v254_v15, %v250_v14  ;;  %v1937_v14 = vpack.c.bf16 %v549_v7, %v545_v6  ;;  %v339_v6 = vld [vmem:[%s4564_s1 + $0x958] sm:$0xff] }
  0x9a   :  { %1898 = vmatprep.subr.bf16.mxu0 %v1897_v21  ;;  %v259_v21 = vld [vmem:[%s4564_s1 + $0x6d8] sm:$0xff]  ;;  %v1919_v26 = vpack.c.bf16 %v508_v20, %v504_v13  ;;  %v294_v13 = vld [vmem:[%s4564_s1 + $0x7f0] sm:$0xff]  ;;  %v548_v15 = vld [vmem:[%s4564_s1 + $0xfe0] sm:$0xff] }
  0x9b   :  { %2028 = vmatpush1.bf16.msra.mxu1 %v2027_v27  ;;  %v2049_v27 = vpack.c.bf16 %v263_v22, %v259_v21  ;;  %v303_v20 = vld [vmem:[%s4564_s1 + $0x838] sm:$0xff] }
  0x9c   :  { %2030 = vmatprep.subr.bf16.mxu1 %v2029_v30  ;;  %v258_v30 = vld [vmem:[%s4564_s1 + $0x6d0] sm:$0xff] }
  0x9d   :  { %1900 = vmatpush1.bf16.msra.mxu0 %v1899_v29  ;;  %v512_v29 = vld [vmem:[%s4564_s1 + $0xec0] sm:$0xff]  ;;  %v2051_v38 = vpack.c.bf16 %v262_v31, %v258_v30  ;;  %v3653_v30 = vld [vmem:[%s4565_s0 + $0x30] sm:$0xff] }
  0x9e   :  { %1902 = vmatprep.subr.bf16.mxu0 %v1901_v34  ;;  %v267_v34 = vld [vmem:[%s4564_s1 + $0x718] sm:$0xff]  ;;  %v1923_v39 = vpack.c.bf16 %v516_v33, %v512_v29  ;;  %v310_v33 = vld [vmem:[%s4564_s1 + $0x870] sm:$0xff] }
  0x9f   :  { %2032 = vmatpush1.bf16.msra.mxu1 %v2031_v40  ;;  %v2053_v40 = vpack.c.bf16 %v271_v35, %v267_v34  ;;  %v315_v34 = vld [vmem:[%s4564_s1 + $0x898] sm:$0xff] }
  0xa0   :  { %2034 = vmatprep.subr.bf16.mxu1 %v2033_v43  ;;  %v266_v43 = vld [vmem:[%s4564_s1 + $0x710] sm:$0xff]  ;;  %v319_v35 = vld [vmem:[%s4564_s1 + $0x8b8] sm:$0xff] }
  0xa1   :  { %1904 = vmatpush1.bf16.msra.mxu0 %v1903_v41  ;;  %v520_v41 = vld [vmem:[%s4564_s1 + $0xf00] sm:$0xff]  ;;  %v2055_v49 = vpack.c.bf16 %v270_v44, %v266_v43  ;;  %v1147_v43 = vld [vmem:[%s4566_s3 + $0x8] sm:$0xff]  ;;  %v1149_v44 = vld [vmem:[%s4566_s3 + $0x18] sm:$0xff] }
  0xa2   :  { %1906 = vmatprep.subr.bf16.mxu0 %v1905_v46  ;;  %v275_v46 = vld [vmem:[%s4564_s1 + $0x758] sm:$0xff]  ;;  %v1927_v50 = vpack.c.bf16 %v524_v45, %v520_v41  ;;  %v2077_v45 = vpack.c.bf16 %v319_v35, %v315_v34 }
  0xa3   :  { %2036 = vmatpush1.bf16.msra.mxu1 %v2035_v51  ;;  %v2057_v51 = vpack.c.bf16 %v279_v47, %v275_v46  ;;  %v327_v41 = vld [vmem:[%s4564_s1 + $0x8f8] sm:$0xff]  ;;  %v2197_v46 = vpack.c.bf16 %v1149_v44, %v1147_v43  ;;  %v1148_v47 = vld [vmem:[%s4566_s3 + $0x10] sm:$0xff] }
  0xa4   :  { %2038 = vmatprep.subr.bf16.mxu1 %v2037_v53  ;;  %v274_v53 = vld [vmem:[%s4564_s1 + $0x750] sm:$0xff]  ;;  %v355_v35 = vld [vmem:[%s4564_s1 + $0x9d8] sm:$0xff] }
  0xa5   :  { %1908 = vmatpush1.bf16.msra.mxu0 %v1907_v52  ;;  %v528_v52 = vld [vmem:[%s4564_s1 + $0xf40] sm:$0xff]  ;;  %v2059_v60 = vpack.c.bf16 %v278_v54, %v274_v53  ;;  %v1157_v53 = vld [vmem:[%s4566_s3 + $0x58] sm:$0xff]  ;;  %v354_v44 = vld [vmem:[%s4564_s1 + $0x9d0] sm:$0xff] }
  0xa6   :  { %1910 = vmatprep.subr.bf16.mxu0 %v1909_v57  ;;  %v283_v57 = vld [vmem:[%s4564_s1 + $0x798] sm:$0xff]  ;;  %v1931_v61 = vpack.c.bf16 %v532_v56, %v528_v52  ;;  %v1155_v52 = vld [vmem:[%s4566_s3 + $0x48] sm:$0xff]  ;;  %v326_v56 = vld [vmem:[%s4564_s1 + $0x8f0] sm:$0xff] }
  0xa7   :  { %2040 = vmatpush1.bf16.msra.mxu1 %v2039_v62  ;;  %v2061_v62 = vpack.c.bf16 %v287_v58, %v283_v57  ;;  %v2205_v59 = vpack.c.bf16 %v1157_v53, %v1155_v52  ;;  %v362_v53 = vld [vmem:[%s4564_s1 + $0xa10] sm:$0xff] }
  0xa8   :  { %2042 = vmatprep.subr.bf16.mxu1 %v2041_v0  ;;  %v282_v0 = vld [vmem:[%s4564_s1 + $0x790] sm:$0xff] }
  0xa9   :  { %1912 = vmatpush1.bf16.msra.mxu0 %v1911_v63  ;;  %v536_v63 = vld [vmem:[%s4564_s1 + $0xf80] sm:$0xff]  ;;  %v2063_v8 = vpack.c.bf16 %v286_v1, %v282_v0  ;;  %v1161_v0 = vld [vmem:[%s4566_s3 + $0x78] sm:$0xff] }
  0xaa   :  { %1914 = vmatprep.subr.bf16.mxu0 %v1913_v4  ;;  %v291_v4 = vld [vmem:[%s4564_s1 + $0x7d8] sm:$0xff]  ;;  %v1935_v9 = vpack.c.bf16 %v540_v3, %v536_v63  ;;  %v1159_v63 = vld [vmem:[%s4566_s3 + $0x68] sm:$0xff]  ;;  %v334_v3 = vld [vmem:[%s4564_s1 + $0x930] sm:$0xff] }
  0xab   :  { %2044 = vmatpush1.bf16.msra.mxu1 %v2043_v10  ;;  %v2065_v10 = vpack.c.bf16 %v295_v5, %v291_v4  ;;  %v2209_v7 = vpack.c.bf16 %v1161_v0, %v1159_v63  ;;  %v370_v0 = vld [vmem:[%s4564_s1 + $0xa50] sm:$0xff] }
  0xac   :  { %2046 = vmatprep.subr.bf16.mxu1 %v2045_v12  ;;  %v290_v12 = vld [vmem:[%s4564_s1 + $0x7d0] sm:$0xff] }
  0xad   :  { %1916 = vmatpush1.bf16.msra.mxu0 %v1915_v11  ;;  %v544_v11 = vld [vmem:[%s4564_s1 + $0xfc0] sm:$0xff]  ;;  %v2067_v21 = vpack.c.bf16 %v294_v13, %v290_v12  ;;  %v1165_v12 = vld [vmem:[%s4566_s3 + $0x98] sm:$0xff] }
  0xae   :  { %1918 = vmatprep.subr.bf16.mxu0 %v1917_v18  ;;  %v299_v18 = vld [vmem:[%s4564_s1 + $0x818] sm:$0xff]  ;;  %v1939_v22 = vpack.c.bf16 %v548_v15, %v544_v11  ;;  %v1163_v11 = vld [vmem:[%s4566_s3 + $0x88] sm:$0xff]  ;;  %v342_v15 = vld [vmem:[%s4564_s1 + $0x970] sm:$0xff] }
  0xaf   :  { %2048 = vmatpush1.bf16.msra.mxu1 %v2047_v25  ;;  %v2069_v23 = vpack.c.bf16 %v303_v20, %v299_v18  ;;  %v302_v25 = vld [vmem:[%s4564_s1 + $0x830] sm:$0xff] }
  0xb0   :  { %2050 = vmatprep.subr.bf16.mxu1 %v2049_v27  ;;  %v311_v27 = vld [vmem:[%s4564_s1 + $0x878] sm:$0xff]  ;;  %v2071_v29 = vpack.c.bf16 %v302_v25, %v298_v24  ;;  %v1164_v24 = vld [vmem:[%s4566_s3 + $0x90] sm:$0xff] }
  0xb1   :  { %1920 = vmatpush1.bf16.msra.mxu0 %v1919_v26  ;;  %v307_v26 = vld [vmem:[%s4564_s1 + $0x858] sm:$0xff] }
  0xb2   :  { %1922 = vmatprep.subr.bf16.mxu0 %v1921_v32  ;;  %v2073_v31 = vpack.c.bf16 %v311_v27, %v307_v26  ;;  %v306_v32 = vld [vmem:[%s4564_s1 + $0x850] sm:$0xff]  ;;  %v351_v25 = vld [vmem:[%s4564_s1 + $0x9b8] sm:$0xff]  ;;  %v1167_v26 = vld [vmem:[%s4566_s3 + $0xa8] sm:$0xff] }
  0xb3   :  { %2052 = vmatpush1.bf16.msra.mxu1 %v2051_v38  ;;  %v318_v38 = vld [vmem:[%s4564_s1 + $0x8b0] sm:$0xff]  ;;  %v1169_v27 = vld [vmem:[%s4566_s3 + $0xb8] sm:$0xff] }
  0xb4   :  { %2054 = vmatprep.subr.bf16.mxu1 %v2053_v40  ;;  %v323_v40 = vld [vmem:[%s4564_s1 + $0x8d8] sm:$0xff]  ;;  %v2079_v54 = vpack.c.bf16 %v318_v38, %v314_v37  ;;  %v1166_v37 = vld [vmem:[%s4566_s3 + $0xa0] sm:$0xff]  ;;  %v1168_v38 = vld [vmem:[%s4566_s3 + $0xb0] sm:$0xff] }
  0xb5   :  { %1924 = vmatpush1.bf16.msra.mxu0 %v1923_v39  ;;  %v2075_v39 = vpack.c.bf16 %v310_v33, %v306_v32  ;;  %v2081_v58 = vpack.c.bf16 %v327_v41, %v323_v40  ;;  %v350_v32 = vld [vmem:[%s4564_s1 + $0x9b0] sm:$0xff]  ;;  %v1171_v40 = vld [vmem:[%s4566_s3 + $0xc8] sm:$0xff]  ;;  %v1173_v41 = vld [vmem:[%s4566_s3 + $0xd8] sm:$0xff] }
  0xb6   :  { %1926 = vmatprep.subr.bf16.mxu0 %v1925_v17  ;;  %v1146_v17 = vld [vmem:[%s4566_s3] sm:$0xff] }
  0xb7   :  { %2056 = vmatpush1.bf16.msra.mxu1 %v2055_v49  ;;  %v2199_v49 = vpack.c.bf16 %v1148_v47, %v1146_v17  ;;  %v358_v17 = vld [vmem:[%s4564_s1 + $0x9f0] sm:$0xff]  ;;  %v363_v47 = vld [vmem:[%s4564_s1 + $0xa18] sm:$0xff] }
  0xb8   :  { %2058 = vmatprep.subr.bf16.mxu1 %v2057_v51  ;;  %v1150_v51 = vld [vmem:[%s4566_s3 + $0x20] sm:$0xff]  ;;  %v2099_v52 = vpack.c.bf16 %v358_v17, %v354_v44 }
  0xb9   :  { %1928 = vmatpush1.bf16.msra.mxu0 %v1927_v50  ;;  %v2201_v50 = vpack.c.bf16 %v1153_v48, %v1151_v16  ;;  %v2221_v16 = vpack.c.bf16 %v1173_v41, %v1171_v40  ;;  %v1170_v48 = vld [vmem:[%s4566_s3 + $0xc0] sm:$0xff]  ;;  %v394_v41 = vld [vmem:[%s4564_s1 + $0xb10] sm:$0xff] }
  0xba   :  { %1930 = vmatprep.subr.bf16.mxu0 %v1929_v55  ;;  %v322_v55 = vld [vmem:[%s4564_s1 + $0x8d0] sm:$0xff] }
  0xbb   :  { %2060 = vmatpush1.bf16.msra.mxu1 %v2059_v60  ;;  %v1154_v60 = vld [vmem:[%s4566_s3 + $0x40] sm:$0xff]  ;;  %v2083_v1 = vpack.c.bf16 %v326_v56, %v322_v55 }
  0xbc   :  { %2062 = vmatprep.subr.bf16.mxu1 %v2061_v62  ;;  %v335_v62 = vld [vmem:[%s4564_s1 + $0x938] sm:$0xff] }
  0xbd   :  { %1932 = vmatpush1.bf16.msra.mxu0 %v1931_v61  ;;  %v1156_v61 = vld [vmem:[%s4566_s3 + $0x50] sm:$0xff]  ;;  %v2085_v5 = vpack.c.bf16 %v335_v62, %v331_v19  ;;  %v1174_v19 = vld [vmem:[%s4566_s3 + $0xe0] sm:$0xff]  ;;  %v1181_v62 = vld [vmem:[%s4566_s3 + $0x118] sm:$0xff] }
  0xbe   :  { %1934 = vmatprep.subr.bf16.mxu0 %v1933_v2  ;;  %v330_v2 = vld [vmem:[%s4564_s1 + $0x910] sm:$0xff]  ;;  %v2207_v4 = vpack.c.bf16 %v1156_v61, %v1154_v60  ;;  %v375_v60 = vld [vmem:[%s4564_s1 + $0xa78] sm:$0xff]  ;;  %v1179_v61 = vld [vmem:[%s4566_s3 + $0x108] sm:$0xff] }
  0xbf   :  { %2064 = vmatpush1.bf16.msra.mxu1 %v2063_v8  ;;  %v1158_v8 = vld [vmem:[%s4566_s3 + $0x60] sm:$0xff]  ;;  %v2087_v13 = vpack.c.bf16 %v334_v3, %v330_v2 }
  0xc0   :  { %2066 = vmatprep.subr.bf16.mxu1 %v2065_v10  ;;  %v343_v10 = vld [vmem:[%s4564_s1 + $0x978] sm:$0xff] }
  0xc1   :  { %1936 = vmatpush1.bf16.msra.mxu0 %v1935_v9  ;;  %v1160_v9 = vld [vmem:[%s4566_s3 + $0x70] sm:$0xff]  ;;  %v2089_v20 = vpack.c.bf16 %v343_v10, %v339_v6  ;;  %v1178_v6 = vld [vmem:[%s4566_s3 + $0x100] sm:$0xff]  ;;  %v1185_v10 = vld [vmem:[%s4566_s3 + $0x138] sm:$0xff] }
  0xc2   :  { %1938 = vmatprep.subr.bf16.mxu0 %v1937_v14  ;;  %v338_v14 = vld [vmem:[%s4564_s1 + $0x950] sm:$0xff]  ;;  %v2211_v18 = vpack.c.bf16 %v1160_v9, %v1158_v8  ;;  %v383_v8 = vld [vmem:[%s4564_s1 + $0xab8] sm:$0xff]  ;;  %v1183_v9 = vld [vmem:[%s4566_s3 + $0x128] sm:$0xff] }
  0xc3   :  { %2068 = vmatpush1.bf16.msra.mxu1 %v2067_v21  ;;  %v347_v21 = vld [vmem:[%s4564_s1 + $0x998] sm:$0xff] }
  0xc4   :  { %2070 = vmatprep.subr.bf16.mxu1 %v2069_v23  ;;  %v1162_v23 = vld [vmem:[%s4566_s3 + $0x80] sm:$0xff]  ;;  %v2093_v34 = vpack.c.bf16 %v351_v25, %v347_v21  ;;  %v1189_v25 = vld [vmem:[%s4566_s3 + $0x158] sm:$0xff] }
  0xc5   :  { %1940 = vmatpush1.bf16.msra.mxu0 %v1939_v22  ;;  %v2213_v22 = vpack.c.bf16 %v1165_v12, %v1163_v11  ;;  %v2215_v33 = vpack.c.bf16 %v1164_v24, %v1162_v23  ;;  %v378_v12 = vld [vmem:[%s4564_s1 + $0xa90] sm:$0xff]  ;;  %v1182_v21 = vld [vmem:[%s4566_s3 + $0x120] sm:$0xff]  ;;  %v391_v23 = vld [vmem:[%s4564_s1 + $0xaf8] sm:$0xff] }
  0xc6   :  { %994 = vmatmul.mubr.f32.vlgmr.msra.gmra.mrb[2].mxu1 %v2386_v36  ;;  %2198 = vmatprep.subr.bf16.mxu0 %v2197_v46  ;;  %v2217_v36 = vpack.c.bf16 %v1169_v27, %v1167_v26  ;;  %v1187_v24 = vld [vmem:[%s4566_s3 + $0x148] sm:$0xff]  ;;  %v386_v27 = vld [vmem:[%s4564_s1 + $0xad0] sm:$0xff] }
  0xc7   :  { %2072 = vmatpush1.bf16.msra.mxu1 %v2071_v29  ;;  %1064 = vmatprep.mubr.f32.mxu1 %v3024_v28  ;;  %v1152_v28 = vld [vmem:[%s4566_s3 + $0x30] sm:$0xff]  ;;  %v2091_v29 = vpack.c.bf16 %v342_v15, %v338_v14 }
  0xc8   :  { %852 = vmatmul.mubr.f32.vlgmr.msra.gmra.mrb[0].mxu0 %v3653_v30  ;;  %2074 = vmatprep.subr.bf16.mxu1 %v2073_v31  ;;  %v2203_v57 = vpack.c.bf16 %v1152_v28, %v1150_v51  ;;  %v346_v31 = vld [vmem:[%s4564_s1 + $0x990] sm:$0xff]  ;;  %v1175_v51 = vld [vmem:[%s4566_s3 + $0xe8] sm:$0xff]  ;;  %v1177_v28 = vld [vmem:[%s4566_s3 + $0xf8] sm:$0xff] }
  0xc9   :  { %2200 = vmatpush1.bf16.msra.mxu0 %v2199_v49  ;;  %v2095_v43 = vpack.c.bf16 %v350_v32, %v346_v31  ;;  %v1172_v49 = vld [vmem:[%s4566_s3 + $0xd0] sm:$0xff] }
  0xca   :  { %2202 = vmatprep.subr.bf16.mxu0 %v2201_v50  ;;  %v367_v50 = vld [vmem:[%s4564_s1 + $0xa38] sm:$0xff]  ;;  %v2223_v55 = vpack.c.bf16 %v1172_v49, %v1170_v48  ;;  %v1195_v49 = vld [vmem:[%s4566_s3 + $0x188] sm:$0xff] }
  0xcb   :  { %2076 = vmatpush1.bf16.msra.mxu1 %v2075_v39  ;;  %v359_v39 = vld [vmem:[%s4564_s1 + $0x9f8] sm:$0xff]  ;;  %v2101_v56 = vpack.c.bf16 %v367_v50, %v363_v47  ;;  %v1190_v47 = vld [vmem:[%s4566_s3 + $0x160] sm:$0xff] }
  0xcc   :  { %2078 = vmatprep.subr.bf16.mxu1 %v2077_v45  ;;  %v2219_v45 = vpack.c.bf16 %v1168_v38, %v1166_v37  ;;  %v2097_v46 = vpack.c.bf16 %v359_v39, %v355_v35  ;;  %v1186_v35 = vld [vmem:[%s4566_s3 + $0x140] sm:$0xff]  ;;  %v399_v37 = vld [vmem:[%s4564_s1 + $0xb38] sm:$0xff]  ;;  %v1191_v38 = vld [vmem:[%s4566_s3 + $0x168] sm:$0xff] }
  0xcd   :  { %2204 = vmatpush1.bf16.msra.mxu0 %v2203_v57  ;;  %v371_v57 = vld [vmem:[%s4564_s1 + $0xa58] sm:$0xff] }
  0xce   :  { %2206 = vmatprep.subr.bf16.mxu0 %v2205_v59  ;;  %v1176_v59 = vld [vmem:[%s4566_s3 + $0xf0] sm:$0xff]  ;;  %v2105_v3 = vpack.c.bf16 %v375_v60, %v371_v57  ;;  %v1193_v39 = vld [vmem:[%s4566_s3 + $0x178] sm:$0xff]  ;;  %v1194_v57 = vld [vmem:[%s4566_s3 + $0x180] sm:$0xff] }
  0xcf   :  { %2080 = vmatpush1.bf16.msra.mxu1 %v2079_v54  ;;  %v366_v54 = vld [vmem:[%s4564_s1 + $0xa30] sm:$0xff]  ;;  %v2227_v2 = vpack.c.bf16 %v1176_v59, %v1174_v19  ;;  %v407_v48 = vld [vmem:[%s4564_s1 + $0xb78] sm:$0xff]  ;;  %v1199_v59 = vld [vmem:[%s4566_s3 + $0x1a8] sm:$0xff] }
  0xd0   :  { %2082 = vmatprep.subr.bf16.mxu1 %v2081_v58  ;;  %v2225_v58 = vpack.c.bf16 %v1177_v28, %v1175_v51  ;;  %v2103_v63 = vpack.c.bf16 %v366_v54, %v362_v53  ;;  %v1197_v50 = vld [vmem:[%s4566_s3 + $0x198] sm:$0xff]  ;;  %v402_v28 = vld [vmem:[%s4564_s1 + $0xb50] sm:$0xff] }
  0xd1   :  { %2208 = vmatpush1.bf16.msra.mxu0 %v2207_v4  ;;  %v379_v4 = vld [vmem:[%s4564_s1 + $0xa98] sm:$0xff] }
  0xd2   :  { %2210 = vmatprep.subr.bf16.mxu0 %v2209_v7  ;;  %v1180_v7 = vld [vmem:[%s4566_s3 + $0x110] sm:$0xff]  ;;  %v2109_v15 = vpack.c.bf16 %v383_v8, %v379_v4  ;;  %v415_v19 = vld [vmem:[%s4564_s1 + $0xbb8] sm:$0xff]  ;;  %v1198_v4 = vld [vmem:[%s4566_s3 + $0x1a0] sm:$0xff] }
  0xd3   :  { %2084 = vmatpush1.bf16.msra.mxu1 %v2083_v1  ;;  %v374_v1 = vld [vmem:[%s4564_s1 + $0xa70] sm:$0xff]  ;;  %v2231_v14 = vpack.c.bf16 %v1180_v7, %v1178_v6  ;;  %v1201_v60 = vld [vmem:[%s4566_s3 + $0x1b8] sm:$0xff]  ;;  %v1203_v7 = vld [vmem:[%s4566_s3 + $0x1c8] sm:$0xff] }
  0xd4   :  { %2086 = vmatprep.subr.bf16.mxu1 %v2085_v5  ;;  %v2229_v5 = vpack.c.bf16 %v1181_v62, %v1179_v61  ;;  %v2107_v11 = vpack.c.bf16 %v374_v1, %v370_v0  ;;  %v410_v62 = vld [vmem:[%s4564_s1 + $0xb90] sm:$0xff]  ;;  %v423_v6 = vld [vmem:[%s4564_s1 + $0xbf8] sm:$0xff] }
  0xd5   :  { %2212 = vmatpush1.bf16.msra.mxu0 %v2211_v18  ;;  %v387_v18 = vld [vmem:[%s4564_s1 + $0xad8] sm:$0xff] }
  0xd6   :  { %2214 = vmatprep.subr.bf16.mxu0 %v2213_v22  ;;  %v1184_v22 = vld [vmem:[%s4566_s3 + $0x130] sm:$0xff]  ;;  %v2113_v32 = vpack.c.bf16 %v391_v23, %v387_v18  ;;  %v1205_v8 = vld [vmem:[%s4566_s3 + $0x1d8] sm:$0xff] }
  0xd7   :  { %2088 = vmatpush1.bf16.msra.mxu1 %v2087_v13  ;;  %v382_v13 = vld [vmem:[%s4564_s1 + $0xab0] sm:$0xff]  ;;  %v2235_v31 = vpack.c.bf16 %v1184_v22, %v1182_v21  ;;  %v431_v18 = vld [vmem:[%s4564_s1 + $0xc38] sm:$0xff] }
  0xd8   :  { %2090 = vmatprep.subr.bf16.mxu1 %v2089_v20  ;;  %v2233_v20 = vpack.c.bf16 %v1185_v10, %v1183_v9  ;;  %v2111_v26 = vpack.c.bf16 %v382_v13, %v378_v12  ;;  %v418_v12 = vld [vmem:[%s4564_s1 + $0xbd0] sm:$0xff] }
  0xd9   :  { %2216 = vmatpush1.bf16.msra.mxu0 %v2215_v33  ;;  %v395_v33 = vld [vmem:[%s4564_s1 + $0xb18] sm:$0xff]  ;;  %v422_v13 = vld [vmem:[%s4564_s1 + $0xbf0] sm:$0xff] }
  0xda   :  { %2218 = vmatprep.subr.bf16.mxu0 %v2217_v36  ;;  %v1188_v36 = vld [vmem:[%s4566_s3 + $0x150] sm:$0xff]  ;;  %v2117_v17 = vpack.c.bf16 %v399_v37, %v395_v33  ;;  %v447_v33 = vld [vmem:[%s4564_s1 + $0xcb8] sm:$0xff] }
  0xdb   :  { %2092 = vmatpush1.bf16.msra.mxu1 %v2091_v29  ;;  %v390_v29 = vld [vmem:[%s4564_s1 + $0xaf0] sm:$0xff]  ;;  %v2239_v44 = vpack.c.bf16 %v1188_v36, %v1186_v35 }
  0xdc   :  { %2094 = vmatprep.subr.bf16.mxu1 %v2093_v34  ;;  %v2237_v34 = vpack.c.bf16 %v1189_v25, %v1187_v24  ;;  %v2115_v40 = vpack.c.bf16 %v390_v29, %v386_v27  ;;  %v426_v22 = vld [vmem:[%s4564_s1 + $0xc10] sm:$0xff]  ;;  %v435_v24 = vld [vmem:[%s4564_s1 + $0xc58] sm:$0xff] }
  0xdd   :  { %2220 = vmatpush1.bf16.msra.mxu0 %v2219_v45  ;;  %v403_v45 = vld [vmem:[%s4564_s1 + $0xb58] sm:$0xff]  ;;  %v430_v23 = vld [vmem:[%s4564_s1 + $0xc30] sm:$0xff] }
  0xde   :  { %2222 = vmatprep.subr.bf16.mxu0 %v2221_v16  ;;  %v1192_v16 = vld [vmem:[%s4566_s3 + $0x170] sm:$0xff]  ;;  %v2121_v54 = vpack.c.bf16 %v407_v48, %v403_v45  ;;  %v439_v25 = vld [vmem:[%s4564_s1 + $0xc78] sm:$0xff] }
  0xdf   :  { %2096 = vmatpush1.bf16.msra.mxu1 %v2095_v43  ;;  %v398_v43 = vld [vmem:[%s4564_s1 + $0xb30] sm:$0xff]  ;;  %v2243_v53 = vpack.c.bf16 %v1192_v16, %v1190_v47  ;;  %v2137_v27 = vpack.c.bf16 %v439_v25, %v435_v24  ;;  %v463_v45 = vld [vmem:[%s4564_s1 + $0xd38] sm:$0xff] }
  0xe0   :  { %2098 = vmatprep.subr.bf16.mxu1 %v2097_v46  ;;  %v2241_v46 = vpack.c.bf16 %v1193_v39, %v1191_v38  ;;  %v2119_v51 = vpack.c.bf16 %v398_v43, %v394_v41  ;;  %v434_v29 = vld [vmem:[%s4564_s1 + $0xc50] sm:$0xff]  ;;  %v451_v39 = vld [vmem:[%s4564_s1 + $0xcd8] sm:$0xff] }
  0xe1   :  { %2224 = vmatpush1.bf16.msra.mxu0 %v2223_v55  ;;  %v411_v55 = vld [vmem:[%s4564_s1 + $0xb98] sm:$0xff]  ;;  %v442_v37 = vld [vmem:[%s4564_s1 + $0xc90] sm:$0xff] }
  0xe2   :  { %2226 = vmatprep.subr.bf16.mxu0 %v2225_v58  ;;  %v1196_v58 = vld [vmem:[%s4566_s3 + $0x190] sm:$0xff]  ;;  %v2125_v1 = vpack.c.bf16 %v415_v19, %v411_v55  ;;  %v479_v55 = vld [vmem:[%s4564_s1 + $0xdb8] sm:$0xff] }
  0xe3   :  { %2100 = vmatpush1.bf16.msra.mxu1 %v2099_v52  ;;  %v406_v52 = vld [vmem:[%s4564_s1 + $0xb70] sm:$0xff]  ;;  %v2247_v0 = vpack.c.bf16 %v1196_v58, %v1194_v57  ;;  %v1202_v57 = vld [vmem:[%s4566_s3 + $0x1c0] sm:$0xff]  ;;  %v1213_v24 = vld [vmem:[%s4566_s3 + $0x218] sm:$0xff] }
  0xe4   :  { %2102 = vmatprep.subr.bf16.mxu1 %v2101_v56  ;;  %v2245_v56 = vpack.c.bf16 %v1197_v50, %v1195_v49  ;;  %v2123_v61 = vpack.c.bf16 %v406_v52, %v402_v28  ;;  %v446_v38 = vld [vmem:[%s4564_s1 + $0xcb0] sm:$0xff]  ;;  %v467_v49 = vld [vmem:[%s4564_s1 + $0xd58] sm:$0xff] }
  0xe5   :  { %2228 = vmatpush1.bf16.msra.mxu0 %v2227_v2  ;;  %v419_v2 = vld [vmem:[%s4564_s1 + $0xbd8] sm:$0xff]  ;;  %v450_v43 = vld [vmem:[%s4564_s1 + $0xcd0] sm:$0xff] }
  0xe6   :  { %2230 = vmatprep.subr.bf16.mxu0 %v2229_v5  ;;  %v1200_v5 = vld [vmem:[%s4566_s3 + $0x1b0] sm:$0xff]  ;;  %v471_v50 = vld [vmem:[%s4564_s1 + $0xd78] sm:$0xff] }
  0xe7   :  { %2104 = vmatpush1.bf16.msra.mxu1 %v2103_v63  ;;  %v414_v63 = vld [vmem:[%s4564_s1 + $0xbb0] sm:$0xff]  ;;  %v2251_v10 = vpack.c.bf16 %v1200_v5, %v1198_v4  ;;  %v2153_v28 = vpack.c.bf16 %v471_v50, %v467_v49  ;;  %v535_v49 = vld [vmem:[%s4564_s1 + $0xf78] sm:$0xff] }
  0xe8   :  { %2106 = vmatprep.subr.bf16.mxu1 %v2105_v3  ;;  %v2249_v3 = vpack.c.bf16 %v1201_v60, %v1199_v59  ;;  %v2127_v9 = vpack.c.bf16 %v414_v63, %v410_v62  ;;  %v458_v16 = vld [vmem:[%s4564_s1 + $0xd10] sm:$0xff]  ;;  %v483_v63 = vld [vmem:[%s4564_s1 + $0xdd8] sm:$0xff] }
  0xe9   :  { %2232 = vmatpush1.bf16.msra.mxu0 %v2231_v14  ;;  %v2253_v14 = vpack.c.bf16 %v1205_v8, %v1203_v7  ;;  %v462_v48 = vld [vmem:[%s4564_s1 + $0xd30] sm:$0xff] }
  0xea   :  { %2234 = vmatprep.subr.bf16.mxu0 %v2233_v20  ;;  %v2131_v20 = vpack.c.bf16 %v422_v13, %v418_v12  ;;  %v466_v52 = vld [vmem:[%s4564_s1 + $0xd50] sm:$0xff]  ;;  %v491_v12 = vld [vmem:[%s4564_s1 + $0xe18] sm:$0xff] }
  0xeb   :  { %2108 = vmatpush1.bf16.msra.mxu1 %v2107_v11  ;;  %v2129_v11 = vpack.c.bf16 %v423_v6, %v419_v2  ;;  %v1204_v58 = vld [vmem:[%s4566_s3 + $0x1d0] sm:$0xff]  ;;  %v1207_v2 = vld [vmem:[%s4566_s3 + $0x1e8] sm:$0xff]  ;;  %v1206_v6 = vld [vmem:[%s4566_s3 + $0x1e0] sm:$0xff] }
  0xec   :  { %2110 = vmatprep.subr.bf16.mxu1 %v2109_v15  ;;  %v427_v15 = vld [vmem:[%s4564_s1 + $0xc18] sm:$0xff]  ;;  %v474_v59 = vld [vmem:[%s4564_s1 + $0xd90] sm:$0xff] }
  0xed   :  { %2236 = vmatpush1.bf16.msra.mxu0 %v2235_v31  ;;  %v2133_v21 = vpack.c.bf16 %v431_v18, %v427_v15  ;;  %v438_v31 = vld [vmem:[%s4564_s1 + $0xc70] sm:$0xff]  ;;  %v495_v13 = vld [vmem:[%s4564_s1 + $0xe38] sm:$0xff] }
  0xee   :  { %2238 = vmatprep.subr.bf16.mxu0 %v2237_v34  ;;  %v2387_v34 = vld [vmem:[%s4565_s0 + $0x20] sm:$0xff]  ;;  %v2139_v35 = vpack.c.bf16 %v438_v31, %v434_v29  ;;  %v478_v60 = vld [vmem:[%s4564_s1 + $0xdb0] sm:$0xff]  ;;  %v2165_v15 = vpack.c.bf16 %v495_v13, %v491_v12 }
  0xef   :  { %2112 = vmatpush1.bf16.msra.mxu1 %v2111_v26  ;;  %v2135_v26 = vpack.c.bf16 %v430_v23, %v426_v22  ;;  %v2159_v4 = vpack.c.bf16 %v478_v60, %v474_v59  ;;  %v1208_v7 = vld [vmem:[%s4566_s3 + $0x1f0] sm:$0xff]  ;;  %v503_v22 = vld [vmem:[%s4564_s1 + $0xe78] sm:$0xff]  ;;  %v1211_v23 = vld [vmem:[%s4566_s3 + $0x208] sm:$0xff] }
  0xf0   :  { %2114 = vmatprep.subr.bf16.mxu1 %v2113_v32  ;;  %v443_v32 = vld [vmem:[%s4564_s1 + $0xc98] sm:$0xff]  ;;  %v490_v18 = vld [vmem:[%s4564_s1 + $0xe10] sm:$0xff]  ;;  %v2261_v25 = vpack.c.bf16 %v1213_v24, %v1211_v23  ;;  %v1214_v24 = vld [vmem:[%s4566_s3 + $0x220] sm:$0xff] }
  0xf1   :  { %2240 = vmatpush1.bf16.msra.mxu0 %v2239_v44  ;;  %v2141_v36 = vpack.c.bf16 %v447_v33, %v443_v32  ;;  %v454_v44 = vld [vmem:[%s4564_s1 + $0xcf0] sm:$0xff]  ;;  %v507_v32 = vld [vmem:[%s4564_s1 + $0xe98] sm:$0xff] }
  0xf2   :  { %2242 = vmatprep.subr.bf16.mxu0 %v2241_v46  ;;  %v2147_v46 = vpack.c.bf16 %v454_v44, %v450_v43  ;;  %v498_v29 = vld [vmem:[%s4564_s1 + $0xe50] sm:$0xff]  ;;  %v511_v33 = vld [vmem:[%s4564_s1 + $0xeb8] sm:$0xff] }
  0xf3   :  { %2116 = vmatpush1.bf16.msra.mxu1 %v2115_v40  ;;  %v455_v40 = vld [vmem:[%s4564_s1 + $0xcf8] sm:$0xff]  ;;  %v502_v31 = vld [vmem:[%s4564_s1 + $0xe70] sm:$0xff] }
  0xf4   :  { %2118 = vmatprep.subr.bf16.mxu1 %v2117_v17  ;;  %v2145_v41 = vpack.c.bf16 %v455_v40, %v451_v39  ;;  %v459_v17 = vld [vmem:[%s4564_s1 + $0xd18] sm:$0xff]  ;;  %v518_v43 = vld [vmem:[%s4564_s1 + $0xef0] sm:$0xff] }
  0xf5   :  { %2244 = vmatpush1.bf16.msra.mxu0 %v2243_v53  ;;  %v2149_v47 = vpack.c.bf16 %v463_v45, %v459_v17  ;;  %v470_v53 = vld [vmem:[%s4564_s1 + $0xd70] sm:$0xff]  ;;  %v519_v39 = vld [vmem:[%s4564_s1 + $0xef8] sm:$0xff] }
  0xf6   :  { %2246 = vmatprep.subr.bf16.mxu0 %v2245_v56  ;;  %v2155_v56 = vpack.c.bf16 %v470_v53, %v466_v52  ;;  %v523_v44 = vld [vmem:[%s4564_s1 + $0xf18] sm:$0xff]  ;;  %v534_v52 = vld [vmem:[%s4564_s1 + $0xf70] sm:$0xff] }
  0xf7   :  { %2120 = vmatpush1.bf16.msra.mxu1 %v2119_v51  ;;  %v2151_v51 = vpack.c.bf16 %v462_v48, %v458_v16  ;;  %v527_v17 = vld [vmem:[%s4564_s1 + $0xf38] sm:$0xff]  ;;  %v526_v16 = vld [vmem:[%s4564_s1 + $0xf30] sm:$0xff] }
  0xf8   :  { %2122 = vmatprep.subr.bf16.mxu1 %v2121_v54  ;;  %v475_v54 = vld [vmem:[%s4564_s1 + $0xd98] sm:$0xff] }
  0xf9   :  { %2248 = vmatpush1.bf16.msra.mxu0 %v2247_v0  ;;  %v2157_v19 = vpack.c.bf16 %v479_v55, %v475_v54  ;;  %v487_v0 = vld [vmem:[%s4564_s1 + $0xdf8] sm:$0xff] }
  0xfa   :  { %2250 = vmatprep.subr.bf16.mxu0 %v2249_v3  ;;  %v1209_v3 = vld [vmem:[%s4566_s3 + $0x1f8] sm:$0xff]  ;;  %v2161_v8 = vpack.c.bf16 %v487_v0, %v483_v63  ;;  %v546_v63 = vld [vmem:[%s4564_s1 + $0xfd0] sm:$0xff] }
  0xfb   :  { %2124 = vmatpush1.bf16.msra.mxu1 %v2123_v61  ;;  %v2255_v61 = vpack.c.bf16 %v1204_v58, %v1202_v57  ;;  %v2257_v5 = vpack.c.bf16 %v1209_v3, %v1207_v2  ;;  %v531_v48 = vld [vmem:[%s4564_s1 + $0xf58] sm:$0xff]  ;;  %v538_v57 = vld [vmem:[%s4564_s1 + $0xf90] sm:$0xff]  ;;  %v554_v3 = vlaneseq }
  0xfc   :  { %2126 = vmatprep.subr.bf16.mxu1 %v2125_v1  ;;  %v539_v53 = vld [vmem:[%s4564_s1 + $0xf98] sm:$0xff]  ;;  %v542_v58 = vld [vmem:[%s4564_s1 + $0xfb0] sm:$0xff] }
  0xfd   :  { %2252 = vmatpush1.bf16.msra.mxu0 %v2251_v10  ;;  %v486_v10 = vld [vmem:[%s4564_s1 + $0xdf0] sm:$0xff]  ;;  %v543_v54 = vld [vmem:[%s4564_s1 + $0xfb8] sm:$0xff]  ;;  %v2191_v60 = vpack.c.bf16 %v542_v58, %v538_v57 }
  0xfe   :  { %2254 = vmatprep.subr.bf16.mxu0 %v2253_v14  ;;  %v551_v59 = vld [vmem:[%s4564_s1 + $0xff8] sm:$0xff]  ;;  %v550_v0 = vld [vmem:[%s4564_s1 + $0xff0] sm:$0xff] }
  0xff   :  { %2128 = vmatpush1.bf16.msra.mxu1 %v2127_v9  ;;  %v482_v9 = vld [vmem:[%s4564_s1 + $0xdd0] sm:$0xff]  ;;  %v2195_v2 = vpack.c.bf16 %v550_v0, %v546_v63 }
 0x100   :  { %2130 = vmatprep.subr.bf16.mxu1 %v2129_v11  ;;  %v2259_v11 = vpack.c.bf16 %v1208_v7, %v1206_v6  ;;  %v2163_v14 = vpack.c.bf16 %v486_v10, %v482_v9  ;;  %v4239_v6 = vld [vmem:[%s4567_s2] sm:$0xf] }
 0x101   :  { %2256 = vmatpush1.bf16.msra.mxu0 %v2255_v61 }
 0x102   :  { %2258 = vmatprep.subr.bf16.mxu0 %v2257_v5 }
 0x103   :  { %2132 = vmatpush1.bf16.msra.mxu1 %v2131_v20  ;;  %v494_v20 = vld [vmem:[%s4564_s1 + $0xe30] sm:$0xff] }
 0x104   :  { %2134 = vmatprep.subr.bf16.mxu1 %v2133_v21  ;;  %v499_v21 = vld [vmem:[%s4564_s1 + $0xe58] sm:$0xff] }
 0x105   :  { %2260 = vmatpush1.bf16.msra.mxu0 %v2259_v11 }
 0x106   :  { %1065 = vmatmul.mubr.f32.vlgmr.msra.gmra.mrb[2].mxu1 %v2387_v34  ;;  %2262 = vmatprep.subr.bf16.mxu0 %v2261_v25  ;;  %v2171_v34 = vpack.c.bf16 %v502_v31, %v498_v29  ;;  %v1216_v25 = vld [vmem:[%s4566_s3 + $0x230] sm:$0xff] }
 0x107   :  { %2136 = vmatpush1.bf16.msra.mxu1 %v2135_v26  ;;  %1135 = vmatprep.mubr.f32.mxu1 %v3304_v42  ;;  %v2143_v42 = vpack.c.bf16 %v446_v38, %v442_v37  ;;  %v2167_v26 = vpack.c.bf16 %v494_v20, %v490_v18  ;;  %v510_v37 = vld [vmem:[%s4564_s1 + $0xeb0] sm:$0xff]  ;;  %v515_v38 = vld [vmem:[%s4564_s1 + $0xed8] sm:$0xff]  ;;  %v1215_v20 = vld [vmem:[%s4566_s3 + $0x228] sm:$0xff]  ;;  %v2267_v29 = vpack.c.bf16 %v1216_v25, %v1214_v24 }
 0x108   :  { %2138 = vmatprep.subr.bf16.mxu1 %v2137_v27  ;;  %v2169_v27 = vpack.c.bf16 %v503_v22, %v499_v21  ;;  %v1254_v24 = vld [vmem:[%s4566_s3 + $0x360] sm:$0xff]  ;;  %v1256_v25 = vld [vmem:[%s4566_s3 + $0x370] sm:$0xff] }
 0x10b   :  { %2140 = vmatpush1.bf16.msra.mxu1 %v2139_v35  ;;  %v2173_v35 = vpack.c.bf16 %v511_v33, %v507_v32  ;;  %v1218_v32 = vld [vmem:[%s4566_s3 + $0x240] sm:$0xff]  ;;  %v1220_v33 = vld [vmem:[%s4566_s3 + $0x250] sm:$0xff] }
 0x10c   :  { %2142 = vmatprep.subr.bf16.mxu1 %v2141_v36  ;;  %v506_v36 = vld [vmem:[%s4564_s1 + $0xe90] sm:$0xff] }
 0x10d   :  { %v2175_v40 = vpack.c.bf16 %v510_v37, %v506_v36  ;;  %v2271_v36 = vpack.c.bf16 %v1220_v33, %v1218_v32  ;;  %v1258_v32 = vld [vmem:[%s4566_s3 + $0x380] sm:$0xff]  ;;  %v1260_v33 = vld [vmem:[%s4566_s3 + $0x390] sm:$0xff] }
 0x10f   :  { %2144 = vmatpush1.bf16.msra.mxu1 %v2143_v42  ;;  %v2177_v42 = vpack.c.bf16 %v519_v39, %v515_v38  ;;  %v1222_v38 = vld [vmem:[%s4566_s3 + $0x260] sm:$0xff]  ;;  %v1224_v39 = vld [vmem:[%s4566_s3 + $0x270] sm:$0xff] }
 0x110   :  { %2146 = vmatprep.subr.bf16.mxu1 %v2145_v41  ;;  %v514_v41 = vld [vmem:[%s4564_s1 + $0xed0] sm:$0xff] }
 0x111   :  { %v2179_v45 = vpack.c.bf16 %v518_v43, %v514_v41  ;;  %v2275_v41 = vpack.c.bf16 %v1224_v39, %v1222_v38  ;;  %v1262_v38 = vld [vmem:[%s4566_s3 + $0x3a0] sm:$0xff]  ;;  %v1264_v39 = vld [vmem:[%s4566_s3 + $0x3b0] sm:$0xff] }
 0x113   :  { %2148 = vmatpush1.bf16.msra.mxu1 %v2147_v46  ;;  %v2181_v46 = vpack.c.bf16 %v527_v17, %v523_v44  ;;  %v1226_v44 = vld [vmem:[%s4566_s3 + $0x280] sm:$0xff]  ;;  %v1228_v17 = vld [vmem:[%s4566_s3 + $0x290] sm:$0xff] }
 0x114   :  { %2150 = vmatprep.subr.bf16.mxu1 %v2149_v47  ;;  %v522_v47 = vld [vmem:[%s4564_s1 + $0xf10] sm:$0xff] }
 0x115   :  { %v2183_v50 = vpack.c.bf16 %v526_v16, %v522_v47  ;;  %v2279_v47 = vpack.c.bf16 %v1228_v17, %v1226_v44  ;;  %v1266_v44 = vld [vmem:[%s4566_s3 + $0x3c0] sm:$0xff]  ;;  %v1268_v17 = vld [vmem:[%s4566_s3 + $0x3d0] sm:$0xff] }
 0x117   :  { %2152 = vmatpush1.bf16.msra.mxu1 %v2151_v51  ;;  %v2185_v51 = vpack.c.bf16 %v535_v49, %v531_v48  ;;  %v1230_v48 = vld [vmem:[%s4566_s3 + $0x2a0] sm:$0xff]  ;;  %v1232_v49 = vld [vmem:[%s4566_s3 + $0x2b0] sm:$0xff] }
 0x118   :  { %2154 = vmatprep.subr.bf16.mxu1 %v2153_v28  ;;  %v530_v28 = vld [vmem:[%s4564_s1 + $0xf50] sm:$0xff] }
 0x119   :  { %v4102_v62 = vpop.f32.mrb[0].mxu1  ;;  %v2187_v55 = vpack.c.bf16 %v534_v52, %v530_v28  ;;  %v2283_v28 = vpack.c.bf16 %v1232_v49, %v1230_v48  ;;  %v1270_v48 = vld [vmem:[%s4566_s3 + $0x3e0] sm:$0xff]  ;;  %v1272_v49 = vld [vmem:[%s4566_s3 + $0x3f0] sm:$0xff] }
 0x11a   :  { %v4110_v1 = vpop.f32.mrb[1].mxu1 }
 0x11b   :  { %2156 = vmatpush1.bf16.msra.mxu1 %v2155_v56  ;;  %v2189_v56 = vpack.c.bf16 %v543_v54, %v539_v53  ;;  %v1234_v53 = vld [vmem:[%s4566_s3 + $0x2c0] sm:$0xff]  ;;  %v1236_v54 = vld [vmem:[%s4566_s3 + $0x2d0] sm:$0xff] }
 0x11c   :  { %2158 = vmatprep.subr.bf16.mxu1 %v2157_v19  ;;  %v547_v19 = vld [vmem:[%s4564_s1 + $0xfd8] sm:$0xff]  ;;  %v2287_v57 = vpack.c.bf16 %v1236_v54, %v1234_v53 }
 0x11d   :  { %v2193_v61 = vpack.c.bf16 %v551_v59, %v547_v19  ;;  %v1238_v19 = vld [vmem:[%s4566_s3 + $0x2e0] sm:$0xff]  ;;  %v1240_v59 = vld [vmem:[%s4566_s3 + $0x2f0] sm:$0xff] }
 0x11e   :  { %v2291_v63 = vpack.c.bf16 %v1240_v59, %v1238_v19  ;;  %v1430_v59 = vld [vmem:[%s4568_s5] sm:$0xff] }
 0x11f   :  { %2160 = vmatpush1.bf16.msra.mxu1 %v2159_v4  ;;  %v4233_v4 = vshrl.u32 %v554_v3, 7  ;;  %v1244_v3 = vld [vmem:[%s4566_s3 + $0x310] sm:$0xff] }
 0x120   :  { %2162 = vmatprep.subr.bf16.mxu1 %v2161_v8 }
 0x121   :  { %v556_v5 = vsub.s32 0, %v4233_v4  ;;  %v560_v7 = vsub.s32 1, %v4233_v4  ;;  %v564_v53 = vsub.s32 2, %v4233_v4  ;;  %v568_v54 = vsub.s32 3, %v4233_v4  ;;  %v1542_v4 = vld [vmem:[%s4570_s7 + $0x10] sm:$0xff] }
 0x123   :  { %2164 = vmatpush1.bf16.msra.mxu1 %v2163_v14  ;;  %v557_v8 = vrot.slane %v4239_v6, %v556_v5  ;;  %v1210_v14 = vld [vmem:[%s4566_s3 + $0x200] sm:$0xff] }
 0x124   :  { %2166 = vmatprep.subr.bf16.mxu1 %v2165_v15  ;;  %v1212_v15 = vld [vmem:[%s4566_s3 + $0x210] sm:$0xff] }
 0x125   :  { %v641_v9 = vadd.f32 %v4102_v62, %v557_v8  ;;  %v1217_v62 = vld [vmem:[%s4566_s3 + $0x238] sm:$0xff]  ;;  %v2263_v21 = vpack.c.bf16 %v1212_v15, %v1210_v14  ;;  %v1247_v8 = vld [vmem:[%s4566_s3 + $0x328] sm:$0xff] }
 0x126   :  { %v2265_v23 = vpack.c.bf16 %v1217_v62, %v1215_v20  ;;  %v1253_v14 = vld [vmem:[%s4566_s3 + $0x358] sm:$0xff]  ;;  %v1250_v20 = vld [vmem:[%s4566_s3 + $0x340] sm:$0xff]  ;;  %v1252_v62 = vld [vmem:[%s4566_s3 + $0x350] sm:$0xff] }
 0x127   :  { %2168 = vmatpush1.bf16.msra.mxu1 %v2167_v26  ;;  %v1219_v26 = vld [vmem:[%s4566_s3 + $0x248] sm:$0xff] }
 0x128   :  { %2170 = vmatprep.subr.bf16.mxu1 %v2169_v27  ;;  %v1221_v27 = vld [vmem:[%s4566_s3 + $0x258] sm:$0xff] }
 0x129   :  { %v2269_v31 = vpack.c.bf16 %v1221_v27, %v1219_v26  ;;  %v1259_v26 = vld [vmem:[%s4566_s3 + $0x388] sm:$0xff]  ;;  %v1261_v27 = vld [vmem:[%s4566_s3 + $0x398] sm:$0xff] }
 0x12b   :  { %2172 = vmatpush1.bf16.msra.mxu1 %v2171_v34  ;;  %v1223_v34 = vld [vmem:[%s4566_s3 + $0x268] sm:$0xff] }
 0x12c   :  { %2174 = vmatprep.subr.bf16.mxu1 %v2173_v35  ;;  %v1225_v35 = vld [vmem:[%s4566_s3 + $0x278] sm:$0xff] }
 0x12d   :  { %v2273_v37 = vpack.c.bf16 %v1225_v35, %v1223_v34  ;;  %v1263_v34 = vld [vmem:[%s4566_s3 + $0x3a8] sm:$0xff]  ;;  %v1265_v35 = vld [vmem:[%s4566_s3 + $0x3b8] sm:$0xff] }
 0x12f   :  { %2176 = vmatpush1.bf16.msra.mxu1 %v2175_v40  ;;  %v1227_v40 = vld [vmem:[%s4566_s3 + $0x288] sm:$0xff] }
 0x130   :  { %2178 = vmatprep.subr.bf16.mxu1 %v2177_v42  ;;  %v1229_v42 = vld [vmem:[%s4566_s3 + $0x298] sm:$0xff] }
 0x131   :  { %v2277_v43 = vpack.c.bf16 %v1229_v42, %v1227_v40  ;;  %v1267_v40 = vld [vmem:[%s4566_s3 + $0x3c8] sm:$0xff]  ;;  %v1269_v42 = vld [vmem:[%s4566_s3 + $0x3d8] sm:$0xff] }
 0x133   :  { %2180 = vmatpush1.bf16.msra.mxu1 %v2179_v45  ;;  %v1231_v45 = vld [vmem:[%s4566_s3 + $0x2a8] sm:$0xff] }
 0x134   :  { %2182 = vmatprep.subr.bf16.mxu1 %v2181_v46  ;;  %v1233_v46 = vld [vmem:[%s4566_s3 + $0x2b8] sm:$0xff] }
 0x135   :  { %v2281_v16 = vpack.c.bf16 %v1233_v46, %v1231_v45  ;;  %v1271_v45 = vld [vmem:[%s4566_s3 + $0x3e8] sm:$0xff]  ;;  %v1273_v46 = vld [vmem:[%s4566_s3 + $0x3f8] sm:$0xff] }
 0x137   :  { %2184 = vmatpush1.bf16.msra.mxu1 %v2183_v50  ;;  %v1235_v50 = vld [vmem:[%s4566_s3 + $0x2c8] sm:$0xff] }
 0x138   :  { %2186 = vmatprep.subr.bf16.mxu1 %v2185_v51  ;;  %v1237_v51 = vld [vmem:[%s4566_s3 + $0x2d8] sm:$0xff] }
 0x139   :  { %v2285_v52 = vpack.c.bf16 %v1237_v51, %v1235_v50  ;;  %v1446_v50 = vld [vmem:[%s4568_s5 + $0x80] sm:$0xff]  ;;  %v1447_v51 = vld [vmem:[%s4568_s5 + $0x88] sm:$0xff] }
 0x13b   :  { %2188 = vmatpush1.bf16.msra.mxu1 %v2187_v55  ;;  %v1239_v55 = vld [vmem:[%s4566_s3 + $0x2e8] sm:$0xff] }
 0x13c   :  { %2190 = vmatprep.subr.bf16.mxu1 %v2189_v56  ;;  %v1241_v56 = vld [vmem:[%s4566_s3 + $0x2f8] sm:$0xff] }
 0x13d   :  { %v2289_v58 = vpack.c.bf16 %v1241_v56, %v1239_v55  ;;  %v565_v55 = vrot.slane %v4239_v6, %v564_v53  ;;  %v569_v56 = vrot.slane %v4239_v6, %v568_v54 }
 0x13f   :  { %2192 = vmatpush1.bf16.msra.mxu1 %v2191_v60  ;;  %v1243_v60 = vld [vmem:[%s4566_s3 + $0x308] sm:$0xff] }
 0x140   :  { %2194 = vmatprep.subr.bf16.mxu1 %v2193_v61  ;;  %v1245_v61 = vld [vmem:[%s4566_s3 + $0x318] sm:$0xff] }
 0x141   :  { %v2293_v0 = vpack.c.bf16 %v1245_v61, %v1243_v60  ;;  %v1431_v60 = vld [vmem:[%s4568_s5 + $0x8] sm:$0xff] }
 0x143   :  { %2196 = vmatpush1.bf16.msra.mxu1 %v2195_v2  ;;  %v1242_v2 = vld [vmem:[%s4566_s3 + $0x300] sm:$0xff] }
 0x146   :  { %1136 = vmatmul.mubr.f32.vlgmr.msra.gmra.mrb[2].mxu1 %v3653_v30  ;;  %v561_v30 = vrot.slane %v4239_v6, %v560_v7  ;;  %v1449_v6 = vld [vmem:[%s4568_s5 + $0x98] sm:$0xff] }
 0x148   :  { %v643_v10 = vadd.f32 %v4110_v1, %v561_v30  ;;  %v1249_v30 = vld [vmem:[%s4566_s3 + $0x338] sm:$0xff] }
 0x19b   :  { %v853_v11 = vpop.f32.mrb[0].mxu0 }
 0x19c   :  { %v2364_v12 = vadd.f32 %v853_v11, %v641_v9  ;;  %v855_v13 = vpop.f32.mrb[1].mxu0  ;;  %v2295_v9 = vpack.c.bf16 %v1244_v3, %v1242_v2  ;;  %v1246_v11 = vld [vmem:[%s4566_s3 + $0x320] sm:$0xff]  ;;  %v2327_v2 = vpack.c.bf16 %v1431_v60, %v1430_v59  ;;  %v2390_v59 = vmov 0.0  }
 0x19d   :  { %v2366_v18 = vadd.f32 %v855_v13, %v643_v10  ;;  %v2297_v10 = vpack.c.bf16 %v1249_v30, %v1247_v8  ;;  %v1251_v13 = vld [vmem:[%s4566_s3 + $0x348] sm:$0xff]  ;;  %v1432_v30 = vld [vmem:[%s4568_s5 + $0x10] sm:$0xff]  ;;  %1682 = vmatprep.mubr.msk.f32.mxu1 %vm2389_vm0, %v2390_v59 }
 0x19e   :  { %v1142_v22 = vmax.f32 %v2364_v12, 0.0  ;;  %v1248_v12 = vld [vmem:[%s4566_s3 + $0x330] sm:$0xff] }
 0x19f   :  { %v1143_v1 = vmax.f32 %v2366_v18, 0.0  ;;  %v2299_v15 = vpack.c.bf16 %v1248_v12, %v1246_v11  ;;  %v2301_v18 = vpack.c.bf16 %v1253_v14, %v1251_v13  ;;  %v1451_v11 = vld [vmem:[%s4568_s5 + $0xa8] sm:$0xff]  ;;  %v1434_v14 = vld [vmem:[%s4568_s5 + $0x20] sm:$0xff] }
 0x1a1   :  { %1350 = vmatprep.mubr.f32.mxu0 %v1143_v1  ;;  %v1255_v1 = vld [vmem:[%s4566_s3 + $0x368] sm:$0xff] }
 0x1a2   :  { %1351 = vmatmul.mubr.f32.vlgmr.msra.gmra.mrb[2].mxu0 %v1142_v22  ;;  %v2303_v22 = vpack.c.bf16 %v1252_v62, %v1250_v20  ;;  %v1453_v20 = vld [vmem:[%s4568_s5 + $0xb8] sm:$0xff] }
 0x1a3   :  { %2264 = vmatpush1.bf16.msra.mxu0 %v2263_v21  ;;  %v1257_v21 = vld [vmem:[%s4566_s3 + $0x378] sm:$0xff] }
 0x1a4   :  { %2266 = vmatprep.subr.bf16.mxu0 %v2265_v23  ;;  %v2305_v23 = vpack.c.bf16 %v1257_v21, %v1255_v1  ;;  %v1436_v21 = vld [vmem:[%s4568_s5 + $0x30] sm:$0xff] }
 0x1a7   :  { %2268 = vmatpush1.bf16.msra.mxu0 %v2267_v29  ;;  %v2307_v29 = vpack.c.bf16 %v1256_v25, %v1254_v24  ;;  %v1455_v24 = vld [vmem:[%s4568_s5 + $0xc8] sm:$0xff] }
 0x1a8   :  { %2270 = vmatprep.subr.bf16.mxu0 %v2269_v31  ;;  %v2309_v31 = vpack.c.bf16 %v1261_v27, %v1259_v26  ;;  %v1438_v27 = vld [vmem:[%s4568_s5 + $0x40] sm:$0xff] }
 0x1ab   :  { %2272 = vmatpush1.bf16.msra.mxu0 %v2271_v36  ;;  %v2311_v36 = vpack.c.bf16 %v1260_v33, %v1258_v32  ;;  %v1457_v32 = vld [vmem:[%s4568_s5 + $0xd8] sm:$0xff] }
 0x1ac   :  { %2274 = vmatprep.subr.bf16.mxu0 %v2273_v37  ;;  %v2313_v37 = vpack.c.bf16 %v1265_v35, %v1263_v34  ;;  %v1440_v35 = vld [vmem:[%s4568_s5 + $0x50] sm:$0xff] }
 0x1af   :  { %2276 = vmatpush1.bf16.msra.mxu0 %v2275_v41  ;;  %v2315_v41 = vpack.c.bf16 %v1264_v39, %v1262_v38  ;;  %v1459_v38 = vld [vmem:[%s4568_s5 + $0xe8] sm:$0xff] }
 0x1b0   :  { %2278 = vmatprep.subr.bf16.mxu0 %v2277_v43  ;;  %v2317_v43 = vpack.c.bf16 %v1269_v42, %v1267_v40  ;;  %v1442_v42 = vld [vmem:[%s4568_s5 + $0x60] sm:$0xff] }
 0x1b3   :  { %2280 = vmatpush1.bf16.msra.mxu0 %v2279_v47  ;;  %v2319_v47 = vpack.c.bf16 %v1268_v17, %v1266_v44  ;;  %v1460_v44 = vld [vmem:[%s4568_s5 + $0xf0] sm:$0xff]  ;;  %v1461_v17 = vld [vmem:[%s4568_s5 + $0xf8] sm:$0xff] }
 0x1b4   :  { %2282 = vmatprep.subr.bf16.mxu0 %v2281_v16  ;;  %v2321_v16 = vpack.c.bf16 %v1273_v46, %v1271_v45  ;;  %v2353_v45 = vpack.c.bf16 %v1461_v17, %v1460_v44  ;;  %v1444_v46 = vld [vmem:[%s4568_s5 + $0x70] sm:$0xff] }
 0x1b7   :  { %2284 = vmatpush1.bf16.msra.mxu0 %v2283_v28  ;;  %v2323_v28 = vpack.c.bf16 %v1272_v49, %v1270_v48  ;;  %v1274_v48 = vld [vmem:[%s4569_s4] sm:$0x3] }
 0x1b8   :  { %2286 = vmatprep.subr.bf16.mxu0 %v2285_v52  ;;  %v2325_v52 = vpack.c.bf16 %v1447_v51, %v1446_v50  ;;  %v1279_v49 = vrot.slane %v1274_v48, %v556_v5  ;;  %v1283_v50 = vrot.slane %v1274_v48, %v560_v7  ;;  %v1543_v7 = vld [vmem:[%s4570_s7 + $0x18] sm:$0xff] }
 0x1bb   :  { %2288 = vmatpush1.bf16.msra.mxu0 %v2287_v57 }
 0x1bc   :  { %2290 = vmatprep.subr.bf16.mxu0 %v2289_v58 }
 0x1bf   :  { %2292 = vmatpush1.bf16.msra.mxu0 %v2291_v63  ;;  %v1448_v63 = vld [vmem:[%s4568_s5 + $0x90] sm:$0xff] }
 0x1c0   :  { %2294 = vmatprep.subr.bf16.mxu0 %v2293_v0  ;;  %v2329_v8 = vpack.c.bf16 %v1449_v6, %v1448_v63 }
 0x1c3   :  { %2296 = vmatpush1.bf16.msra.mxu0 %v2295_v9  ;;  %v1433_v9 = vld [vmem:[%s4568_s5 + $0x18] sm:$0xff] }
 0x1c4   :  { %2298 = vmatprep.subr.bf16.mxu0 %v2297_v10  ;;  %v1450_v10 = vld [vmem:[%s4568_s5 + $0xa0] sm:$0xff]  ;;  %v2331_v12 = vpack.c.bf16 %v1433_v9, %v1432_v30 }
 0x1c5   :  { %v2333_v13 = vpack.c.bf16 %v1451_v11, %v1450_v10 }
 0x1c7   :  { %2300 = vmatpush1.bf16.msra.mxu0 %v2299_v15  ;;  %v1435_v15 = vld [vmem:[%s4568_s5 + $0x28] sm:$0xff] }
 0x1c8   :  { %2302 = vmatprep.subr.bf16.mxu0 %v2301_v18  ;;  %v1452_v18 = vld [vmem:[%s4568_s5 + $0xb0] sm:$0xff]  ;;  %v2335_v62 = vpack.c.bf16 %v1435_v15, %v1434_v14 }
 0x1c9   :  { %v2337_v1 = vpack.c.bf16 %v1453_v20, %v1452_v18 }
 0x1cb   :  { %2304 = vmatpush1.bf16.msra.mxu0 %v2303_v22  ;;  %v1437_v22 = vld [vmem:[%s4568_s5 + $0x38] sm:$0xff] }
 0x1cc   :  { %2306 = vmatprep.subr.bf16.mxu0 %v2305_v23  ;;  %v1454_v23 = vld [vmem:[%s4568_s5 + $0xc0] sm:$0xff]  ;;  %v2339_v25 = vpack.c.bf16 %v1437_v22, %v1436_v21 }
 0x1cd   :  { %v2341_v26 = vpack.c.bf16 %v1455_v24, %v1454_v23 }
 0x1cf   :  { %2308 = vmatpush1.bf16.msra.mxu0 %v2307_v29  ;;  %v1439_v29 = vld [vmem:[%s4568_s5 + $0x48] sm:$0xff] }
 0x1d0   :  { %2310 = vmatprep.subr.bf16.mxu0 %v2309_v31  ;;  %v1456_v31 = vld [vmem:[%s4568_s5 + $0xd0] sm:$0xff]  ;;  %v2343_v33 = vpack.c.bf16 %v1439_v29, %v1438_v27 }
 0x1d1   :  { %v2345_v34 = vpack.c.bf16 %v1457_v32, %v1456_v31 }
 0x1d3   :  { %2312 = vmatpush1.bf16.msra.mxu0 %v2311_v36  ;;  %v1441_v36 = vld [vmem:[%s4568_s5 + $0x58] sm:$0xff] }
 0x1d4   :  { %2314 = vmatprep.subr.bf16.mxu0 %v2313_v37  ;;  %v1458_v37 = vld [vmem:[%s4568_s5 + $0xe0] sm:$0xff]  ;;  %v2347_v39 = vpack.c.bf16 %v1441_v36, %v1440_v35 }
 0x1d5   :  { %v2349_v40 = vpack.c.bf16 %v1459_v38, %v1458_v37 }
 0x1d7   :  { %2316 = vmatpush1.bf16.msra.mxu0 %v2315_v41  ;;  %v1443_v41 = vld [vmem:[%s4568_s5 + $0x68] sm:$0xff] }
 0x1d8   :  { %2318 = vmatprep.subr.bf16.mxu0 %v2317_v43  ;;  %v2351_v43 = vpack.c.bf16 %v1443_v41, %v1442_v42 }
 0x1db   :  { %2320 = vmatpush1.bf16.msra.mxu0 %v2319_v47  ;;  %v1445_v47 = vld [vmem:[%s4568_s5 + $0x78] sm:$0xff] }
 0x1dc   :  { %2322 = vmatprep.subr.bf16.mxu0 %v2321_v16  ;;  %v2355_v16 = vpack.c.bf16 %v1445_v47, %v1444_v46 }
 0x1df   :  { %2324 = vmatpush1.bf16.msra.mxu0 %v2323_v28 }
 0x1e0   :  { %2326 = vmatprep.subr.bf16.mxu0 %v2325_v52 }
 0x219   :  { %v1137_v57 = vpop.f32.mrb[2].mxu1 }
 0x21a   :  { %v2367_v58 = vadd.f32 %v1137_v57, %v565_v55  ;;  %v1139_v19 = vpop.f32.mrb[3].mxu1  ;;  %v1541_v57 = vld [vmem:[%s4570_s7 + $0x8] sm:$0xff] }
 0x21b   :  { %v2368_v61 = vadd.f32 %v1139_v19, %v569_v56  ;;  %v1540_v56 = vld [vmem:[%s4570_s7] sm:$0xff]  ;;  %v2361_v19 = vpack.c.bf16 %v1543_v7, %v1542_v4 }
 0x21c   :  { %v1144_v3 = vmax.f32 %v2367_v58, 0.0  ;;  %v2358_v5 = vpack.c.bf16 %v1541_v57, %v1540_v56  ;;  %v2388_v58 = vmov 0.0|0.0  }
 0x21d   :  { %v1145_v0 = vmax.f32 %v2368_v61, 0.0  ;;  %2357 = vmatprep.subr.bf16.mxu1 %v2388_v58  ;;  %v1631_v61 = vld [vmem:[%s4571_s6] ss:$0 sm:$0xff] }
 0x21e   :  { %2359 = vmatpush3.bf16.msra.mxu1 %v2358_v5 }
 0x21f   :  { %1421 = vmatprep.mubr.f32.mxu0 %v1145_v0  ;;  %2360 = vmatprep.subr.bf16.mxu1 %v2388_v58 }
 0x220   :  { %1422 = vmatmul.mubr.f32.vlgmr.msra.gmra.mrb[2].mxu0 %v1144_v3  ;;  %v1632_v3 = vld [vmem:[%s4572_s8] ss:$0 sm:$0xff] }
 0x221   :  { %2328 = vmatpush3.bf16.msra.mxu0 %v2327_v2 }
 0x222   :  { %2330 = vmatprep.subr.bf16.mxu0 %v2329_v8  ;;  %2362 = vmatpush3.bf16.msra.mxu1 %v2361_v19 }
 0x225   :  { %2332 = vmatpush3.bf16.msra.mxu0 %v2331_v12 }
 0x226   :  { %2334 = vmatprep.subr.bf16.mxu0 %v2333_v13 }
 0x229   :  { %2336 = vmatpush3.bf16.msra.mxu0 %v2335_v62 }
 0x22a   :  { %2338 = vmatprep.subr.bf16.mxu0 %v2337_v1 }
 0x22d   :  { %2340 = vmatpush3.bf16.msra.mxu0 %v2339_v25 }
 0x22e   :  { %2342 = vmatprep.subr.bf16.mxu0 %v2341_v26 }
 0x231   :  { %2344 = vmatpush3.bf16.msra.mxu0 %v2343_v33 }
 0x232   :  { %2346 = vmatprep.subr.bf16.mxu0 %v2345_v34 }
 0x235   :  { %2348 = vmatpush3.bf16.msra.mxu0 %v2347_v39 }
 0x236   :  { %2350 = vmatprep.subr.bf16.mxu0 %v2349_v40 }
 0x239   :  { %2352 = vmatpush3.bf16.msra.mxu0 %v2351_v43 }
 0x23a   :  { %2354 = vmatprep.subr.bf16.mxu0 %v2353_v45 }
 0x23d   :  { %2356 = vmatpush3.bf16.msra.mxu0 %v2355_v16 }
 0x2f3   :  { %v1423_v51 = vpop.f32.mrb[2].mxu0 }
 0x2f4   :  { %v2369_v28 = vadd.f32 %v1423_v51, %v1279_v49  ;;  %v1425_v52 = vpop.f32.mrb[3].mxu0 }
 0x2f5   :  { %v2370_v53 = vadd.f32 %v1425_v52, %v1283_v50 }
 0x2f6   :  { %v1428_v55 = vmax.f32 %v2369_v28, 0.0 }
 0x2f7   :  { %v1429_v54 = vmax.f32 %v2370_v53, 0.0 }
 0x2f9   :  { %1533 = vmatprep.mubr.f32.mxu0 %v1429_v54 }
 0x2fa   :  { %1534 = vmatmul.mubr.f32.vlgmr.msra.gmra.mrb[4].mxu0 %v1428_v55 }
 0x3cd   :  { %v1666_v60 = vpop.f32.mrb[4].mxu0 }
 0x3ce   :  { %v1667_v63 = vpop.f32.mrb[5].mxu0 }
 0x3cf   :  { %v1668_v6 = vadd.f32 %v1667_v63, %v1666_v60 }
 0x3d1   :  { %v1536_v0 = vadd.f32 %v1668_v6, %v1631_v61 }
 0x3d3   :  { %v1539_v2 = vmax.f32 %v1536_v0, 0.0 }
 0x3d5   :  { %1683 = vmatmul.mubr.msk.f32.vlgmr.msra.gmra.mrb[4].mxu1 %vm1551_vm1, %v1539_v2 }
 0x4a8   :  { %v1621_v8 = vpop.f32.mrb[4].mxu1 }
 0x4a9   :  { %v1622_v30 = vadd.f32 %v1632_v3, %v1621_v8  ;;  %v1684_v9 = vpop.f32.mrb[5].mxu1 }
 0x4ab   :  { %1626 = vst.msk [vmem:[%s4573_s9] sm:$0xff] %vm1625_vm2, %v1622_v30 }

// kernel: mlp_forward.2
= control target key start
LH: loop header
LB: loop body
LE: loop exit
PB: predicated region body
PF: predicated region fallthrough
CT: control target
= control target key end

     0   :  { %8 = vsyncpa [#allocation3], 0  ;;  %s7435_s0 = inlined_call_operand.hbm [shape: f32[8,8288], index: 0, kind: input, shape index: {}]   ;;  %s7436_s1 = inlined_call_operand.hbm [shape: f32[8,8288,128], index: 1, kind: input, shape index: {}]   ;;  %s7437_s2 = inlined_call_operand.hbm [shape: f32[1,1024], index: 2, kind: input, shape index: {}]   ;;  %s7438_s3 = inlined_call_operand.vmem [shape: f32[8,1024], index: 3, kind: output, shape index: {}]  }
   0x1   :  { %9 = vsyncpa [#allocation5], 0 }
   0x2   :  { %11 = vsyncpa [#allocation5 + $0x1], 0  ;;  %s6185_s12 = smov 0   ;;  %s6187_s13 = smov 0  }
   0x3   :  { %s6189_s14 = smov 0   ;;  %s6191_s15 = smov 0  }
   0x4 LB: > { %s6206_s16 = sadd.s32 1, %s6155_s15   ;;  %s45_s17 = sadd.s32 1, %s6151_s14  ;;  %s6155_s15 = sphi %s6191_s15, %s7455_s15   ;;  %s6151_s14 = sphi %s6189_s14, %s7454_s14   ;;  %s6147_s13 = sphi %s6187_s13, %s7453_s13   ;;  %s6143_s12 = sphi %s6185_s12, %s7452_s12  }
   0x5   : > { %s42_s18 = ssub.s32 %s6155_s15, %s6206_s16  ;;  %p52_p0 = scmp.ne.s32.totalorder %s6151_s14, %s6147_s13 }
   0x6   : > { %p43_p1 = scmp.eq.s32.totalorder %s42_s18, 0  ;;  %p53_p2 = scmp.eq.s32.totalorder %s6155_s15, 0 }
   0x7   : > { %p5989_p3 = scmp.lt.s32.totalorder %s6155_s15, 8  ;;  %s145_s20 = sand.u32 1, %s6155_s15  }
   0x8   : > { %s6216_s19 = scalar_select %p43_p1, %s6151_s14, %s45_s17  }
   0x9   : > { %p54_p4 = por %p53_p2, %p52_p0  ;;  %s147_s21 = sand.u32 1, %s6151_s14  }
   0xa   : > { %s5966_s22 = smul.u32 8288, %s147_s21  ;;  %s6234_s30 = scalar_lea.sflag [#allocation5], %s145_s20 }
   0xb   : > { %p6222_p5 = pnand %p5989_p3, %p54_p4  ;;  %s5967_s24 = smul.u32 132608, %s6155_s15 }
   0xc   : > { %s149_s28 = scalar_lea.vmem [#allocation4], %s5966_s22  ;;  %s6034_s7 = scalar_lea.hbm %s7436_s1, 1060864 }
   0xd   : > { %s6230_s27 = scalar_lea.hbm %s7436_s1, %s5967_s24  ;;  %s156_s29 = sshll.u32 %s149_s28, 4  ;;  %s6232_s29 = int_to_ptr.vmem [resolvable:$true] %s156_s29 }
   0xe   : > { %s6029_s4 = scalar_lea.hbm %s6230_s27, 132608  ;;  %p6031_p7 = pneg %p6222_p5 }
   0xf   : > { %p6030_p6 = scmp.ne.s32.totalorder %s6230_s27, %s6029_s4  ;;  %p6035_p10 = scmp.lt.u32.totalorder %s6230_s27, %s7436_s1 }
  0x10   : > { %p6036_p11 = scmp.lt.u32.totalorder %s6034_s7, %s6029_s4  ;;  %p6038_p13 = scmp.lt.u32.totalorder %s6029_s4, %s6230_s27 }
  0x11   : > { %p6032_p8 = pnand %p6031_p7, %p6030_p6 }
  0x12   : > { %p6037_p12 = por %p6036_p11, %p6035_p10 }
  0x13   : > { %p6033_p9 = pneg %p6032_p8 }
  0x14   : > { %p6039_p0 = por %p6038_p13, %p6037_p12 }
  0x16   : > { %p6040_p1 = pnand %p6039_p0, %p6033_p9 }
  0x18   : > { %6043 = shalt.err (!%p6040_p1)
}
  0x19   : > { %s6044_s10 = scalar_lea.vmem %s6232_s29, 132608  ;;  %s6157_s11 = smov [#allocation4]  }
  0x1a   : > { %p6045_p2 = scmp.ne.s32.totalorder %s6232_s29, %s6044_s10  ;;  %s6049_s17 = sshll.u32 %s6157_s11, 4  ;;  %s6050_s17 = int_to_ptr.vmem [resolvable:$false] %s6049_s17 }
  0x1b   : > { %s6051_s18 = scalar_lea.vmem %s6050_s17, 265216  ;;  %p6052_p6 = scmp.lt.s32.totalorder %s6232_s29, %s6050_s17 }
  0x1c   : > { %p6047_p3 = pnand %p6045_p2, %p6031_p7  ;;  %p6053_p8 = scmp.lt.s32.totalorder %s6051_s18, %s6044_s10 }
  0x1e   : > { %p6048_p4 = pneg %p6047_p3  ;;  %p6054_p10 = por %p6053_p8, %p6052_p6 }
  0x20   : > { %p6055_p11 = pnand %p6054_p10, %p6048_p4 }
  0x22   : > { %6058 = shalt.err (!%p6055_p11)
}
  0x23   : > { %s6158_s20 = smov 128   ;;  %s6159_s22 = smov 8  }
  0x24   : > { %5984 = dma.hbm_to_vmem [thread:$0]  (!%p6222_p5), %s6230_s27, 132608, %s6232_s29, %s6234_s30, %s6158_s20, %s6158_s20, %s6159_s22  }
  0x25   : > { %s6263_s24 = sadd.s32 4294967295, %s6155_s15   ;;  %p58_p12 = scmp.ne.s32.totalorder %s6147_s13, %s6143_s12 }
  0x26   : > { %p7439_p9 = scmp.eq.s32.totalorder %s6263_s24, 0  ;;  %p3752_p13 = scmp.ge.s32.totalorder %s6155_s15, 1 }
  0x27   : > { %p121_p0 = scmp.lt.s32.totalorder %s6155_s15, 9  ;;  %s6160_s27 = smov [#allocation2]  }
  0x28   : > { %p6272_p1 = por %p7439_p9, %p58_p12  ;;  %s134_s28 = sshll.u32 %s6160_s27, 4  ;;  %s6280_s28 = int_to_ptr.vmem [resolvable:$true] %s134_s28 }
  0x29   : > { %p6276_p2 = pnand %p3752_p13, %p121_p0  ;;  %s3756_s12 = sshll.u32 %s6155_s15, 4 }
  0x2a   : > { %s7444_s25 = scalar_select %p6272_p1, 1, 0 }
  0x2b   : > { %s7445_s26 = scalar_select %p6276_p2, 1, 0 }
  0x2c   : > { %p5977_p3 = pneg %p6276_p2  ;;  %s6288_s5 = scalar_lea.hbm %s7437_s2, %s3756_s12 }
  0x2d   : > { %s169_s6 = scalar_lea.vmem [#allocation6], %s147_s21  ;;  %s6059_s9 = scalar_lea.hbm %s6288_s5, 16 }
  0x2e   : > { %s176_s7 = sshll.u32 %s169_s6, 4  ;;  %p6294_p4 = pnand %p5977_p3, %p7439_p9  ;;  %s177_s7 = int_to_ptr.vmem [resolvable:$true] %s176_s7 }
  0x2f   : > { %p6060_p6 = scmp.ne.s32.totalorder %s6288_s5, %s6059_s9  ;;  %s6064_s11 = scalar_lea.hbm %s7437_s2, 128 }
  0x30   : > { %s7446_s8 = scalar_select %p6294_p4, 1, 0 }
  0x31   : > { %p6062_p8 = pnand %p6060_p6, %p6031_p7  ;;  %p6065_p11 = scmp.lt.u32.totalorder %s6288_s5, %s7437_s2 }
  0x32   : > { %p6066_p12 = scmp.lt.u32.totalorder %s6064_s11, %s6059_s9  ;;  %p6068_p0 = scmp.lt.u32.totalorder %s6059_s9, %s6288_s5 }
  0x33   : > { %p6063_p10 = pneg %p6062_p8 }
  0x34   : > { %p6067_p13 = por %p6066_p12, %p6065_p11 }
  0x36   : > { %p6069_p3 = por %p6068_p0, %p6067_p13 }
  0x38   : > { %p6070_p9 = pnand %p6069_p3, %p6063_p10 }
  0x3a   : > { %6073 = shalt.err (!%p6070_p9)
}
  0x3b   : > { %s6074_s21 = scalar_lea.vmem %s177_s7, 16  ;;  %s6161_s20 = smov [#allocation6]  }
  0x3c   : > { %p6075_p1 = scmp.ne.s32.totalorder %s177_s7, %s6074_s21  ;;  %s6079_s22 = sshll.u32 %s6161_s20, 4  ;;  %s6080_s22 = int_to_ptr.vmem [resolvable:$false] %s6079_s22 }
  0x3d   : > { %s6081_s27 = scalar_lea.vmem %s6080_s22, 32  ;;  %p6082_p2 = scmp.lt.s32.totalorder %s177_s7, %s6080_s22 }
  0x3e   : > { %p6077_p6 = pnand %p6075_p1, %p6031_p7  ;;  %p6083_p4 = scmp.lt.s32.totalorder %s6081_s27, %s6074_s21 }
  0x40   : > { %p6078_p8 = pneg %p6077_p6  ;;  %p6084_p11 = por %p6083_p4, %p6082_p2 }
  0x42   : > { %p6085_p12 = pnand %p6084_p11, %p6078_p8 }
  0x44   : > { %6088 = shalt.err (!%p6085_p12)
}
  0x45   : > { %5987 = dma.hbm_to_vmem [thread:$0]  (!%p6222_p5), %s6288_s5, 16, %s177_s7, %s6234_s30  }
  0x46   : > { %s6089_s4 = scalar_lea.hbm %s7435_s0, 8320  ;;  %p7447_p9 = scmp.ne.s32.totalorder %s7446_s8, 0 }
  0x47   : > { %p6090_p7 = scmp.ne.s32.totalorder %s7435_s0, %s6089_s4  ;;  %p6096_p4 = scmp.lt.u32.totalorder %s6089_s4, %s7435_s0 }
  0x48   : > { %p6091_p1 = pneg %p7447_p9 }
  0x4a   : > { %p6092_p10 = pnand %p6091_p1, %p6090_p7 }
  0x4c   : > { %p6093_p2 = pneg %p6092_p10 }
  0x4e   : > { %p6098_p13 = pnand %p6096_p4, %p6093_p2 }
  0x50   : > { %6101 = shalt.err (!%p6098_p13)
}
  0x51   : > { %s6102_s23 = scalar_lea.vmem %s6280_s28, 8320  ;;  %p6110_p6 = scmp.lt.s32.totalorder %s6280_s28, %s6280_s28 }
  0x52   : > { %p6103_p5 = scmp.ne.s32.totalorder %s6280_s28, %s6102_s23  ;;  %p6111_p8 = scmp.lt.s32.totalorder %s6102_s23, %s6102_s23 }
  0x54   : > { %p6105_p0 = pnand %p6103_p5, %p6091_p1  ;;  %p6112_p11 = por %p6111_p8, %p6110_p6 }
  0x56   : > { %p6106_p3 = pneg %p6105_p0 }
  0x58   : > { %p6113_p12 = pnand %p6112_p11, %p6106_p3 }
  0x5a   : > { %6116 = shalt.err (!%p6113_p12)
}
  0x5b   : > { %5980 = dma.hbm_to_vmem [thread:$0]  (!%p7447_p9), %s7435_s0, 8320, %s6280_s28, [#allocation3]  }
  0x5c   : > { %p7448_p7 = scmp.ne.s32.totalorder %s7445_s26, 0 }
  0x5d   : > { %p7449_p10 = scmp.eq.s32.totalorder (!%p7448_p7), %s6263_s24, 0 }
  0x5e   : > { %185 = sbr.rel (%p7448_p7) target bundleno = 863 (0x35f), region = 32 }
  0x65   : > { %6134 = dma.done.wait (%p7449_p10), [#allocation3], 8320   ;;  %p7450_p1 = pmov %p7449_p10 }
  0x66   : > { %s191_s7 = sand.u32 1, %s6263_s24   ;;  %s193_s8 = sand.u32 1, %s6147_s13  }
  0x67   : > { %6136 = vsyncadd (%p7450_p1), [#allocation3], 4294958976  ;;  %s5968_s11 = smul.u32 8288, %s193_s8  ;;  %s192_s17 = scalar_lea.sflag [#allocation5], %s191_s7 }
  0x68   : > { %p7451_p9 = scmp.ne.s32.totalorder %s7444_s25, 0 }
  0x69   : > { %s6349_s18 = scalar_lea.vmem [#allocation4], %s5968_s11 }
  0x6a   : > { %6138 = dma.done.wait (%p7451_p9), %s192_s17, 132624  }
  0x6b   : > { %6140 = vsyncadd (%p7451_p9), %s192_s17, 4294834672  ;;  %v314_v0 = vld [vmem:[%s6349_s18 + $0x80] sm:$0xff]  ;;  %v315_v1 = vld [vmem:[%s6349_s18 + $0x88] sm:$0xff]  ;;  %s203_s25 = scalar_lea.vmem [#allocation6], %s193_s8  ;;  %vm6163_vm0 = vmmov 0   ;;  %vm1341_vm1 = vcmask 785408  }
  0x6c   : > { %v298_v2 = vld [vmem:[%s6349_s18] sm:$0xff]  ;;  %v4924_v3 = vpack.c.bf16 %v315_v1, %v314_v0  ;;  %v299_v4 = vld [vmem:[%s6349_s18 + $0x8] sm:$0xff]  ;;  %v316_v11 = vld [vmem:[%s6349_s18 + $0x90] sm:$0xff]  ;;  %p229_p2 = scmp.lt.s32.totalorder %s6263_s24, 7 }
  0x6d   : > { %v346_v5 = vld [vmem:[%s6349_s18 + $0x180] sm:$0xff]  ;;  %v347_v6 = vld [vmem:[%s6349_s18 + $0x188] sm:$0xff]  ;;  %v4926_v7 = vpack.c.bf16 %v299_v4, %v298_v2  ;;  %v317_v13 = vld [vmem:[%s6349_s18 + $0x98] sm:$0xff] }
  0x6e   : > { %v4956_v8 = vpack.c.bf16 %v347_v6, %v346_v5  ;;  %v330_v9 = vld [vmem:[%s6349_s18 + $0x100] sm:$0xff]  ;;  %v331_v10 = vld [vmem:[%s6349_s18 + $0x108] sm:$0xff]  ;;  %4925 = vmatprep.subr.bf16.mxu0 %v4924_v3  ;;  %v300_v14 = vld [vmem:[%s6349_s18 + $0x10] sm:$0xff]  ;;  %v4928_v16 = vpack.c.bf16 %v317_v13, %v316_v11  ;;  %s7457_s24 = smov (!%p229_p2, %s6263_s24), 7 }
  0x6f   : > { %v4958_v12 = vpack.c.bf16 %v331_v10, %v330_v9  ;;  %v301_v15 = vld [vmem:[%s6349_s18 + $0x18] sm:$0xff]  ;;  %4927 = vmatpush3.bf16.msra.mxu0 %v4926_v7  ;;  %v348_v18 = vld [vmem:[%s6349_s18 + $0x190] sm:$0xff]  ;;  %v318_v23 = vld [vmem:[%s6349_s18 + $0xa0] sm:$0xff]  ;;  %s3759_s26 = sshll.u32 %s7457_s24, 3 }
  0x70   : > { %4957 = vmatprep.subr.bf16.mxu1 %v4956_v8  ;;  %v4930_v17 = vpack.c.bf16 %v301_v15, %v300_v14  ;;  %v349_v19 = vld [vmem:[%s6349_s18 + $0x198] sm:$0xff]  ;;  %v332_v20 = vld [vmem:[%s6349_s18 + $0x110] sm:$0xff]  ;;  %v319_v24 = vld [vmem:[%s6349_s18 + $0xa8] sm:$0xff]  ;;  %4929 = vmatprep.subr.bf16.mxu0 %v4928_v16  ;;  %s232_s20 = scalar_lea.vmem %s7438_s3, %s3759_s26 }
  0x71   : > { %4959 = vmatpush3.bf16.msra.mxu1 %v4958_v12  ;;  %v4960_v21 = vpack.c.bf16 %v349_v19, %v348_v18  ;;  %v333_v22 = vld [vmem:[%s6349_s18 + $0x118] sm:$0xff]  ;;  %v4932_v26 = vpack.c.bf16 %v319_v24, %v318_v23  ;;  %v302_v27 = vld [vmem:[%s6349_s18 + $0x20] sm:$0xff]  ;;  %v303_v28 = vld [vmem:[%s6349_s18 + $0x28] sm:$0xff] }
  0x72   : > { %v4962_v25 = vpack.c.bf16 %v333_v22, %v332_v20  ;;  %v350_v29 = vld [vmem:[%s6349_s18 + $0x1a0] sm:$0xff]  ;;  %v351_v30 = vld [vmem:[%s6349_s18 + $0x1a8] sm:$0xff]  ;;  %v4934_v33 = vpack.c.bf16 %v303_v28, %v302_v27  ;;  %v320_v35 = vld [vmem:[%s6349_s18 + $0xb0] sm:$0xff] }
  0x73   : > { %4961 = vmatprep.subr.bf16.mxu1 %v4960_v21  ;;  %v334_v31 = vld [vmem:[%s6349_s18 + $0x120] sm:$0xff]  ;;  %v335_v32 = vld [vmem:[%s6349_s18 + $0x128] sm:$0xff]  ;;  %4931 = vmatpush3.bf16.msra.mxu0 %v4930_v17  ;;  %v4964_v34 = vpack.c.bf16 %v351_v30, %v350_v29  ;;  %v321_v36 = vld [vmem:[%s6349_s18 + $0xb8] sm:$0xff] }
  0x74   : > { %v304_v37 = vld [vmem:[%s6349_s18 + $0x30] sm:$0xff]  ;;  %4933 = vmatprep.subr.bf16.mxu0 %v4932_v26  ;;  %v4966_v38 = vpack.c.bf16 %v335_v32, %v334_v31  ;;  %v4936_v39 = vpack.c.bf16 %v321_v36, %v320_v35  ;;  %v305_v40 = vld [vmem:[%s6349_s18 + $0x38] sm:$0xff]  ;;  %v322_v46 = vld [vmem:[%s6349_s18 + $0xc0] sm:$0xff] }
  0x75   : > { %4963 = vmatpush3.bf16.msra.mxu1 %v4962_v25  ;;  %v352_v41 = vld [vmem:[%s6349_s18 + $0x1b0] sm:$0xff]  ;;  %v353_v42 = vld [vmem:[%s6349_s18 + $0x1b8] sm:$0xff]  ;;  %v323_v47 = vld [vmem:[%s6349_s18 + $0xc8] sm:$0xff]  ;;  %v4938_v48 = vpack.c.bf16 %v305_v40, %v304_v37 }
  0x76   : > { %4965 = vmatprep.subr.bf16.mxu1 %v4964_v34  ;;  %v4968_v43 = vpack.c.bf16 %v353_v42, %v352_v41  ;;  %v336_v44 = vld [vmem:[%s6349_s18 + $0x130] sm:$0xff]  ;;  %v337_v45 = vld [vmem:[%s6349_s18 + $0x138] sm:$0xff]  ;;  %v354_v49 = vld [vmem:[%s6349_s18 + $0x1c0] sm:$0xff]  ;;  %v4940_v52 = vpack.c.bf16 %v323_v47, %v322_v46 }
  0x77   : > { %4935 = vmatpush3.bf16.msra.mxu0 %v4934_v33  ;;  %v355_v50 = vld [vmem:[%s6349_s18 + $0x1c8] sm:$0xff]  ;;  %v4970_v51 = vpack.c.bf16 %v337_v45, %v336_v44  ;;  %v306_v53 = vld [vmem:[%s6349_s18 + $0x40] sm:$0xff]  ;;  %v324_v58 = vld [vmem:[%s6349_s18 + $0xd0] sm:$0xff] }
  0x78   : > { %4937 = vmatprep.subr.bf16.mxu0 %v4936_v39  ;;  %v307_v54 = vld [vmem:[%s6349_s18 + $0x48] sm:$0xff]  ;;  %v338_v55 = vld [vmem:[%s6349_s18 + $0x140] sm:$0xff]  ;;  %v4972_v56 = vpack.c.bf16 %v355_v50, %v354_v49  ;;  %v325_v59 = vld [vmem:[%s6349_s18 + $0xd8] sm:$0xff] }
  0x79   : > { %4967 = vmatpush3.bf16.msra.mxu1 %v4966_v38  ;;  %v339_v57 = vld [vmem:[%s6349_s18 + $0x148] sm:$0xff]  ;;  %v356_v60 = vld [vmem:[%s6349_s18 + $0x1d0] sm:$0xff]  ;;  %v357_v61 = vld [vmem:[%s6349_s18 + $0x1d8] sm:$0xff]  ;;  %v4942_v62 = vpack.c.bf16 %v307_v54, %v306_v53  ;;  %v4944_v0 = vpack.c.bf16 %v325_v59, %v324_v58 }
  0x7a   : > { %4969 = vmatprep.subr.bf16.mxu1 %v4968_v43  ;;  %v4974_v63 = vpack.c.bf16 %v339_v57, %v338_v55  ;;  %v308_v1 = vld [vmem:[%s6349_s18 + $0x50] sm:$0xff]  ;;  %v309_v2 = vld [vmem:[%s6349_s18 + $0x58] sm:$0xff]  ;;  %v4976_v4 = vpack.c.bf16 %v357_v61, %v356_v60  ;;  %v326_v6 = vld [vmem:[%s6349_s18 + $0xe0] sm:$0xff] }
  0x7b   : > { %4939 = vmatpush3.bf16.msra.mxu0 %v4938_v48  ;;  %v340_v3 = vld [vmem:[%s6349_s18 + $0x150] sm:$0xff]  ;;  %v341_v5 = vld [vmem:[%s6349_s18 + $0x158] sm:$0xff]  ;;  %v327_v7 = vld [vmem:[%s6349_s18 + $0xe8] sm:$0xff]  ;;  %v4946_v10 = vpack.c.bf16 %v309_v2, %v308_v1 }
  0x7c   : > { %4941 = vmatprep.subr.bf16.mxu0 %v4940_v52  ;;  %v358_v8 = vld [vmem:[%s6349_s18 + $0x1e0] sm:$0xff]  ;;  %v359_v9 = vld [vmem:[%s6349_s18 + $0x1e8] sm:$0xff]  ;;  %v4978_v13 = vpack.c.bf16 %v341_v5, %v340_v3  ;;  %v4948_v14 = vpack.c.bf16 %v327_v7, %v326_v6  ;;  %v328_v19 = vld [vmem:[%s6349_s18 + $0xf0] sm:$0xff] }
  0x7d   : > { %4971 = vmatpush3.bf16.msra.mxu1 %v4970_v51  ;;  %v310_v11 = vld [vmem:[%s6349_s18 + $0x60] sm:$0xff]  ;;  %v311_v15 = vld [vmem:[%s6349_s18 + $0x68] sm:$0xff]  ;;  %v4980_v18 = vpack.c.bf16 %v359_v9, %v358_v8  ;;  %v329_v20 = vld [vmem:[%s6349_s18 + $0xf8] sm:$0xff] }
  0x7e   : > { %4973 = vmatprep.subr.bf16.mxu1 %v4972_v56  ;;  %v234_v12 = vld [vmem:[#allocation2 + $0x8] sm:$0xff]  ;;  %v343_v17 = vld [vmem:[%s6349_s18 + $0x168] sm:$0xff]  ;;  %v236_v21 = vld [vmem:[#allocation2 + $0x18] sm:$0xff]  ;;  %v4950_v24 = vpack.c.bf16 %v311_v15, %v310_v11  ;;  %v4952_v26 = vpack.c.bf16 %v329_v20, %v328_v19 }
  0x7f   : > { %4943 = vmatpush3.bf16.msra.mxu0 %v4942_v62  ;;  %v342_v16 = vld [vmem:[%s6349_s18 + $0x160] sm:$0xff]  ;;  %1409 = vmatprep.mubr.f32.mxu0 %v234_v12  ;;  %v360_v22 = vld [vmem:[%s6349_s18 + $0x1f0] sm:$0xff]  ;;  %v361_v23 = vld [vmem:[%s6349_s18 + $0x1f8] sm:$0xff] }
  0x80   : > { %4945 = vmatprep.subr.bf16.mxu0 %v4944_v0  ;;  %1479 = vmatprep.mubr.f32.mxu1 %v236_v21  ;;  %v4982_v25 = vpack.c.bf16 %v343_v17, %v342_v16  ;;  %v312_v27 = vld [vmem:[%s6349_s18 + $0x70] sm:$0xff]  ;;  %v313_v28 = vld [vmem:[%s6349_s18 + $0x78] sm:$0xff]  ;;  %v4984_v30 = vpack.c.bf16 %v361_v23, %v360_v22  ;;  %v378_v32 = vld [vmem:[%s6349_s18 + $0x280] sm:$0xff] }
  0x81   : > { %4975 = vmatpush3.bf16.msra.mxu1 %v4974_v63  ;;  %v344_v29 = vld [vmem:[%s6349_s18 + $0x170] sm:$0xff]  ;;  %v345_v31 = vld [vmem:[%s6349_s18 + $0x178] sm:$0xff]  ;;  %v379_v33 = vld [vmem:[%s6349_s18 + $0x288] sm:$0xff]  ;;  %v4954_v36 = vpack.c.bf16 %v313_v28, %v312_v27 }
  0x82   : > { %4977 = vmatprep.subr.bf16.mxu1 %v4976_v4  ;;  %v410_v34 = vld [vmem:[%s6349_s18 + $0x380] sm:$0xff]  ;;  %v411_v35 = vld [vmem:[%s6349_s18 + $0x388] sm:$0xff]  ;;  %v4986_v37 = vpack.c.bf16 %v345_v31, %v344_v29  ;;  %v4988_v38 = vpack.c.bf16 %v379_v33, %v378_v32  ;;  %v380_v44 = vld [vmem:[%s6349_s18 + $0x290] sm:$0xff] }
  0x83   : > { %4947 = vmatpush3.bf16.msra.mxu0 %v4946_v10  ;;  %v362_v39 = vld [vmem:[%s6349_s18 + $0x200] sm:$0xff]  ;;  %v363_v40 = vld [vmem:[%s6349_s18 + $0x208] sm:$0xff]  ;;  %v5020_v42 = vpack.c.bf16 %v411_v35, %v410_v34  ;;  %v381_v45 = vld [vmem:[%s6349_s18 + $0x298] sm:$0xff] }
  0x84   : > { %4949 = vmatprep.subr.bf16.mxu0 %v4948_v14  ;;  %v394_v41 = vld [vmem:[%s6349_s18 + $0x300] sm:$0xff]  ;;  %v395_v43 = vld [vmem:[%s6349_s18 + $0x308] sm:$0xff]  ;;  %v412_v46 = vld [vmem:[%s6349_s18 + $0x390] sm:$0xff]  ;;  %v4990_v49 = vpack.c.bf16 %v363_v40, %v362_v39  ;;  %v4992_v52 = vpack.c.bf16 %v381_v45, %v380_v44 }
  0x85   : > { %4979 = vmatpush3.bf16.msra.mxu1 %v4978_v13  ;;  %v413_v47 = vld [vmem:[%s6349_s18 + $0x398] sm:$0xff]  ;;  %v235_v50 = vld [vmem:[#allocation2 + $0x10] sm:$0xff]  ;;  %v5022_v51 = vpack.c.bf16 %v395_v43, %v394_v41  ;;  %v364_v53 = vld [vmem:[%s6349_s18 + $0x210] sm:$0xff] }
  0x86   : > { %4981 = vmatprep.subr.bf16.mxu1 %v4980_v18  ;;  %v233_v48 = vld [vmem:[#allocation2] sm:$0xff]  ;;  %v396_v55 = vld [vmem:[%s6349_s18 + $0x310] sm:$0xff]  ;;  %v5024_v56 = vpack.c.bf16 %v413_v47, %v412_v46  ;;  %v382_v58 = vld [vmem:[%s6349_s18 + $0x2a0] sm:$0xff] }
  0x87   : > { %4951 = vmatpush3.bf16.msra.mxu0 %v4950_v24  ;;  %v365_v54 = vld [vmem:[%s6349_s18 + $0x218] sm:$0xff]  ;;  %v383_v59 = vld [vmem:[%s6349_s18 + $0x2a8] sm:$0xff]  ;;  %v414_v60 = vld [vmem:[%s6349_s18 + $0x3a0] sm:$0xff] }
  0x88   : > { %4953 = vmatprep.subr.bf16.mxu0 %v4952_v26  ;;  %v397_v57 = vld [vmem:[%s6349_s18 + $0x318] sm:$0xff]  ;;  %v415_v61 = vld [vmem:[%s6349_s18 + $0x3a8] sm:$0xff]  ;;  %v4994_v62 = vpack.c.bf16 %v365_v54, %v364_v53  ;;  %v4996_v0 = vpack.c.bf16 %v383_v59, %v382_v58  ;;  %v366_v1 = vld [vmem:[%s6349_s18 + $0x220] sm:$0xff] }
  0x89   : > { %4983 = vmatpush3.bf16.msra.mxu1 %v4982_v25  ;;  %v5026_v63 = vpack.c.bf16 %v397_v57, %v396_v55  ;;  %v367_v2 = vld [vmem:[%s6349_s18 + $0x228] sm:$0xff]  ;;  %v398_v3 = vld [vmem:[%s6349_s18 + $0x320] sm:$0xff]  ;;  %v5028_v4 = vpack.c.bf16 %v415_v61, %v414_v60  ;;  %v384_v6 = vld [vmem:[%s6349_s18 + $0x2b0] sm:$0xff] }
  0x8a   : > { %4985 = vmatprep.subr.bf16.mxu1 %v4984_v30  ;;  %v399_v5 = vld [vmem:[%s6349_s18 + $0x328] sm:$0xff]  ;;  %v385_v7 = vld [vmem:[%s6349_s18 + $0x2b8] sm:$0xff]  ;;  %v416_v8 = vld [vmem:[%s6349_s18 + $0x3b0] sm:$0xff]  ;;  %v4998_v10 = vpack.c.bf16 %v367_v2, %v366_v1 }
  0x8b   : > { %4955 = vmatpush3.bf16.msra.mxu0 %v4954_v36  ;;  %v417_v9 = vld [vmem:[%s6349_s18 + $0x3b8] sm:$0xff]  ;;  %v5030_v11 = vpack.c.bf16 %v399_v5, %v398_v3  ;;  %v5000_v12 = vpack.c.bf16 %v385_v7, %v384_v6  ;;  %v368_v13 = vld [vmem:[%s6349_s18 + $0x230] sm:$0xff]  ;;  %v386_v18 = vld [vmem:[%s6349_s18 + $0x2c0] sm:$0xff] }
  0x8c   : > { %4989 = vmatprep.subr.bf16.mxu0 %v4988_v38  ;;  %v369_v14 = vld [vmem:[%s6349_s18 + $0x238] sm:$0xff]  ;;  %v400_v15 = vld [vmem:[%s6349_s18 + $0x330] sm:$0xff]  ;;  %v5032_v16 = vpack.c.bf16 %v417_v9, %v416_v8  ;;  %v387_v19 = vld [vmem:[%s6349_s18 + $0x2c8] sm:$0xff] }
  0x8d   : > { %4987 = vmatpush3.bf16.msra.mxu1 %v4986_v37  ;;  %v401_v17 = vld [vmem:[%s6349_s18 + $0x338] sm:$0xff]  ;;  %v418_v20 = vld [vmem:[%s6349_s18 + $0x3c0] sm:$0xff]  ;;  %v419_v21 = vld [vmem:[%s6349_s18 + $0x3c8] sm:$0xff]  ;;  %v5002_v23 = vpack.c.bf16 %v369_v14, %v368_v13  ;;  %v5004_v26 = vpack.c.bf16 %v387_v19, %v386_v18 }
  0x8e   : > { %5021 = vmatprep.subr.bf16.mxu1 %v5020_v42  ;;  %1410 = vmatmul.mubr.f32.vlgmr.msra.gmra.mrb[0].mxu0 %v233_v48  ;;  %v238_v22 = vld [vmem:[#allocation2 + $0x28] sm:$0xff]  ;;  %v5034_v25 = vpack.c.bf16 %v401_v17, %v400_v15  ;;  %v371_v27 = vld [vmem:[%s6349_s18 + $0x248] sm:$0xff]  ;;  %v240_v29 = vld [vmem:[#allocation2 + $0x38] sm:$0xff]  ;;  %v5036_v30 = vpack.c.bf16 %v419_v21, %v418_v20 }
  0x8f   : > { %4991 = vmatpush3.bf16.msra.mxu0 %v4990_v49  ;;  %v370_v24 = vld [vmem:[%s6349_s18 + $0x240] sm:$0xff]  ;;  %1549 = vmatprep.mubr.f32.mxu0 %v238_v22  ;;  %v403_v31 = vld [vmem:[%s6349_s18 + $0x348] sm:$0xff]  ;;  %v388_v32 = vld [vmem:[%s6349_s18 + $0x2d0] sm:$0xff] }
  0x90   : > { %1480 = vmatmul.mubr.f32.vlgmr.msra.gmra.mrb[0].mxu1 %v235_v50  ;;  %4993 = vmatprep.subr.bf16.mxu0 %v4992_v52  ;;  %v402_v28 = vld [vmem:[%s6349_s18 + $0x340] sm:$0xff]  ;;  %v389_v33 = vld [vmem:[%s6349_s18 + $0x2d8] sm:$0xff]  ;;  %v420_v34 = vld [vmem:[%s6349_s18 + $0x3d0] sm:$0xff]  ;;  %v5006_v36 = vpack.c.bf16 %v371_v27, %v370_v24 }
  0x91   : > { %5023 = vmatpush3.bf16.msra.mxu1 %v5022_v51  ;;  %1619 = vmatprep.mubr.f32.mxu1 %v240_v29  ;;  %v421_v35 = vld [vmem:[%s6349_s18 + $0x3d8] sm:$0xff]  ;;  %v5038_v37 = vpack.c.bf16 %v403_v31, %v402_v28  ;;  %v5008_v38 = vpack.c.bf16 %v389_v33, %v388_v32  ;;  %v372_v39 = vld [vmem:[%s6349_s18 + $0x250] sm:$0xff]  ;;  %v390_v44 = vld [vmem:[%s6349_s18 + $0x2e0] sm:$0xff] }
  0x92   : > { %5025 = vmatprep.subr.bf16.mxu1 %v5024_v56  ;;  %v373_v40 = vld [vmem:[%s6349_s18 + $0x258] sm:$0xff]  ;;  %v404_v41 = vld [vmem:[%s6349_s18 + $0x350] sm:$0xff]  ;;  %v5040_v42 = vpack.c.bf16 %v421_v35, %v420_v34  ;;  %v391_v45 = vld [vmem:[%s6349_s18 + $0x2e8] sm:$0xff] }
  0x93   : > { %4995 = vmatpush3.bf16.msra.mxu0 %v4994_v62  ;;  %v405_v43 = vld [vmem:[%s6349_s18 + $0x358] sm:$0xff]  ;;  %v422_v46 = vld [vmem:[%s6349_s18 + $0x3e0] sm:$0xff]  ;;  %v423_v47 = vld [vmem:[%s6349_s18 + $0x3e8] sm:$0xff]  ;;  %v5010_v48 = vpack.c.bf16 %v373_v40, %v372_v39  ;;  %v5012_v50 = vpack.c.bf16 %v391_v45, %v390_v44 }
  0x94   : > { %4997 = vmatprep.subr.bf16.mxu0 %v4996_v0  ;;  %v5042_v49 = vpack.c.bf16 %v405_v43, %v404_v41  ;;  %v374_v51 = vld [vmem:[%s6349_s18 + $0x260] sm:$0xff]  ;;  %v375_v52 = vld [vmem:[%s6349_s18 + $0x268] sm:$0xff]  ;;  %v5044_v54 = vpack.c.bf16 %v423_v47, %v422_v46  ;;  %v392_v56 = vld [vmem:[%s6349_s18 + $0x2f0] sm:$0xff] }
  0x95   : > { %5027 = vmatpush3.bf16.msra.mxu1 %v5026_v63  ;;  %v406_v53 = vld [vmem:[%s6349_s18 + $0x360] sm:$0xff]  ;;  %v407_v55 = vld [vmem:[%s6349_s18 + $0x368] sm:$0xff]  ;;  %v393_v57 = vld [vmem:[%s6349_s18 + $0x2f8] sm:$0xff]  ;;  %v5014_v60 = vpack.c.bf16 %v375_v52, %v374_v51 }
  0x96   : > { %5029 = vmatprep.subr.bf16.mxu1 %v5028_v4  ;;  %v424_v58 = vld [vmem:[%s6349_s18 + $0x3f0] sm:$0xff]  ;;  %v425_v59 = vld [vmem:[%s6349_s18 + $0x3f8] sm:$0xff]  ;;  %v5046_v61 = vpack.c.bf16 %v407_v55, %v406_v53  ;;  %v5016_v62 = vpack.c.bf16 %v393_v57, %v392_v56  ;;  %v442_v4 = vld [vmem:[%s6349_s18 + $0x480] sm:$0xff] }
  0x97   : > { %4999 = vmatpush3.bf16.msra.mxu0 %v4998_v10  ;;  %v376_v63 = vld [vmem:[%s6349_s18 + $0x270] sm:$0xff]  ;;  %v377_v0 = vld [vmem:[%s6349_s18 + $0x278] sm:$0xff]  ;;  %v5048_v2 = vpack.c.bf16 %v425_v59, %v424_v58  ;;  %v443_v5 = vld [vmem:[%s6349_s18 + $0x488] sm:$0xff] }
  0x98   : > { %5001 = vmatprep.subr.bf16.mxu0 %v5000_v12  ;;  %v408_v1 = vld [vmem:[%s6349_s18 + $0x370] sm:$0xff]  ;;  %v409_v3 = vld [vmem:[%s6349_s18 + $0x378] sm:$0xff]  ;;  %v474_v6 = vld [vmem:[%s6349_s18 + $0x580] sm:$0xff]  ;;  %v5018_v8 = vpack.c.bf16 %v377_v0, %v376_v63  ;;  %v5052_v10 = vpack.c.bf16 %v443_v5, %v442_v4 }
  0x99   : > { %5031 = vmatpush3.bf16.msra.mxu1 %v5030_v11  ;;  %v475_v7 = vld [vmem:[%s6349_s18 + $0x588] sm:$0xff]  ;;  %v5050_v9 = vpack.c.bf16 %v409_v3, %v408_v1  ;;  %v426_v11 = vld [vmem:[%s6349_s18 + $0x400] sm:$0xff]  ;;  %v445_v17 = vld [vmem:[%s6349_s18 + $0x498] sm:$0xff] }
  0x9a   : > { %5033 = vmatprep.subr.bf16.mxu1 %v5032_v16  ;;  %v427_v12 = vld [vmem:[%s6349_s18 + $0x408] sm:$0xff]  ;;  %v458_v13 = vld [vmem:[%s6349_s18 + $0x500] sm:$0xff]  ;;  %v5084_v14 = vpack.c.bf16 %v475_v7, %v474_v6  ;;  %v444_v16 = vld [vmem:[%s6349_s18 + $0x490] sm:$0xff] }
  0x9b   : > { %5003 = vmatpush3.bf16.msra.mxu0 %v5002_v23  ;;  %v459_v15 = vld [vmem:[%s6349_s18 + $0x508] sm:$0xff]  ;;  %v476_v18 = vld [vmem:[%s6349_s18 + $0x590] sm:$0xff]  ;;  %v477_v19 = vld [vmem:[%s6349_s18 + $0x598] sm:$0xff]  ;;  %v5054_v21 = vpack.c.bf16 %v427_v12, %v426_v11  ;;  %v5056_v24 = vpack.c.bf16 %v445_v17, %v444_v16 }
  0x9c   : > { %5005 = vmatprep.subr.bf16.mxu0 %v5004_v26  ;;  %v237_v20 = vld [vmem:[#allocation2 + $0x20] sm:$0xff]  ;;  %v239_v22 = vld [vmem:[#allocation2 + $0x30] sm:$0xff]  ;;  %v5086_v23 = vpack.c.bf16 %v459_v15, %v458_v13  ;;  %v460_v27 = vld [vmem:[%s6349_s18 + $0x510] sm:$0xff]  ;;  %v5088_v28 = vpack.c.bf16 %v477_v19, %v476_v18 }
  0x9d   : > { %5035 = vmatpush3.bf16.msra.mxu1 %v5034_v25  ;;  %v428_v25 = vld [vmem:[%s6349_s18 + $0x410] sm:$0xff]  ;;  %v429_v26 = vld [vmem:[%s6349_s18 + $0x418] sm:$0xff]  ;;  %v447_v31 = vld [vmem:[%s6349_s18 + $0x4a8] sm:$0xff] }
  0x9e   : > { %5037 = vmatprep.subr.bf16.mxu1 %v5036_v30  ;;  %v461_v29 = vld [vmem:[%s6349_s18 + $0x518] sm:$0xff]  ;;  %v446_v30 = vld [vmem:[%s6349_s18 + $0x4a0] sm:$0xff]  ;;  %v479_v33 = vld [vmem:[%s6349_s18 + $0x5a8] sm:$0xff]  ;;  %v5058_v35 = vpack.c.bf16 %v429_v26, %v428_v25 }
  0x9f   : > { %5007 = vmatpush3.bf16.msra.mxu0 %v5006_v36  ;;  %v478_v32 = vld [vmem:[%s6349_s18 + $0x5a0] sm:$0xff]  ;;  %v244_v36 = vld [vmem:[#allocation2 + $0x58] sm:$0xff]  ;;  %v431_v40 = vld [vmem:[%s6349_s18 + $0x428] sm:$0xff] }
  0xa0   : > { %5009 = vmatprep.subr.bf16.mxu0 %v5008_v38  ;;  %v242_v34 = vld [vmem:[#allocation2 + $0x48] sm:$0xff]  ;;  %v5060_v38 = vpack.c.bf16 %v447_v31, %v446_v30  ;;  %v463_v43 = vld [vmem:[%s6349_s18 + $0x528] sm:$0xff]  ;;  %v448_v44 = vld [vmem:[%s6349_s18 + $0x4b0] sm:$0xff] }
  0xa1   : > { %5039 = vmatpush3.bf16.msra.mxu1 %v5038_v37  ;;  %v5090_v37 = vpack.c.bf16 %v461_v29, %v460_v27  ;;  %v430_v39 = vld [vmem:[%s6349_s18 + $0x420] sm:$0xff]  ;;  %v449_v45 = vld [vmem:[%s6349_s18 + $0x4b8] sm:$0xff]  ;;  %v480_v46 = vld [vmem:[%s6349_s18 + $0x5b0] sm:$0xff] }
  0xa2   : > { %5041 = vmatprep.subr.bf16.mxu1 %v5040_v42  ;;  %v462_v41 = vld [vmem:[%s6349_s18 + $0x520] sm:$0xff]  ;;  %v5092_v42 = vpack.c.bf16 %v479_v33, %v478_v32  ;;  %v481_v47 = vld [vmem:[%s6349_s18 + $0x5b8] sm:$0xff]  ;;  %v432_v51 = vld [vmem:[%s6349_s18 + $0x430] sm:$0xff] }
  0xa3   : > { %5011 = vmatpush3.bf16.msra.mxu0 %v5010_v48  ;;  %v5062_v48 = vpack.c.bf16 %v431_v40, %v430_v39  ;;  %v433_v52 = vld [vmem:[%s6349_s18 + $0x438] sm:$0xff]  ;;  %v464_v53 = vld [vmem:[%s6349_s18 + $0x530] sm:$0xff]  ;;  %v450_v56 = vld [vmem:[%s6349_s18 + $0x4c0] sm:$0xff] }
  0xa4   : > { %5013 = vmatprep.subr.bf16.mxu0 %v5012_v50  ;;  %v5064_v50 = vpack.c.bf16 %v449_v45, %v448_v44  ;;  %v465_v55 = vld [vmem:[%s6349_s18 + $0x538] sm:$0xff]  ;;  %v451_v57 = vld [vmem:[%s6349_s18 + $0x4c8] sm:$0xff]  ;;  %v482_v58 = vld [vmem:[%s6349_s18 + $0x5c0] sm:$0xff] }
  0xa5   : > { %5043 = vmatpush3.bf16.msra.mxu1 %v5042_v49  ;;  %v5094_v49 = vpack.c.bf16 %v463_v43, %v462_v41  ;;  %v483_v59 = vld [vmem:[%s6349_s18 + $0x5c8] sm:$0xff]  ;;  %v434_v63 = vld [vmem:[%s6349_s18 + $0x440] sm:$0xff]  ;;  %v452_v4 = vld [vmem:[%s6349_s18 + $0x4d0] sm:$0xff] }
  0xa6   : > { %5045 = vmatprep.subr.bf16.mxu1 %v5044_v54  ;;  %v5096_v54 = vpack.c.bf16 %v481_v47, %v480_v46  ;;  %v435_v0 = vld [vmem:[%s6349_s18 + $0x448] sm:$0xff]  ;;  %v466_v1 = vld [vmem:[%s6349_s18 + $0x540] sm:$0xff]  ;;  %v453_v5 = vld [vmem:[%s6349_s18 + $0x4d8] sm:$0xff] }
  0xa7   : > { %5015 = vmatpush3.bf16.msra.mxu0 %v5014_v60  ;;  %v5066_v60 = vpack.c.bf16 %v433_v52, %v432_v51  ;;  %v467_v3 = vld [vmem:[%s6349_s18 + $0x548] sm:$0xff]  ;;  %v484_v6 = vld [vmem:[%s6349_s18 + $0x5d0] sm:$0xff]  ;;  %v485_v7 = vld [vmem:[%s6349_s18 + $0x5d8] sm:$0xff] }
  0xa8   : > { %5017 = vmatprep.subr.bf16.mxu0 %v5016_v62  ;;  %v5068_v62 = vpack.c.bf16 %v451_v57, %v450_v56  ;;  %v436_v11 = vld [vmem:[%s6349_s18 + $0x450] sm:$0xff]  ;;  %v437_v12 = vld [vmem:[%s6349_s18 + $0x458] sm:$0xff]  ;;  %v454_v16 = vld [vmem:[%s6349_s18 + $0x4e0] sm:$0xff] }
  0xa9   : > { %5047 = vmatpush3.bf16.msra.mxu1 %v5046_v61  ;;  %v5098_v61 = vpack.c.bf16 %v465_v55, %v464_v53  ;;  %v468_v13 = vld [vmem:[%s6349_s18 + $0x550] sm:$0xff]  ;;  %v469_v15 = vld [vmem:[%s6349_s18 + $0x558] sm:$0xff]  ;;  %v455_v17 = vld [vmem:[%s6349_s18 + $0x4e8] sm:$0xff] }
  0xaa   : > { %5049 = vmatprep.subr.bf16.mxu1 %v5048_v2  ;;  %v5100_v2 = vpack.c.bf16 %v483_v59, %v482_v58  ;;  %v486_v18 = vld [vmem:[%s6349_s18 + $0x5e0] sm:$0xff]  ;;  %v487_v19 = vld [vmem:[%s6349_s18 + $0x5e8] sm:$0xff]  ;;  %v457_v29 = vld [vmem:[%s6349_s18 + $0x4f8] sm:$0xff] }
  0xab   : > { %5019 = vmatpush3.bf16.msra.mxu0 %v5018_v8  ;;  %v5070_v8 = vpack.c.bf16 %v435_v0, %v434_v63  ;;  %v470_v25 = vld [vmem:[%s6349_s18 + $0x560] sm:$0xff]  ;;  %v5108_v26 = vpack.c.bf16 %v487_v19, %v486_v18  ;;  %v471_v27 = vld [vmem:[%s6349_s18 + $0x568] sm:$0xff]  ;;  %v488_v30 = vld [vmem:[%s6349_s18 + $0x5f0] sm:$0xff] }
  0xac   : > { %5053 = vmatprep.subr.bf16.mxu0 %v5052_v10  ;;  %v5072_v10 = vpack.c.bf16 %v453_v5, %v452_v4  ;;  %v489_v31 = vld [vmem:[%s6349_s18 + $0x5f8] sm:$0xff]  ;;  %v5110_v33 = vpack.c.bf16 %v471_v27, %v470_v25  ;;  %v506_v40 = vld [vmem:[%s6349_s18 + $0x680] sm:$0xff]  ;;  %v507_v41 = vld [vmem:[%s6349_s18 + $0x688] sm:$0xff] }
  0xad   : > { %5051 = vmatpush3.bf16.msra.mxu1 %v5050_v9  ;;  %v5102_v9 = vpack.c.bf16 %v467_v3, %v466_v1  ;;  %v473_v39 = vld [vmem:[%s6349_s18 + $0x578] sm:$0xff]  ;;  %v539_v43 = vld [vmem:[%s6349_s18 + $0x788] sm:$0xff]  ;;  %v5116_v46 = vpack.c.bf16 %v507_v41, %v506_v40  ;;  %v490_v47 = vld [vmem:[%s6349_s18 + $0x600] sm:$0xff] }
  0xae   : > { %5085 = vmatprep.subr.bf16.mxu1 %v5084_v14  ;;  %1550 = vmatmul.mubr.f32.vlgmr.msra.gmra.mrb[2].mxu0 %v237_v20  ;;  %v5104_v14 = vpack.c.bf16 %v485_v7, %v484_v6  ;;  %v5074_v20 = vpack.c.bf16 %v437_v12, %v436_v11  ;;  %v523_v51 = vld [vmem:[%s6349_s18 + $0x708] sm:$0xff]  ;;  %v508_v52 = vld [vmem:[%s6349_s18 + $0x690] sm:$0xff]  ;;  %v509_v53 = vld [vmem:[%s6349_s18 + $0x698] sm:$0xff] }
  0xaf   : > { %5055 = vmatpush3.bf16.msra.mxu0 %v5054_v21  ;;  %1689 = vmatprep.mubr.f32.mxu0 %v242_v34  ;;  %v5106_v21 = vpack.c.bf16 %v469_v15, %v468_v13  ;;  %v541_v55 = vld [vmem:[%s6349_s18 + $0x798] sm:$0xff]  ;;  %v243_v58 = vld [vmem:[#allocation2 + $0x50] sm:$0xff]  ;;  %v524_v63 = vld [vmem:[%s6349_s18 + $0x710] sm:$0xff] }
  0xb0   : > { %1620 = vmatmul.mubr.f32.vlgmr.msra.gmra.mrb[2].mxu1 %v239_v22  ;;  %5057 = vmatprep.subr.bf16.mxu0 %v5056_v24  ;;  %v5076_v22 = vpack.c.bf16 %v455_v17, %v454_v16  ;;  %v439_v24 = vld [vmem:[%s6349_s18 + $0x468] sm:$0xff]  ;;  %v241_v56 = vld [vmem:[#allocation2 + $0x40] sm:$0xff]  ;;  %v542_v4 = vld [vmem:[%s6349_s18 + $0x7a0] sm:$0xff] }
  0xb1   : > { %5087 = vmatpush3.bf16.msra.mxu1 %v5086_v23  ;;  %1759 = vmatprep.mubr.f32.mxu1 %v244_v36  ;;  %v438_v23 = vld [vmem:[%s6349_s18 + $0x460] sm:$0xff]  ;;  %v441_v36 = vld [vmem:[%s6349_s18 + $0x478] sm:$0xff]  ;;  %v511_v3 = vld [vmem:[%s6349_s18 + $0x6a8] sm:$0xff] }
  0xb2   : > { %5089 = vmatprep.subr.bf16.mxu1 %v5088_v28  ;;  %v456_v28 = vld [vmem:[%s6349_s18 + $0x4f0] sm:$0xff]  ;;  %v5078_v32 = vpack.c.bf16 %v439_v24, %v438_v23  ;;  %v525_v1 = vld [vmem:[%s6349_s18 + $0x718] sm:$0xff]  ;;  %v543_v5 = vld [vmem:[%s6349_s18 + $0x7a8] sm:$0xff] }
  0xb3   : > { %5059 = vmatpush3.bf16.msra.mxu0 %v5058_v35  ;;  %v5080_v34 = vpack.c.bf16 %v457_v29, %v456_v28  ;;  %v440_v35 = vld [vmem:[%s6349_s18 + $0x470] sm:$0xff]  ;;  %v246_v6 = vld [vmem:[#allocation2 + $0x68] sm:$0xff]  ;;  %v495_v12 = vld [vmem:[%s6349_s18 + $0x628] sm:$0xff] }
  0xb4   : > { %5061 = vmatprep.subr.bf16.mxu0 %v5060_v38  ;;  %v5112_v38 = vpack.c.bf16 %v489_v31, %v488_v30  ;;  %v5082_v44 = vpack.c.bf16 %v441_v36, %v440_v35  ;;  %v494_v11 = vld [vmem:[%s6349_s18 + $0x620] sm:$0xff]  ;;  %v527_v15 = vld [vmem:[%s6349_s18 + $0x728] sm:$0xff]  ;;  %v512_v16 = vld [vmem:[%s6349_s18 + $0x6b0] sm:$0xff] }
  0xb5   : > { %5091 = vmatpush3.bf16.msra.mxu1 %v5090_v37  ;;  %v472_v37 = vld [vmem:[%s6349_s18 + $0x570] sm:$0xff]  ;;  %v526_v13 = vld [vmem:[%s6349_s18 + $0x720] sm:$0xff]  ;;  %v513_v17 = vld [vmem:[%s6349_s18 + $0x6b8] sm:$0xff] }
  0xb6   : > { %5093 = vmatprep.subr.bf16.mxu1 %v5092_v42  ;;  %v538_v42 = vld [vmem:[%s6349_s18 + $0x780] sm:$0xff]  ;;  %v5114_v45 = vpack.c.bf16 %v473_v39, %v472_v37  ;;  %v544_v18 = vld [vmem:[%s6349_s18 + $0x7b0] sm:$0xff]  ;;  %v545_v19 = vld [vmem:[%s6349_s18 + $0x7b8] sm:$0xff] }
  0xb7   : > { %5063 = vmatpush3.bf16.msra.mxu0 %v5062_v48  ;;  %v491_v48 = vld [vmem:[%s6349_s18 + $0x608] sm:$0xff]  ;;  %v496_v23 = vld [vmem:[%s6349_s18 + $0x630] sm:$0xff]  ;;  %v497_v24 = vld [vmem:[%s6349_s18 + $0x638] sm:$0xff] }
  0xb8   : > { %5065 = vmatprep.subr.bf16.mxu0 %v5064_v50  ;;  %v5148_v50 = vpack.c.bf16 %v539_v43, %v538_v42  ;;  %v5118_v57 = vpack.c.bf16 %v491_v48, %v490_v47  ;;  %v528_v25 = vld [vmem:[%s6349_s18 + $0x730] sm:$0xff]  ;;  %v529_v27 = vld [vmem:[%s6349_s18 + $0x738] sm:$0xff]  ;;  %v514_v28 = vld [vmem:[%s6349_s18 + $0x6c0] sm:$0xff] }
  0xb9   : > { %5095 = vmatpush3.bf16.msra.mxu1 %v5094_v49  ;;  %v522_v49 = vld [vmem:[%s6349_s18 + $0x700] sm:$0xff]  ;;  %v515_v29 = vld [vmem:[%s6349_s18 + $0x6c8] sm:$0xff]  ;;  %v516_v40 = vld [vmem:[%s6349_s18 + $0x6d0] sm:$0xff] }
  0xba   : > { %5097 = vmatprep.subr.bf16.mxu1 %v5096_v54  ;;  %v540_v54 = vld [vmem:[%s6349_s18 + $0x790] sm:$0xff]  ;;  %v5150_v59 = vpack.c.bf16 %v523_v51, %v522_v49  ;;  %v546_v30 = vld [vmem:[%s6349_s18 + $0x7c0] sm:$0xff]  ;;  %v547_v31 = vld [vmem:[%s6349_s18 + $0x7c8] sm:$0xff] }
  0xbb   : > { %5067 = vmatpush3.bf16.msra.mxu0 %v5066_v60  ;;  %v5120_v60 = vpack.c.bf16 %v509_v53, %v508_v52  ;;  %v5152_v0 = vpack.c.bf16 %v541_v55, %v540_v54  ;;  %v498_v35 = vld [vmem:[%s6349_s18 + $0x640] sm:$0xff]  ;;  %v499_v36 = vld [vmem:[%s6349_s18 + $0x648] sm:$0xff]  ;;  %v517_v41 = vld [vmem:[%s6349_s18 + $0x6d8] sm:$0xff] }
  0xbc   : > { %5069 = vmatprep.subr.bf16.mxu0 %v5068_v62  ;;  %v493_v62 = vld [vmem:[%s6349_s18 + $0x618] sm:$0xff]  ;;  %v530_v37 = vld [vmem:[%s6349_s18 + $0x740] sm:$0xff]  ;;  %v531_v39 = vld [vmem:[%s6349_s18 + $0x748] sm:$0xff] }
  0xbd   : > { %5099 = vmatpush3.bf16.msra.mxu1 %v5098_v61  ;;  %v492_v61 = vld [vmem:[%s6349_s18 + $0x610] sm:$0xff]  ;;  %v549_v43 = vld [vmem:[%s6349_s18 + $0x7d8] sm:$0xff]  ;;  %v518_v52 = vld [vmem:[%s6349_s18 + $0x6e0] sm:$0xff] }
  0xbe   : > { %5101 = vmatprep.subr.bf16.mxu1 %v5100_v2  ;;  %v510_v2 = vld [vmem:[%s6349_s18 + $0x6a0] sm:$0xff]  ;;  %v5122_v7 = vpack.c.bf16 %v493_v62, %v492_v61  ;;  %v548_v42 = vld [vmem:[%s6349_s18 + $0x7d0] sm:$0xff]  ;;  %v501_v48 = vld [vmem:[%s6349_s18 + $0x658] sm:$0xff] }
  0xbf   : > { %5071 = vmatpush3.bf16.msra.mxu0 %v5070_v8  ;;  %v248_v8 = vld [vmem:[#allocation2 + $0x78] sm:$0xff]  ;;  %v533_v51 = vld [vmem:[%s6349_s18 + $0x758] sm:$0xff]  ;;  %v519_v53 = vld [vmem:[%s6349_s18 + $0x6e8] sm:$0xff] }
  0xc0   : > { %5073 = vmatprep.subr.bf16.mxu0 %v5072_v10  ;;  %v5124_v10 = vpack.c.bf16 %v511_v3, %v510_v2  ;;  %v500_v47 = vld [vmem:[%s6349_s18 + $0x650] sm:$0xff]  ;;  %v550_v54 = vld [vmem:[%s6349_s18 + $0x7e0] sm:$0xff]  ;;  %v551_v55 = vld [vmem:[%s6349_s18 + $0x7e8] sm:$0xff] }
  0xc1   : > { %5103 = vmatpush3.bf16.msra.mxu1 %v5102_v9  ;;  %v5154_v9 = vpack.c.bf16 %v525_v1, %v524_v63  ;;  %v532_v49 = vld [vmem:[%s6349_s18 + $0x750] sm:$0xff]  ;;  %v534_v61 = vld [vmem:[%s6349_s18 + $0x760] sm:$0xff]  ;;  %v5172_v62 = vpack.c.bf16 %v551_v55, %v550_v54  ;;  %v535_v63 = vld [vmem:[%s6349_s18 + $0x768] sm:$0xff] }
  0xc2   : > { %5105 = vmatprep.subr.bf16.mxu1 %v5104_v14  ;;  %v5156_v14 = vpack.c.bf16 %v543_v5, %v542_v4  ;;  %v521_v1 = vld [vmem:[%s6349_s18 + $0x6f8] sm:$0xff]  ;;  %v552_v2 = vld [vmem:[%s6349_s18 + $0x7f0] sm:$0xff]  ;;  %v5174_v5 = vpack.c.bf16 %v535_v63, %v534_v61 }
  0xc3   : > { %5075 = vmatpush3.bf16.msra.mxu0 %v5074_v20  ;;  %v5126_v20 = vpack.c.bf16 %v495_v12, %v494_v11  ;;  %v553_v3 = vld [vmem:[%s6349_s18 + $0x7f8] sm:$0xff]  ;;  %v570_v12 = vld [vmem:[%s6349_s18 + $0x880] sm:$0xff]  ;;  %v608_v54 = vld [vmem:[%s6349_s18 + $0x9b0] sm:$0xff] }
  0xc4   : > { %5077 = vmatprep.subr.bf16.mxu0 %v5076_v22  ;;  %v5128_v22 = vpack.c.bf16 %v513_v17, %v512_v16  ;;  %v537_v11 = vld [vmem:[%s6349_s18 + $0x778] sm:$0xff]  ;;  %v592_v61 = vld [vmem:[%s6349_s18 + $0x930] sm:$0xff] }
  0xc5   : > { %5107 = vmatpush3.bf16.msra.mxu1 %v5106_v21  ;;  %v5158_v21 = vpack.c.bf16 %v527_v15, %v526_v13  ;;  %v571_v13 = vld [vmem:[%s6349_s18 + $0x888] sm:$0xff]  ;;  %v609_v55 = vld [vmem:[%s6349_s18 + $0x9b8] sm:$0xff] }
  0xc6   : > { %5109 = vmatprep.subr.bf16.mxu1 %v5108_v26  ;;  %v5160_v26 = vpack.c.bf16 %v545_v19, %v544_v18  ;;  %v603_v15 = vld [vmem:[%s6349_s18 + $0x988] sm:$0xff]  ;;  %v5180_v18 = vpack.c.bf16 %v571_v13, %v570_v12  ;;  %v554_v19 = vld [vmem:[%s6349_s18 + $0x800] sm:$0xff]  ;;  %v593_v63 = vld [vmem:[%s6349_s18 + $0x938] sm:$0xff] }
  0xc7   : > { %5079 = vmatpush3.bf16.msra.mxu0 %v5078_v32  ;;  %v5130_v32 = vpack.c.bf16 %v497_v24, %v496_v23  ;;  %v587_v23 = vld [vmem:[%s6349_s18 + $0x908] sm:$0xff]  ;;  %v572_v24 = vld [vmem:[%s6349_s18 + $0x890] sm:$0xff]  ;;  %v581_v13 = vld [vmem:[%s6349_s18 + $0x8d8] sm:$0xff] }
  0xc8   : > { %5081 = vmatprep.subr.bf16.mxu0 %v5080_v34  ;;  %v5132_v34 = vpack.c.bf16 %v515_v29, %v514_v28  ;;  %v245_v28 = vld [vmem:[#allocation2 + $0x60] sm:$0xff]  ;;  %v580_v12 = vld [vmem:[%s6349_s18 + $0x8d0] sm:$0xff] }
  0xc9   : > { %5111 = vmatpush3.bf16.msra.mxu1 %v5110_v33  ;;  %v5162_v33 = vpack.c.bf16 %v529_v27, %v528_v25  ;;  %v573_v25 = vld [vmem:[%s6349_s18 + $0x898] sm:$0xff] }
  0xca   : > { %5113 = vmatprep.subr.bf16.mxu1 %v5112_v38  ;;  %v5164_v38 = vpack.c.bf16 %v547_v31, %v546_v30  ;;  %v605_v27 = vld [vmem:[%s6349_s18 + $0x998] sm:$0xff]  ;;  %v247_v30 = vld [vmem:[#allocation2 + $0x70] sm:$0xff] }
  0xcb   : > { %5083 = vmatpush3.bf16.msra.mxu0 %v5082_v44  ;;  %v5134_v44 = vpack.c.bf16 %v499_v36, %v498_v35  ;;  %v588_v35 = vld [vmem:[%s6349_s18 + $0x910] sm:$0xff] }
  0xcc   : > { %5117 = vmatprep.subr.bf16.mxu0 %v5116_v46  ;;  %v5136_v46 = vpack.c.bf16 %v517_v41, %v516_v40  ;;  %v606_v40 = vld [vmem:[%s6349_s18 + $0x9a0] sm:$0xff]  ;;  %v607_v41 = vld [vmem:[%s6349_s18 + $0x9a8] sm:$0xff] }
  0xcd   : > { %5115 = vmatpush3.bf16.msra.mxu1 %v5114_v45  ;;  %v5166_v45 = vpack.c.bf16 %v531_v39, %v530_v37  ;;  %v589_v37 = vld [vmem:[%s6349_s18 + $0x918] sm:$0xff]  ;;  %v575_v39 = vld [vmem:[%s6349_s18 + $0x8a8] sm:$0xff] }
  0xce   : > { %5149 = vmatprep.subr.bf16.mxu1 %v5148_v50  ;;  %1690 = vmatmul.mubr.f32.vlgmr.msra.gmra.mrb[4].mxu0 %v241_v56  ;;  %v5168_v50 = vpack.c.bf16 %v549_v43, %v548_v42  ;;  %v5138_v56 = vpack.c.bf16 %v501_v48, %v500_v47  ;;  %v250_v42 = vld [vmem:[#allocation2 + $0x88] sm:$0xff]  ;;  %v559_v48 = vld [vmem:[%s6349_s18 + $0x828] sm:$0xff] }
  0xcf   : > { %5119 = vmatpush3.bf16.msra.mxu0 %v5118_v57  ;;  %1829 = vmatprep.mubr.f32.mxu0 %v246_v6  ;;  %v5170_v57 = vpack.c.bf16 %v533_v51, %v532_v49  ;;  %v558_v47 = vld [vmem:[%s6349_s18 + $0x820] sm:$0xff]  ;;  %v591_v51 = vld [vmem:[%s6349_s18 + $0x928] sm:$0xff] }
  0xd0   : > { %1760 = vmatmul.mubr.f32.vlgmr.msra.gmra.mrb[4].mxu1 %v243_v58  ;;  %5121 = vmatprep.subr.bf16.mxu0 %v5120_v60  ;;  %v5140_v58 = vpack.c.bf16 %v519_v53, %v518_v52  ;;  %v503_v60 = vld [vmem:[%s6349_s18 + $0x668] sm:$0xff]  ;;  %v590_v49 = vld [vmem:[%s6349_s18 + $0x920] sm:$0xff]  ;;  %v576_v52 = vld [vmem:[%s6349_s18 + $0x8b0] sm:$0xff] }
  0xd1   : > { %5151 = vmatpush3.bf16.msra.mxu1 %v5150_v59  ;;  %1899 = vmatprep.mubr.f32.mxu1 %v248_v8  ;;  %v502_v59 = vld [vmem:[%s6349_s18 + $0x660] sm:$0xff]  ;;  %v505_v8 = vld [vmem:[%s6349_s18 + $0x678] sm:$0xff] }
  0xd2   : > { %5153 = vmatprep.subr.bf16.mxu1 %v5152_v0  ;;  %v520_v0 = vld [vmem:[%s6349_s18 + $0x6f0] sm:$0xff]  ;;  %v5142_v4 = vpack.c.bf16 %v503_v60, %v502_v59  ;;  %v577_v53 = vld [vmem:[%s6349_s18 + $0x8b8] sm:$0xff] }
  0xd3   : > { %5123 = vmatpush3.bf16.msra.mxu0 %v5122_v7  ;;  %v5144_v6 = vpack.c.bf16 %v521_v1, %v520_v0  ;;  %v504_v7 = vld [vmem:[%s6349_s18 + $0x670] sm:$0xff]  ;;  %v561_v60 = vld [vmem:[%s6349_s18 + $0x838] sm:$0xff]  ;;  %v578_v0 = vld [vmem:[%s6349_s18 + $0x8c0] sm:$0xff] }
  0xd4   : > { %5125 = vmatprep.subr.bf16.mxu0 %v5124_v10  ;;  %v5176_v10 = vpack.c.bf16 %v553_v3, %v552_v2  ;;  %v5146_v16 = vpack.c.bf16 %v505_v8, %v504_v7  ;;  %v560_v59 = vld [vmem:[%s6349_s18 + $0x830] sm:$0xff]  ;;  %v579_v1 = vld [vmem:[%s6349_s18 + $0x8c8] sm:$0xff]  ;;  %v610_v2 = vld [vmem:[%s6349_s18 + $0x9c0] sm:$0xff] }
  0xd5   : > { %5155 = vmatpush3.bf16.msra.mxu1 %v5154_v9  ;;  %v536_v9 = vld [vmem:[%s6349_s18 + $0x770] sm:$0xff]  ;;  %v611_v3 = vld [vmem:[%s6349_s18 + $0x9c8] sm:$0xff]  ;;  %v562_v7 = vld [vmem:[%s6349_s18 + $0x840] sm:$0xff] }
  0xd6   : > { %5157 = vmatprep.subr.bf16.mxu1 %v5156_v14  ;;  %v602_v14 = vld [vmem:[%s6349_s18 + $0x980] sm:$0xff]  ;;  %v5178_v17 = vpack.c.bf16 %v537_v11, %v536_v9  ;;  %v563_v8 = vld [vmem:[%s6349_s18 + $0x848] sm:$0xff] }
  0xd7   : > { %5127 = vmatpush3.bf16.msra.mxu0 %v5126_v20  ;;  %v555_v20 = vld [vmem:[%s6349_s18 + $0x808] sm:$0xff]  ;;  %v594_v9 = vld [vmem:[%s6349_s18 + $0x940] sm:$0xff] }
  0xd8   : > { %5129 = vmatprep.subr.bf16.mxu0 %v5128_v22  ;;  %v5212_v22 = vpack.c.bf16 %v603_v15, %v602_v14  ;;  %v5182_v29 = vpack.c.bf16 %v555_v20, %v554_v19  ;;  %v595_v11 = vld [vmem:[%s6349_s18 + $0x948] sm:$0xff]  ;;  %v612_v14 = vld [vmem:[%s6349_s18 + $0x9d0] sm:$0xff]  ;;  %v613_v15 = vld [vmem:[%s6349_s18 + $0x9d8] sm:$0xff] }
  0xd9   : > { %5159 = vmatpush3.bf16.msra.mxu1 %v5158_v21  ;;  %v586_v21 = vld [vmem:[%s6349_s18 + $0x900] sm:$0xff]  ;;  %v564_v19 = vld [vmem:[%s6349_s18 + $0x850] sm:$0xff]  ;;  %v565_v20 = vld [vmem:[%s6349_s18 + $0x858] sm:$0xff] }
  0xda   : > { %5161 = vmatprep.subr.bf16.mxu1 %v5160_v26  ;;  %v604_v26 = vld [vmem:[%s6349_s18 + $0x990] sm:$0xff]  ;;  %v5214_v31 = vpack.c.bf16 %v587_v23, %v586_v21  ;;  %v597_v23 = vld [vmem:[%s6349_s18 + $0x958] sm:$0xff] }
  0xdb   : > { %5131 = vmatpush3.bf16.msra.mxu0 %v5130_v32  ;;  %v5184_v32 = vpack.c.bf16 %v573_v25, %v572_v24  ;;  %v5216_v36 = vpack.c.bf16 %v605_v27, %v604_v26  ;;  %v596_v21 = vld [vmem:[%s6349_s18 + $0x950] sm:$0xff]  ;;  %v582_v24 = vld [vmem:[%s6349_s18 + $0x8e0] sm:$0xff]  ;;  %v583_v25 = vld [vmem:[%s6349_s18 + $0x8e8] sm:$0xff] }
  0xdc   : > { %5133 = vmatprep.subr.bf16.mxu0 %v5132_v34  ;;  %v557_v34 = vld [vmem:[%s6349_s18 + $0x818] sm:$0xff]  ;;  %v614_v26 = vld [vmem:[%s6349_s18 + $0x9e0] sm:$0xff]  ;;  %v615_v27 = vld [vmem:[%s6349_s18 + $0x9e8] sm:$0xff] }
  0xdd   : > { %5163 = vmatpush3.bf16.msra.mxu1 %v5162_v33  ;;  %v556_v33 = vld [vmem:[%s6349_s18 + $0x810] sm:$0xff] }
  0xde   : > { %5165 = vmatprep.subr.bf16.mxu1 %v5164_v38  ;;  %v574_v38 = vld [vmem:[%s6349_s18 + $0x8a0] sm:$0xff]  ;;  %v5186_v43 = vpack.c.bf16 %v557_v34, %v556_v33  ;;  %v5236_v34 = vpack.c.bf16 %v615_v27, %v614_v26  ;;  %v672_v26 = vld [vmem:[%s6349_s18 + $0xbb0] sm:$0xff]  ;;  %v673_v27 = vld [vmem:[%s6349_s18 + $0xbb8] sm:$0xff] }
  0xdf   : > { %5135 = vmatpush3.bf16.msra.mxu0 %v5134_v44  ;;  %v252_v44 = vld [vmem:[#allocation2 + $0x98] sm:$0xff]  ;;  %v598_v33 = vld [vmem:[%s6349_s18 + $0x960] sm:$0xff] }
  0xe0   : > { %5137 = vmatprep.subr.bf16.mxu0 %v5136_v46  ;;  %v5188_v46 = vpack.c.bf16 %v575_v39, %v574_v38  ;;  %v616_v38 = vld [vmem:[%s6349_s18 + $0x9f0] sm:$0xff]  ;;  %v617_v39 = vld [vmem:[%s6349_s18 + $0x9f8] sm:$0xff] }
  0xe1   : > { %5167 = vmatpush3.bf16.msra.mxu1 %v5166_v45  ;;  %v5218_v45 = vpack.c.bf16 %v589_v37, %v588_v35  ;;  %v599_v35 = vld [vmem:[%s6349_s18 + $0x968] sm:$0xff]  ;;  %v585_v37 = vld [vmem:[%s6349_s18 + $0x8f8] sm:$0xff] }
  0xe2   : > { %5169 = vmatprep.subr.bf16.mxu1 %v5168_v50  ;;  %v5220_v50 = vpack.c.bf16 %v607_v41, %v606_v40  ;;  %v5238_v41 = vpack.c.bf16 %v599_v35, %v598_v33  ;;  %v656_v33 = vld [vmem:[%s6349_s18 + $0xb30] sm:$0xff]  ;;  %v657_v35 = vld [vmem:[%s6349_s18 + $0xb38] sm:$0xff] }
  0xe3   : > { %5139 = vmatpush3.bf16.msra.mxu0 %v5138_v56  ;;  %v5190_v56 = vpack.c.bf16 %v559_v48, %v558_v47  ;;  %v601_v47 = vld [vmem:[%s6349_s18 + $0x978] sm:$0xff]  ;;  %v634_v48 = vld [vmem:[%s6349_s18 + $0xa80] sm:$0xff] }
  0xe4   : > { %5141 = vmatprep.subr.bf16.mxu0 %v5140_v58  ;;  %v5192_v58 = vpack.c.bf16 %v577_v53, %v576_v52 }
  0xe5   : > { %5171 = vmatpush3.bf16.msra.mxu1 %v5170_v57  ;;  %v5222_v57 = vpack.c.bf16 %v591_v51, %v590_v49  ;;  %v635_v49 = vld [vmem:[%s6349_s18 + $0xa88] sm:$0xff] }
  0xe6   : > { %5173 = vmatprep.subr.bf16.mxu1 %v5172_v62  ;;  %v5224_v62 = vpack.c.bf16 %v609_v55, %v608_v54  ;;  %v667_v51 = vld [vmem:[%s6349_s18 + $0xb88] sm:$0xff]  ;;  %v5244_v54 = vpack.c.bf16 %v635_v49, %v634_v48  ;;  %v618_v55 = vld [vmem:[%s6349_s18 + $0xa00] sm:$0xff]  ;;  %v644_v48 = vld [vmem:[%s6349_s18 + $0xad0] sm:$0xff] }
  0xe7   : > { %5143 = vmatpush3.bf16.msra.mxu0 %v5142_v4  ;;  %v5194_v4 = vpack.c.bf16 %v561_v60, %v560_v59  ;;  %v651_v59 = vld [vmem:[%s6349_s18 + $0xb08] sm:$0xff]  ;;  %v636_v60 = vld [vmem:[%s6349_s18 + $0xa90] sm:$0xff]  ;;  %v645_v49 = vld [vmem:[%s6349_s18 + $0xad8] sm:$0xff] }
  0xe8   : > { %5145 = vmatprep.subr.bf16.mxu0 %v5144_v6  ;;  %v5196_v6 = vpack.c.bf16 %v579_v1, %v578_v0  ;;  %v249_v0 = vld [vmem:[#allocation2 + $0x80] sm:$0xff] }
  0xe9   : > { %5175 = vmatpush3.bf16.msra.mxu1 %v5174_v5  ;;  %v5226_v5 = vpack.c.bf16 %v593_v63, %v592_v61  ;;  %v637_v61 = vld [vmem:[%s6349_s18 + $0xa98] sm:$0xff] }
  0xea   : > { %5177 = vmatprep.subr.bf16.mxu1 %v5176_v10  ;;  %v5228_v10 = vpack.c.bf16 %v611_v3, %v610_v2  ;;  %v669_v63 = vld [vmem:[%s6349_s18 + $0xb98] sm:$0xff]  ;;  %v251_v2 = vld [vmem:[#allocation2 + $0x90] sm:$0xff] }
  0xeb   : > { %5147 = vmatpush3.bf16.msra.mxu0 %v5146_v16  ;;  %v5198_v16 = vpack.c.bf16 %v563_v8, %v562_v7  ;;  %v652_v7 = vld [vmem:[%s6349_s18 + $0xb10] sm:$0xff] }
  0xec   : > { %5181 = vmatprep.subr.bf16.mxu0 %v5180_v18  ;;  %v5200_v18 = vpack.c.bf16 %v581_v13, %v580_v12  ;;  %v670_v12 = vld [vmem:[%s6349_s18 + $0xba0] sm:$0xff]  ;;  %v671_v13 = vld [vmem:[%s6349_s18 + $0xba8] sm:$0xff] }
  0xed   : > { %5179 = vmatpush3.bf16.msra.mxu1 %v5178_v17  ;;  %v5230_v17 = vpack.c.bf16 %v595_v11, %v594_v9  ;;  %v653_v9 = vld [vmem:[%s6349_s18 + $0xb18] sm:$0xff]  ;;  %v639_v11 = vld [vmem:[%s6349_s18 + $0xaa8] sm:$0xff] }
  0xee   : > { %5213 = vmatprep.subr.bf16.mxu1 %v5212_v22  ;;  %1830 = vmatmul.mubr.f32.vlgmr.msra.gmra.mrb[6].mxu0 %v245_v28  ;;  %v5232_v22 = vpack.c.bf16 %v613_v15, %v612_v14  ;;  %v5202_v28 = vpack.c.bf16 %v565_v20, %v564_v19  ;;  %v254_v14 = vld [vmem:[#allocation2 + $0xa8] sm:$0xff]  ;;  %v623_v20 = vld [vmem:[%s6349_s18 + $0xa28] sm:$0xff] }
  0xef   : > { %5183 = vmatpush3.bf16.msra.mxu0 %v5182_v29  ;;  %1969 = vmatprep.mubr.f32.mxu0 %v250_v42  ;;  %v5234_v29 = vpack.c.bf16 %v597_v23, %v596_v21  ;;  %v622_v19 = vld [vmem:[%s6349_s18 + $0xa20] sm:$0xff]  ;;  %v655_v23 = vld [vmem:[%s6349_s18 + $0xb28] sm:$0xff] }
  0xf0   : > { %1900 = vmatmul.mubr.f32.vlgmr.msra.gmra.mrb[6].mxu1 %v247_v30  ;;  %5185 = vmatprep.subr.bf16.mxu0 %v5184_v32  ;;  %v5204_v30 = vpack.c.bf16 %v583_v25, %v582_v24  ;;  %v567_v32 = vld [vmem:[%s6349_s18 + $0x868] sm:$0xff]  ;;  %v654_v21 = vld [vmem:[%s6349_s18 + $0xb20] sm:$0xff]  ;;  %v640_v24 = vld [vmem:[%s6349_s18 + $0xab0] sm:$0xff] }
  0xf1   : > { %5215 = vmatpush3.bf16.msra.mxu1 %v5214_v31  ;;  %2039 = vmatprep.mubr.f32.mxu1 %v252_v44  ;;  %v566_v31 = vld [vmem:[%s6349_s18 + $0x860] sm:$0xff]  ;;  %v569_v44 = vld [vmem:[%s6349_s18 + $0x878] sm:$0xff] }
  0xf2   : > { %5217 = vmatprep.subr.bf16.mxu1 %v5216_v36  ;;  %v584_v36 = vld [vmem:[%s6349_s18 + $0x8f0] sm:$0xff]  ;;  %v5206_v40 = vpack.c.bf16 %v567_v32, %v566_v31  ;;  %v641_v25 = vld [vmem:[%s6349_s18 + $0xab8] sm:$0xff] }
  0xf3   : > { %5187 = vmatpush3.bf16.msra.mxu0 %v5186_v43  ;;  %v5208_v42 = vpack.c.bf16 %v585_v37, %v584_v36  ;;  %v568_v43 = vld [vmem:[%s6349_s18 + $0x870] sm:$0xff]  ;;  %v625_v32 = vld [vmem:[%s6349_s18 + $0xa38] sm:$0xff]  ;;  %v642_v36 = vld [vmem:[%s6349_s18 + $0xac0] sm:$0xff] }
  0xf4   : > { %5189 = vmatprep.subr.bf16.mxu0 %v5188_v46  ;;  %v5240_v46 = vpack.c.bf16 %v617_v39, %v616_v38  ;;  %v5210_v52 = vpack.c.bf16 %v569_v44, %v568_v43  ;;  %v624_v31 = vld [vmem:[%s6349_s18 + $0xa30] sm:$0xff]  ;;  %v643_v37 = vld [vmem:[%s6349_s18 + $0xac8] sm:$0xff]  ;;  %v674_v38 = vld [vmem:[%s6349_s18 + $0xbc0] sm:$0xff] }
  0xf5   : > { %5219 = vmatpush3.bf16.msra.mxu1 %v5218_v45  ;;  %v600_v45 = vld [vmem:[%s6349_s18 + $0x970] sm:$0xff]  ;;  %v675_v39 = vld [vmem:[%s6349_s18 + $0xbc8] sm:$0xff]  ;;  %v626_v43 = vld [vmem:[%s6349_s18 + $0xa40] sm:$0xff] }
  0xf6   : > { %5221 = vmatprep.subr.bf16.mxu1 %v5220_v50  ;;  %v666_v50 = vld [vmem:[%s6349_s18 + $0xb80] sm:$0xff]  ;;  %v5242_v53 = vpack.c.bf16 %v601_v47, %v600_v45  ;;  %v627_v44 = vld [vmem:[%s6349_s18 + $0xa48] sm:$0xff] }
  0xf7   : > { %5191 = vmatpush3.bf16.msra.mxu0 %v5190_v56  ;;  %v619_v56 = vld [vmem:[%s6349_s18 + $0xa08] sm:$0xff]  ;;  %v658_v45 = vld [vmem:[%s6349_s18 + $0xb40] sm:$0xff] }
  0xf8   : > { %5193 = vmatprep.subr.bf16.mxu0 %v5192_v58  ;;  %v5276_v58 = vpack.c.bf16 %v667_v51, %v666_v50  ;;  %v5246_v1 = vpack.c.bf16 %v619_v56, %v618_v55  ;;  %v659_v47 = vld [vmem:[%s6349_s18 + $0xb48] sm:$0xff]  ;;  %v676_v50 = vld [vmem:[%s6349_s18 + $0xbd0] sm:$0xff]  ;;  %v677_v51 = vld [vmem:[%s6349_s18 + $0xbd8] sm:$0xff] }
  0xf9   : > { %5223 = vmatpush3.bf16.msra.mxu1 %v5222_v57  ;;  %v650_v57 = vld [vmem:[%s6349_s18 + $0xb00] sm:$0xff]  ;;  %v628_v55 = vld [vmem:[%s6349_s18 + $0xa50] sm:$0xff]  ;;  %v629_v56 = vld [vmem:[%s6349_s18 + $0xa58] sm:$0xff] }
  0xfa   : > { %5225 = vmatprep.subr.bf16.mxu1 %v5224_v62  ;;  %v668_v62 = vld [vmem:[%s6349_s18 + $0xb90] sm:$0xff]  ;;  %v5278_v3 = vpack.c.bf16 %v651_v59, %v650_v57  ;;  %v661_v59 = vld [vmem:[%s6349_s18 + $0xb58] sm:$0xff] }
  0xfb   : > { %5195 = vmatpush3.bf16.msra.mxu0 %v5194_v4  ;;  %v5248_v4 = vpack.c.bf16 %v637_v61, %v636_v60  ;;  %v5280_v8 = vpack.c.bf16 %v669_v63, %v668_v62  ;;  %v660_v57 = vld [vmem:[%s6349_s18 + $0xb50] sm:$0xff]  ;;  %v646_v60 = vld [vmem:[%s6349_s18 + $0xae0] sm:$0xff]  ;;  %v647_v61 = vld [vmem:[%s6349_s18 + $0xae8] sm:$0xff] }
  0xfc   : > { %5197 = vmatprep.subr.bf16.mxu0 %v5196_v6  ;;  %v621_v6 = vld [vmem:[%s6349_s18 + $0xa18] sm:$0xff]  ;;  %v678_v62 = vld [vmem:[%s6349_s18 + $0xbe0] sm:$0xff]  ;;  %v679_v63 = vld [vmem:[%s6349_s18 + $0xbe8] sm:$0xff] }
  0xfd   : > { %5227 = vmatpush3.bf16.msra.mxu1 %v5226_v5  ;;  %v620_v5 = vld [vmem:[%s6349_s18 + $0xa10] sm:$0xff] }
  0xfe   : > { %5229 = vmatprep.subr.bf16.mxu1 %v5228_v10  ;;  %v638_v10 = vld [vmem:[%s6349_s18 + $0xaa0] sm:$0xff]  ;;  %v5250_v15 = vpack.c.bf16 %v621_v6, %v620_v5  ;;  %v5300_v6 = vpack.c.bf16 %v679_v63, %v678_v62  ;;  %v736_v62 = vld [vmem:[%s6349_s18 + $0xdb0] sm:$0xff]  ;;  %v737_v63 = vld [vmem:[%s6349_s18 + $0xdb8] sm:$0xff] }
  0xff   : > { %5199 = vmatpush3.bf16.msra.mxu0 %v5198_v16  ;;  %v256_v16 = vld [vmem:[#allocation2 + $0xb8] sm:$0xff]  ;;  %v662_v5 = vld [vmem:[%s6349_s18 + $0xb60] sm:$0xff] }
 0x100   : > { %5201 = vmatprep.subr.bf16.mxu0 %v5200_v18  ;;  %v5252_v18 = vpack.c.bf16 %v639_v11, %v638_v10  ;;  %v680_v10 = vld [vmem:[%s6349_s18 + $0xbf0] sm:$0xff]  ;;  %v681_v11 = vld [vmem:[%s6349_s18 + $0xbf8] sm:$0xff] }
 0x101   : > { %5231 = vmatpush3.bf16.msra.mxu1 %v5230_v17  ;;  %v5282_v17 = vpack.c.bf16 %v653_v9, %v652_v7  ;;  %v663_v7 = vld [vmem:[%s6349_s18 + $0xb68] sm:$0xff]  ;;  %v649_v9 = vld [vmem:[%s6349_s18 + $0xaf8] sm:$0xff] }
 0x102   : > { %5233 = vmatprep.subr.bf16.mxu1 %v5232_v22  ;;  %v5284_v22 = vpack.c.bf16 %v671_v13, %v670_v12  ;;  %v5302_v13 = vpack.c.bf16 %v663_v7, %v662_v5  ;;  %v720_v5 = vld [vmem:[%s6349_s18 + $0xd30] sm:$0xff]  ;;  %v721_v7 = vld [vmem:[%s6349_s18 + $0xd38] sm:$0xff] }
 0x103   : > { %5203 = vmatpush3.bf16.msra.mxu0 %v5202_v28  ;;  %v5254_v28 = vpack.c.bf16 %v623_v20, %v622_v19  ;;  %v665_v19 = vld [vmem:[%s6349_s18 + $0xb78] sm:$0xff]  ;;  %v698_v20 = vld [vmem:[%s6349_s18 + $0xc80] sm:$0xff] }
 0x104   : > { %5205 = vmatprep.subr.bf16.mxu0 %v5204_v30  ;;  %v5256_v30 = vpack.c.bf16 %v641_v25, %v640_v24 }
 0x105   : > { %5235 = vmatpush3.bf16.msra.mxu1 %v5234_v29  ;;  %v5286_v29 = vpack.c.bf16 %v655_v23, %v654_v21  ;;  %v699_v21 = vld [vmem:[%s6349_s18 + $0xc88] sm:$0xff] }
 0x106   : > { %5237 = vmatprep.subr.bf16.mxu1 %v5236_v34  ;;  %v5288_v34 = vpack.c.bf16 %v673_v27, %v672_v26  ;;  %v731_v23 = vld [vmem:[%s6349_s18 + $0xd88] sm:$0xff]  ;;  %v5308_v26 = vpack.c.bf16 %v699_v21, %v698_v20  ;;  %v682_v27 = vld [vmem:[%s6349_s18 + $0xc00] sm:$0xff]  ;;  %v708_v20 = vld [vmem:[%s6349_s18 + $0xcd0] sm:$0xff] }
 0x107   : > { %5207 = vmatpush3.bf16.msra.mxu0 %v5206_v40  ;;  %v5258_v40 = vpack.c.bf16 %v625_v32, %v624_v31  ;;  %v715_v31 = vld [vmem:[%s6349_s18 + $0xd08] sm:$0xff]  ;;  %v700_v32 = vld [vmem:[%s6349_s18 + $0xc90] sm:$0xff]  ;;  %v709_v21 = vld [vmem:[%s6349_s18 + $0xcd8] sm:$0xff] }
 0x108   : > { %5209 = vmatprep.subr.bf16.mxu0 %v5208_v42  ;;  %v5260_v42 = vpack.c.bf16 %v643_v37, %v642_v36  ;;  %v253_v36 = vld [vmem:[#allocation2 + $0xa0] sm:$0xff] }
 0x109   : > { %5239 = vmatpush3.bf16.msra.mxu1 %v5238_v41  ;;  %v5290_v41 = vpack.c.bf16 %v657_v35, %v656_v33  ;;  %v701_v33 = vld [vmem:[%s6349_s18 + $0xc98] sm:$0xff] }
 0x10a   : > { %5241 = vmatprep.subr.bf16.mxu1 %v5240_v46  ;;  %v5292_v46 = vpack.c.bf16 %v675_v39, %v674_v38  ;;  %v733_v35 = vld [vmem:[%s6349_s18 + $0xd98] sm:$0xff]  ;;  %v255_v38 = vld [vmem:[#allocation2 + $0xb0] sm:$0xff] }
 0x10b   : > { %5211 = vmatpush3.bf16.msra.mxu0 %v5210_v52  ;;  %v5262_v52 = vpack.c.bf16 %v627_v44, %v626_v43  ;;  %v716_v43 = vld [vmem:[%s6349_s18 + $0xd10] sm:$0xff] }
 0x10c   : > { %5245 = vmatprep.subr.bf16.mxu0 %v5244_v54  ;;  %v5264_v54 = vpack.c.bf16 %v645_v49, %v644_v48  ;;  %v734_v48 = vld [vmem:[%s6349_s18 + $0xda0] sm:$0xff]  ;;  %v735_v49 = vld [vmem:[%s6349_s18 + $0xda8] sm:$0xff] }
 0x10d   : > { %5243 = vmatpush3.bf16.msra.mxu1 %v5242_v53  ;;  %v5294_v53 = vpack.c.bf16 %v659_v47, %v658_v45  ;;  %v717_v45 = vld [vmem:[%s6349_s18 + $0xd18] sm:$0xff]  ;;  %v703_v47 = vld [vmem:[%s6349_s18 + $0xca8] sm:$0xff] }
 0x10e   : > { %5277 = vmatprep.subr.bf16.mxu1 %v5276_v58  ;;  %1970 = vmatmul.mubr.f32.vlgmr.msra.gmra.mrb[8].mxu0 %v249_v0  ;;  %v5296_v58 = vpack.c.bf16 %v677_v51, %v676_v50  ;;  %v5266_v0 = vpack.c.bf16 %v629_v56, %v628_v55  ;;  %v258_v50 = vld [vmem:[#allocation2 + $0xc8] sm:$0xff]  ;;  %v687_v56 = vld [vmem:[%s6349_s18 + $0xc28] sm:$0xff] }
 0x10f   : > { %5247 = vmatpush3.bf16.msra.mxu0 %v5246_v1  ;;  %2109 = vmatprep.mubr.f32.mxu0 %v254_v14  ;;  %v5298_v1 = vpack.c.bf16 %v661_v59, %v660_v57  ;;  %v686_v55 = vld [vmem:[%s6349_s18 + $0xc20] sm:$0xff]  ;;  %v719_v59 = vld [vmem:[%s6349_s18 + $0xd28] sm:$0xff] }
 0x110   : > { %2040 = vmatmul.mubr.f32.vlgmr.msra.gmra.mrb[8].mxu1 %v251_v2  ;;  %5249 = vmatprep.subr.bf16.mxu0 %v5248_v4  ;;  %v5268_v2 = vpack.c.bf16 %v647_v61, %v646_v60  ;;  %v631_v4 = vld [vmem:[%s6349_s18 + $0xa68] sm:$0xff]  ;;  %v718_v57 = vld [vmem:[%s6349_s18 + $0xd20] sm:$0xff]  ;;  %v704_v60 = vld [vmem:[%s6349_s18 + $0xcb0] sm:$0xff] }
 0x111   : > { %5279 = vmatpush3.bf16.msra.mxu1 %v5278_v3  ;;  %2179 = vmatprep.mubr.f32.mxu1 %v256_v16  ;;  %v630_v3 = vld [vmem:[%s6349_s18 + $0xa60] sm:$0xff]  ;;  %v633_v16 = vld [vmem:[%s6349_s18 + $0xa78] sm:$0xff] }
 0x112   : > { %5281 = vmatprep.subr.bf16.mxu1 %v5280_v8  ;;  %v648_v8 = vld [vmem:[%s6349_s18 + $0xaf0] sm:$0xff]  ;;  %v5270_v12 = vpack.c.bf16 %v631_v4, %v630_v3  ;;  %v705_v61 = vld [vmem:[%s6349_s18 + $0xcb8] sm:$0xff] }
 0x113   : > { %5251 = vmatpush3.bf16.msra.mxu0 %v5250_v15  ;;  %v5272_v14 = vpack.c.bf16 %v649_v9, %v648_v8  ;;  %v632_v15 = vld [vmem:[%s6349_s18 + $0xa70] sm:$0xff]  ;;  %v689_v4 = vld [vmem:[%s6349_s18 + $0xc38] sm:$0xff]  ;;  %v706_v8 = vld [vmem:[%s6349_s18 + $0xcc0] sm:$0xff] }
 0x114   : > { %5253 = vmatprep.subr.bf16.mxu0 %v5252_v18  ;;  %v5304_v18 = vpack.c.bf16 %v681_v11, %v680_v10  ;;  %v5274_v24 = vpack.c.bf16 %v633_v16, %v632_v15  ;;  %v688_v3 = vld [vmem:[%s6349_s18 + $0xc30] sm:$0xff]  ;;  %v707_v9 = vld [vmem:[%s6349_s18 + $0xcc8] sm:$0xff]  ;;  %v738_v10 = vld [vmem:[%s6349_s18 + $0xdc0] sm:$0xff] }
 0x115   : > { %5283 = vmatpush3.bf16.msra.mxu1 %v5282_v17  ;;  %v664_v17 = vld [vmem:[%s6349_s18 + $0xb70] sm:$0xff]  ;;  %v739_v11 = vld [vmem:[%s6349_s18 + $0xdc8] sm:$0xff]  ;;  %v690_v15 = vld [vmem:[%s6349_s18 + $0xc40] sm:$0xff] }
 0x116   : > { %5285 = vmatprep.subr.bf16.mxu1 %v5284_v22  ;;  %v730_v22 = vld [vmem:[%s6349_s18 + $0xd80] sm:$0xff]  ;;  %v5306_v25 = vpack.c.bf16 %v665_v19, %v664_v17  ;;  %v691_v16 = vld [vmem:[%s6349_s18 + $0xc48] sm:$0xff] }
 0x117   : > { %5255 = vmatpush3.bf16.msra.mxu0 %v5254_v28  ;;  %v683_v28 = vld [vmem:[%s6349_s18 + $0xc08] sm:$0xff]  ;;  %v722_v17 = vld [vmem:[%s6349_s18 + $0xd40] sm:$0xff] }
 0x118   : > { %5257 = vmatprep.subr.bf16.mxu0 %v5256_v30  ;;  %v5340_v30 = vpack.c.bf16 %v731_v23, %v730_v22  ;;  %v5310_v37 = vpack.c.bf16 %v683_v28, %v682_v27  ;;  %v723_v19 = vld [vmem:[%s6349_s18 + $0xd48] sm:$0xff]  ;;  %v740_v22 = vld [vmem:[%s6349_s18 + $0xdd0] sm:$0xff]  ;;  %v741_v23 = vld [vmem:[%s6349_s18 + $0xdd8] sm:$0xff] }
 0x119   : > { %5287 = vmatpush3.bf16.msra.mxu1 %v5286_v29  ;;  %v714_v29 = vld [vmem:[%s6349_s18 + $0xd00] sm:$0xff]  ;;  %v692_v27 = vld [vmem:[%s6349_s18 + $0xc50] sm:$0xff]  ;;  %v693_v28 = vld [vmem:[%s6349_s18 + $0xc58] sm:$0xff] }
 0x11a   : > { %5289 = vmatprep.subr.bf16.mxu1 %v5288_v34  ;;  %v732_v34 = vld [vmem:[%s6349_s18 + $0xd90] sm:$0xff]  ;;  %v5342_v39 = vpack.c.bf16 %v715_v31, %v714_v29  ;;  %v725_v31 = vld [vmem:[%s6349_s18 + $0xd58] sm:$0xff] }
 0x11b   : > { %5259 = vmatpush3.bf16.msra.mxu0 %v5258_v40  ;;  %v5312_v40 = vpack.c.bf16 %v701_v33, %v700_v32  ;;  %v5344_v44 = vpack.c.bf16 %v733_v35, %v732_v34  ;;  %v724_v29 = vld [vmem:[%s6349_s18 + $0xd50] sm:$0xff]  ;;  %v710_v32 = vld [vmem:[%s6349_s18 + $0xce0] sm:$0xff]  ;;  %v711_v33 = vld [vmem:[%s6349_s18 + $0xce8] sm:$0xff] }
 0x11c   : > { %5261 = vmatprep.subr.bf16.mxu0 %v5260_v42  ;;  %v685_v42 = vld [vmem:[%s6349_s18 + $0xc18] sm:$0xff]  ;;  %v742_v34 = vld [vmem:[%s6349_s18 + $0xde0] sm:$0xff]  ;;  %v743_v35 = vld [vmem:[%s6349_s18 + $0xde8] sm:$0xff] }
 0x11d   : > { %5291 = vmatpush3.bf16.msra.mxu1 %v5290_v41  ;;  %v684_v41 = vld [vmem:[%s6349_s18 + $0xc10] sm:$0xff] }
 0x11e   : > { %5293 = vmatprep.subr.bf16.mxu1 %v5292_v46  ;;  %v702_v46 = vld [vmem:[%s6349_s18 + $0xca0] sm:$0xff]  ;;  %v5314_v51 = vpack.c.bf16 %v685_v42, %v684_v41  ;;  %v5364_v42 = vpack.c.bf16 %v743_v35, %v742_v34  ;;  %v800_v34 = vld [vmem:[%s6349_s18 + $0xfb0] sm:$0xff]  ;;  %v801_v35 = vld [vmem:[%s6349_s18 + $0xfb8] sm:$0xff] }
 0x11f   : > { %5263 = vmatpush3.bf16.msra.mxu0 %v5262_v52  ;;  %v260_v52 = vld [vmem:[#allocation2 + $0xd8] sm:$0xff]  ;;  %v726_v41 = vld [vmem:[%s6349_s18 + $0xd60] sm:$0xff] }
 0x120   : > { %5265 = vmatprep.subr.bf16.mxu0 %v5264_v54  ;;  %v5316_v54 = vpack.c.bf16 %v703_v47, %v702_v46  ;;  %v744_v46 = vld [vmem:[%s6349_s18 + $0xdf0] sm:$0xff]  ;;  %v745_v47 = vld [vmem:[%s6349_s18 + $0xdf8] sm:$0xff] }
 0x121   : > { %5295 = vmatpush3.bf16.msra.mxu1 %v5294_v53  ;;  %v5346_v53 = vpack.c.bf16 %v717_v45, %v716_v43  ;;  %v727_v43 = vld [vmem:[%s6349_s18 + $0xd68] sm:$0xff]  ;;  %v713_v45 = vld [vmem:[%s6349_s18 + $0xcf8] sm:$0xff] }
 0x122   : > { %5297 = vmatprep.subr.bf16.mxu1 %v5296_v58  ;;  %v5348_v58 = vpack.c.bf16 %v735_v49, %v734_v48  ;;  %v5366_v49 = vpack.c.bf16 %v727_v43, %v726_v41  ;;  %v784_v41 = vld [vmem:[%s6349_s18 + $0xf30] sm:$0xff]  ;;  %v785_v43 = vld [vmem:[%s6349_s18 + $0xf38] sm:$0xff] }
 0x123   : > { %5267 = vmatpush3.bf16.msra.mxu0 %v5266_v0  ;;  %v5318_v0 = vpack.c.bf16 %v687_v56, %v686_v55  ;;  %v729_v55 = vld [vmem:[%s6349_s18 + $0xd78] sm:$0xff]  ;;  %v762_v56 = vld [vmem:[%s6349_s18 + $0xe80] sm:$0xff] }
 0x124   : > { %5269 = vmatprep.subr.bf16.mxu0 %v5268_v2  ;;  %v5320_v2 = vpack.c.bf16 %v705_v61, %v704_v60 }
 0x125   : > { %5299 = vmatpush3.bf16.msra.mxu1 %v5298_v1  ;;  %v5350_v1 = vpack.c.bf16 %v719_v59, %v718_v57  ;;  %v763_v57 = vld [vmem:[%s6349_s18 + $0xe88] sm:$0xff] }
 0x126   : > { %5301 = vmatprep.subr.bf16.mxu1 %v5300_v6  ;;  %v5352_v6 = vpack.c.bf16 %v737_v63, %v736_v62  ;;  %v795_v59 = vld [vmem:[%s6349_s18 + $0xf88] sm:$0xff]  ;;  %v5372_v62 = vpack.c.bf16 %v763_v57, %v762_v56  ;;  %v746_v63 = vld [vmem:[%s6349_s18 + $0xe00] sm:$0xff]  ;;  %v772_v56 = vld [vmem:[%s6349_s18 + $0xed0] sm:$0xff] }
 0x127   : > { %5271 = vmatpush3.bf16.msra.mxu0 %v5270_v12  ;;  %v5322_v12 = vpack.c.bf16 %v689_v4, %v688_v3  ;;  %v779_v3 = vld [vmem:[%s6349_s18 + $0xf08] sm:$0xff]  ;;  %v764_v4 = vld [vmem:[%s6349_s18 + $0xe90] sm:$0xff]  ;;  %v773_v57 = vld [vmem:[%s6349_s18 + $0xed8] sm:$0xff] }
 0x128   : > { %5273 = vmatprep.subr.bf16.mxu0 %v5272_v14  ;;  %v5324_v14 = vpack.c.bf16 %v707_v9, %v706_v8  ;;  %v257_v8 = vld [vmem:[#allocation2 + $0xc0] sm:$0xff] }
 0x129   : > { %5303 = vmatpush3.bf16.msra.mxu1 %v5302_v13  ;;  %v5354_v13 = vpack.c.bf16 %v721_v7, %v720_v5  ;;  %v765_v5 = vld [vmem:[%s6349_s18 + $0xe98] sm:$0xff] }
 0x12a   : > { %5305 = vmatprep.subr.bf16.mxu1 %v5304_v18  ;;  %v5356_v18 = vpack.c.bf16 %v739_v11, %v738_v10  ;;  %v797_v7 = vld [vmem:[%s6349_s18 + $0xf98] sm:$0xff]  ;;  %v259_v10 = vld [vmem:[#allocation2 + $0xd0] sm:$0xff] }
 0x12b   : > { %5275 = vmatpush3.bf16.msra.mxu0 %v5274_v24  ;;  %v5326_v24 = vpack.c.bf16 %v691_v16, %v690_v15  ;;  %v780_v15 = vld [vmem:[%s6349_s18 + $0xf10] sm:$0xff] }
 0x12c   : > { %5309 = vmatprep.subr.bf16.mxu0 %v5308_v26  ;;  %v5328_v26 = vpack.c.bf16 %v709_v21, %v708_v20  ;;  %v798_v20 = vld [vmem:[%s6349_s18 + $0xfa0] sm:$0xff]  ;;  %v799_v21 = vld [vmem:[%s6349_s18 + $0xfa8] sm:$0xff] }
 0x12d   : > { %5307 = vmatpush3.bf16.msra.mxu1 %v5306_v25  ;;  %v5358_v25 = vpack.c.bf16 %v723_v19, %v722_v17  ;;  %v781_v17 = vld [vmem:[%s6349_s18 + $0xf18] sm:$0xff]  ;;  %v767_v19 = vld [vmem:[%s6349_s18 + $0xea8] sm:$0xff] }
 0x12e   : > { %5341 = vmatprep.subr.bf16.mxu1 %v5340_v30  ;;  %2110 = vmatmul.mubr.f32.vlgmr.msra.gmra.mrb[10].mxu0 %v253_v36  ;;  %v5360_v30 = vpack.c.bf16 %v741_v23, %v740_v22  ;;  %v5330_v36 = vpack.c.bf16 %v693_v28, %v692_v27  ;;  %v262_v22 = vld [vmem:[#allocation2 + $0xe8] sm:$0xff]  ;;  %v751_v28 = vld [vmem:[%s6349_s18 + $0xe28] sm:$0xff] }
 0x12f   : > { %5311 = vmatpush3.bf16.msra.mxu0 %v5310_v37  ;;  %2249 = vmatprep.mubr.f32.mxu0 %v258_v50  ;;  %v5362_v37 = vpack.c.bf16 %v725_v31, %v724_v29  ;;  %v750_v27 = vld [vmem:[%s6349_s18 + $0xe20] sm:$0xff]  ;;  %v783_v31 = vld [vmem:[%s6349_s18 + $0xf28] sm:$0xff] }
 0x130   : > { %2180 = vmatmul.mubr.f32.vlgmr.msra.gmra.mrb[10].mxu1 %v255_v38  ;;  %5313 = vmatprep.subr.bf16.mxu0 %v5312_v40  ;;  %v5332_v38 = vpack.c.bf16 %v711_v33, %v710_v32  ;;  %v695_v40 = vld [vmem:[%s6349_s18 + $0xc68] sm:$0xff]  ;;  %v782_v29 = vld [vmem:[%s6349_s18 + $0xf20] sm:$0xff]  ;;  %v768_v32 = vld [vmem:[%s6349_s18 + $0xeb0] sm:$0xff] }
 0x131   : > { %5343 = vmatpush3.bf16.msra.mxu1 %v5342_v39  ;;  %2319 = vmatprep.mubr.f32.mxu1 %v260_v52  ;;  %v694_v39 = vld [vmem:[%s6349_s18 + $0xc60] sm:$0xff]  ;;  %v697_v52 = vld [vmem:[%s6349_s18 + $0xc78] sm:$0xff] }
 0x132   : > { %5345 = vmatprep.subr.bf16.mxu1 %v5344_v44  ;;  %v712_v44 = vld [vmem:[%s6349_s18 + $0xcf0] sm:$0xff]  ;;  %v5334_v48 = vpack.c.bf16 %v695_v40, %v694_v39  ;;  %v769_v33 = vld [vmem:[%s6349_s18 + $0xeb8] sm:$0xff] }
 0x133   : > { %5315 = vmatpush3.bf16.msra.mxu0 %v5314_v51  ;;  %v5336_v50 = vpack.c.bf16 %v713_v45, %v712_v44  ;;  %v696_v51 = vld [vmem:[%s6349_s18 + $0xc70] sm:$0xff]  ;;  %v753_v40 = vld [vmem:[%s6349_s18 + $0xe38] sm:$0xff]  ;;  %v770_v44 = vld [vmem:[%s6349_s18 + $0xec0] sm:$0xff] }
 0x134   : > { %5317 = vmatprep.subr.bf16.mxu0 %v5316_v54  ;;  %v5368_v54 = vpack.c.bf16 %v745_v47, %v744_v46  ;;  %v5338_v60 = vpack.c.bf16 %v697_v52, %v696_v51  ;;  %v752_v39 = vld [vmem:[%s6349_s18 + $0xe30] sm:$0xff]  ;;  %v771_v45 = vld [vmem:[%s6349_s18 + $0xec8] sm:$0xff]  ;;  %v802_v46 = vld [vmem:[%s6349_s18 + $0xfc0] sm:$0xff] }
 0x135   : > { %5347 = vmatpush3.bf16.msra.mxu1 %v5346_v53  ;;  %v728_v53 = vld [vmem:[%s6349_s18 + $0xd70] sm:$0xff]  ;;  %v803_v47 = vld [vmem:[%s6349_s18 + $0xfc8] sm:$0xff]  ;;  %v754_v51 = vld [vmem:[%s6349_s18 + $0xe40] sm:$0xff] }
 0x136   : > { %5349 = vmatprep.subr.bf16.mxu1 %v5348_v58  ;;  %v794_v58 = vld [vmem:[%s6349_s18 + $0xf80] sm:$0xff]  ;;  %v5370_v61 = vpack.c.bf16 %v729_v55, %v728_v53  ;;  %v755_v52 = vld [vmem:[%s6349_s18 + $0xe48] sm:$0xff] }
 0x137   : > { %5319 = vmatpush3.bf16.msra.mxu0 %v5318_v0  ;;  %v747_v0 = vld [vmem:[%s6349_s18 + $0xe08] sm:$0xff]  ;;  %v786_v53 = vld [vmem:[%s6349_s18 + $0xf40] sm:$0xff] }
 0x138   : > { %5321 = vmatprep.subr.bf16.mxu0 %v5320_v2  ;;  %v5404_v2 = vpack.c.bf16 %v795_v59, %v794_v58  ;;  %v5374_v9 = vpack.c.bf16 %v747_v0, %v746_v63  ;;  %v787_v55 = vld [vmem:[%s6349_s18 + $0xf48] sm:$0xff]  ;;  %v804_v58 = vld [vmem:[%s6349_s18 + $0xfd0] sm:$0xff]  ;;  %v805_v59 = vld [vmem:[%s6349_s18 + $0xfd8] sm:$0xff] }
 0x139   : > { %5351 = vmatpush3.bf16.msra.mxu1 %v5350_v1  ;;  %v778_v1 = vld [vmem:[%s6349_s18 + $0xf00] sm:$0xff]  ;;  %v756_v63 = vld [vmem:[%s6349_s18 + $0xe50] sm:$0xff]  ;;  %v757_v0 = vld [vmem:[%s6349_s18 + $0xe58] sm:$0xff] }
 0x13a   : > { %5353 = vmatprep.subr.bf16.mxu1 %v5352_v6  ;;  %v796_v6 = vld [vmem:[%s6349_s18 + $0xf90] sm:$0xff]  ;;  %v5406_v11 = vpack.c.bf16 %v779_v3, %v778_v1  ;;  %v789_v3 = vld [vmem:[%s6349_s18 + $0xf58] sm:$0xff] }
 0x13b   : > { %5323 = vmatpush3.bf16.msra.mxu0 %v5322_v12  ;;  %v5376_v12 = vpack.c.bf16 %v765_v5, %v764_v4  ;;  %v5408_v16 = vpack.c.bf16 %v797_v7, %v796_v6  ;;  %v788_v1 = vld [vmem:[%s6349_s18 + $0xf50] sm:$0xff]  ;;  %v774_v4 = vld [vmem:[%s6349_s18 + $0xee0] sm:$0xff]  ;;  %v775_v5 = vld [vmem:[%s6349_s18 + $0xee8] sm:$0xff] }
 0x13c   : > { %5325 = vmatprep.subr.bf16.mxu0 %v5324_v14  ;;  %v749_v14 = vld [vmem:[%s6349_s18 + $0xe18] sm:$0xff]  ;;  %v806_v6 = vld [vmem:[%s6349_s18 + $0xfe0] sm:$0xff]  ;;  %v807_v7 = vld [vmem:[%s6349_s18 + $0xfe8] sm:$0xff] }
 0x13d   : > { %5355 = vmatpush3.bf16.msra.mxu1 %v5354_v13  ;;  %v748_v13 = vld [vmem:[%s6349_s18 + $0xe10] sm:$0xff] }
 0x13e   : > { %5357 = vmatprep.subr.bf16.mxu1 %v5356_v18  ;;  %v766_v18 = vld [vmem:[%s6349_s18 + $0xea0] sm:$0xff]  ;;  %v5378_v23 = vpack.c.bf16 %v749_v14, %v748_v13 }
 0x13f   : > { %5327 = vmatpush3.bf16.msra.mxu0 %v5326_v24  ;;  %v264_v24 = vld [vmem:[#allocation2 + $0xf8] sm:$0xff]  ;;  %v790_v13 = vld [vmem:[%s6349_s18 + $0xf60] sm:$0xff] }
 0x140   : > { %5329 = vmatprep.subr.bf16.mxu0 %v5328_v26  ;;  %v5380_v26 = vpack.c.bf16 %v767_v19, %v766_v18  ;;  %v777_v18 = vld [vmem:[%s6349_s18 + $0xef8] sm:$0xff] }
 0x141   : > { %5359 = vmatpush3.bf16.msra.mxu1 %v5358_v25  ;;  %v5410_v25 = vpack.c.bf16 %v781_v17, %v780_v15  ;;  %v5428_v15 = vpack.c.bf16 %v807_v7, %v806_v6  ;;  %v776_v17 = vld [vmem:[%s6349_s18 + $0xef0] sm:$0xff]  ;;  %v3760_v19 = vld [vmem:[%s203_s25] ss:$0 sm:$0xff] }
 0x142   : > { %5361 = vmatprep.subr.bf16.mxu1 %v5360_v30  ;;  %v5412_v30 = vpack.c.bf16 %v799_v21, %v798_v20 }
 0x143   : > { %5331 = vmatpush3.bf16.msra.mxu0 %v5330_v36  ;;  %v5382_v36 = vpack.c.bf16 %v751_v28, %v750_v27 }
 0x144   : > { %5333 = vmatprep.subr.bf16.mxu0 %v5332_v38  ;;  %v5384_v38 = vpack.c.bf16 %v769_v33, %v768_v32  ;;  %v792_v32 = vld [vmem:[%s6349_s18 + $0xf70] sm:$0xff] }
 0x145   : > { %5363 = vmatpush3.bf16.msra.mxu1 %v5362_v37  ;;  %v5414_v37 = vpack.c.bf16 %v783_v31, %v782_v29  ;;  %v5400_v29 = vpack.c.bf16 %v777_v18, %v776_v17  ;;  %v761_v31 = vld [vmem:[%s6349_s18 + $0xe78] sm:$0xff] }
 0x146   : > { %5365 = vmatprep.subr.bf16.mxu1 %v5364_v42  ;;  %v5416_v42 = vpack.c.bf16 %v801_v35, %v800_v34  ;;  %v793_v35 = vld [vmem:[%s6349_s18 + $0xf78] sm:$0xff] }
 0x147   : > { %5335 = vmatpush3.bf16.msra.mxu0 %v5334_v48  ;;  %v5386_v48 = vpack.c.bf16 %v753_v40, %v752_v39  ;;  %v859_v39 = vld [vmem:[%s6349_s18 + $0x1188] sm:$0xff] }
 0x148   : > { %5337 = vmatprep.subr.bf16.mxu0 %v5336_v50  ;;  %v5388_v50 = vpack.c.bf16 %v771_v45, %v770_v44  ;;  %v810_v44 = vld [vmem:[%s6349_s18 + $0x1000] sm:$0xff]  ;;  %v811_v45 = vld [vmem:[%s6349_s18 + $0x1008] sm:$0xff] }
 0x149   : > { %5367 = vmatpush3.bf16.msra.mxu1 %v5366_v49  ;;  %v5418_v49 = vpack.c.bf16 %v785_v43, %v784_v41 }
 0x14a   : > { %5369 = vmatprep.subr.bf16.mxu1 %v5368_v54  ;;  %v5420_v54 = vpack.c.bf16 %v803_v47, %v802_v46  ;;  %v842_v46 = vld [vmem:[%s6349_s18 + $0x1100] sm:$0xff] }
 0x14b   : > { %5339 = vmatpush3.bf16.msra.mxu0 %v5338_v60  ;;  %v5390_v60 = vpack.c.bf16 %v755_v52, %v754_v51  ;;  %v860_v51 = vld [vmem:[%s6349_s18 + $0x1190] sm:$0xff]  ;;  %v861_v52 = vld [vmem:[%s6349_s18 + $0x1198] sm:$0xff] }
 0x14c   : > { %5373 = vmatprep.subr.bf16.mxu0 %v5372_v62  ;;  %v5392_v62 = vpack.c.bf16 %v773_v57, %v772_v56 }
 0x14d   : > { %5371 = vmatpush3.bf16.msra.mxu1 %v5370_v61  ;;  %v5422_v61 = vpack.c.bf16 %v787_v55, %v786_v53  ;;  %v261_v53 = vld [vmem:[#allocation2 + $0xe0] sm:$0xff]  ;;  %v263_v55 = vld [vmem:[#allocation2 + $0xf0] sm:$0xff] }
 0x14e   : > { %5405 = vmatprep.subr.bf16.mxu1 %v5404_v2  ;;  %2250 = vmatmul.mubr.f32.vlgmr.msra.gmra.mrb[12].mxu0 %v257_v8  ;;  %v5424_v2 = vpack.c.bf16 %v805_v59, %v804_v58  ;;  %v5394_v8 = vpack.c.bf16 %v757_v0, %v756_v63  ;;  %v812_v58 = vld [vmem:[%s6349_s18 + $0x1010] sm:$0xff]  ;;  %v813_v59 = vld [vmem:[%s6349_s18 + $0x1018] sm:$0xff]  ;;  %v830_v63 = vld [vmem:[%s6349_s18 + $0x10a0] sm:$0xff] }
 0x14f   : > { %5375 = vmatpush3.bf16.msra.mxu0 %v5374_v9  ;;  %2389 = vmatprep.mubr.f32.mxu0 %v262_v22  ;;  %v5426_v9 = vpack.c.bf16 %v789_v3, %v788_v1  ;;  %v808_v22 = vld [vmem:[%s6349_s18 + $0xff0] sm:$0xff]  ;;  %v831_v0 = vld [vmem:[%s6349_s18 + $0x10a8] sm:$0xff]  ;;  %v862_v1 = vld [vmem:[%s6349_s18 + $0x11a0] sm:$0xff] }
 0x150   : > { %2320 = vmatmul.mubr.f32.vlgmr.msra.gmra.mrb[12].mxu1 %v259_v10  ;;  %5377 = vmatprep.subr.bf16.mxu0 %v5376_v12  ;;  %v5396_v10 = vpack.c.bf16 %v775_v5, %v774_v4  ;;  %v759_v12 = vld [vmem:[%s6349_s18 + $0xe68] sm:$0xff]  ;;  %v266_v3 = vld [vmem:[#allocation2 + $0x108] sm:$0xff]  ;;  %v5442_v4 = vpack.c.bf16 %v813_v59, %v812_v58  ;;  %v268_v5 = vld [vmem:[#allocation2 + $0x118] sm:$0xff]  ;;  %v5444_v7 = vpack.c.bf16 %v831_v0, %v830_v63 }
 0x151   : > { %5407 = vmatpush3.bf16.msra.mxu1 %v5406_v11  ;;  %2459 = vmatprep.mubr.f32.mxu1 %v264_v24  ;;  %v758_v11 = vld [vmem:[%s6349_s18 + $0xe60] sm:$0xff]  ;;  %v823_v58 = vld [vmem:[%s6349_s18 + $0x1068] sm:$0xff]  ;;  %v840_v63 = vld [vmem:[%s6349_s18 + $0x10f0] sm:$0xff] }
 0x152   : > { %5409 = vmatprep.subr.bf16.mxu1 %v5408_v16  ;;  %v791_v16 = vld [vmem:[%s6349_s18 + $0xf68] sm:$0xff]  ;;  %v854_v59 = vld [vmem:[%s6349_s18 + $0x1160] sm:$0xff]  ;;  %v841_v0 = vld [vmem:[%s6349_s18 + $0x10f8] sm:$0xff] }
 0x153   : > { %5379 = vmatpush3.bf16.msra.mxu0 %v5378_v23  ;;  %v809_v23 = vld [vmem:[%s6349_s18 + $0xff8] sm:$0xff]  ;;  %v5430_v28 = vpack.c.bf16 %v791_v16, %v790_v13  ;;  %v832_v13 = vld [vmem:[%s6349_s18 + $0x10b0] sm:$0xff] }
 0x154   : > { %5381 = vmatprep.subr.bf16.mxu0 %v5380_v26  ;;  %v5398_v26 = vpack.c.bf16 %v759_v12, %v758_v11  ;;  %v5432_v34 = vpack.c.bf16 %v809_v23, %v808_v22  ;;  %v847_v12 = vld [vmem:[%s6349_s18 + $0x1128] sm:$0xff]  ;;  %v865_v16 = vld [vmem:[%s6349_s18 + $0x11b8] sm:$0xff]  ;;  %v848_v22 = vld [vmem:[%s6349_s18 + $0x1130] sm:$0xff] }
 0x155   : > { %5411 = vmatpush3.bf16.msra.mxu1 %v5410_v25 }
 0x156   : > { %5413 = vmatprep.subr.bf16.mxu1 %v5412_v30  ;;  %v760_v30 = vld [vmem:[%s6349_s18 + $0xe70] sm:$0xff] }
 0x157   : > { %5383 = vmatpush3.bf16.msra.mxu0 %v5382_v36  ;;  %v826_v36 = vld [vmem:[%s6349_s18 + $0x1080] sm:$0xff]  ;;  %v5402_v41 = vpack.c.bf16 %v761_v31, %v760_v30 }
 0x158   : > { %5385 = vmatprep.subr.bf16.mxu0 %v5384_v38  ;;  %v858_v38 = vld [vmem:[%s6349_s18 + $0x1180] sm:$0xff] }
 0x159   : > { %5415 = vmatpush3.bf16.msra.mxu1 %v5414_v37  ;;  %v827_v37 = vld [vmem:[%s6349_s18 + $0x1088] sm:$0xff]  ;;  %v5468_v47 = vpack.c.bf16 %v859_v39, %v858_v38  ;;  %v837_v38 = vld [vmem:[%s6349_s18 + $0x10d8] sm:$0xff]  ;;  %v868_v39 = vld [vmem:[%s6349_s18 + $0x11d0] sm:$0xff] }
 0x15a   : > { %5417 = vmatprep.subr.bf16.mxu1 %v5416_v42  ;;  %v5434_v42 = vpack.c.bf16 %v793_v35, %v792_v32  ;;  %v5436_v43 = vpack.c.bf16 %v827_v37, %v826_v36  ;;  %v818_v32 = vld [vmem:[%s6349_s18 + $0x1040] sm:$0xff]  ;;  %v851_v36 = vld [vmem:[%s6349_s18 + $0x1148] sm:$0xff]  ;;  %v836_v37 = vld [vmem:[%s6349_s18 + $0x10d0] sm:$0xff] }
 0x15b   : > { %5387 = vmatpush3.bf16.msra.mxu0 %v5386_v48  ;;  %v843_v48 = vld [vmem:[%s6349_s18 + $0x1108] sm:$0xff] }
 0x15c   : > { %5389 = vmatprep.subr.bf16.mxu0 %v5388_v50  ;;  %v829_v50 = vld [vmem:[%s6349_s18 + $0x1098] sm:$0xff]  ;;  %v5470_v56 = vpack.c.bf16 %v843_v48, %v842_v46 }
 0x15d   : > { %5419 = vmatpush3.bf16.msra.mxu1 %v5418_v49  ;;  %v828_v49 = vld [vmem:[%s6349_s18 + $0x1090] sm:$0xff]  ;;  %v821_v46 = vld [vmem:[%s6349_s18 + $0x1058] sm:$0xff] }
 0x15e   : > { %5421 = vmatprep.subr.bf16.mxu1 %v5420_v54  ;;  %v5438_v54 = vpack.c.bf16 %v811_v45, %v810_v44  ;;  %v5440_v57 = vpack.c.bf16 %v829_v50, %v828_v49  ;;  %v5456_v44 = vpack.c.bf16 %v837_v38, %v836_v37  ;;  %v820_v45 = vld [vmem:[%s6349_s18 + $0x1050] sm:$0xff]  ;;  %v853_v49 = vld [vmem:[%s6349_s18 + $0x1158] sm:$0xff]  ;;  %v838_v50 = vld [vmem:[%s6349_s18 + $0x10e0] sm:$0xff] }
 0x15f   : > { %5391 = vmatpush3.bf16.msra.mxu0 %v5390_v60  ;;  %v844_v60 = vld [vmem:[%s6349_s18 + $0x1110] sm:$0xff] }
 0x160   : > { %5393 = vmatprep.subr.bf16.mxu0 %v5392_v62  ;;  %v845_v62 = vld [vmem:[%s6349_s18 + $0x1118] sm:$0xff]  ;;  %v876_v38 = vld [vmem:[%s6349_s18 + $0x1210] sm:$0xff] }
 0x161   : > { %5423 = vmatpush3.bf16.msra.mxu1 %v5422_v61  ;;  %v3796_v14 = vpop.f32.mrb[0].mxu0  ;;  %v5472_v61 = vpack.c.bf16 %v861_v52, %v860_v51  ;;  %v5474_v6 = vpack.c.bf16 %v845_v62, %v844_v60  ;;  %v839_v51 = vld [vmem:[%s6349_s18 + $0x10e8] sm:$0xff]  ;;  %v870_v52 = vld [vmem:[%s6349_s18 + $0x11e0] sm:$0xff] }
 0x162   : > { %5425 = vmatprep.subr.bf16.mxu1 %v5424_v2  ;;  %v3797_v20 = vpop.f32.mrb[1].mxu0  ;;  %v863_v2 = vld [vmem:[%s6349_s18 + $0x11a8] sm:$0xff] }
 0x163   : > { %v3831_v21 = vpop.f32.mrb[0].mxu1  ;;  %v3798_v24 = vadd.f32 %v3797_v20, %v3796_v14  ;;  %5395 = vmatpush3.bf16.msra.mxu0 %v5394_v8  ;;  %v814_v8 = vld [vmem:[%s6349_s18 + $0x1020] sm:$0xff]  ;;  %v5476_v11 = vpack.c.bf16 %v863_v2, %v862_v1  ;;  %v833_v14 = vld [vmem:[%s6349_s18 + $0x10b8] sm:$0xff]  ;;  %v816_v20 = vld [vmem:[%s6349_s18 + $0x1030] sm:$0xff] }
 0x164   : > { %v3832_v25 = vpop.f32.mrb[1].mxu1  ;;  %5397 = vmatprep.subr.bf16.mxu0 %v5396_v10  ;;  %v846_v10 = vld [vmem:[%s6349_s18 + $0x1120] sm:$0xff]  ;;  %v855_v62 = vld [vmem:[%s6349_s18 + $0x1168] sm:$0xff] }
 0x165   : > { %v3833_v27 = vadd.f32 %v3832_v25, %v3831_v21  ;;  %5427 = vmatpush3.bf16.msra.mxu1 %v5426_v9  ;;  %v1412_v33 = vadd.f32 %v3798_v24, %v3760_v19  ;;  %v815_v9 = vld [vmem:[%s6349_s18 + $0x1028] sm:$0xff]  ;;  %v5478_v18 = vpack.c.bf16 %v847_v12, %v846_v10  ;;  %v5448_v19 = vpack.c.bf16 %v833_v14, %v832_v13  ;;  %v817_v21 = vld [vmem:[%s6349_s18 + $0x1038] sm:$0xff]  ;;  %v834_v25 = vld [vmem:[%s6349_s18 + $0x10c0] sm:$0xff] }
 0x166   : > { %5429 = vmatprep.subr.bf16.mxu1 %v5428_v15  ;;  %v864_v15 = vld [vmem:[%s6349_s18 + $0x11b0] sm:$0xff]  ;;  %v5446_v17 = vpack.c.bf16 %v815_v9, %v814_v8  ;;  %v849_v24 = vld [vmem:[%s6349_s18 + $0x1138] sm:$0xff]  ;;  %v5494_v9 = vpack.c.bf16 %v855_v62, %v854_v59  ;;  %v5464_v10 = vpack.c.bf16 %v841_v0, %v840_v63 }
 0x167   : > { %v6873_v40 = vadd.f32 %v3833_v27, %v1412_v33  ;;  %5399 = vmatpush3.bf16.msra.mxu0 %v5398_v26  ;;  %v5480_v23 = vpack.c.bf16 %v865_v16, %v864_v15  ;;  %v835_v26 = vld [vmem:[%s6349_s18 + $0x10c8] sm:$0xff]  ;;  %v866_v27 = vld [vmem:[%s6349_s18 + $0x11c0] sm:$0xff]  ;;  %v5482_v30 = vpack.c.bf16 %v849_v24, %v848_v22  ;;  %v825_v12 = vld [vmem:[%s6349_s18 + $0x1078] sm:$0xff] }
 0x168   : > { %5401 = vmatprep.subr.bf16.mxu0 %v5400_v29  ;;  %v5450_v29 = vpack.c.bf16 %v817_v21, %v816_v20  ;;  %v5452_v31 = vpack.c.bf16 %v835_v26, %v834_v25  ;;  %v819_v33 = vld [vmem:[%s6349_s18 + $0x1048] sm:$0xff]  ;;  %v856_v13 = vld [vmem:[%s6349_s18 + $0x1170] sm:$0xff]  ;;  %v857_v16 = vld [vmem:[%s6349_s18 + $0x1178] sm:$0xff] }
 0x169   : > { %5431 = vmatpush3.bf16.msra.mxu1 %v5430_v28  ;;  %v867_v28 = vld [vmem:[%s6349_s18 + $0x11c8] sm:$0xff]  ;;  %v874_v24 = vld [vmem:[%s6349_s18 + $0x1200] sm:$0xff]  ;;  %v897_v59 = vld [vmem:[%s6349_s18 + $0x12b8] sm:$0xff] }
 0x16a   : > { %5433 = vmatprep.subr.bf16.mxu1 %v5432_v34  ;;  %v850_v34 = vld [vmem:[%s6349_s18 + $0x1140] sm:$0xff]  ;;  %v5484_v35 = vpack.c.bf16 %v867_v28, %v866_v27  ;;  %v923_v20 = vld [vmem:[%s6349_s18 + $0x1388] sm:$0xff] }
 0x16b   : > { %5403 = vmatpush3.bf16.msra.mxu0 %v5402_v41  ;;  %v869_v41 = vld [vmem:[%s6349_s18 + $0x11d8] sm:$0xff]  ;;  %v875_v25 = vld [vmem:[%s6349_s18 + $0x1208] sm:$0xff]  ;;  %v906_v26 = vld [vmem:[%s6349_s18 + $0x1300] sm:$0xff] }
 0x16c   : > { %5437 = vmatprep.subr.bf16.mxu0 %v5436_v43  ;;  %v5486_v43 = vpack.c.bf16 %v851_v36, %v850_v34  ;;  %v5488_v48 = vpack.c.bf16 %v869_v41, %v868_v39  ;;  %v907_v28 = vld [vmem:[%s6349_s18 + $0x1308] sm:$0xff]  ;;  %v5502_v34 = vpack.c.bf16 %v875_v25, %v874_v24  ;;  %v877_v39 = vld [vmem:[%s6349_s18 + $0x1218] sm:$0xff]  ;;  %v908_v41 = vld [vmem:[%s6349_s18 + $0x1310] sm:$0xff] }
 0x16d   : > { %5435 = vmatpush3.bf16.msra.mxu1 %v5434_v42  ;;  %v5454_v42 = vpack.c.bf16 %v819_v33, %v818_v32  ;;  %v925_v32 = vld [vmem:[%s6349_s18 + $0x1398] sm:$0xff]  ;;  %v5534_v36 = vpack.c.bf16 %v907_v28, %v906_v26  ;;  %v884_v25 = vld [vmem:[%s6349_s18 + $0x1250] sm:$0xff] }
 0x16e   : > { %5469 = vmatprep.subr.bf16.mxu1 %v5468_v47  ;;  %2390 = vmatmul.mubr.f32.vlgmr.msra.gmra.mrb[14].mxu0 %v261_v53  ;;  %v852_v47 = vld [vmem:[%s6349_s18 + $0x1150] sm:$0xff]  ;;  %v871_v53 = vld [vmem:[%s6349_s18 + $0x11e8] sm:$0xff]  ;;  %v265_v33 = vld [vmem:[#allocation2 + $0x100] sm:$0xff] }
 0x16f   : > { %5439 = vmatpush3.bf16.msra.mxu0 %v5438_v54  ;;  %2529 = vmatprep.mubr.f32.mxu0 %v266_v3  ;;  %v5458_v54 = vpack.c.bf16 %v821_v46, %v820_v45  ;;  %v872_v3 = vld [vmem:[%s6349_s18 + $0x11f0] sm:$0xff]  ;;  %v895_v45 = vld [vmem:[%s6349_s18 + $0x12a8] sm:$0xff]  ;;  %v926_v46 = vld [vmem:[%s6349_s18 + $0x13a0] sm:$0xff] }
 0x170   : > { %2460 = vmatmul.mubr.f32.vlgmr.msra.gmra.mrb[14].mxu1 %v263_v55  ;;  %5441 = vmatprep.subr.bf16.mxu0 %v5440_v57  ;;  %v5490_v55 = vpack.c.bf16 %v853_v49, %v852_v47  ;;  %v822_v57 = vld [vmem:[%s6349_s18 + $0x1060] sm:$0xff]  ;;  %v927_v47 = vld [vmem:[%s6349_s18 + $0x13a8] sm:$0xff]  ;;  %v5506_v49 = vpack.c.bf16 %v877_v39, %v876_v38  ;;  %v885_v26 = vld [vmem:[%s6349_s18 + $0x1258] sm:$0xff] }
 0x171   : > { %5471 = vmatpush3.bf16.msra.mxu1 %v5470_v56  ;;  %2599 = vmatprep.mubr.f32.mxu1 %v268_v5  ;;  %v5460_v56 = vpack.c.bf16 %v839_v51, %v838_v50  ;;  %v272_v50 = vld [vmem:[#allocation2 + $0x138] sm:$0xff]  ;;  %v887_v38 = vld [vmem:[%s6349_s18 + $0x1268] sm:$0xff]  ;;  %v918_v39 = vld [vmem:[%s6349_s18 + $0x1360] sm:$0xff] }
 0x172   : > { %5473 = vmatprep.subr.bf16.mxu1 %v5472_v61  ;;  %v5492_v61 = vpack.c.bf16 %v871_v53, %v870_v52  ;;  %v878_v53 = vld [vmem:[%s6349_s18 + $0x1220] sm:$0xff] }
 0x173   : > { %5443 = vmatpush3.bf16.msra.mxu0 %v5442_v4  ;;  %v873_v4 = vld [vmem:[%s6349_s18 + $0x11f8] sm:$0xff] }
 0x174   : > { %5445 = vmatprep.subr.bf16.mxu0 %v5444_v7  ;;  %v5462_v7 = vpack.c.bf16 %v823_v58, %v822_v57  ;;  %v5496_v15 = vpack.c.bf16 %v873_v4, %v872_v3  ;;  %v911_v57 = vld [vmem:[%s6349_s18 + $0x1328] sm:$0xff]  ;;  %v896_v58 = vld [vmem:[%s6349_s18 + $0x12b0] sm:$0xff] }
 0x175   : > { %5475 = vmatpush3.bf16.msra.mxu1 %v5474_v6  ;;  %v5512_v0 = vpack.c.bf16 %v897_v59, %v896_v58  ;;  %v912_v3 = vld [vmem:[%s6349_s18 + $0x1330] sm:$0xff] }
 0x176   : > { %5477 = vmatprep.subr.bf16.mxu1 %v5476_v11  ;;  %v824_v11 = vld [vmem:[%s6349_s18 + $0x1070] sm:$0xff] }
 0x177   : > { %5447 = vmatpush3.bf16.msra.mxu0 %v5446_v17  ;;  %v890_v17 = vld [vmem:[%s6349_s18 + $0x1280] sm:$0xff]  ;;  %v5466_v22 = vpack.c.bf16 %v825_v12, %v824_v11  ;;  %v920_v58 = vld [vmem:[%s6349_s18 + $0x1370] sm:$0xff] }
 0x178   : > { %5449 = vmatprep.subr.bf16.mxu0 %v5448_v19  ;;  %v922_v19 = vld [vmem:[%s6349_s18 + $0x1380] sm:$0xff] }
 0x179   : > { %5479 = vmatpush3.bf16.msra.mxu1 %v5478_v18  ;;  %v891_v18 = vld [vmem:[%s6349_s18 + $0x1288] sm:$0xff]  ;;  %v5532_v27 = vpack.c.bf16 %v923_v20, %v922_v19  ;;  %v901_v19 = vld [vmem:[%s6349_s18 + $0x12d8] sm:$0xff]  ;;  %v932_v20 = vld [vmem:[%s6349_s18 + $0x13d0] sm:$0xff] }
 0x17a   : > { %5481 = vmatprep.subr.bf16.mxu1 %v5480_v23  ;;  %v5500_v23 = vpack.c.bf16 %v891_v18, %v890_v17  ;;  %v915_v17 = vld [vmem:[%s6349_s18 + $0x1348] sm:$0xff]  ;;  %v900_v18 = vld [vmem:[%s6349_s18 + $0x12d0] sm:$0xff] }
 0x17b   : > { %5451 = vmatpush3.bf16.msra.mxu0 %v5450_v29  ;;  %v892_v29 = vld [vmem:[%s6349_s18 + $0x1290] sm:$0xff]  ;;  %v5520_v24 = vpack.c.bf16 %v901_v19, %v900_v18 }
 0x17c   : > { %5453 = vmatprep.subr.bf16.mxu0 %v5452_v31  ;;  %v924_v31 = vld [vmem:[%s6349_s18 + $0x1390] sm:$0xff] }
 0x17d   : > { %5483 = vmatpush3.bf16.msra.mxu1 %v5482_v30  ;;  %v893_v30 = vld [vmem:[%s6349_s18 + $0x1298] sm:$0xff]  ;;  %v940_v19 = vld [vmem:[%s6349_s18 + $0x1410] sm:$0xff] }
 0x17e   : > { %5485 = vmatprep.subr.bf16.mxu1 %v5484_v35  ;;  %v267_v35 = vld [vmem:[#allocation2 + $0x110] sm:$0xff]  ;;  %v5504_v37 = vpack.c.bf16 %v893_v30, %v892_v29  ;;  %v917_v29 = vld [vmem:[%s6349_s18 + $0x1358] sm:$0xff]  ;;  %v902_v30 = vld [vmem:[%s6349_s18 + $0x12e0] sm:$0xff] }
 0x17f   : > { %5455 = vmatpush3.bf16.msra.mxu0 %v5454_v42  ;;  %v5536_v42 = vpack.c.bf16 %v925_v32, %v924_v31  ;;  %v903_v31 = vld [vmem:[%s6349_s18 + $0x12e8] sm:$0xff]  ;;  %v934_v32 = vld [vmem:[%s6349_s18 + $0x13e0] sm:$0xff] }
 0x180   : > { %5457 = vmatprep.subr.bf16.mxu0 %v5456_v44  ;;  %v894_v44 = vld [vmem:[%s6349_s18 + $0x12a0] sm:$0xff] }
 0x181   : > { %5487 = vmatpush3.bf16.msra.mxu1 %v5486_v43  ;;  %v3866_v60 = vpop.f32.mrb[2].mxu0  ;;  %v909_v43 = vld [vmem:[%s6349_s18 + $0x1318] sm:$0xff]  ;;  %v5508_v52 = vpack.c.bf16 %v895_v45, %v894_v44  ;;  %v904_v44 = vld [vmem:[%s6349_s18 + $0x12f0] sm:$0xff] }
 0x182   : > { %5489 = vmatprep.subr.bf16.mxu1 %v5488_v48  ;;  %v3867_v1 = vpop.f32.mrb[3].mxu0  ;;  %v270_v48 = vld [vmem:[#allocation2 + $0x128] sm:$0xff]  ;;  %v5538_v51 = vpack.c.bf16 %v909_v43, %v908_v41  ;;  %v919_v43 = vld [vmem:[%s6349_s18 + $0x1368] sm:$0xff]  ;;  %v905_v45 = vld [vmem:[%s6349_s18 + $0x12f8] sm:$0xff] }
 0x183   : > { %v3901_v2 = vpop.f32.mrb[2].mxu1  ;;  %v3868_v5 = vadd.f32 %v3867_v1, %v3866_v60  ;;  %5459 = vmatpush3.bf16.msra.mxu0 %v5458_v54  ;;  %v879_v54 = vld [vmem:[%s6349_s18 + $0x1228] sm:$0xff]  ;;  %v928_v60 = vld [vmem:[%s6349_s18 + $0x13b0] sm:$0xff] }
 0x184   : > { %v3902_v6 = vpop.f32.mrb[3].mxu1  ;;  %5461 = vmatprep.subr.bf16.mxu0 %v5460_v56  ;;  %v5540_v56 = vpack.c.bf16 %v927_v47, %v926_v46  ;;  %v5510_v62 = vpack.c.bf16 %v879_v54, %v878_v53  ;;  %v880_v1 = vld [vmem:[%s6349_s18 + $0x1230] sm:$0xff]  ;;  %v5558_v54 = vpack.c.bf16 %v919_v43, %v918_v39  ;;  %v961_v39 = vld [vmem:[%s6349_s18 + $0x14b8] sm:$0xff] }
 0x185   : > { %v3903_v8 = vadd.f32 %v3902_v6, %v3901_v2  ;;  %5491 = vmatpush3.bf16.msra.mxu1 %v5490_v55  ;;  %v1552_v14 = vadd.f32 %v3868_v5, %v6873_v40  ;;  %v5498_v40 = vpack.c.bf16 %v857_v16, %v856_v13  ;;  %v910_v55 = vld [vmem:[%s6349_s18 + $0x1320] sm:$0xff]  ;;  %v881_v2 = vld [vmem:[%s6349_s18 + $0x1238] sm:$0xff] }
 0x186   : > { %5493 = vmatprep.subr.bf16.mxu1 %v5492_v61  ;;  %v929_v61 = vld [vmem:[%s6349_s18 + $0x13b8] sm:$0xff]  ;;  %v5542_v63 = vpack.c.bf16 %v911_v57, %v910_v55  ;;  %v898_v6 = vld [vmem:[%s6349_s18 + $0x12c0] sm:$0xff]  ;;  %v5528_v55 = vpack.c.bf16 %v905_v45, %v904_v44 }
 0x187   : > { %v6940_v21 = vadd.f32 %v3903_v8, %v1552_v14  ;;  %5463 = vmatpush3.bf16.msra.mxu0 %v5462_v7  ;;  %v5544_v4 = vpack.c.bf16 %v929_v61, %v928_v60  ;;  %v913_v5 = vld [vmem:[%s6349_s18 + $0x1338] sm:$0xff]  ;;  %v899_v7 = vld [vmem:[%s6349_s18 + $0x12c8] sm:$0xff]  ;;  %v930_v8 = vld [vmem:[%s6349_s18 + $0x13c0] sm:$0xff] }
 0x188   : > { %5465 = vmatprep.subr.bf16.mxu0 %v5464_v10  ;;  %v5514_v10 = vpack.c.bf16 %v881_v2, %v880_v1  ;;  %v5546_v11 = vpack.c.bf16 %v913_v5, %v912_v3  ;;  %v5516_v12 = vpack.c.bf16 %v899_v7, %v898_v6  ;;  %v882_v13 = vld [vmem:[%s6349_s18 + $0x1240] sm:$0xff]  ;;  %v883_v14 = vld [vmem:[%s6349_s18 + $0x1248] sm:$0xff]  ;;  %v889_v57 = vld [vmem:[%s6349_s18 + $0x1278] sm:$0xff] }
 0x189   : > { %5495 = vmatpush3.bf16.msra.mxu1 %v5494_v9  ;;  %v931_v9 = vld [vmem:[%s6349_s18 + $0x13c8] sm:$0xff]  ;;  %v921_v61 = vld [vmem:[%s6349_s18 + $0x1378] sm:$0xff]  ;;  %v938_v5 = vld [vmem:[%s6349_s18 + $0x1400] sm:$0xff] }
 0x18a   : > { %5497 = vmatprep.subr.bf16.mxu1 %v5496_v15  ;;  %v914_v15 = vld [vmem:[%s6349_s18 + $0x1340] sm:$0xff]  ;;  %v5548_v16 = vpack.c.bf16 %v931_v9, %v930_v8  ;;  %v987_v1 = vld [vmem:[%s6349_s18 + $0x1588] sm:$0xff] }
 0x18b   : > { %5467 = vmatpush3.bf16.msra.mxu0 %v5466_v22  ;;  %v933_v22 = vld [vmem:[%s6349_s18 + $0x13d8] sm:$0xff]  ;;  %v939_v6 = vld [vmem:[%s6349_s18 + $0x1408] sm:$0xff]  ;;  %v970_v7 = vld [vmem:[%s6349_s18 + $0x1500] sm:$0xff] }
 0x18c   : > { %5501 = vmatprep.subr.bf16.mxu0 %v5500_v23  ;;  %v5550_v23 = vpack.c.bf16 %v915_v17, %v914_v15  ;;  %v5552_v28 = vpack.c.bf16 %v933_v22, %v932_v20  ;;  %v971_v9 = vld [vmem:[%s6349_s18 + $0x1508] sm:$0xff]  ;;  %v5566_v15 = vpack.c.bf16 %v939_v6, %v938_v5  ;;  %v941_v20 = vld [vmem:[%s6349_s18 + $0x1418] sm:$0xff]  ;;  %v972_v22 = vld [vmem:[%s6349_s18 + $0x1510] sm:$0xff] }
 0x18d   : > { %5499 = vmatpush3.bf16.msra.mxu1 %v5498_v40  ;;  %v5518_v40 = vpack.c.bf16 %v883_v14, %v882_v13  ;;  %v989_v13 = vld [vmem:[%s6349_s18 + $0x1598] sm:$0xff]  ;;  %v5598_v17 = vpack.c.bf16 %v971_v9, %v970_v7  ;;  %v948_v6 = vld [vmem:[%s6349_s18 + $0x1450] sm:$0xff] }
 0x18e   : > { %5533 = vmatprep.subr.bf16.mxu1 %v5532_v27  ;;  %2530 = vmatmul.mubr.f32.vlgmr.msra.gmra.mrb[16].mxu0 %v265_v33  ;;  %v916_v27 = vld [vmem:[%s6349_s18 + $0x1350] sm:$0xff]  ;;  %v935_v33 = vld [vmem:[%s6349_s18 + $0x13e8] sm:$0xff]  ;;  %v269_v14 = vld [vmem:[#allocation2 + $0x120] sm:$0xff] }
 0x18f   : > { %5503 = vmatpush3.bf16.msra.mxu0 %v5502_v34  ;;  %2669 = vmatprep.mubr.f32.mxu0 %v270_v48  ;;  %v5522_v34 = vpack.c.bf16 %v885_v26, %v884_v25  ;;  %v936_v48 = vld [vmem:[%s6349_s18 + $0x13f0] sm:$0xff]  ;;  %v959_v25 = vld [vmem:[%s6349_s18 + $0x14a8] sm:$0xff]  ;;  %v990_v26 = vld [vmem:[%s6349_s18 + $0x15a0] sm:$0xff] }
 0x190   : > { %2600 = vmatmul.mubr.f32.vlgmr.msra.gmra.mrb[16].mxu1 %v267_v35  ;;  %5505 = vmatprep.subr.bf16.mxu0 %v5504_v37  ;;  %v5554_v35 = vpack.c.bf16 %v917_v29, %v916_v27  ;;  %v886_v37 = vld [vmem:[%s6349_s18 + $0x1260] sm:$0xff]  ;;  %v991_v27 = vld [vmem:[%s6349_s18 + $0x15a8] sm:$0xff]  ;;  %v5570_v29 = vpack.c.bf16 %v941_v20, %v940_v19  ;;  %v949_v7 = vld [vmem:[%s6349_s18 + $0x1458] sm:$0xff] }
 0x191   : > { %5535 = vmatpush3.bf16.msra.mxu1 %v5534_v36  ;;  %2739 = vmatprep.mubr.f32.mxu1 %v272_v50  ;;  %v5524_v36 = vpack.c.bf16 %v903_v31, %v902_v30  ;;  %v276_v30 = vld [vmem:[#allocation2 + $0x158] sm:$0xff]  ;;  %v951_v19 = vld [vmem:[%s6349_s18 + $0x1468] sm:$0xff]  ;;  %v982_v20 = vld [vmem:[%s6349_s18 + $0x1560] sm:$0xff] }
 0x192   : > { %5537 = vmatprep.subr.bf16.mxu1 %v5536_v42  ;;  %v5556_v42 = vpack.c.bf16 %v935_v33, %v934_v32  ;;  %v942_v33 = vld [vmem:[%s6349_s18 + $0x1420] sm:$0xff] }
 0x193   : > { %5507 = vmatpush3.bf16.msra.mxu0 %v5506_v49  ;;  %v937_v49 = vld [vmem:[%s6349_s18 + $0x13f8] sm:$0xff] }
 0x194   : > { %5509 = vmatprep.subr.bf16.mxu0 %v5508_v52  ;;  %v5526_v52 = vpack.c.bf16 %v887_v38, %v886_v37  ;;  %v5560_v60 = vpack.c.bf16 %v937_v49, %v936_v48  ;;  %v975_v37 = vld [vmem:[%s6349_s18 + $0x1528] sm:$0xff]  ;;  %v960_v38 = vld [vmem:[%s6349_s18 + $0x14b0] sm:$0xff] }
 0x195   : > { %5539 = vmatpush3.bf16.msra.mxu1 %v5538_v51  ;;  %v5576_v45 = vpack.c.bf16 %v961_v39, %v960_v38  ;;  %v976_v48 = vld [vmem:[%s6349_s18 + $0x1530] sm:$0xff] }
 0x196   : > { %5541 = vmatprep.subr.bf16.mxu1 %v5540_v56  ;;  %v888_v56 = vld [vmem:[%s6349_s18 + $0x1270] sm:$0xff] }
 0x197   : > { %5511 = vmatpush3.bf16.msra.mxu0 %v5510_v62  ;;  %v954_v62 = vld [vmem:[%s6349_s18 + $0x1480] sm:$0xff]  ;;  %v5530_v3 = vpack.c.bf16 %v889_v57, %v888_v56  ;;  %v984_v38 = vld [vmem:[%s6349_s18 + $0x1570] sm:$0xff] }
 0x198   : > { %5513 = vmatprep.subr.bf16.mxu0 %v5512_v0  ;;  %v986_v0 = vld [vmem:[%s6349_s18 + $0x1580] sm:$0xff] }
 0x199   : > { %5543 = vmatpush3.bf16.msra.mxu1 %v5542_v63  ;;  %v955_v63 = vld [vmem:[%s6349_s18 + $0x1488] sm:$0xff]  ;;  %v5596_v8 = vpack.c.bf16 %v987_v1, %v986_v0  ;;  %v965_v0 = vld [vmem:[%s6349_s18 + $0x14d8] sm:$0xff]  ;;  %v996_v1 = vld [vmem:[%s6349_s18 + $0x15d0] sm:$0xff] }
 0x19a   : > { %5545 = vmatprep.subr.bf16.mxu1 %v5544_v4  ;;  %v5564_v4 = vpack.c.bf16 %v955_v63, %v954_v62  ;;  %v979_v62 = vld [vmem:[%s6349_s18 + $0x1548] sm:$0xff]  ;;  %v964_v63 = vld [vmem:[%s6349_s18 + $0x14d0] sm:$0xff] }
 0x19b   : > { %5515 = vmatpush3.bf16.msra.mxu0 %v5514_v10  ;;  %v956_v10 = vld [vmem:[%s6349_s18 + $0x1490] sm:$0xff]  ;;  %v5584_v5 = vpack.c.bf16 %v965_v0, %v964_v63 }
 0x19c   : > { %5517 = vmatprep.subr.bf16.mxu0 %v5516_v12  ;;  %v988_v12 = vld [vmem:[%s6349_s18 + $0x1590] sm:$0xff] }
 0x19d   : > { %5547 = vmatpush3.bf16.msra.mxu1 %v5546_v11  ;;  %v957_v11 = vld [vmem:[%s6349_s18 + $0x1498] sm:$0xff]  ;;  %v1004_v0 = vld [vmem:[%s6349_s18 + $0x1610] sm:$0xff] }
 0x19e   : > { %5549 = vmatprep.subr.bf16.mxu1 %v5548_v16  ;;  %v271_v16 = vld [vmem:[#allocation2 + $0x130] sm:$0xff]  ;;  %v5568_v18 = vpack.c.bf16 %v957_v11, %v956_v10  ;;  %v981_v10 = vld [vmem:[%s6349_s18 + $0x1558] sm:$0xff]  ;;  %v966_v11 = vld [vmem:[%s6349_s18 + $0x14e0] sm:$0xff] }
 0x19f   : > { %5519 = vmatpush3.bf16.msra.mxu0 %v5518_v40  ;;  %v5600_v40 = vpack.c.bf16 %v989_v13, %v988_v12  ;;  %v967_v12 = vld [vmem:[%s6349_s18 + $0x14e8] sm:$0xff]  ;;  %v998_v13 = vld [vmem:[%s6349_s18 + $0x15e0] sm:$0xff] }
 0x1a0   : > { %5521 = vmatprep.subr.bf16.mxu0 %v5520_v24  ;;  %v958_v24 = vld [vmem:[%s6349_s18 + $0x14a0] sm:$0xff] }
 0x1a1   : > { %5551 = vmatpush3.bf16.msra.mxu1 %v5550_v23  ;;  %v3936_v41 = vpop.f32.mrb[4].mxu0  ;;  %v973_v23 = vld [vmem:[%s6349_s18 + $0x1518] sm:$0xff]  ;;  %v5572_v32 = vpack.c.bf16 %v959_v25, %v958_v24  ;;  %v968_v24 = vld [vmem:[%s6349_s18 + $0x14f0] sm:$0xff] }
 0x1a2   : > { %5553 = vmatprep.subr.bf16.mxu1 %v5552_v28  ;;  %v3937_v46 = vpop.f32.mrb[5].mxu0  ;;  %v274_v28 = vld [vmem:[#allocation2 + $0x148] sm:$0xff]  ;;  %v5602_v31 = vpack.c.bf16 %v973_v23, %v972_v22  ;;  %v983_v23 = vld [vmem:[%s6349_s18 + $0x1568] sm:$0xff]  ;;  %v969_v25 = vld [vmem:[%s6349_s18 + $0x14f8] sm:$0xff] }
 0x1a3   : > { %v3971_v47 = vpop.f32.mrb[4].mxu1  ;;  %v3938_v50 = vadd.f32 %v3937_v46, %v3936_v41  ;;  %5523 = vmatpush3.bf16.msra.mxu0 %v5522_v34  ;;  %v943_v34 = vld [vmem:[%s6349_s18 + $0x1428] sm:$0xff]  ;;  %v992_v41 = vld [vmem:[%s6349_s18 + $0x15b0] sm:$0xff] }
 0x1a4   : > { %v3972_v51 = vpop.f32.mrb[5].mxu1  ;;  %5525 = vmatprep.subr.bf16.mxu0 %v5524_v36  ;;  %v5604_v36 = vpack.c.bf16 %v991_v27, %v990_v26  ;;  %v5574_v43 = vpack.c.bf16 %v943_v34, %v942_v33  ;;  %v944_v46 = vld [vmem:[%s6349_s18 + $0x1430] sm:$0xff]  ;;  %v5622_v34 = vpack.c.bf16 %v983_v23, %v982_v20  ;;  %v1025_v20 = vld [vmem:[%s6349_s18 + $0x16b8] sm:$0xff] }
 0x1a5   : > { %v3973_v53 = vadd.f32 %v3972_v51, %v3971_v47  ;;  %5555 = vmatpush3.bf16.msra.mxu1 %v5554_v35  ;;  %v1692_v59 = vadd.f32 %v3938_v50, %v6940_v21  ;;  %v5562_v21 = vpack.c.bf16 %v921_v61, %v920_v58  ;;  %v974_v35 = vld [vmem:[%s6349_s18 + $0x1520] sm:$0xff]  ;;  %v945_v47 = vld [vmem:[%s6349_s18 + $0x1438] sm:$0xff] }
 0x1a6   : > { %5557 = vmatprep.subr.bf16.mxu1 %v5556_v42  ;;  %v993_v42 = vld [vmem:[%s6349_s18 + $0x15b8] sm:$0xff]  ;;  %v5606_v44 = vpack.c.bf16 %v975_v37, %v974_v35  ;;  %v962_v51 = vld [vmem:[%s6349_s18 + $0x14c0] sm:$0xff]  ;;  %v5592_v35 = vpack.c.bf16 %v969_v25, %v968_v24 }
 0x1a7   : > { %v7007_v2 = vadd.f32 %v3973_v53, %v1692_v59  ;;  %5527 = vmatpush3.bf16.msra.mxu0 %v5526_v52  ;;  %v5608_v49 = vpack.c.bf16 %v993_v42, %v992_v41  ;;  %v977_v50 = vld [vmem:[%s6349_s18 + $0x1538] sm:$0xff]  ;;  %v963_v52 = vld [vmem:[%s6349_s18 + $0x14c8] sm:$0xff]  ;;  %v994_v53 = vld [vmem:[%s6349_s18 + $0x15c0] sm:$0xff] }
 0x1a8   : > { %5529 = vmatprep.subr.bf16.mxu0 %v5528_v55  ;;  %v5578_v55 = vpack.c.bf16 %v945_v47, %v944_v46  ;;  %v5610_v56 = vpack.c.bf16 %v977_v50, %v976_v48  ;;  %v5580_v57 = vpack.c.bf16 %v963_v52, %v962_v51  ;;  %v946_v58 = vld [vmem:[%s6349_s18 + $0x1440] sm:$0xff]  ;;  %v947_v59 = vld [vmem:[%s6349_s18 + $0x1448] sm:$0xff]  ;;  %v953_v37 = vld [vmem:[%s6349_s18 + $0x1478] sm:$0xff] }
 0x1a9   : > { %5559 = vmatpush3.bf16.msra.mxu1 %v5558_v54  ;;  %v995_v54 = vld [vmem:[%s6349_s18 + $0x15c8] sm:$0xff]  ;;  %v985_v42 = vld [vmem:[%s6349_s18 + $0x1578] sm:$0xff]  ;;  %v1002_v50 = vld [vmem:[%s6349_s18 + $0x1600] sm:$0xff] }
 0x1aa   : > { %5561 = vmatprep.subr.bf16.mxu1 %v5560_v60  ;;  %v978_v60 = vld [vmem:[%s6349_s18 + $0x1540] sm:$0xff]  ;;  %v5612_v61 = vpack.c.bf16 %v995_v54, %v994_v53  ;;  %v1051_v46 = vld [vmem:[%s6349_s18 + $0x1788] sm:$0xff] }
 0x1ab   : > { %5531 = vmatpush3.bf16.msra.mxu0 %v5530_v3  ;;  %v997_v3 = vld [vmem:[%s6349_s18 + $0x15d8] sm:$0xff]  ;;  %v1003_v51 = vld [vmem:[%s6349_s18 + $0x1608] sm:$0xff]  ;;  %v1034_v52 = vld [vmem:[%s6349_s18 + $0x1700] sm:$0xff] }
 0x1ac   : > { %5565 = vmatprep.subr.bf16.mxu0 %v5564_v4  ;;  %v5614_v4 = vpack.c.bf16 %v979_v62, %v978_v60  ;;  %v5616_v9 = vpack.c.bf16 %v997_v3, %v996_v1  ;;  %v1035_v54 = vld [vmem:[%s6349_s18 + $0x1708] sm:$0xff]  ;;  %v5630_v60 = vpack.c.bf16 %v1003_v51, %v1002_v50  ;;  %v1005_v1 = vld [vmem:[%s6349_s18 + $0x1618] sm:$0xff]  ;;  %v1036_v3 = vld [vmem:[%s6349_s18 + $0x1710] sm:$0xff] }
 0x1ad   : > { %5563 = vmatpush3.bf16.msra.mxu1 %v5562_v21  ;;  %v5582_v21 = vpack.c.bf16 %v947_v59, %v946_v58  ;;  %v1053_v58 = vld [vmem:[%s6349_s18 + $0x1798] sm:$0xff]  ;;  %v5662_v62 = vpack.c.bf16 %v1035_v54, %v1034_v52  ;;  %v1012_v51 = vld [vmem:[%s6349_s18 + $0x1650] sm:$0xff] }
 0x1ae   : > { %5597 = vmatprep.subr.bf16.mxu1 %v5596_v8  ;;  %2670 = vmatmul.mubr.f32.vlgmr.msra.gmra.mrb[18].mxu0 %v269_v14  ;;  %v980_v8 = vld [vmem:[%s6349_s18 + $0x1550] sm:$0xff]  ;;  %v999_v14 = vld [vmem:[%s6349_s18 + $0x15e8] sm:$0xff]  ;;  %v273_v59 = vld [vmem:[#allocation2 + $0x140] sm:$0xff] }
 0x1af   : > { %5567 = vmatpush3.bf16.msra.mxu0 %v5566_v15  ;;  %2809 = vmatprep.mubr.f32.mxu0 %v274_v28  ;;  %v5586_v15 = vpack.c.bf16 %v949_v7, %v948_v6  ;;  %v1000_v28 = vld [vmem:[%s6349_s18 + $0x15f0] sm:$0xff]  ;;  %v1023_v6 = vld [vmem:[%s6349_s18 + $0x16a8] sm:$0xff]  ;;  %v1054_v7 = vld [vmem:[%s6349_s18 + $0x17a0] sm:$0xff] }
 0x1b0   : > { %2740 = vmatmul.mubr.f32.vlgmr.msra.gmra.mrb[18].mxu1 %v271_v16  ;;  %5569 = vmatprep.subr.bf16.mxu0 %v5568_v18  ;;  %v5618_v16 = vpack.c.bf16 %v981_v10, %v980_v8  ;;  %v950_v18 = vld [vmem:[%s6349_s18 + $0x1460] sm:$0xff]  ;;  %v1055_v8 = vld [vmem:[%s6349_s18 + $0x17a8] sm:$0xff]  ;;  %v5634_v10 = vpack.c.bf16 %v1005_v1, %v1004_v0  ;;  %v1013_v52 = vld [vmem:[%s6349_s18 + $0x1658] sm:$0xff] }
 0x1b1   : > { %5599 = vmatpush3.bf16.msra.mxu1 %v5598_v17  ;;  %2879 = vmatprep.mubr.f32.mxu1 %v276_v30  ;;  %v5588_v17 = vpack.c.bf16 %v967_v12, %v966_v11  ;;  %v280_v11 = vld [vmem:[#allocation2 + $0x178] sm:$0xff]  ;;  %v1015_v0 = vld [vmem:[%s6349_s18 + $0x1668] sm:$0xff]  ;;  %v1046_v1 = vld [vmem:[%s6349_s18 + $0x1760] sm:$0xff] }
 0x1b2   : > { %5601 = vmatprep.subr.bf16.mxu1 %v5600_v40  ;;  %v5620_v40 = vpack.c.bf16 %v999_v14, %v998_v13  ;;  %v1006_v14 = vld [vmem:[%s6349_s18 + $0x1620] sm:$0xff] }
 0x1b3   : > { %5571 = vmatpush3.bf16.msra.mxu0 %v5570_v29  ;;  %v1001_v29 = vld [vmem:[%s6349_s18 + $0x15f8] sm:$0xff] }
 0x1b4   : > { %5573 = vmatprep.subr.bf16.mxu0 %v5572_v32  ;;  %v5590_v32 = vpack.c.bf16 %v951_v19, %v950_v18  ;;  %v5624_v41 = vpack.c.bf16 %v1001_v29, %v1000_v28  ;;  %v1039_v18 = vld [vmem:[%s6349_s18 + $0x1728] sm:$0xff]  ;;  %v1024_v19 = vld [vmem:[%s6349_s18 + $0x16b0] sm:$0xff] }
 0x1b5   : > { %5603 = vmatpush3.bf16.msra.mxu1 %v5602_v31  ;;  %v5640_v25 = vpack.c.bf16 %v1025_v20, %v1024_v19  ;;  %v1040_v28 = vld [vmem:[%s6349_s18 + $0x1730] sm:$0xff] }
 0x1b6   : > { %5605 = vmatprep.subr.bf16.mxu1 %v5604_v36  ;;  %v952_v36 = vld [vmem:[%s6349_s18 + $0x1470] sm:$0xff] }
 0x1b7   : > { %5575 = vmatpush3.bf16.msra.mxu0 %v5574_v43  ;;  %v1018_v43 = vld [vmem:[%s6349_s18 + $0x1680] sm:$0xff]  ;;  %v5594_v48 = vpack.c.bf16 %v953_v37, %v952_v36  ;;  %v1048_v19 = vld [vmem:[%s6349_s18 + $0x1770] sm:$0xff] }
 0x1b8   : > { %5577 = vmatprep.subr.bf16.mxu0 %v5576_v45  ;;  %v1050_v45 = vld [vmem:[%s6349_s18 + $0x1780] sm:$0xff] }
 0x1b9   : > { %5607 = vmatpush3.bf16.msra.mxu1 %v5606_v44  ;;  %v1019_v44 = vld [vmem:[%s6349_s18 + $0x1688] sm:$0xff]  ;;  %v5660_v53 = vpack.c.bf16 %v1051_v46, %v1050_v45  ;;  %v1029_v45 = vld [vmem:[%s6349_s18 + $0x16d8] sm:$0xff]  ;;  %v1060_v46 = vld [vmem:[%s6349_s18 + $0x17d0] sm:$0xff] }
 0x1ba   : > { %5609 = vmatprep.subr.bf16.mxu1 %v5608_v49  ;;  %v5628_v49 = vpack.c.bf16 %v1019_v44, %v1018_v43  ;;  %v1043_v43 = vld [vmem:[%s6349_s18 + $0x1748] sm:$0xff]  ;;  %v1028_v44 = vld [vmem:[%s6349_s18 + $0x16d0] sm:$0xff] }
 0x1bb   : > { %5579 = vmatpush3.bf16.msra.mxu0 %v5578_v55  ;;  %v1020_v55 = vld [vmem:[%s6349_s18 + $0x1690] sm:$0xff]  ;;  %v5648_v50 = vpack.c.bf16 %v1029_v45, %v1028_v44 }
 0x1bc   : > { %5581 = vmatprep.subr.bf16.mxu0 %v5580_v57  ;;  %v1052_v57 = vld [vmem:[%s6349_s18 + $0x1790] sm:$0xff] }
 0x1bd   : > { %5611 = vmatpush3.bf16.msra.mxu1 %v5610_v56  ;;  %v1021_v56 = vld [vmem:[%s6349_s18 + $0x1698] sm:$0xff]  ;;  %v1068_v45 = vld [vmem:[%s6349_s18 + $0x1810] sm:$0xff] }
 0x1be   : > { %5613 = vmatprep.subr.bf16.mxu1 %v5612_v61  ;;  %v275_v61 = vld [vmem:[#allocation2 + $0x150] sm:$0xff]  ;;  %v5632_v63 = vpack.c.bf16 %v1021_v56, %v1020_v55  ;;  %v1045_v55 = vld [vmem:[%s6349_s18 + $0x1758] sm:$0xff]  ;;  %v1030_v56 = vld [vmem:[%s6349_s18 + $0x16e0] sm:$0xff] }
 0x1bf   : > { %5583 = vmatpush3.bf16.msra.mxu0 %v5582_v21  ;;  %v5664_v21 = vpack.c.bf16 %v1053_v58, %v1052_v57  ;;  %v1031_v57 = vld [vmem:[%s6349_s18 + $0x16e8] sm:$0xff]  ;;  %v1062_v58 = vld [vmem:[%s6349_s18 + $0x17e0] sm:$0xff] }
 0x1c0   : > { %5585 = vmatprep.subr.bf16.mxu0 %v5584_v5  ;;  %v1022_v5 = vld [vmem:[%s6349_s18 + $0x16a0] sm:$0xff] }
 0x1c1   : > { %5615 = vmatpush3.bf16.msra.mxu1 %v5614_v4  ;;  %v4006_v22 = vpop.f32.mrb[6].mxu0  ;;  %v1037_v4 = vld [vmem:[%s6349_s18 + $0x1718] sm:$0xff]  ;;  %v5636_v13 = vpack.c.bf16 %v1023_v6, %v1022_v5  ;;  %v1032_v5 = vld [vmem:[%s6349_s18 + $0x16f0] sm:$0xff] }
 0x1c2   : > { %5617 = vmatprep.subr.bf16.mxu1 %v5616_v9  ;;  %v4007_v26 = vpop.f32.mrb[7].mxu0  ;;  %v278_v9 = vld [vmem:[#allocation2 + $0x168] sm:$0xff]  ;;  %v5666_v12 = vpack.c.bf16 %v1037_v4, %v1036_v3  ;;  %v1047_v4 = vld [vmem:[%s6349_s18 + $0x1768] sm:$0xff]  ;;  %v1033_v6 = vld [vmem:[%s6349_s18 + $0x16f8] sm:$0xff] }
 0x1c3   : > { %v4041_v27 = vpop.f32.mrb[6].mxu1  ;;  %v4008_v30 = vadd.f32 %v4007_v26, %v4006_v22  ;;  %5587 = vmatpush3.bf16.msra.mxu0 %v5586_v15  ;;  %v1007_v15 = vld [vmem:[%s6349_s18 + $0x1628] sm:$0xff]  ;;  %v1056_v22 = vld [vmem:[%s6349_s18 + $0x17b0] sm:$0xff] }
 0x1c4   : > { %v4042_v31 = vpop.f32.mrb[7].mxu1  ;;  %5589 = vmatprep.subr.bf16.mxu0 %v5588_v17  ;;  %v5668_v17 = vpack.c.bf16 %v1055_v8, %v1054_v7  ;;  %v5638_v23 = vpack.c.bf16 %v1007_v15, %v1006_v14  ;;  %v1008_v26 = vld [vmem:[%s6349_s18 + $0x1630] sm:$0xff]  ;;  %v5686_v15 = vpack.c.bf16 %v1047_v4, %v1046_v1  ;;  %v1089_v1 = vld [vmem:[%s6349_s18 + $0x18b8] sm:$0xff] }
 0x1c5   : > { %v4043_v33 = vadd.f32 %v4042_v31, %v4041_v27  ;;  %5619 = vmatpush3.bf16.msra.mxu1 %v5618_v16  ;;  %v1832_v39 = vadd.f32 %v4008_v30, %v7007_v2  ;;  %v5626_v2 = vpack.c.bf16 %v985_v42, %v984_v38  ;;  %v1038_v16 = vld [vmem:[%s6349_s18 + $0x1720] sm:$0xff]  ;;  %v1009_v27 = vld [vmem:[%s6349_s18 + $0x1638] sm:$0xff] }
 0x1c6   : > { %5621 = vmatprep.subr.bf16.mxu1 %v5620_v40  ;;  %v1057_v40 = vld [vmem:[%s6349_s18 + $0x17b8] sm:$0xff]  ;;  %v5670_v24 = vpack.c.bf16 %v1039_v18, %v1038_v16  ;;  %v1026_v31 = vld [vmem:[%s6349_s18 + $0x16c0] sm:$0xff]  ;;  %v5656_v16 = vpack.c.bf16 %v1033_v6, %v1032_v5 }
 0x1c7   : > { %v7074_v47 = vadd.f32 %v4043_v33, %v1832_v39  ;;  %5591 = vmatpush3.bf16.msra.mxu0 %v5590_v32  ;;  %v5672_v29 = vpack.c.bf16 %v1057_v40, %v1056_v22  ;;  %v1041_v30 = vld [vmem:[%s6349_s18 + $0x1738] sm:$0xff]  ;;  %v1027_v32 = vld [vmem:[%s6349_s18 + $0x16c8] sm:$0xff]  ;;  %v1058_v33 = vld [vmem:[%s6349_s18 + $0x17c0] sm:$0xff] }
 0x1c8   : > { %5593 = vmatprep.subr.bf16.mxu0 %v5592_v35  ;;  %v5642_v35 = vpack.c.bf16 %v1009_v27, %v1008_v26  ;;  %v5674_v36 = vpack.c.bf16 %v1041_v30, %v1040_v28  ;;  %v5644_v37 = vpack.c.bf16 %v1027_v32, %v1026_v31  ;;  %v1010_v38 = vld [vmem:[%s6349_s18 + $0x1640] sm:$0xff]  ;;  %v1011_v39 = vld [vmem:[%s6349_s18 + $0x1648] sm:$0xff]  ;;  %v1017_v18 = vld [vmem:[%s6349_s18 + $0x1678] sm:$0xff] }
 0x1c9   : > { %5623 = vmatpush3.bf16.msra.mxu1 %v5622_v34  ;;  %v1059_v34 = vld [vmem:[%s6349_s18 + $0x17c8] sm:$0xff]  ;;  %v1049_v40 = vld [vmem:[%s6349_s18 + $0x1778] sm:$0xff]  ;;  %v1066_v30 = vld [vmem:[%s6349_s18 + $0x1800] sm:$0xff] }
 0x1ca   : > { %5625 = vmatprep.subr.bf16.mxu1 %v5624_v41  ;;  %v1042_v41 = vld [vmem:[%s6349_s18 + $0x1740] sm:$0xff]  ;;  %v5676_v42 = vpack.c.bf16 %v1059_v34, %v1058_v33  ;;  %v1115_v26 = vld [vmem:[%s6349_s18 + $0x1988] sm:$0xff] }
 0x1cb   : > { %5595 = vmatpush3.bf16.msra.mxu0 %v5594_v48  ;;  %v1061_v48 = vld [vmem:[%s6349_s18 + $0x17d8] sm:$0xff]  ;;  %v1067_v31 = vld [vmem:[%s6349_s18 + $0x1808] sm:$0xff]  ;;  %v1098_v32 = vld [vmem:[%s6349_s18 + $0x1900] sm:$0xff] }
 0x1cc   : > { %5629 = vmatprep.subr.bf16.mxu0 %v5628_v49  ;;  %v5678_v49 = vpack.c.bf16 %v1043_v43, %v1042_v41  ;;  %v5680_v54 = vpack.c.bf16 %v1061_v48, %v1060_v46  ;;  %v1099_v34 = vld [vmem:[%s6349_s18 + $0x1908] sm:$0xff]  ;;  %v5694_v41 = vpack.c.bf16 %v1067_v31, %v1066_v30  ;;  %v1069_v46 = vld [vmem:[%s6349_s18 + $0x1818] sm:$0xff]  ;;  %v1100_v48 = vld [vmem:[%s6349_s18 + $0x1910] sm:$0xff] }
 0x1cd   : > { %5627 = vmatpush3.bf16.msra.mxu1 %v5626_v2  ;;  %v5646_v2 = vpack.c.bf16 %v1011_v39, %v1010_v38  ;;  %v1117_v38 = vld [vmem:[%s6349_s18 + $0x1998] sm:$0xff]  ;;  %v5726_v43 = vpack.c.bf16 %v1099_v34, %v1098_v32  ;;  %v1076_v31 = vld [vmem:[%s6349_s18 + $0x1850] sm:$0xff] }
 0x1ce   : > { %5661 = vmatprep.subr.bf16.mxu1 %v5660_v53  ;;  %2810 = vmatmul.mubr.f32.vlgmr.msra.gmra.mrb[20].mxu0 %v273_v59  ;;  %v1044_v53 = vld [vmem:[%s6349_s18 + $0x1750] sm:$0xff]  ;;  %v1063_v59 = vld [vmem:[%s6349_s18 + $0x17e8] sm:$0xff]  ;;  %v277_v39 = vld [vmem:[#allocation2 + $0x160] sm:$0xff] }
 0x1cf   : > { %5631 = vmatpush3.bf16.msra.mxu0 %v5630_v60  ;;  %2949 = vmatprep.mubr.f32.mxu0 %v278_v9  ;;  %v5650_v60 = vpack.c.bf16 %v1013_v52, %v1012_v51  ;;  %v1064_v9 = vld [vmem:[%s6349_s18 + $0x17f0] sm:$0xff]  ;;  %v1087_v51 = vld [vmem:[%s6349_s18 + $0x18a8] sm:$0xff]  ;;  %v1118_v52 = vld [vmem:[%s6349_s18 + $0x19a0] sm:$0xff] }
 0x1d0   : > { %2880 = vmatmul.mubr.f32.vlgmr.msra.gmra.mrb[20].mxu1 %v275_v61  ;;  %5633 = vmatprep.subr.bf16.mxu0 %v5632_v63  ;;  %v5682_v61 = vpack.c.bf16 %v1045_v55, %v1044_v53  ;;  %v1014_v63 = vld [vmem:[%s6349_s18 + $0x1660] sm:$0xff]  ;;  %v1119_v53 = vld [vmem:[%s6349_s18 + $0x19a8] sm:$0xff]  ;;  %v5698_v55 = vpack.c.bf16 %v1069_v46, %v1068_v45  ;;  %v1077_v32 = vld [vmem:[%s6349_s18 + $0x1858] sm:$0xff] }
 0x1d1   : > { %5663 = vmatpush3.bf16.msra.mxu1 %v5662_v62  ;;  %3019 = vmatprep.mubr.f32.mxu1 %v280_v11  ;;  %v5652_v62 = vpack.c.bf16 %v1031_v57, %v1030_v56  ;;  %v284_v56 = vld [vmem:[#allocation2 + $0x198] sm:$0xff]  ;;  %v1079_v45 = vld [vmem:[%s6349_s18 + $0x1868] sm:$0xff]  ;;  %v1110_v46 = vld [vmem:[%s6349_s18 + $0x1960] sm:$0xff] }
 0x1d2   : > { %5665 = vmatprep.subr.bf16.mxu1 %v5664_v21  ;;  %v5684_v21 = vpack.c.bf16 %v1063_v59, %v1062_v58  ;;  %v1070_v59 = vld [vmem:[%s6349_s18 + $0x1820] sm:$0xff] }
 0x1d3   : > { %5635 = vmatpush3.bf16.msra.mxu0 %v5634_v10  ;;  %v1065_v10 = vld [vmem:[%s6349_s18 + $0x17f8] sm:$0xff] }
 0x1d4   : > { %5637 = vmatprep.subr.bf16.mxu0 %v5636_v13  ;;  %v5654_v13 = vpack.c.bf16 %v1015_v0, %v1014_v63  ;;  %v5688_v22 = vpack.c.bf16 %v1065_v10, %v1064_v9  ;;  %v1103_v63 = vld [vmem:[%s6349_s18 + $0x1928] sm:$0xff]  ;;  %v1088_v0 = vld [vmem:[%s6349_s18 + $0x18b0] sm:$0xff] }
 0x1d5   : > { %5667 = vmatpush3.bf16.msra.mxu1 %v5666_v12  ;;  %v5704_v6 = vpack.c.bf16 %v1089_v1, %v1088_v0  ;;  %v1104_v9 = vld [vmem:[%s6349_s18 + $0x1930] sm:$0xff] }
 0x1d6   : > { %5669 = vmatprep.subr.bf16.mxu1 %v5668_v17  ;;  %v1016_v17 = vld [vmem:[%s6349_s18 + $0x1670] sm:$0xff] }
 0x1d7   : > { %5639 = vmatpush3.bf16.msra.mxu0 %v5638_v23  ;;  %v1082_v23 = vld [vmem:[%s6349_s18 + $0x1880] sm:$0xff]  ;;  %v5658_v28 = vpack.c.bf16 %v1017_v18, %v1016_v17  ;;  %v1112_v0 = vld [vmem:[%s6349_s18 + $0x1970] sm:$0xff] }
 0x1d8   : > { %5641 = vmatprep.subr.bf16.mxu0 %v5640_v25  ;;  %v1114_v25 = vld [vmem:[%s6349_s18 + $0x1980] sm:$0xff] }
 0x1d9   : > { %5671 = vmatpush3.bf16.msra.mxu1 %v5670_v24  ;;  %v1083_v24 = vld [vmem:[%s6349_s18 + $0x1888] sm:$0xff]  ;;  %v5724_v33 = vpack.c.bf16 %v1115_v26, %v1114_v25  ;;  %v1093_v25 = vld [vmem:[%s6349_s18 + $0x18d8] sm:$0xff]  ;;  %v1124_v26 = vld [vmem:[%s6349_s18 + $0x19d0] sm:$0xff] }
 0x1da   : > { %5673 = vmatprep.subr.bf16.mxu1 %v5672_v29  ;;  %v5692_v29 = vpack.c.bf16 %v1083_v24, %v1082_v23  ;;  %v1107_v23 = vld [vmem:[%s6349_s18 + $0x1948] sm:$0xff]  ;;  %v1092_v24 = vld [vmem:[%s6349_s18 + $0x18d0] sm:$0xff] }
 0x1db   : > { %5643 = vmatpush3.bf16.msra.mxu0 %v5642_v35  ;;  %v1084_v35 = vld [vmem:[%s6349_s18 + $0x1890] sm:$0xff]  ;;  %v5712_v30 = vpack.c.bf16 %v1093_v25, %v1092_v24 }
 0x1dc   : > { %5645 = vmatprep.subr.bf16.mxu0 %v5644_v37  ;;  %v1116_v37 = vld [vmem:[%s6349_s18 + $0x1990] sm:$0xff] }
 0x1dd   : > { %5675 = vmatpush3.bf16.msra.mxu1 %v5674_v36  ;;  %v1085_v36 = vld [vmem:[%s6349_s18 + $0x1898] sm:$0xff]  ;;  %v1132_v25 = vld [vmem:[%s6349_s18 + $0x1a10] sm:$0xff] }
 0x1de   : > { %5677 = vmatprep.subr.bf16.mxu1 %v5676_v42  ;;  %v279_v42 = vld [vmem:[#allocation2 + $0x170] sm:$0xff]  ;;  %v5696_v44 = vpack.c.bf16 %v1085_v36, %v1084_v35  ;;  %v1109_v35 = vld [vmem:[%s6349_s18 + $0x1958] sm:$0xff]  ;;  %v1094_v36 = vld [vmem:[%s6349_s18 + $0x18e0] sm:$0xff] }
 0x1df   : > { %5647 = vmatpush3.bf16.msra.mxu0 %v5646_v2  ;;  %v5728_v2 = vpack.c.bf16 %v1117_v38, %v1116_v37  ;;  %v1095_v37 = vld [vmem:[%s6349_s18 + $0x18e8] sm:$0xff]  ;;  %v1126_v38 = vld [vmem:[%s6349_s18 + $0x19e0] sm:$0xff] }
 0x1e0   : > { %5649 = vmatprep.subr.bf16.mxu0 %v5648_v50  ;;  %v1086_v50 = vld [vmem:[%s6349_s18 + $0x18a0] sm:$0xff] }
 0x1e1   : > { %5679 = vmatpush3.bf16.msra.mxu1 %v5678_v49  ;;  %v4076_v3 = vpop.f32.mrb[8].mxu0  ;;  %v1101_v49 = vld [vmem:[%s6349_s18 + $0x1918] sm:$0xff]  ;;  %v5700_v58 = vpack.c.bf16 %v1087_v51, %v1086_v50  ;;  %v1096_v50 = vld [vmem:[%s6349_s18 + $0x18f0] sm:$0xff] }
 0x1e2   : > { %5681 = vmatprep.subr.bf16.mxu1 %v5680_v54  ;;  %v4077_v7 = vpop.f32.mrb[9].mxu0  ;;  %v282_v54 = vld [vmem:[#allocation2 + $0x188] sm:$0xff]  ;;  %v5730_v57 = vpack.c.bf16 %v1101_v49, %v1100_v48  ;;  %v1111_v49 = vld [vmem:[%s6349_s18 + $0x1968] sm:$0xff]  ;;  %v1097_v51 = vld [vmem:[%s6349_s18 + $0x18f8] sm:$0xff] }
 0x1e3   : > { %v4111_v8 = vpop.f32.mrb[8].mxu1  ;;  %v4078_v11 = vadd.f32 %v4077_v7, %v4076_v3  ;;  %5651 = vmatpush3.bf16.msra.mxu0 %v5650_v60  ;;  %v1071_v60 = vld [vmem:[%s6349_s18 + $0x1828] sm:$0xff]  ;;  %v1120_v3 = vld [vmem:[%s6349_s18 + $0x19b0] sm:$0xff] }
 0x1e4   : > { %v4112_v12 = vpop.f32.mrb[9].mxu1  ;;  %5653 = vmatprep.subr.bf16.mxu0 %v5652_v62  ;;  %v5732_v62 = vpack.c.bf16 %v1119_v53, %v1118_v52  ;;  %v5702_v4 = vpack.c.bf16 %v1071_v60, %v1070_v59  ;;  %v1072_v7 = vld [vmem:[%s6349_s18 + $0x1830] sm:$0xff]  ;;  %v5750_v60 = vpack.c.bf16 %v1111_v49, %v1110_v46  ;;  %v1153_v46 = vld [vmem:[%s6349_s18 + $0x1ab8] sm:$0xff] }
 0x1e5   : > { %v4113_v14 = vadd.f32 %v4112_v12, %v4111_v8  ;;  %5683 = vmatpush3.bf16.msra.mxu1 %v5682_v61  ;;  %v1972_v20 = vadd.f32 %v4078_v11, %v7074_v47  ;;  %v5690_v47 = vpack.c.bf16 %v1049_v40, %v1048_v19  ;;  %v1102_v61 = vld [vmem:[%s6349_s18 + $0x1920] sm:$0xff]  ;;  %v1073_v8 = vld [vmem:[%s6349_s18 + $0x1838] sm:$0xff] }
 0x1e6   : > { %5685 = vmatprep.subr.bf16.mxu1 %v5684_v21  ;;  %v1121_v21 = vld [vmem:[%s6349_s18 + $0x19b8] sm:$0xff]  ;;  %v5734_v5 = vpack.c.bf16 %v1103_v63, %v1102_v61  ;;  %v1090_v12 = vld [vmem:[%s6349_s18 + $0x18c0] sm:$0xff]  ;;  %v5720_v61 = vpack.c.bf16 %v1097_v51, %v1096_v50 }
 0x1e7   : > { %v7141_v27 = vadd.f32 %v4113_v14, %v1972_v20  ;;  %5655 = vmatpush3.bf16.msra.mxu0 %v5654_v13  ;;  %v5736_v10 = vpack.c.bf16 %v1121_v21, %v1120_v3  ;;  %v1105_v11 = vld [vmem:[%s6349_s18 + $0x1938] sm:$0xff]  ;;  %v1091_v13 = vld [vmem:[%s6349_s18 + $0x18c8] sm:$0xff]  ;;  %v1122_v14 = vld [vmem:[%s6349_s18 + $0x19c0] sm:$0xff] }
 0x1e8   : > { %5657 = vmatprep.subr.bf16.mxu0 %v5656_v16  ;;  %v5706_v16 = vpack.c.bf16 %v1073_v8, %v1072_v7  ;;  %v5738_v17 = vpack.c.bf16 %v1105_v11, %v1104_v9  ;;  %v5708_v18 = vpack.c.bf16 %v1091_v13, %v1090_v12  ;;  %v1074_v19 = vld [vmem:[%s6349_s18 + $0x1840] sm:$0xff]  ;;  %v1075_v20 = vld [vmem:[%s6349_s18 + $0x1848] sm:$0xff]  ;;  %v1081_v63 = vld [vmem:[%s6349_s18 + $0x1878] sm:$0xff] }
 0x1e9   : > { %5687 = vmatpush3.bf16.msra.mxu1 %v5686_v15  ;;  %v1123_v15 = vld [vmem:[%s6349_s18 + $0x19c8] sm:$0xff]  ;;  %v1113_v21 = vld [vmem:[%s6349_s18 + $0x1978] sm:$0xff]  ;;  %v1130_v11 = vld [vmem:[%s6349_s18 + $0x1a00] sm:$0xff] }
 0x1ea   : > { %5689 = vmatprep.subr.bf16.mxu1 %v5688_v22  ;;  %v1106_v22 = vld [vmem:[%s6349_s18 + $0x1940] sm:$0xff]  ;;  %v5740_v40 = vpack.c.bf16 %v1123_v15, %v1122_v14  ;;  %v1179_v7 = vld [vmem:[%s6349_s18 + $0x1b88] sm:$0xff] }
 0x1eb   : > { %5659 = vmatpush3.bf16.msra.mxu0 %v5658_v28  ;;  %v1125_v28 = vld [vmem:[%s6349_s18 + $0x19d8] sm:$0xff]  ;;  %v1131_v12 = vld [vmem:[%s6349_s18 + $0x1a08] sm:$0xff]  ;;  %v1162_v13 = vld [vmem:[%s6349_s18 + $0x1b00] sm:$0xff] }
 0x1ec   : > { %5693 = vmatprep.subr.bf16.mxu0 %v5692_v29  ;;  %v5742_v29 = vpack.c.bf16 %v1107_v23, %v1106_v22  ;;  %v5744_v34 = vpack.c.bf16 %v1125_v28, %v1124_v26  ;;  %v1163_v15 = vld [vmem:[%s6349_s18 + $0x1b08] sm:$0xff]  ;;  %v5758_v22 = vpack.c.bf16 %v1131_v12, %v1130_v11  ;;  %v1133_v26 = vld [vmem:[%s6349_s18 + $0x1a18] sm:$0xff]  ;;  %v1164_v28 = vld [vmem:[%s6349_s18 + $0x1b10] sm:$0xff] }
 0x1ed   : > { %5691 = vmatpush3.bf16.msra.mxu1 %v5690_v47  ;;  %v5710_v47 = vpack.c.bf16 %v1075_v20, %v1074_v19  ;;  %v1181_v19 = vld [vmem:[%s6349_s18 + $0x1b98] sm:$0xff]  ;;  %v5790_v23 = vpack.c.bf16 %v1163_v15, %v1162_v13  ;;  %v1140_v12 = vld [vmem:[%s6349_s18 + $0x1a50] sm:$0xff] }
 0x1ee   : > { %5725 = vmatprep.subr.bf16.mxu1 %v5724_v33  ;;  %2950 = vmatmul.mubr.f32.vlgmr.msra.gmra.mrb[22].mxu0 %v277_v39  ;;  %v1108_v33 = vld [vmem:[%s6349_s18 + $0x1950] sm:$0xff]  ;;  %v1127_v39 = vld [vmem:[%s6349_s18 + $0x19e8] sm:$0xff]  ;;  %v281_v20 = vld [vmem:[#allocation2 + $0x180] sm:$0xff] }
 0x1ef   : > { %5695 = vmatpush3.bf16.msra.mxu0 %v5694_v41  ;;  %3089 = vmatprep.mubr.f32.mxu0 %v282_v54  ;;  %v5714_v41 = vpack.c.bf16 %v1077_v32, %v1076_v31  ;;  %v1128_v54 = vld [vmem:[%s6349_s18 + $0x19f0] sm:$0xff]  ;;  %v1151_v31 = vld [vmem:[%s6349_s18 + $0x1aa8] sm:$0xff]  ;;  %v1182_v32 = vld [vmem:[%s6349_s18 + $0x1ba0] sm:$0xff] }
 0x1f0   : > { %3020 = vmatmul.mubr.f32.vlgmr.msra.gmra.mrb[22].mxu1 %v279_v42  ;;  %5697 = vmatprep.subr.bf16.mxu0 %v5696_v44  ;;  %v5746_v42 = vpack.c.bf16 %v1109_v35, %v1108_v33  ;;  %v1078_v44 = vld [vmem:[%s6349_s18 + $0x1860] sm:$0xff]  ;;  %v1183_v33 = vld [vmem:[%s6349_s18 + $0x1ba8] sm:$0xff]  ;;  %v5762_v35 = vpack.c.bf16 %v1133_v26, %v1132_v25  ;;  %v1141_v13 = vld [vmem:[%s6349_s18 + $0x1a58] sm:$0xff] }
 0x1f1   : > { %5727 = vmatpush3.bf16.msra.mxu1 %v5726_v43  ;;  %3159 = vmatprep.mubr.f32.mxu1 %v284_v56  ;;  %v5716_v43 = vpack.c.bf16 %v1095_v37, %v1094_v36  ;;  %v288_v36 = vld [vmem:[#allocation2 + $0x1b8] sm:$0xff]  ;;  %v1143_v25 = vld [vmem:[%s6349_s18 + $0x1a68] sm:$0xff]  ;;  %v1174_v26 = vld [vmem:[%s6349_s18 + $0x1b60] sm:$0xff] }
 0x1f2   : > { %5729 = vmatprep.subr.bf16.mxu1 %v5728_v2  ;;  %v5748_v2 = vpack.c.bf16 %v1127_v39, %v1126_v38  ;;  %v1134_v39 = vld [vmem:[%s6349_s18 + $0x1a20] sm:$0xff] }
 0x1f3   : > { %5699 = vmatpush3.bf16.msra.mxu0 %v5698_v55  ;;  %v1129_v55 = vld [vmem:[%s6349_s18 + $0x19f8] sm:$0xff] }
 0x1f4   : > { %5701 = vmatprep.subr.bf16.mxu0 %v5700_v58  ;;  %v5718_v58 = vpack.c.bf16 %v1079_v45, %v1078_v44  ;;  %v5752_v3 = vpack.c.bf16 %v1129_v55, %v1128_v54  ;;  %v1167_v44 = vld [vmem:[%s6349_s18 + $0x1b28] sm:$0xff]  ;;  %v1152_v45 = vld [vmem:[%s6349_s18 + $0x1ab0] sm:$0xff] }
 0x1f5   : > { %5731 = vmatpush3.bf16.msra.mxu1 %v5730_v57  ;;  %v5768_v51 = vpack.c.bf16 %v1153_v46, %v1152_v45  ;;  %v1168_v54 = vld [vmem:[%s6349_s18 + $0x1b30] sm:$0xff] }
 0x1f6   : > { %5733 = vmatprep.subr.bf16.mxu1 %v5732_v62  ;;  %v1080_v62 = vld [vmem:[%s6349_s18 + $0x1870] sm:$0xff] }
 0x1f7   : > { %5703 = vmatpush3.bf16.msra.mxu0 %v5702_v4  ;;  %v1146_v4 = vld [vmem:[%s6349_s18 + $0x1a80] sm:$0xff]  ;;  %v5722_v9 = vpack.c.bf16 %v1081_v63, %v1080_v62  ;;  %v1176_v45 = vld [vmem:[%s6349_s18 + $0x1b70] sm:$0xff] }
 0x1f8   : > { %5705 = vmatprep.subr.bf16.mxu0 %v5704_v6  ;;  %v1178_v6 = vld [vmem:[%s6349_s18 + $0x1b80] sm:$0xff] }
 0x1f9   : > { %5735 = vmatpush3.bf16.msra.mxu1 %v5734_v5  ;;  %v1147_v5 = vld [vmem:[%s6349_s18 + $0x1a88] sm:$0xff]  ;;  %v5788_v14 = vpack.c.bf16 %v1179_v7, %v1178_v6  ;;  %v1157_v6 = vld [vmem:[%s6349_s18 + $0x1ad8] sm:$0xff]  ;;  %v1188_v7 = vld [vmem:[%s6349_s18 + $0x1bd0] sm:$0xff] }
 0x1fa   : > { %5737 = vmatprep.subr.bf16.mxu1 %v5736_v10  ;;  %v5756_v10 = vpack.c.bf16 %v1147_v5, %v1146_v4  ;;  %v1171_v4 = vld [vmem:[%s6349_s18 + $0x1b48] sm:$0xff]  ;;  %v1156_v5 = vld [vmem:[%s6349_s18 + $0x1ad0] sm:$0xff] }
 0x1fb   : > { %5707 = vmatpush3.bf16.msra.mxu0 %v5706_v16  ;;  %v1148_v16 = vld [vmem:[%s6349_s18 + $0x1a90] sm:$0xff]  ;;  %v5776_v11 = vpack.c.bf16 %v1157_v6, %v1156_v5 }
 0x1fc   : > { %5709 = vmatprep.subr.bf16.mxu0 %v5708_v18  ;;  %v1180_v18 = vld [vmem:[%s6349_s18 + $0x1b90] sm:$0xff] }
 0x1fd   : > { %5739 = vmatpush3.bf16.msra.mxu1 %v5738_v17  ;;  %v1149_v17 = vld [vmem:[%s6349_s18 + $0x1a98] sm:$0xff]  ;;  %v1196_v6 = vld [vmem:[%s6349_s18 + $0x1c10] sm:$0xff] }
 0x1fe   : > { %5741 = vmatprep.subr.bf16.mxu1 %v5740_v40  ;;  %v283_v40 = vld [vmem:[#allocation2 + $0x190] sm:$0xff]  ;;  %v5760_v24 = vpack.c.bf16 %v1149_v17, %v1148_v16  ;;  %v1173_v16 = vld [vmem:[%s6349_s18 + $0x1b58] sm:$0xff]  ;;  %v1158_v17 = vld [vmem:[%s6349_s18 + $0x1ae0] sm:$0xff] }
 0x1ff   : > { %5711 = vmatpush3.bf16.msra.mxu0 %v5710_v47  ;;  %v5792_v47 = vpack.c.bf16 %v1181_v19, %v1180_v18  ;;  %v1159_v18 = vld [vmem:[%s6349_s18 + $0x1ae8] sm:$0xff]  ;;  %v1190_v19 = vld [vmem:[%s6349_s18 + $0x1be0] sm:$0xff] }
 0x200   : > { %5713 = vmatprep.subr.bf16.mxu0 %v5712_v30  ;;  %v1150_v30 = vld [vmem:[%s6349_s18 + $0x1aa0] sm:$0xff] }
 0x201   : > { %5743 = vmatpush3.bf16.msra.mxu1 %v5742_v29  ;;  %v4146_v48 = vpop.f32.mrb[10].mxu0  ;;  %v1165_v29 = vld [vmem:[%s6349_s18 + $0x1b18] sm:$0xff]  ;;  %v5764_v38 = vpack.c.bf16 %v1151_v31, %v1150_v30  ;;  %v1160_v30 = vld [vmem:[%s6349_s18 + $0x1af0] sm:$0xff] }
 0x202   : > { %5745 = vmatprep.subr.bf16.mxu1 %v5744_v34  ;;  %v4147_v52 = vpop.f32.mrb[11].mxu0  ;;  %v286_v34 = vld [vmem:[#allocation2 + $0x1a8] sm:$0xff]  ;;  %v5794_v37 = vpack.c.bf16 %v1165_v29, %v1164_v28  ;;  %v1175_v29 = vld [vmem:[%s6349_s18 + $0x1b68] sm:$0xff]  ;;  %v1161_v31 = vld [vmem:[%s6349_s18 + $0x1af8] sm:$0xff] }
 0x203   : > { %v4181_v53 = vpop.f32.mrb[10].mxu1  ;;  %v4148_v56 = vadd.f32 %v4147_v52, %v4146_v48  ;;  %5715 = vmatpush3.bf16.msra.mxu0 %v5714_v41  ;;  %v1135_v41 = vld [vmem:[%s6349_s18 + $0x1a28] sm:$0xff]  ;;  %v1184_v48 = vld [vmem:[%s6349_s18 + $0x1bb0] sm:$0xff] }
 0x204   : > { %v4182_v57 = vpop.f32.mrb[11].mxu1  ;;  %5717 = vmatprep.subr.bf16.mxu0 %v5716_v43  ;;  %v5796_v43 = vpack.c.bf16 %v1183_v33, %v1182_v32  ;;  %v5766_v49 = vpack.c.bf16 %v1135_v41, %v1134_v39  ;;  %v1136_v52 = vld [vmem:[%s6349_s18 + $0x1a30] sm:$0xff]  ;;  %v5814_v41 = vpack.c.bf16 %v1175_v29, %v1174_v26  ;;  %v1217_v26 = vld [vmem:[%s6349_s18 + $0x1cb8] sm:$0xff] }
 0x205   : > { %v4183_v59 = vadd.f32 %v4182_v57, %v4181_v53  ;;  %5747 = vmatpush3.bf16.msra.mxu1 %v5746_v42  ;;  %v2112_v1 = vadd.f32 %v4148_v56, %v7141_v27  ;;  %v5754_v27 = vpack.c.bf16 %v1113_v21, %v1112_v0  ;;  %v1166_v42 = vld [vmem:[%s6349_s18 + $0x1b20] sm:$0xff]  ;;  %v1137_v53 = vld [vmem:[%s6349_s18 + $0x1a38] sm:$0xff] }
 0x206   : > { %5749 = vmatprep.subr.bf16.mxu1 %v5748_v2  ;;  %v1185_v2 = vld [vmem:[%s6349_s18 + $0x1bb8] sm:$0xff]  ;;  %v5798_v50 = vpack.c.bf16 %v1167_v44, %v1166_v42  ;;  %v1154_v57 = vld [vmem:[%s6349_s18 + $0x1ac0] sm:$0xff]  ;;  %v5784_v42 = vpack.c.bf16 %v1161_v31, %v1160_v30 }
 0x207   : > { %v7208_v8 = vadd.f32 %v4183_v59, %v2112_v1  ;;  %5719 = vmatpush3.bf16.msra.mxu0 %v5718_v58  ;;  %v5800_v55 = vpack.c.bf16 %v1185_v2, %v1184_v48  ;;  %v1169_v56 = vld [vmem:[%s6349_s18 + $0x1b38] sm:$0xff]  ;;  %v1155_v58 = vld [vmem:[%s6349_s18 + $0x1ac8] sm:$0xff]  ;;  %v1186_v59 = vld [vmem:[%s6349_s18 + $0x1bc0] sm:$0xff] }
 0x208   : > { %5721 = vmatprep.subr.bf16.mxu0 %v5720_v61  ;;  %v5770_v61 = vpack.c.bf16 %v1137_v53, %v1136_v52  ;;  %v5802_v62 = vpack.c.bf16 %v1169_v56, %v1168_v54  ;;  %v5772_v63 = vpack.c.bf16 %v1155_v58, %v1154_v57  ;;  %v1138_v0 = vld [vmem:[%s6349_s18 + $0x1a40] sm:$0xff]  ;;  %v1139_v1 = vld [vmem:[%s6349_s18 + $0x1a48] sm:$0xff]  ;;  %v1145_v44 = vld [vmem:[%s6349_s18 + $0x1a78] sm:$0xff] }
 0x209   : > { %5751 = vmatpush3.bf16.msra.mxu1 %v5750_v60  ;;  %v1187_v60 = vld [vmem:[%s6349_s18 + $0x1bc8] sm:$0xff]  ;;  %v1177_v2 = vld [vmem:[%s6349_s18 + $0x1b78] sm:$0xff]  ;;  %v1194_v56 = vld [vmem:[%s6349_s18 + $0x1c00] sm:$0xff] }
 0x20a   : > { %5753 = vmatprep.subr.bf16.mxu1 %v5752_v3  ;;  %v1170_v3 = vld [vmem:[%s6349_s18 + $0x1b40] sm:$0xff]  ;;  %v5804_v21 = vpack.c.bf16 %v1187_v60, %v1186_v59  ;;  %v1243_v52 = vld [vmem:[%s6349_s18 + $0x1d88] sm:$0xff] }
 0x20b   : > { %5723 = vmatpush3.bf16.msra.mxu0 %v5722_v9  ;;  %v1189_v9 = vld [vmem:[%s6349_s18 + $0x1bd8] sm:$0xff]  ;;  %v1195_v57 = vld [vmem:[%s6349_s18 + $0x1c08] sm:$0xff]  ;;  %v1226_v58 = vld [vmem:[%s6349_s18 + $0x1d00] sm:$0xff] }
 0x20c   : > { %5757 = vmatprep.subr.bf16.mxu0 %v5756_v10  ;;  %v5806_v10 = vpack.c.bf16 %v1171_v4, %v1170_v3  ;;  %v5808_v15 = vpack.c.bf16 %v1189_v9, %v1188_v7  ;;  %v1227_v60 = vld [vmem:[%s6349_s18 + $0x1d08] sm:$0xff]  ;;  %v5822_v3 = vpack.c.bf16 %v1195_v57, %v1194_v56  ;;  %v1197_v7 = vld [vmem:[%s6349_s18 + $0x1c18] sm:$0xff]  ;;  %v1228_v9 = vld [vmem:[%s6349_s18 + $0x1d10] sm:$0xff] }
 0x20d   : > { %5755 = vmatpush3.bf16.msra.mxu1 %v5754_v27  ;;  %v5774_v27 = vpack.c.bf16 %v1139_v1, %v1138_v0  ;;  %v1245_v0 = vld [vmem:[%s6349_s18 + $0x1d98] sm:$0xff]  ;;  %v5854_v4 = vpack.c.bf16 %v1227_v60, %v1226_v58  ;;  %v1204_v57 = vld [vmem:[%s6349_s18 + $0x1c50] sm:$0xff] }
 0x20e   : > { %5789 = vmatprep.subr.bf16.mxu1 %v5788_v14  ;;  %3090 = vmatmul.mubr.f32.vlgmr.msra.gmra.mrb[24].mxu0 %v281_v20  ;;  %v1172_v14 = vld [vmem:[%s6349_s18 + $0x1b50] sm:$0xff]  ;;  %v1191_v20 = vld [vmem:[%s6349_s18 + $0x1be8] sm:$0xff]  ;;  %v285_v1 = vld [vmem:[#allocation2 + $0x1a0] sm:$0xff] }
 0x20f   : > { %5759 = vmatpush3.bf16.msra.mxu0 %v5758_v22  ;;  %3229 = vmatprep.mubr.f32.mxu0 %v286_v34  ;;  %v5778_v22 = vpack.c.bf16 %v1141_v13, %v1140_v12  ;;  %v1192_v34 = vld [vmem:[%s6349_s18 + $0x1bf0] sm:$0xff]  ;;  %v1215_v12 = vld [vmem:[%s6349_s18 + $0x1ca8] sm:$0xff]  ;;  %v1246_v13 = vld [vmem:[%s6349_s18 + $0x1da0] sm:$0xff] }
 0x210   : > { %3160 = vmatmul.mubr.f32.vlgmr.msra.gmra.mrb[24].mxu1 %v283_v40  ;;  %5761 = vmatprep.subr.bf16.mxu0 %v5760_v24  ;;  %v5810_v40 = vpack.c.bf16 %v1173_v16, %v1172_v14  ;;  %v1142_v24 = vld [vmem:[%s6349_s18 + $0x1a60] sm:$0xff]  ;;  %v1247_v14 = vld [vmem:[%s6349_s18 + $0x1da8] sm:$0xff]  ;;  %v5826_v16 = vpack.c.bf16 %v1197_v7, %v1196_v6  ;;  %v1205_v58 = vld [vmem:[%s6349_s18 + $0x1c58] sm:$0xff] }
 0x211   : > { %5791 = vmatpush3.bf16.msra.mxu1 %v5790_v23  ;;  %3299 = vmatprep.mubr.f32.mxu1 %v288_v36  ;;  %v5780_v23 = vpack.c.bf16 %v1159_v18, %v1158_v17  ;;  %v292_v17 = vld [vmem:[#allocation2 + $0x1d8] sm:$0xff]  ;;  %v1207_v6 = vld [vmem:[%s6349_s18 + $0x1c68] sm:$0xff]  ;;  %v1238_v7 = vld [vmem:[%s6349_s18 + $0x1d60] sm:$0xff] }
 0x212   : > { %5793 = vmatprep.subr.bf16.mxu1 %v5792_v47  ;;  %v5812_v47 = vpack.c.bf16 %v1191_v20, %v1190_v19  ;;  %v1198_v20 = vld [vmem:[%s6349_s18 + $0x1c20] sm:$0xff] }
 0x213   : > { %5763 = vmatpush3.bf16.msra.mxu0 %v5762_v35  ;;  %v1193_v35 = vld [vmem:[%s6349_s18 + $0x1bf8] sm:$0xff] }
 0x214   : > { %5765 = vmatprep.subr.bf16.mxu0 %v5764_v38  ;;  %v5782_v38 = vpack.c.bf16 %v1143_v25, %v1142_v24  ;;  %v5816_v48 = vpack.c.bf16 %v1193_v35, %v1192_v34  ;;  %v1231_v24 = vld [vmem:[%s6349_s18 + $0x1d28] sm:$0xff]  ;;  %v1216_v25 = vld [vmem:[%s6349_s18 + $0x1cb0] sm:$0xff] }
 0x215   : > { %5795 = vmatpush3.bf16.msra.mxu1 %v5794_v37  ;;  %v5832_v31 = vpack.c.bf16 %v1217_v26, %v1216_v25  ;;  %v1232_v34 = vld [vmem:[%s6349_s18 + $0x1d30] sm:$0xff] }
 0x216   : > { %5797 = vmatprep.subr.bf16.mxu1 %v5796_v43  ;;  %v1144_v43 = vld [vmem:[%s6349_s18 + $0x1a70] sm:$0xff] }
 0x217   : > { %5767 = vmatpush3.bf16.msra.mxu0 %v5766_v49  ;;  %v1210_v49 = vld [vmem:[%s6349_s18 + $0x1c80] sm:$0xff]  ;;  %v5786_v54 = vpack.c.bf16 %v1145_v44, %v1144_v43  ;;  %v1240_v25 = vld [vmem:[%s6349_s18 + $0x1d70] sm:$0xff] }
 0x218   : > { %5769 = vmatprep.subr.bf16.mxu0 %v5768_v51  ;;  %v1242_v51 = vld [vmem:[%s6349_s18 + $0x1d80] sm:$0xff] }
 0x219   : > { %5799 = vmatpush3.bf16.msra.mxu1 %v5798_v50  ;;  %v1211_v50 = vld [vmem:[%s6349_s18 + $0x1c88] sm:$0xff]  ;;  %v5852_v59 = vpack.c.bf16 %v1243_v52, %v1242_v51  ;;  %v1221_v51 = vld [vmem:[%s6349_s18 + $0x1cd8] sm:$0xff]  ;;  %v1252_v52 = vld [vmem:[%s6349_s18 + $0x1dd0] sm:$0xff] }
 0x21a   : > { %5801 = vmatprep.subr.bf16.mxu1 %v5800_v55  ;;  %v5820_v55 = vpack.c.bf16 %v1211_v50, %v1210_v49  ;;  %v1235_v49 = vld [vmem:[%s6349_s18 + $0x1d48] sm:$0xff]  ;;  %v1220_v50 = vld [vmem:[%s6349_s18 + $0x1cd0] sm:$0xff] }
 0x21b   : > { %5771 = vmatpush3.bf16.msra.mxu0 %v5770_v61  ;;  %v1212_v61 = vld [vmem:[%s6349_s18 + $0x1c90] sm:$0xff]  ;;  %v5840_v56 = vpack.c.bf16 %v1221_v51, %v1220_v50 }
 0x21c   : > { %5773 = vmatprep.subr.bf16.mxu0 %v5772_v63  ;;  %v1244_v63 = vld [vmem:[%s6349_s18 + $0x1d90] sm:$0xff] }
 0x21d   : > { %5803 = vmatpush3.bf16.msra.mxu1 %v5802_v62  ;;  %v1213_v62 = vld [vmem:[%s6349_s18 + $0x1c98] sm:$0xff]  ;;  %v1260_v51 = vld [vmem:[%s6349_s18 + $0x1e10] sm:$0xff] }
 0x21e   : > { %5805 = vmatprep.subr.bf16.mxu1 %v5804_v21  ;;  %v287_v21 = vld [vmem:[#allocation2 + $0x1b0] sm:$0xff]  ;;  %v5824_v5 = vpack.c.bf16 %v1213_v62, %v1212_v61  ;;  %v1237_v61 = vld [vmem:[%s6349_s18 + $0x1d58] sm:$0xff]  ;;  %v1222_v62 = vld [vmem:[%s6349_s18 + $0x1ce0] sm:$0xff] }
 0x21f   : > { %5775 = vmatpush3.bf16.msra.mxu0 %v5774_v27  ;;  %v5856_v27 = vpack.c.bf16 %v1245_v0, %v1244_v63  ;;  %v1223_v63 = vld [vmem:[%s6349_s18 + $0x1ce8] sm:$0xff]  ;;  %v1254_v0 = vld [vmem:[%s6349_s18 + $0x1de0] sm:$0xff] }
 0x220   : > { %5777 = vmatprep.subr.bf16.mxu0 %v5776_v11  ;;  %v1214_v11 = vld [vmem:[%s6349_s18 + $0x1ca0] sm:$0xff] }
 0x221   : > { %5807 = vmatpush3.bf16.msra.mxu1 %v5806_v10  ;;  %v4216_v28 = vpop.f32.mrb[12].mxu0  ;;  %v1229_v10 = vld [vmem:[%s6349_s18 + $0x1d18] sm:$0xff]  ;;  %v5828_v19 = vpack.c.bf16 %v1215_v12, %v1214_v11  ;;  %v1224_v11 = vld [vmem:[%s6349_s18 + $0x1cf0] sm:$0xff] }
 0x222   : > { %5809 = vmatprep.subr.bf16.mxu1 %v5808_v15  ;;  %v4217_v32 = vpop.f32.mrb[13].mxu0  ;;  %v290_v15 = vld [vmem:[#allocation2 + $0x1c8] sm:$0xff]  ;;  %v5858_v18 = vpack.c.bf16 %v1229_v10, %v1228_v9  ;;  %v1239_v10 = vld [vmem:[%s6349_s18 + $0x1d68] sm:$0xff]  ;;  %v1225_v12 = vld [vmem:[%s6349_s18 + $0x1cf8] sm:$0xff] }
 0x223   : > { %v4251_v33 = vpop.f32.mrb[12].mxu1  ;;  %v4218_v36 = vadd.f32 %v4217_v32, %v4216_v28  ;;  %5779 = vmatpush3.bf16.msra.mxu0 %v5778_v22  ;;  %v1199_v22 = vld [vmem:[%s6349_s18 + $0x1c28] sm:$0xff]  ;;  %v1248_v28 = vld [vmem:[%s6349_s18 + $0x1db0] sm:$0xff] }
 0x224   : > { %v4252_v37 = vpop.f32.mrb[13].mxu1  ;;  %5781 = vmatprep.subr.bf16.mxu0 %v5780_v23  ;;  %v5860_v23 = vpack.c.bf16 %v1247_v14, %v1246_v13  ;;  %v5830_v29 = vpack.c.bf16 %v1199_v22, %v1198_v20  ;;  %v1200_v32 = vld [vmem:[%s6349_s18 + $0x1c30] sm:$0xff]  ;;  %v5878_v22 = vpack.c.bf16 %v1239_v10, %v1238_v7  ;;  %v1281_v7 = vld [vmem:[%s6349_s18 + $0x1eb8] sm:$0xff] }
 0x225   : > { %v4253_v39 = vadd.f32 %v4252_v37, %v4251_v33  ;;  %5811 = vmatpush3.bf16.msra.mxu1 %v5810_v40  ;;  %v2252_v46 = vadd.f32 %v4218_v36, %v7208_v8  ;;  %v5818_v8 = vpack.c.bf16 %v1177_v2, %v1176_v45  ;;  %v1230_v40 = vld [vmem:[%s6349_s18 + $0x1d20] sm:$0xff]  ;;  %v1201_v33 = vld [vmem:[%s6349_s18 + $0x1c38] sm:$0xff] }
 0x226   : > { %5813 = vmatprep.subr.bf16.mxu1 %v5812_v47  ;;  %v1249_v47 = vld [vmem:[%s6349_s18 + $0x1db8] sm:$0xff]  ;;  %v5862_v30 = vpack.c.bf16 %v1231_v24, %v1230_v40  ;;  %v1218_v37 = vld [vmem:[%s6349_s18 + $0x1cc0] sm:$0xff]  ;;  %v5848_v40 = vpack.c.bf16 %v1225_v12, %v1224_v11 }
 0x227   : > { %v7275_v53 = vadd.f32 %v4253_v39, %v2252_v46  ;;  %5783 = vmatpush3.bf16.msra.mxu0 %v5782_v38  ;;  %v5864_v35 = vpack.c.bf16 %v1249_v47, %v1248_v28  ;;  %v1233_v36 = vld [vmem:[%s6349_s18 + $0x1d38] sm:$0xff]  ;;  %v1219_v38 = vld [vmem:[%s6349_s18 + $0x1cc8] sm:$0xff]  ;;  %v1250_v39 = vld [vmem:[%s6349_s18 + $0x1dc0] sm:$0xff] }
 0x228   : > { %5785 = vmatprep.subr.bf16.mxu0 %v5784_v42  ;;  %v5834_v42 = vpack.c.bf16 %v1201_v33, %v1200_v32  ;;  %v5866_v43 = vpack.c.bf16 %v1233_v36, %v1232_v34  ;;  %v5836_v44 = vpack.c.bf16 %v1219_v38, %v1218_v37  ;;  %v1202_v45 = vld [vmem:[%s6349_s18 + $0x1c40] sm:$0xff]  ;;  %v1203_v46 = vld [vmem:[%s6349_s18 + $0x1c48] sm:$0xff]  ;;  %v1209_v24 = vld [vmem:[%s6349_s18 + $0x1c78] sm:$0xff] }
 0x229   : > { %5815 = vmatpush3.bf16.msra.mxu1 %v5814_v41  ;;  %v1251_v41 = vld [vmem:[%s6349_s18 + $0x1dc8] sm:$0xff]  ;;  %v1241_v47 = vld [vmem:[%s6349_s18 + $0x1d78] sm:$0xff]  ;;  %v1258_v36 = vld [vmem:[%s6349_s18 + $0x1e00] sm:$0xff] }
 0x22a   : > { %5817 = vmatprep.subr.bf16.mxu1 %v5816_v48  ;;  %v1234_v48 = vld [vmem:[%s6349_s18 + $0x1d40] sm:$0xff]  ;;  %v5868_v2 = vpack.c.bf16 %v1251_v41, %v1250_v39  ;;  %v1307_v32 = vld [vmem:[%s6349_s18 + $0x1f88] sm:$0xff] }
 0x22b   : > { %5787 = vmatpush3.bf16.msra.mxu0 %v5786_v54  ;;  %v1253_v54 = vld [vmem:[%s6349_s18 + $0x1dd8] sm:$0xff]  ;;  %v1259_v37 = vld [vmem:[%s6349_s18 + $0x1e08] sm:$0xff]  ;;  %v1290_v38 = vld [vmem:[%s6349_s18 + $0x1f00] sm:$0xff] }
 0x22c   : > { %5821 = vmatprep.subr.bf16.mxu0 %v5820_v55  ;;  %v5870_v55 = vpack.c.bf16 %v1235_v49, %v1234_v48  ;;  %v5872_v60 = vpack.c.bf16 %v1253_v54, %v1252_v52  ;;  %v1291_v41 = vld [vmem:[%s6349_s18 + $0x1f08] sm:$0xff]  ;;  %v5886_v48 = vpack.c.bf16 %v1259_v37, %v1258_v36  ;;  %v1261_v52 = vld [vmem:[%s6349_s18 + $0x1e18] sm:$0xff]  ;;  %v1292_v54 = vld [vmem:[%s6349_s18 + $0x1f10] sm:$0xff] }
 0x22d   : > { %5819 = vmatpush3.bf16.msra.mxu1 %v5818_v8  ;;  %v5838_v8 = vpack.c.bf16 %v1203_v46, %v1202_v45  ;;  %v1309_v45 = vld [vmem:[%s6349_s18 + $0x1f98] sm:$0xff]  ;;  %v5918_v49 = vpack.c.bf16 %v1291_v41, %v1290_v38  ;;  %v1268_v37 = vld [vmem:[%s6349_s18 + $0x1e50] sm:$0xff] }
 0x22e   : > { %5853 = vmatprep.subr.bf16.mxu1 %v5852_v59  ;;  %3230 = vmatmul.mubr.f32.vlgmr.msra.gmra.mrb[26].mxu0 %v285_v1  ;;  %v1236_v59 = vld [vmem:[%s6349_s18 + $0x1d50] sm:$0xff]  ;;  %v1255_v1 = vld [vmem:[%s6349_s18 + $0x1de8] sm:$0xff]  ;;  %v289_v46 = vld [vmem:[#allocation2 + $0x1c0] sm:$0xff] }
 0x22f   : > { %5823 = vmatpush3.bf16.msra.mxu0 %v5822_v3  ;;  %3369 = vmatprep.mubr.f32.mxu0 %v290_v15  ;;  %v5842_v3 = vpack.c.bf16 %v1205_v58, %v1204_v57  ;;  %v1256_v15 = vld [vmem:[%s6349_s18 + $0x1df0] sm:$0xff]  ;;  %v1279_v57 = vld [vmem:[%s6349_s18 + $0x1ea8] sm:$0xff]  ;;  %v1310_v58 = vld [vmem:[%s6349_s18 + $0x1fa0] sm:$0xff] }
 0x230   : > { %3300 = vmatmul.mubr.f32.vlgmr.msra.gmra.mrb[26].mxu1 %v287_v21  ;;  %5825 = vmatprep.subr.bf16.mxu0 %v5824_v5  ;;  %v5874_v21 = vpack.c.bf16 %v1237_v61, %v1236_v59  ;;  %v1206_v5 = vld [vmem:[%s6349_s18 + $0x1c60] sm:$0xff]  ;;  %v1311_v59 = vld [vmem:[%s6349_s18 + $0x1fa8] sm:$0xff]  ;;  %v5890_v61 = vpack.c.bf16 %v1261_v52, %v1260_v51  ;;  %v1269_v38 = vld [vmem:[%s6349_s18 + $0x1e58] sm:$0xff] }
 0x231   : > { %5855 = vmatpush3.bf16.msra.mxu1 %v5854_v4  ;;  %3439 = vmatprep.mubr.f32.mxu1 %v292_v17  ;;  %v5844_v4 = vpack.c.bf16 %v1223_v63, %v1222_v62  ;;  %v296_v62 = vld [vmem:[#allocation2 + $0x1f8] sm:$0xff]  ;;  %v1271_v51 = vld [vmem:[%s6349_s18 + $0x1e68] sm:$0xff]  ;;  %v1302_v52 = vld [vmem:[%s6349_s18 + $0x1f60] sm:$0xff] }
 0x232   : > { %5857 = vmatprep.subr.bf16.mxu1 %v5856_v27  ;;  %v5876_v27 = vpack.c.bf16 %v1255_v1, %v1254_v0  ;;  %v1262_v1 = vld [vmem:[%s6349_s18 + $0x1e20] sm:$0xff] }
 0x233   : > { %5827 = vmatpush3.bf16.msra.mxu0 %v5826_v16  ;;  %v1257_v16 = vld [vmem:[%s6349_s18 + $0x1df8] sm:$0xff] }
 0x234   : > { %5829 = vmatprep.subr.bf16.mxu0 %v5828_v19  ;;  %v5846_v19 = vpack.c.bf16 %v1207_v6, %v1206_v5  ;;  %v5880_v28 = vpack.c.bf16 %v1257_v16, %v1256_v15  ;;  %v1295_v5 = vld [vmem:[%s6349_s18 + $0x1f28] sm:$0xff]  ;;  %v1280_v6 = vld [vmem:[%s6349_s18 + $0x1eb0] sm:$0xff] }
 0x235   : > { %5859 = vmatpush3.bf16.msra.mxu1 %v5858_v18  ;;  %v5896_v12 = vpack.c.bf16 %v1281_v7, %v1280_v6  ;;  %v1296_v15 = vld [vmem:[%s6349_s18 + $0x1f30] sm:$0xff] }
 0x236   : > { %5861 = vmatprep.subr.bf16.mxu1 %v5860_v23  ;;  %v1208_v23 = vld [vmem:[%s6349_s18 + $0x1c70] sm:$0xff] }
 0x237   : > { %5831 = vmatpush3.bf16.msra.mxu0 %v5830_v29  ;;  %v1274_v29 = vld [vmem:[%s6349_s18 + $0x1e80] sm:$0xff]  ;;  %v5850_v34 = vpack.c.bf16 %v1209_v24, %v1208_v23 }
 0x238   : > { %5833 = vmatprep.subr.bf16.mxu0 %v5832_v31  ;;  %v1306_v31 = vld [vmem:[%s6349_s18 + $0x1f80] sm:$0xff] }
 0x239   : > { %5863 = vmatpush3.bf16.msra.mxu1 %v5862_v30  ;;  %v1275_v30 = vld [vmem:[%s6349_s18 + $0x1e88] sm:$0xff]  ;;  %v5916_v39 = vpack.c.bf16 %v1307_v32, %v1306_v31  ;;  %v1285_v31 = vld [vmem:[%s6349_s18 + $0x1ed8] sm:$0xff]  ;;  %v1316_v32 = vld [vmem:[%s6349_s18 + $0x1fd0] sm:$0xff] }
 0x23a   : > { %5865 = vmatprep.subr.bf16.mxu1 %v5864_v35  ;;  %v5884_v35 = vpack.c.bf16 %v1275_v30, %v1274_v29  ;;  %v1299_v29 = vld [vmem:[%s6349_s18 + $0x1f48] sm:$0xff]  ;;  %v1284_v30 = vld [vmem:[%s6349_s18 + $0x1ed0] sm:$0xff] }
 0x23b   : > { %5835 = vmatpush3.bf16.msra.mxu0 %v5834_v42  ;;  %v1276_v42 = vld [vmem:[%s6349_s18 + $0x1e90] sm:$0xff]  ;;  %v5904_v36 = vpack.c.bf16 %v1285_v31, %v1284_v30 }
 0x23c   : > { %5837 = vmatprep.subr.bf16.mxu0 %v5836_v44  ;;  %v1308_v44 = vld [vmem:[%s6349_s18 + $0x1f90] sm:$0xff] }
 0x23d   : > { %5867 = vmatpush3.bf16.msra.mxu1 %v5866_v43  ;;  %v1277_v43 = vld [vmem:[%s6349_s18 + $0x1e98] sm:$0xff]  ;;  %v1332_v31 = vld [vmem:[%s6349_s18 + $0x2050] sm:$0xff] }
 0x23e   : > { %5869 = vmatprep.subr.bf16.mxu1 %v5868_v2  ;;  %v291_v2 = vld [vmem:[#allocation2 + $0x1d0] sm:$0xff]  ;;  %v5888_v50 = vpack.c.bf16 %v1277_v43, %v1276_v42  ;;  %v1301_v42 = vld [vmem:[%s6349_s18 + $0x1f58] sm:$0xff]  ;;  %v1286_v43 = vld [vmem:[%s6349_s18 + $0x1ee0] sm:$0xff] }
 0x23f   : > { %5839 = vmatpush3.bf16.msra.mxu0 %v5838_v8  ;;  %v5920_v8 = vpack.c.bf16 %v1309_v45, %v1308_v44  ;;  %v1287_v44 = vld [vmem:[%s6349_s18 + $0x1ee8] sm:$0xff]  ;;  %v1318_v45 = vld [vmem:[%s6349_s18 + $0x1fe0] sm:$0xff] }
 0x240   : > { %5841 = vmatprep.subr.bf16.mxu0 %v5840_v56  ;;  %v1278_v56 = vld [vmem:[%s6349_s18 + $0x1ea0] sm:$0xff] }
 0x241   : > { %5871 = vmatpush3.bf16.msra.mxu1 %v5870_v55  ;;  %v4286_v9 = vpop.f32.mrb[14].mxu0  ;;  %v1293_v55 = vld [vmem:[%s6349_s18 + $0x1f18] sm:$0xff]  ;;  %v5892_v0 = vpack.c.bf16 %v1279_v57, %v1278_v56  ;;  %v1288_v56 = vld [vmem:[%s6349_s18 + $0x1ef0] sm:$0xff] }
 0x242   : > { %5873 = vmatprep.subr.bf16.mxu1 %v5872_v60  ;;  %v4287_v13 = vpop.f32.mrb[15].mxu0  ;;  %v294_v60 = vld [vmem:[#allocation2 + $0x1e8] sm:$0xff]  ;;  %v5922_v63 = vpack.c.bf16 %v1293_v55, %v1292_v54  ;;  %v1303_v55 = vld [vmem:[%s6349_s18 + $0x1f68] sm:$0xff]  ;;  %v1289_v57 = vld [vmem:[%s6349_s18 + $0x1ef8] sm:$0xff] }
 0x243   : > { %v4321_v14 = vpop.f32.mrb[14].mxu1  ;;  %v4288_v17 = vadd.f32 %v4287_v13, %v4286_v9  ;;  %5843 = vmatpush3.bf16.msra.mxu0 %v5842_v3  ;;  %v1263_v3 = vld [vmem:[%s6349_s18 + $0x1e28] sm:$0xff]  ;;  %v1312_v9 = vld [vmem:[%s6349_s18 + $0x1fb0] sm:$0xff] }
 0x244   : > { %v4322_v18 = vpop.f32.mrb[15].mxu1  ;;  %5845 = vmatprep.subr.bf16.mxu0 %v5844_v4  ;;  %v5924_v4 = vpack.c.bf16 %v1311_v59, %v1310_v58  ;;  %v5894_v10 = vpack.c.bf16 %v1263_v3, %v1262_v1  ;;  %v1264_v13 = vld [vmem:[%s6349_s18 + $0x1e30] sm:$0xff]  ;;  %v5942_v3 = vpack.c.bf16 %v1303_v55, %v1302_v52 }
 0x245   : > { %v4323_v20 = vadd.f32 %v4322_v18, %v4321_v14  ;;  %5875 = vmatpush3.bf16.msra.mxu1 %v5874_v21  ;;  %v2392_v26 = vadd.f32 %v4288_v17, %v7275_v53  ;;  %v5882_v53 = vpack.c.bf16 %v1241_v47, %v1240_v25  ;;  %v1294_v21 = vld [vmem:[%s6349_s18 + $0x1f20] sm:$0xff]  ;;  %v1265_v14 = vld [vmem:[%s6349_s18 + $0x1e38] sm:$0xff] }
 0x246   : > { %5877 = vmatprep.subr.bf16.mxu1 %v5876_v27  ;;  %v1313_v27 = vld [vmem:[%s6349_s18 + $0x1fb8] sm:$0xff]  ;;  %v5926_v11 = vpack.c.bf16 %v1295_v5, %v1294_v21  ;;  %v1282_v18 = vld [vmem:[%s6349_s18 + $0x1ec0] sm:$0xff]  ;;  %v5912_v21 = vpack.c.bf16 %v1289_v57, %v1288_v56 }
 0x247   : > { %v7342_v33 = vadd.f32 %v4323_v20, %v2392_v26  ;;  %5847 = vmatpush3.bf16.msra.mxu0 %v5846_v19  ;;  %v5928_v16 = vpack.c.bf16 %v1313_v27, %v1312_v9  ;;  %v1297_v17 = vld [vmem:[%s6349_s18 + $0x1f38] sm:$0xff]  ;;  %v1283_v19 = vld [vmem:[%s6349_s18 + $0x1ec8] sm:$0xff]  ;;  %v1314_v20 = vld [vmem:[%s6349_s18 + $0x1fc0] sm:$0xff] }
 0x248   : > { %5849 = vmatprep.subr.bf16.mxu0 %v5848_v40  ;;  %v5898_v40 = vpack.c.bf16 %v1265_v14, %v1264_v13  ;;  %v5930_v23 = vpack.c.bf16 %v1297_v17, %v1296_v15  ;;  %v5900_v24 = vpack.c.bf16 %v1283_v19, %v1282_v18  ;;  %v1266_v25 = vld [vmem:[%s6349_s18 + $0x1e40] sm:$0xff]  ;;  %v1267_v26 = vld [vmem:[%s6349_s18 + $0x1e48] sm:$0xff]  ;;  %v1273_v5 = vld [vmem:[%s6349_s18 + $0x1e78] sm:$0xff] }
 0x249   : > { %5879 = vmatpush3.bf16.msra.mxu1 %v5878_v22  ;;  %v1315_v22 = vld [vmem:[%s6349_s18 + $0x1fc8] sm:$0xff]  ;;  %v1304_v9 = vld [vmem:[%s6349_s18 + $0x1f70] sm:$0xff]  ;;  %v1305_v27 = vld [vmem:[%s6349_s18 + $0x1f78] sm:$0xff] }
 0x24a   : > { %5881 = vmatprep.subr.bf16.mxu1 %v5880_v28  ;;  %v1298_v28 = vld [vmem:[%s6349_s18 + $0x1f40] sm:$0xff]  ;;  %v5932_v47 = vpack.c.bf16 %v1315_v22, %v1314_v20  ;;  %v1323_v14 = vld [vmem:[%s6349_s18 + $0x2008] sm:$0xff]  ;;  %v293_v15 = vld [vmem:[#allocation2 + $0x1e0] sm:$0xff] }
 0x24b   : > { %5851 = vmatpush3.bf16.msra.mxu0 %v5850_v34  ;;  %v1317_v34 = vld [vmem:[%s6349_s18 + $0x1fd8] sm:$0xff]  ;;  %v1322_v13 = vld [vmem:[%s6349_s18 + $0x2000] sm:$0xff]  ;;  %v295_v17 = vld [vmem:[#allocation2 + $0x1f0] sm:$0xff] }
 0x24c   : > { %5885 = vmatprep.subr.bf16.mxu0 %v5884_v35  ;;  %v5934_v35 = vpack.c.bf16 %v1299_v29, %v1298_v28  ;;  %v5936_v41 = vpack.c.bf16 %v1317_v34, %v1316_v32  ;;  %v1324_v18 = vld [vmem:[%s6349_s18 + $0x2010] sm:$0xff]  ;;  %v1325_v19 = vld [vmem:[%s6349_s18 + $0x2018] sm:$0xff]  ;;  %v1326_v22 = vld [vmem:[%s6349_s18 + $0x2020] sm:$0xff] }
 0x24d   : > { %5883 = vmatpush3.bf16.msra.mxu1 %v5882_v53  ;;  %v5902_v53 = vpack.c.bf16 %v1267_v26, %v1266_v25  ;;  %v5952_v20 = vpack.c.bf16 %v1325_v19, %v1324_v18  ;;  %v1328_v25 = vld [vmem:[%s6349_s18 + $0x2030] sm:$0xff]  ;;  %v1329_v26 = vld [vmem:[%s6349_s18 + $0x2038] sm:$0xff]  ;;  %v1331_v29 = vld [vmem:[%s6349_s18 + $0x2048] sm:$0xff] }
 0x24e   : > { %5917 = vmatprep.subr.bf16.mxu1 %v5916_v39  ;;  %3370 = vmatmul.mubr.f32.vlgmr.msra.gmra.mrb[28].mxu0 %v289_v46  ;;  %v1300_v39 = vld [vmem:[%s6349_s18 + $0x1f50] sm:$0xff]  ;;  %v1319_v46 = vld [vmem:[%s6349_s18 + $0x1fe8] sm:$0xff]  ;;  %v5958_v28 = vpack.c.bf16 %v1329_v26, %v1328_v25  ;;  %v1333_v32 = vld [vmem:[%s6349_s18 + $0x2058] sm:$0xff] }
 0x24f   : > { %5887 = vmatpush3.bf16.msra.mxu0 %v5886_v48  ;;  %3509 = vmatprep.mubr.f32.mxu0 %v294_v60  ;;  %v5906_v48 = vpack.c.bf16 %v1269_v38, %v1268_v37  ;;  %v1320_v60 = vld [vmem:[%s6349_s18 + $0x1ff0] sm:$0xff]  ;;  %v5964_v34 = vpack.c.bf16 %v1333_v32, %v1332_v31 }
 0x250   : > { %3440 = vmatmul.mubr.f32.vlgmr.msra.gmra.mrb[28].mxu1 %v291_v2  ;;  %5889 = vmatprep.subr.bf16.mxu0 %v5888_v50  ;;  %v5938_v2 = vpack.c.bf16 %v1301_v42, %v1300_v39  ;;  %v1270_v50 = vld [vmem:[%s6349_s18 + $0x1e60] sm:$0xff]  ;;  %v297_v39 = vld [vmem:[#allocation2 + $0x200] sm:$0xff] }
 0x251   : > { %5919 = vmatpush3.bf16.msra.mxu1 %v5918_v49  ;;  %3579 = vmatprep.mubr.f32.mxu1 %v296_v62  ;;  %v5908_v49 = vpack.c.bf16 %v1287_v44, %v1286_v43 }
 0x252   : > { %5921 = vmatprep.subr.bf16.mxu1 %v5920_v8  ;;  %v5940_v8 = vpack.c.bf16 %v1319_v46, %v1318_v45 }
 0x253   : > { %5891 = vmatpush3.bf16.msra.mxu0 %v5890_v61  ;;  %v1321_v61 = vld [vmem:[%s6349_s18 + $0x1ff8] sm:$0xff] }
 0x254   : > { %5893 = vmatprep.subr.bf16.mxu0 %v5892_v0  ;;  %v5910_v0 = vpack.c.bf16 %v1271_v51, %v1270_v50  ;;  %v5944_v7 = vpack.c.bf16 %v1321_v61, %v1320_v60 }
 0x255   : > { %5923 = vmatpush3.bf16.msra.mxu1 %v5922_v63 }
 0x256   : > { %5925 = vmatprep.subr.bf16.mxu1 %v5924_v4  ;;  %v1272_v4 = vld [vmem:[%s6349_s18 + $0x1e70] sm:$0xff] }
 0x257   : > { %5895 = vmatpush3.bf16.msra.mxu0 %v5894_v10 }
 0x258   : > { %5897 = vmatprep.subr.bf16.mxu0 %v5896_v12  ;;  %v5946_v12 = vpack.c.bf16 %v1305_v27, %v1304_v9 }
 0x259   : > { %5927 = vmatpush3.bf16.msra.mxu1 %v5926_v11  ;;  %v5914_v11 = vpack.c.bf16 %v1273_v5, %v1272_v4 }
 0x25a   : > { %5929 = vmatprep.subr.bf16.mxu1 %v5928_v16  ;;  %v6162_v16 = vmov 0.0|0.0  }
 0x25b   : > { %5899 = vmatpush3.bf16.msra.mxu0 %v5898_v40  ;;  %v1327_v40 = vld [vmem:[%s6349_s18 + $0x2028] sm:$0xff] }
 0x25c   : > { %5901 = vmatprep.subr.bf16.mxu0 %v5900_v24  ;;  %v5955_v24 = vpack.c.bf16 %v1327_v40, %v1326_v22 }
 0x25d   : > { %5931 = vmatpush3.bf16.msra.mxu1 %v5930_v23  ;;  %v6164_v23 = vmov 0.0  }
 0x25e   : > { %5933 = vmatprep.subr.bf16.mxu1 %v5932_v47  ;;  %v1330_v47 = vld [vmem:[%s6349_s18 + $0x2040] sm:$0xff] }
 0x25f   : > { %5903 = vmatpush3.bf16.msra.mxu0 %v5902_v53  ;;  %v5961_v30 = vpack.c.bf16 %v1331_v29, %v1330_v47 }
 0x260   : > { %5905 = vmatprep.subr.bf16.mxu0 %v5904_v36 }
 0x261   : > { %5935 = vmatpush3.bf16.msra.mxu1 %v5934_v35  ;;  %v4356_v54 = vpop.f32.mrb[16].mxu0 }
 0x262   : > { %5937 = vmatprep.subr.bf16.mxu1 %v5936_v41  ;;  %v4357_v58 = vpop.f32.mrb[17].mxu0 }
 0x263   : > { %v4391_v59 = vpop.f32.mrb[16].mxu1  ;;  %v4358_v62 = vadd.f32 %v4357_v58, %v4356_v54  ;;  %5907 = vmatpush3.bf16.msra.mxu0 %v5906_v48 }
 0x264   : > { %v4392_v63 = vpop.f32.mrb[17].mxu1  ;;  %5909 = vmatprep.subr.bf16.mxu0 %v5908_v49 }
 0x265   : > { %v4393_v1 = vadd.f32 %v4392_v63, %v4391_v59  ;;  %5939 = vmatpush3.bf16.msra.mxu1 %v5938_v2  ;;  %v2532_v6 = vadd.f32 %v4358_v62, %v7342_v33  ;;  %v5949_v33 = vpack.c.bf16 %v1323_v14, %v1322_v13 }
 0x266   : > { %5941 = vmatprep.subr.bf16.mxu1 %v5940_v8 }
 0x267   : > { %v2602_v10 = vadd.f32 %v4393_v1, %v2532_v6  ;;  %5911 = vmatpush3.bf16.msra.mxu0 %v5910_v0 }
 0x268   : > { %5913 = vmatprep.subr.bf16.mxu0 %v5912_v21 }
 0x269   : > { %5943 = vmatpush3.bf16.msra.mxu1 %v5942_v3 }
 0x26a   : > { %5945 = vmatprep.subr.bf16.mxu1 %v5944_v7 }
 0x26b   : > { %5915 = vmatpush3.bf16.msra.mxu0 %v5914_v11 }
 0x26c   : > { %5948 = vmatprep.subr.bf16.mxu0 %v6162_v16 }
 0x26d   : > { %5947 = vmatpush3.bf16.msra.mxu1 %v5946_v12 }
 0x26e   : > { %3510 = vmatmul.mubr.f32.vlgmr.msra.gmra.mrb[30].mxu0 %v293_v15 }
 0x26f   : > { %5950 = vmatpush3.bf16.msra.mxu0 %v5949_v33  ;;  %4921 = vmatprep.mubr.msk.f32.mxu0 %vm6163_vm0, %v6164_v23 }
 0x270   : > { %3580 = vmatmul.mubr.f32.vlgmr.msra.gmra.mrb[30].mxu1 %v295_v17  ;;  %5951 = vmatprep.subr.bf16.mxu0 %v6162_v16 }
 0x273   : > { %5953 = vmatpush3.bf16.msra.mxu0 %v5952_v20 }
 0x274   : > { %5954 = vmatprep.subr.bf16.mxu0 %v6162_v16 }
 0x277   : > { %5956 = vmatpush3.bf16.msra.mxu0 %v5955_v24 }
 0x278   : > { %5957 = vmatprep.subr.bf16.mxu0 %v6162_v16 }
 0x27b   : > { %5959 = vmatpush3.bf16.msra.mxu0 %v5958_v28 }
 0x27c   : > { %5960 = vmatprep.subr.bf16.mxu0 %v6162_v16 }
 0x27f   : > { %5962 = vmatpush3.bf16.msra.mxu0 %v5961_v30 }
 0x280   : > { %5963 = vmatprep.subr.bf16.mxu0 %v6162_v16 }
 0x281   : > { %v4426_v53 = vpop.f32.mrb[18].mxu0 }
 0x282   : > { %v4427_v35 = vpop.f32.mrb[19].mxu0 }
 0x283   : > { %v4461_v36 = vpop.f32.mrb[18].mxu1  ;;  %v4428_v37 = vadd.f32 %v4427_v35, %v4426_v53  ;;  %5965 = vmatpush3.bf16.msra.mxu0 %v5964_v34 }
 0x284   : > { %v4462_v38 = vpop.f32.mrb[19].mxu1 }
 0x285   : > { %v4463_v41 = vadd.f32 %v4462_v38, %v4461_v36  ;;  %v2672_v42 = vadd.f32 %v4428_v37, %v2602_v10 }
 0x286   : > { %4922 = vmatmul.mubr.msk.f32.vlgmr.msra.gmra.mrb[32].mxu0 %vm1341_vm1, %v297_v39 }
 0x287   : > { %v2742_v43 = vadd.f32 %v4463_v41, %v2672_v42 }
 0x2a1   : > { %v4496_v44 = vpop.f32.mrb[20].mxu0 }
 0x2a2   : > { %v4497_v45 = vpop.f32.mrb[21].mxu0 }
 0x2a3   : > { %v4531_v46 = vpop.f32.mrb[20].mxu1  ;;  %v4498_v48 = vadd.f32 %v4497_v45, %v4496_v44 }
 0x2a4   : > { %v4532_v2 = vpop.f32.mrb[21].mxu1 }
 0x2a5   : > { %v4533_v49 = vadd.f32 %v4532_v2, %v4531_v46  ;;  %v2812_v50 = vadd.f32 %v4498_v48, %v2742_v43 }
 0x2a7   : > { %v2882_v51 = vadd.f32 %v4533_v49, %v2812_v50 }
 0x2c1   : > { %v4566_v52 = vpop.f32.mrb[22].mxu0 }
 0x2c2   : > { %v4567_v54 = vpop.f32.mrb[23].mxu0 }
 0x2c3   : > { %v4601_v8 = vpop.f32.mrb[22].mxu1  ;;  %v4568_v55 = vadd.f32 %v4567_v54, %v4566_v52 }
 0x2c4   : > { %v4602_v56 = vpop.f32.mrb[23].mxu1 }
 0x2c5   : > { %v4603_v57 = vadd.f32 %v4602_v56, %v4601_v8  ;;  %v2952_v58 = vadd.f32 %v4568_v55, %v2882_v51 }
 0x2c7   : > { %v3022_v59 = vadd.f32 %v4603_v57, %v2952_v58 }
 0x2e1   : > { %v4636_v60 = vpop.f32.mrb[24].mxu0 }
 0x2e2   : > { %v4637_v61 = vpop.f32.mrb[25].mxu0 }
 0x2e3   : > { %v4671_v62 = vpop.f32.mrb[24].mxu1  ;;  %v4638_v63 = vadd.f32 %v4637_v61, %v4636_v60 }
 0x2e4   : > { %v4672_v0 = vpop.f32.mrb[25].mxu1 }
 0x2e5   : > { %v4673_v1 = vadd.f32 %v4672_v0, %v4671_v62  ;;  %v3092_v3 = vadd.f32 %v4638_v63, %v3022_v59 }
 0x2e7   : > { %v3162_v21 = vadd.f32 %v4673_v1, %v3092_v3 }
 0x301   : > { %v4706_v4 = vpop.f32.mrb[26].mxu0 }
 0x302   : > { %v4707_v5 = vpop.f32.mrb[27].mxu0 }
 0x303   : > { %v4741_v6 = vpop.f32.mrb[26].mxu1  ;;  %v4708_v7 = vadd.f32 %v4707_v5, %v4706_v4 }
 0x304   : > { %v4742_v9 = vpop.f32.mrb[27].mxu1 }
 0x305   : > { %v4743_v27 = vadd.f32 %v4742_v9, %v4741_v6  ;;  %v3232_v10 = vadd.f32 %v4708_v7, %v3162_v21 }
 0x307   : > { %v3302_v11 = vadd.f32 %v4743_v27, %v3232_v10 }
 0x321   : > { %v4776_v12 = vpop.f32.mrb[28].mxu0 }
 0x322   : > { %v4777_v13 = vpop.f32.mrb[29].mxu0 }
 0x323   : > { %v4811_v14 = vpop.f32.mrb[28].mxu1  ;;  %v4778_v15 = vadd.f32 %v4777_v13, %v4776_v12 }
 0x324   : > { %v4812_v33 = vpop.f32.mrb[29].mxu1 }
 0x325   : > { %v4813_v16 = vadd.f32 %v4812_v33, %v4811_v14  ;;  %v3372_v17 = vadd.f32 %v4778_v15, %v3302_v11 }
 0x327   : > { %v3442_v18 = vadd.f32 %v4813_v16, %v3372_v17 }
 0x341   : > { %v4846_v19 = vpop.f32.mrb[30].mxu0 }
 0x342   : > { %v4847_v20 = vpop.f32.mrb[31].mxu0 }
 0x343   : > { %v4881_v22 = vpop.f32.mrb[30].mxu1  ;;  %v4848_v40 = vadd.f32 %v4847_v20, %v4846_v19 }
 0x344   : > { %v4882_v23 = vpop.f32.mrb[31].mxu1 }
 0x345   : > { %v4883_v24 = vadd.f32 %v4882_v23, %v4881_v22  ;;  %v3512_v25 = vadd.f32 %v4848_v40, %v3442_v18 }
 0x347   : > { %v3582_v26 = vadd.f32 %v4883_v24, %v3512_v25 }
 0x359   : > { %v3651_v28 = vpop.f32.mrb[32].mxu0 }
 0x35a   : > { %v3652_v47 = vadd.f32 %v3651_v28, %v3582_v26  ;;  %v4923_v29 = vpop.f32.mrb[33].mxu0 }
 0x35c   : > { %v3655_v30 = vmax.f32 %v3652_v47, 0.0 }
 0x35e   : > { %3656 = vst [vmem:[%s232_s20] sm:$0xff] %v3655_v30 }
 0x35f PF: > { %p14_p4 = scmp.ge.s32.totalorder %s6206_s16, 10   ;;  %s7452_s12 = smov %s6147_s13 }
 0x360   : > { %s7453_s13 = smov %s6151_s14  ;;  %s7454_s14 = smov %s6216_s19 }
 0x361   : > { %s7455_s15 = smov %s6206_s16  ;;  %16 = sbr.rel (!%p14_p4) target bundleno = 4 (0x4), region = 88 }
 0x368   :  { %3676 = vsyncpa [#allocation3], 1 }
 0x369   :  { %3678 = vsyncpa [#allocation3 + $0x1], 1 }
 0x36a   :  { %3679 = vsyncpa [#allocation5], 1 }
 0x36b   :  { %3681 = vsyncpa [#allocation5 + $0x1], 1 }

</bundles_post_ra>
